<compile_context>
chip_gen: v7x
topology: tpu7x:2x2x1
jax: 0.10.0
libtpu: 0.0.40
codegen_flags: <defaults>
</compile_context>

<pallas_src>
import functools

import numpy as np
import jax
import jax.numpy as jnp
from jax.experimental import pallas as pl
from jax.experimental.pallas import tpu as pltpu

BN_EPS = 1e-5
_HIGHEST = jax.lax.Precision.HIGHEST
_VMEM = pl.BlockSpec(memory_space=pltpu.MemorySpace.VMEM)
_GATHER_CHUNK = 1024   # bounds the (chunk, M_out) one-hot tile in VMEM


# -----------------------------------------------------------------------------
# Host-side helpers (shared by the wrapper precompute and the pure-JAX reference)
# -----------------------------------------------------------------------------
def _nearest_idx(out_size, in_size):
    # F.interpolate(mode='nearest'): src = floor(dst * in / out)
    return np.floor(np.arange(out_size) * (in_size / out_size)).astype(np.int32)


def _unnormalize_reflect(coord, size):
    """[-1, 1] grid coordinate -> source pixel coordinate, reflection padding,
    align_corners=False (PyTorch grid_sample defaults + Decoder's padding)."""
    size_f = float(size)
    c = (coord + 1.0) * (size_f * 0.5) - 0.5          # align_corners=False
    lo, span = -0.5, size_f                            # reflect on [-0.5, size-0.5]
    c = jnp.abs(c - lo)
    q = jnp.floor(c / span)
    extra = c - q * span
    is_even = (jnp.floor(q * 0.5) * 2.0) == q          # parity without fmod
    c = jnp.where(is_even, extra + lo, span - extra + lo)
    return jnp.clip(c, 0.0, size_f - 1.0)              # PyTorch clips after reflect


def _corner_indices(guidance, h, w):
    """Bilinear corner indices/weights for grid_sample(feature(h, w),
    nearest-resize(guidance)).  Returns idx (B,4,h*w) int32, wgt (B,4,h*w) f32."""
    bsz, hg, wg, _ = guidance.shape
    flow = guidance[:, _nearest_idx(h, hg)][:, :, _nearest_idx(w, wg)]   # (B,h,w,2)
    flow = flow.reshape(bsz, h * w, 2)
    ix = _unnormalize_reflect(flow[..., 0], w)          # x -> width coordinate
    iy = _unnormalize_reflect(flow[..., 1], h)
    x0f, y0f = jnp.floor(ix), jnp.floor(iy)
    wx, wy = ix - x0f, iy - y0f
    x0, y0 = x0f.astype(jnp.int32), y0f.astype(jnp.int32)
    x1 = jnp.minimum(x0 + 1, w - 1)   # only out of range when its weight is 0
    y1 = jnp.minimum(y0 + 1, h - 1)
    idx = jnp.stack([y0 * w + x0, y0 * w + x1, y1 * w + x0, y1 * w + x1], axis=1)
    wgt = jnp.stack([(1 - wx) * (1 - wy), wx * (1 - wy),
                     (1 - wx) * wy, wx * wy], axis=1)
    return idx.astype(jnp.int32), wgt.astype(jnp.float32)


# -----------------------------------------------------------------------------
# The fused decoder kernel
# -----------------------------------------------------------------------------
def _decoder_fused_kernel(*refs, num_blocks, level_hw):
    """Whole Decoder.forward for the full batch, everything VMEM-resident.

    Input refs, in order (n = num_blocks, levels fine -> coarse):
      skips[0..n-1]                  (B, C_l, H_l*W_l)
      (idx_l, wgt_l) for each level  (B, 4, H_l*W_l)   bilinear corners
      (w, b, gamma, beta) per block  (Cout,Cin) (Cout,1) (Cout,1) (Cout,1)
      refine w, refine b             (Cout, 2*Cout) (Cout, 1)
    Output refs: target_def (B, C_0, M_0), refine_out (B, Cout, M_0)
    """
    n = num_blocks
    skips = refs[:n]
    corners = refs[n:3 * n]
    blocks = refs[3 * n:7 * n]
    wr_ref, br_ref = refs[7 * n:7 * n + 2]
    td_ref, rf_ref = refs[7 * n + 2:7 * n + 4]
    batch = skips[0].shape[0]

    def deform(level):
        """grid_sample(skips[level], flow) -> list over batch of (C, M) f32."""
        feat_ref = skips[level]
        idx_ref, wgt_ref = corners[2 * level], corners[2 * level + 1]
        m = feat_ref.shape[2]
        outs = []
        for b in range(batch):
            feat, idx, wgt = feat_ref[b], idx_ref[b], wgt_ref[b]  # (C,M)(4,M)(4,M)
            acc = jnp.zeros((feat.shape[0], m), jnp.float32)
            # Chunk the contraction axis: peak VMEM is O(chunk*M), not O(M^2),
            # so the kernel stays inside v7x's 64 MiB VMEM at large H*W.
            for s in range(0, m, _GATHER_CHUNK):
                e = min(s + _GATHER_CHUNK, m)
                rows = jax.lax.broadcasted_iota(jnp.int32, (e - s, m), 0) + s
                # one-hot interpolation matrix, built once as a single fused
                # expression (no 4-pass read-modify-write of the buffer)
                g = (wgt[0:1] * (rows == idx[0:1]).astype(jnp.float32) +
                     wgt[1:2] * (rows == idx[1:2]).astype(jnp.float32) +
                     wgt[2:3] * (rows == idx[2:3]).astype(jnp.float32) +
                     wgt[3:4] * (rows == idx[3:4]).astype(jnp.float32))
                acc = acc + jnp.dot(feat[:, s:e], g,
                                    preferred_element_type=jnp.float32,
                                    precision=_HIGHEST)
            outs.append(acc)
        return outs

    def bn_relu(acc, gamma_ref, beta_ref, m):
        """BatchNorm2d (training-mode batch stats, centered two-pass) + ReLU."""
        inv = 1.0 / float(batch * m)
        s = acc[0].sum(axis=-1, keepdims=True)
        for a in acc[1:]:
            s = s + a.sum(axis=-1, keepdims=True)
        mean = s * inv                                            # (C, 1)
        d0 = acc[0] - mean
        v = (d0 * d0).sum(axis=-1, keepdims=True)
        for a in acc[1:]:
            d = a - mean
            v = v + (d * d).sum(axis=-1, keepdims=True)
        scale = gamma_ref[...] * jax.lax.rsqrt(v * inv + BN_EPS)  # (C, 1)
        shift = beta_ref[...] - mean * scale
        return [jnp.maximum(a * scale + shift, 0.0) for a in acc]

    def conv(xs, w_ref, b_ref):
        w, b = w_ref[...], b_ref[...]
        return [jnp.dot(w, x, preferred_element_type=jnp.float32,
                        precision=_HIGHEST) + b for x in xs]

    def cat_conv(x1s, x2s, w_ref, b_ref):
        """1x1 conv of torch.cat([x1, x2], C) -- the concat is fused as split-K."""
        c1 = x1s[0].shape[0]
        w, b = w_ref[...], b_ref[...]
        return [jnp.dot(w[:, :c1], x1, preferred_element_type=jnp.float32,
                        precision=_HIGHEST)
                + jnp.dot(w[:, c1:], x2, preferred_element_type=jnp.float32,
                          precision=_HIGHEST) + b
                for x1, x2 in zip(x1s, x2s)]

    def resize_nearest(xs, hw_in, hw_out):
        """F.interpolate(mode='nearest') as a static in-kernel one-hot matmul."""
        if hw_in == hw_out:
            return xs
        (h_in, w_in), (h_out, w_out) = hw_in, hw_out
        m_in, m_out = h_in * w_in, h_out * w_out
        cols = jax.lax.broadcasted_iota(jnp.int32, (m_in, m_out), 1).astype(jnp.float32)
        rows = jax.lax.broadcasted_iota(jnp.int32, (m_in, m_out), 0).astype(jnp.float32)
        oh = jnp.floor(cols / float(w_out))
        ow = cols - oh * float(w_out)
        src = (jnp.floor(oh * (h_in / h_out)) * float(w_in)
               + jnp.floor(ow * (w_in / w_out)))
        u = (rows == src).astype(jnp.float32)
        return [jnp.dot(x, u, preferred_element_type=jnp.float32,
                        precision=_HIGHEST) for x in xs]

    # ---- Decoder.forward ----
    d_last = deform(n - 1)                              # deform_feature(skips[-1])
    target_def = d_last if n == 1 else None
    w0, b0, g0, bt0 = blocks[0:4]
    cur_hw = level_hw[n - 1]
    inter = bn_relu(conv(d_last, w0, b0), g0, bt0, cur_hw[0] * cur_hw[1])
    for i in range(1, n):
        tgt_hw = level_hw[n - 1 - i]
        inter = resize_nearest(inter, cur_hw, tgt_hw)
        cur_hw = tgt_hw
        skip_def = deform(n - 1 - i)
        if n - 1 - i == 0:
            target_def = skip_def                       # == deform_feature(skips[0])
        wi, bi, gi, bti = blocks[4 * i:4 * i + 4]
        inter = bn_relu(cat_conv(inter, skip_def, wi, bi), gi, bti,
                        tgt_hw[0] * tgt_hw[1])

    # refine(cat([resize(inter, skips[0].shape), target_def])) -- its result is
    # discarded by the module, but computed here so the full forward is exercised.
    res = resize_nearest(inter, cur_hw, level_hw[0])
    c1 = res[0].shape[0]
    wr, br = wr_ref[...], br_ref[...]
    for b in range(batch):
        td_ref[b] = target_def[b].astype(td_ref.dtype)
        rf_ref[b] = (jnp.dot(wr[:, :c1], res[b], preferred_element_type=jnp.float32,
                             precision=_HIGHEST)
                     + jnp.dot(wr[:, c1:], target_def[b],
                               preferred_element_type=jnp.float32,
                               precision=_HIGHEST)
                     + br).astype(rf_ref.dtype)


# -----------------------------------------------------------------------------
# Wrapper: one pallas_call for the whole forward
# -----------------------------------------------------------------------------
def _decoder_apply(params, skips_nchw, guidance):
    blocks = params["blocks"]
    n = len(blocks)
    assert len(skips_nchw) == n, "Decoder expects one skip per block"
    bsz = skips_nchw[0].shape[0]
    level_hw = tuple((int(s.shape[2]), int(s.shape[3])) for s in skips_nchw)
    c0 = skips_nchw[0].shape[1]
    c_out = params["refine"]["w"].shape[0]
    m0 = level_hw[0][0] * level_hw[0][1]

    inputs = [s.reshape(s.shape[0], s.shape[1], -1) for s in skips_nchw]
    for (h, w) in level_hw:
        idx, wgt = _corner_indices(guidance, h, w)       # tiny XLA precompute
        inputs += [idx, wgt]
    for blk in blocks:
        inputs += [blk["w"], blk["b"].reshape(-1, 1),
                   blk["gamma"].reshape(-1, 1), blk["beta"].reshape(-1, 1)]
    inputs += [params["refine"]["w"], params["refine"]["b"].reshape(-1, 1)]

    kernel = functools.partial(_decoder_fused_kernel,
                               num_blocks=n, level_hw=level_hw)
    target_def, refine_out = pl.pallas_call(
        kernel,
        out_shape=(jax.ShapeDtypeStruct((bsz, c0, m0), jnp.float32),
                   jax.ShapeDtypeStruct((bsz, c_out, m0), jnp.float32)),
        in_specs=[_VMEM] * len(inputs),
        out_specs=(_VMEM, _VMEM),
    )(*inputs)
    h0, w0 = level_hw[0]
    return (target_def.reshape(bsz, c0, h0, w0),
            refine_out.reshape(bsz, c_out, h0, w0))


@jax.jit
def decoder_forward(params, skips, guidance):
    """Matches Decoder.forward exactly: returns target_def (refine is discarded)."""
    target_def, _ = _decoder_apply(params, skips, guidance)
    return target_def


@jax.jit
def decoder_forward_with_refine(params, skips, guidance):
    """Same forward, also returning the (otherwise dead) refine output."""
    return _decoder_apply(params, skips, guidance)


# -----------------------------------------------------------------------------
# Pure-JAX reference of the whole forward (self-check)
# -----------------------------------------------------------------------------
def _decoder_ref(params, skips, guidance):
    def deform(s):
        bsz, c, h, w = s.shape
        idx, wgt = _corner_indices(guidance, h, w)
        feat = s.reshape(bsz, c, h * w)
        out = jnp.zeros_like(feat)
        for k in range(4):
            gathered = jnp.take_along_axis(
                feat, jnp.broadcast_to(idx[:, k][:, None, :], feat.shape), axis=2)
            out = out + wgt[:, k][:, None, :] * gathered
        return out.reshape(bsz, c, h, w)

    def conv1x1(x, w, b):
        return (jnp.einsum("oi,bihw->bohw", w, x, precision=_HIGHEST)
                + b[None, :, None, None])

    def block(x, p):
        y = conv1x1(x, p["w"], p["b"])
        mu = jnp.mean(y, axis=(0, 2, 3), keepdims=True)
        var = jnp.mean((y - mu) ** 2, axis=(0, 2, 3), keepdims=True)
        y = ((y - mu) * jax.lax.rsqrt(var + BN_EPS) * p["gamma"][None, :, None, None]
             + p["beta"][None, :, None, None])
        return jnp.maximum(y, 0.0)

    def resize(x, h, w):
        return x[:, :, _nearest_idx(h, x.shape[2])][:, :, :, _nearest_idx(w, x.shape[3])]

    blocks = params["blocks"]
    n = len(blocks)
    inter = block(deform(skips[-1]), blocks[0])
    for i in range(1, n):
        tgt = skips[-1 - i]
        inter = resize(inter, tgt.shape[2], tgt.shape[3])
        inter = block(jnp.concatenate([inter, deform(tgt)], axis=1), blocks[i])
    res = resize(inter, skips[0].shape[2], skips[0].shape[3])
    target_def = deform(skips[0])
    refine = conv1x1(jnp.concatenate([res, target_def], axis=1),
                     params["refine"]["w"], params["refine"]["b"])
    return target_def, refine


# -----------------------------------------------------------------------------
# Parameters
# -----------------------------------------------------------------------------
def init_decoder_params(key, inter_channels, out_channels, num_blocks=3):
    """Deterministic synthetic parameters.  1x1 conv weights stored as (Cout, Cin)."""
    blocks = []
    for i in range(num_blocks):
        cin = inter_channels * (1 if i == 0 else 2)
        cout = out_channels if i == num_blocks - 1 else inter_channels
        key, kw, kb, kg, kbt = jax.random.split(key, 5)
        blocks.append(dict(
            w=0.2 * jax.random.normal(kw, (cout, cin), jnp.float32),
            b=0.1 * jax.random.normal(kb, (cout,), jnp.float32),
            gamma=1.0 + 0.1 * jax.random.normal(kg, (cout,), jnp.float32),
            beta=0.1 * jax.random.normal(kbt, (cout,), jnp.float32),
        ))
    key, kw, kb = jax.random.split(key, 3)
    refine = dict(
        w=0.2 * jax.random.normal(kw, (out_channels, out_channels * 2), jnp.float32),
        b=0.1 * jax.random.normal(kb, (out_channels,), jnp.float32),
    )
    return dict(blocks=blocks, refine=refine)


if __name__ == "__main__":
    key = jax.random.PRNGKey(0)
    B = 2
    # refine expects out_channels*2 = out_channels + skips[0].channels, so the
    # module implicitly requires inter_channels == out_channels.
    inter_channels = out_channels = 8

    key, k0, k1, k2, kg, kp = jax.random.split(key, 6)
    # skips: high -> low resolution pyramid, PyTorch layout [B, C, H, W]
    skips = [
        jax.random.normal(k0, (B, inter_channels, 16, 16), jnp.float32),
        jax.random.normal(k1, (B, inter_channels, 8, 8), jnp.float32),
        jax.random.normal(k2, (B, inter_channels, 4, 4), jnp.float32),
    ]
    # guidance: [B, H, W, 2] normalized coordinates (slightly outside [-1, 1]
    # to exercise the reflection padding)
    guidance = jax.random.uniform(kg, (B, 16, 16, 2), jnp.float32, -1.1, 1.1)
    params = init_decoder_params(kp, inter_channels, out_channels, num_blocks=3)

    target_def, refine_out = jax.block_until_ready(
        decoder_forward_with_refine(params, skips, guidance))
    assert target_def.shape == (B, inter_channels, 16, 16), target_def.shape
    assert refine_out.shape == (B, out_channels, 16, 16), refine_out.shape
    assert bool(jnp.isfinite(target_def).all())
    assert bool(jnp.isfinite(refine_out).all())

    # Module-faithful entry point (returns only target_def, like Decoder.forward).
    td = jax.block_until_ready(decoder_forward(params, skips, guidance))
    assert bool(jnp.allclose(td, target_def))

    # Pure-JAX reference of the whole forward.  target_def (the module output,
    # a pure gather) gets a tight bound; the refine branch (discarded by the
    # module, deeper conv/BN accumulation) gets a slightly looser one.
    ref_td, ref_rf = _decoder_ref(params, skips, guidance)
    err_td = float(jnp.max(jnp.abs(target_def - ref_td)))
    err_rf = float(jnp.max(jnp.abs(refine_out - ref_rf)))
    assert err_td < 1e-3, err_td
    assert err_rf < 1e-2, err_rf

    print("KERNEL_OK")
</pallas_src>

<mosaic_0001>
module attributes {stable_mosaic.version = 11 : i64} {
  func.func @_decoder_fused_kernel(%arg0: memref<2x8x256xf32, #tpu.memory_space<vmem>>, %arg1: memref<2x8x64xf32, #tpu.memory_space<vmem>>, %arg2: memref<2x8x16xf32, #tpu.memory_space<vmem>>, %arg3: memref<2x4x256xi32, #tpu.memory_space<vmem>>, %arg4: memref<2x4x256xf32, #tpu.memory_space<vmem>>, %arg5: memref<2x4x64xi32, #tpu.memory_space<vmem>>, %arg6: memref<2x4x64xf32, #tpu.memory_space<vmem>>, %arg7: memref<2x4x16xi32, #tpu.memory_space<vmem>>, %arg8: memref<2x4x16xf32, #tpu.memory_space<vmem>>, %arg9: memref<8x8xf32, #tpu.memory_space<vmem>>, %arg10: memref<8x1xf32, #tpu.memory_space<vmem>>, %arg11: memref<8x1xf32, #tpu.memory_space<vmem>>, %arg12: memref<8x1xf32, #tpu.memory_space<vmem>>, %arg13: memref<8x16xf32, #tpu.memory_space<vmem>>, %arg14: memref<8x1xf32, #tpu.memory_space<vmem>>, %arg15: memref<8x1xf32, #tpu.memory_space<vmem>>, %arg16: memref<8x1xf32, #tpu.memory_space<vmem>>, %arg17: memref<8x16xf32, #tpu.memory_space<vmem>>, %arg18: memref<8x1xf32, #tpu.memory_space<vmem>>, %arg19: memref<8x1xf32, #tpu.memory_space<vmem>>, %arg20: memref<8x1xf32, #tpu.memory_space<vmem>>, %arg21: memref<8x16xf32, #tpu.memory_space<vmem>>, %arg22: memref<8x1xf32, #tpu.memory_space<vmem>>, %arg23: memref<2x8x256xf32, #tpu.memory_space<vmem>>, %arg24: memref<2x8x256xf32, #tpu.memory_space<vmem>>) attributes {dimension_semantics = [], scalar_prefetch = 0 : i64, scratch_operands = 0 : i64, tpu.core_type = #tpu.core_type<tc>} {
    %c0 = arith.constant 0 : index
    %c0_0 = arith.constant 0 : index
    %c0_1 = arith.constant 0 : index
    %0 = vector.load %arg2[%c0, %c0_0, %c0_1] : memref<2x8x16xf32, #tpu.memory_space<vmem>>, vector<1x8x16xf32>
    %1 = vector.shape_cast %0 : vector<1x8x16xf32> to vector<8x16xf32>
    %c0_2 = arith.constant 0 : index
    %c0_3 = arith.constant 0 : index
    %c0_4 = arith.constant 0 : index
    %2 = vector.load %arg7[%c0_2, %c0_3, %c0_4] : memref<2x4x16xi32, #tpu.memory_space<vmem>>, vector<1x4x16xi32>
    %3 = vector.shape_cast %2 : vector<1x4x16xi32> to vector<4x16xi32>
    %c0_5 = arith.constant 0 : index
    %c0_6 = arith.constant 0 : index
    %c0_7 = arith.constant 0 : index
    %4 = vector.load %arg8[%c0_5, %c0_6, %c0_7] : memref<2x4x16xf32, #tpu.memory_space<vmem>>, vector<1x4x16xf32>
    %5 = vector.shape_cast %4 : vector<1x4x16xf32> to vector<4x16xf32>
    %cst = arith.constant 0.000000e+00 : f32
    %6 = vector.broadcast %cst : f32 to vector<8x16xf32>
    %7 = tpu.iota {dimensions = array<i32: 0>} : vector<16x16xi32>
    %c0_i32 = arith.constant 0 : i32
    %8 = vector.broadcast %c0_i32 : i32 to vector<16x16xi32>
    %9 = arith.addi %7, %8 : vector<16x16xi32>
    %10 = vector.extract_strided_slice %5 {offsets = [0, 0], sizes = [1, 16], strides = [1, 1]} : vector<4x16xf32> to vector<1x16xf32>
    %11 = vector.extract_strided_slice %3 {offsets = [0, 0], sizes = [1, 16], strides = [1, 1]} : vector<4x16xi32> to vector<1x16xi32>
    %12 = vector.broadcast %11 : vector<1x16xi32> to vector<16x16xi32>
    %13 = arith.cmpi eq, %9, %12 : vector<16x16xi32>
    %14 = arith.extui %13 : vector<16x16xi1> to vector<16x16xi32>
    %15 = arith.sitofp %14 : vector<16x16xi32> to vector<16x16xf32>
    %16 = vector.broadcast %10 : vector<1x16xf32> to vector<16x16xf32>
    %17 = arith.mulf %16, %15 : vector<16x16xf32>
    %18 = vector.extract_strided_slice %5 {offsets = [1, 0], sizes = [1, 16], strides = [1, 1]} : vector<4x16xf32> to vector<1x16xf32>
    %19 = vector.extract_strided_slice %3 {offsets = [1, 0], sizes = [1, 16], strides = [1, 1]} : vector<4x16xi32> to vector<1x16xi32>
    %20 = vector.broadcast %19 : vector<1x16xi32> to vector<16x16xi32>
    %21 = arith.cmpi eq, %9, %20 : vector<16x16xi32>
    %22 = arith.extui %21 : vector<16x16xi1> to vector<16x16xi32>
    %23 = arith.sitofp %22 : vector<16x16xi32> to vector<16x16xf32>
    %24 = vector.broadcast %18 : vector<1x16xf32> to vector<16x16xf32>
    %25 = arith.mulf %24, %23 : vector<16x16xf32>
    %26 = arith.addf %17, %25 : vector<16x16xf32>
    %27 = vector.extract_strided_slice %5 {offsets = [2, 0], sizes = [1, 16], strides = [1, 1]} : vector<4x16xf32> to vector<1x16xf32>
    %28 = vector.extract_strided_slice %3 {offsets = [2, 0], sizes = [1, 16], strides = [1, 1]} : vector<4x16xi32> to vector<1x16xi32>
    %29 = vector.broadcast %28 : vector<1x16xi32> to vector<16x16xi32>
    %30 = arith.cmpi eq, %9, %29 : vector<16x16xi32>
    %31 = arith.extui %30 : vector<16x16xi1> to vector<16x16xi32>
    %32 = arith.sitofp %31 : vector<16x16xi32> to vector<16x16xf32>
    %33 = vector.broadcast %27 : vector<1x16xf32> to vector<16x16xf32>
    %34 = arith.mulf %33, %32 : vector<16x16xf32>
    %35 = arith.addf %26, %34 : vector<16x16xf32>
    %36 = vector.extract_strided_slice %5 {offsets = [3, 0], sizes = [1, 16], strides = [1, 1]} : vector<4x16xf32> to vector<1x16xf32>
    %37 = vector.extract_strided_slice %3 {offsets = [3, 0], sizes = [1, 16], strides = [1, 1]} : vector<4x16xi32> to vector<1x16xi32>
    %38 = vector.broadcast %37 : vector<1x16xi32> to vector<16x16xi32>
    %39 = arith.cmpi eq, %9, %38 : vector<16x16xi32>
    %40 = arith.extui %39 : vector<16x16xi1> to vector<16x16xi32>
    %41 = arith.sitofp %40 : vector<16x16xi32> to vector<16x16xf32>
    %42 = vector.broadcast %36 : vector<1x16xf32> to vector<16x16xf32>
    %43 = arith.mulf %42, %41 : vector<16x16xf32>
    %44 = arith.addf %35, %43 : vector<16x16xf32>
    %cst_8 = arith.constant dense<0.000000e+00> : vector<8x16xf32>
    %45 = tpu.matmul %1, %44, %cst_8 {dimension_numbers = #tpu.dot_dimension_numbers<[1], [0], [0], [1], [0, 0, 1, 1], [], []>, precision = #tpu.contract_precision<fp32>} : vector<8x16xf32>, vector<16x16xf32>, vector<8x16xf32> -> vector<8x16xf32>
    %46 = arith.addf %6, %45 : vector<8x16xf32>
    %c1 = arith.constant 1 : index
    %c0_9 = arith.constant 0 : index
    %c0_10 = arith.constant 0 : index
    %47 = vector.load %arg2[%c1, %c0_9, %c0_10] : memref<2x8x16xf32, #tpu.memory_space<vmem>>, vector<1x8x16xf32>
    %48 = vector.shape_cast %47 : vector<1x8x16xf32> to vector<8x16xf32>
    %c1_11 = arith.constant 1 : index
    %c0_12 = arith.constant 0 : index
    %c0_13 = arith.constant 0 : index
    %49 = vector.load %arg7[%c1_11, %c0_12, %c0_13] : memref<2x4x16xi32, #tpu.memory_space<vmem>>, vector<1x4x16xi32>
    %50 = vector.shape_cast %49 : vector<1x4x16xi32> to vector<4x16xi32>
    %c1_14 = arith.constant 1 : index
    %c0_15 = arith.constant 0 : index
    %c0_16 = arith.constant 0 : index
    %51 = vector.load %arg8[%c1_14, %c0_15, %c0_16] : memref<2x4x16xf32, #tpu.memory_space<vmem>>, vector<1x4x16xf32>
    %52 = vector.shape_cast %51 : vector<1x4x16xf32> to vector<4x16xf32>
    %cst_17 = arith.constant 0.000000e+00 : f32
    %53 = vector.broadcast %cst_17 : f32 to vector<8x16xf32>
    %54 = tpu.iota {dimensions = array<i32: 0>} : vector<16x16xi32>
    %c0_i32_18 = arith.constant 0 : i32
    %55 = vector.broadcast %c0_i32_18 : i32 to vector<16x16xi32>
    %56 = arith.addi %54, %55 : vector<16x16xi32>
    %57 = vector.extract_strided_slice %52 {offsets = [0, 0], sizes = [1, 16], strides = [1, 1]} : vector<4x16xf32> to vector<1x16xf32>
    %58 = vector.extract_strided_slice %50 {offsets = [0, 0], sizes = [1, 16], strides = [1, 1]} : vector<4x16xi32> to vector<1x16xi32>
    %59 = vector.broadcast %58 : vector<1x16xi32> to vector<16x16xi32>
    %60 = arith.cmpi eq, %56, %59 : vector<16x16xi32>
    %61 = arith.extui %60 : vector<16x16xi1> to vector<16x16xi32>
    %62 = arith.sitofp %61 : vector<16x16xi32> to vector<16x16xf32>
    %63 = vector.broadcast %57 : vector<1x16xf32> to vector<16x16xf32>
    %64 = arith.mulf %63, %62 : vector<16x16xf32>
    %65 = vector.extract_strided_slice %52 {offsets = [1, 0], sizes = [1, 16], strides = [1, 1]} : vector<4x16xf32> to vector<1x16xf32>
    %66 = vector.extract_strided_slice %50 {offsets = [1, 0], sizes = [1, 16], strides = [1, 1]} : vector<4x16xi32> to vector<1x16xi32>
    %67 = vector.broadcast %66 : vector<1x16xi32> to vector<16x16xi32>
    %68 = arith.cmpi eq, %56, %67 : vector<16x16xi32>
    %69 = arith.extui %68 : vector<16x16xi1> to vector<16x16xi32>
    %70 = arith.sitofp %69 : vector<16x16xi32> to vector<16x16xf32>
    %71 = vector.broadcast %65 : vector<1x16xf32> to vector<16x16xf32>
    %72 = arith.mulf %71, %70 : vector<16x16xf32>
    %73 = arith.addf %64, %72 : vector<16x16xf32>
    %74 = vector.extract_strided_slice %52 {offsets = [2, 0], sizes = [1, 16], strides = [1, 1]} : vector<4x16xf32> to vector<1x16xf32>
    %75 = vector.extract_strided_slice %50 {offsets = [2, 0], sizes = [1, 16], strides = [1, 1]} : vector<4x16xi32> to vector<1x16xi32>
    %76 = vector.broadcast %75 : vector<1x16xi32> to vector<16x16xi32>
    %77 = arith.cmpi eq, %56, %76 : vector<16x16xi32>
    %78 = arith.extui %77 : vector<16x16xi1> to vector<16x16xi32>
    %79 = arith.sitofp %78 : vector<16x16xi32> to vector<16x16xf32>
    %80 = vector.broadcast %74 : vector<1x16xf32> to vector<16x16xf32>
    %81 = arith.mulf %80, %79 : vector<16x16xf32>
    %82 = arith.addf %73, %81 : vector<16x16xf32>
    %83 = vector.extract_strided_slice %52 {offsets = [3, 0], sizes = [1, 16], strides = [1, 1]} : vector<4x16xf32> to vector<1x16xf32>
    %84 = vector.extract_strided_slice %50 {offsets = [3, 0], sizes = [1, 16], strides = [1, 1]} : vector<4x16xi32> to vector<1x16xi32>
    %85 = vector.broadcast %84 : vector<1x16xi32> to vector<16x16xi32>
    %86 = arith.cmpi eq, %56, %85 : vector<16x16xi32>
    %87 = arith.extui %86 : vector<16x16xi1> to vector<16x16xi32>
    %88 = arith.sitofp %87 : vector<16x16xi32> to vector<16x16xf32>
    %89 = vector.broadcast %83 : vector<1x16xf32> to vector<16x16xf32>
    %90 = arith.mulf %89, %88 : vector<16x16xf32>
    %91 = arith.addf %82, %90 : vector<16x16xf32>
    %cst_19 = arith.constant dense<0.000000e+00> : vector<8x16xf32>
    %92 = tpu.matmul %48, %91, %cst_19 {dimension_numbers = #tpu.dot_dimension_numbers<[1], [0], [0], [1], [0, 0, 1, 1], [], []>, precision = #tpu.contract_precision<fp32>} : vector<8x16xf32>, vector<16x16xf32>, vector<8x16xf32> -> vector<8x16xf32>
    %93 = arith.addf %53, %92 : vector<8x16xf32>
    %c0_20 = arith.constant 0 : index
    %c0_21 = arith.constant 0 : index
    %94 = vector.load %arg9[%c0_20, %c0_21] : memref<8x8xf32, #tpu.memory_space<vmem>>, vector<8x8xf32>
    %c0_22 = arith.constant 0 : index
    %c0_23 = arith.constant 0 : index
    %95 = vector.load %arg10[%c0_22, %c0_23] : memref<8x1xf32, #tpu.memory_space<vmem>>, vector<8x1xf32>
    %cst_24 = arith.constant dense<0.000000e+00> : vector<8x16xf32>
    %96 = tpu.matmul %94, %46, %cst_24 {dimension_numbers = #tpu.dot_dimension_numbers<[1], [0], [0], [1], [0, 0, 1, 1], [], []>, precision = #tpu.contract_precision<fp32>} : vector<8x8xf32>, vector<8x16xf32>, vector<8x16xf32> -> vector<8x16xf32>
    %97 = vector.broadcast %95 : vector<8x1xf32> to vector<8x16xf32>
    %98 = arith.addf %96, %97 : vector<8x16xf32>
    %cst_25 = arith.constant dense<0.000000e+00> : vector<8x16xf32>
    %99 = tpu.matmul %94, %93, %cst_25 {dimension_numbers = #tpu.dot_dimension_numbers<[1], [0], [0], [1], [0, 0, 1, 1], [], []>, precision = #tpu.contract_precision<fp32>} : vector<8x8xf32>, vector<8x16xf32>, vector<8x16xf32> -> vector<8x16xf32>
    %100 = vector.broadcast %95 : vector<8x1xf32> to vector<8x16xf32>
    %101 = arith.addf %99, %100 : vector<8x16xf32>
    %cst_26 = arith.constant dense<0.000000e+00> : vector<8xf32>
    %102 = vector.multi_reduction <add>, %98, %cst_26 [1] : vector<8x16xf32> to vector<8xf32>
    %103 = vector.shape_cast %102 : vector<8xf32> to vector<8x1xf32>
    %cst_27 = arith.constant dense<0.000000e+00> : vector<8xf32>
    %104 = vector.multi_reduction <add>, %101, %cst_27 [1] : vector<8x16xf32> to vector<8xf32>
    %105 = vector.shape_cast %104 : vector<8xf32> to vector<8x1xf32>
    %106 = arith.addf %103, %105 : vector<8x1xf32>
    %cst_28 = arith.constant 3.125000e-02 : f32
    %107 = vector.broadcast %cst_28 : f32 to vector<8x1xf32>
    %108 = arith.mulf %106, %107 : vector<8x1xf32>
    %109 = vector.broadcast %108 : vector<8x1xf32> to vector<8x16xf32>
    %110 = arith.subf %98, %109 : vector<8x16xf32>
    %111 = arith.mulf %110, %110 : vector<8x16xf32>
    %cst_29 = arith.constant dense<0.000000e+00> : vector<8xf32>
    %112 = vector.multi_reduction <add>, %111, %cst_29 [1] : vector<8x16xf32> to vector<8xf32>
    %113 = vector.shape_cast %112 : vector<8xf32> to vector<8x1xf32>
    %114 = vector.broadcast %108 : vector<8x1xf32> to vector<8x16xf32>
    %115 = arith.subf %101, %114 : vector<8x16xf32>
    %116 = arith.mulf %115, %115 : vector<8x16xf32>
    %cst_30 = arith.constant dense<0.000000e+00> : vector<8xf32>
    %117 = vector.multi_reduction <add>, %116, %cst_30 [1] : vector<8x16xf32> to vector<8xf32>
    %118 = vector.shape_cast %117 : vector<8xf32> to vector<8x1xf32>
    %119 = arith.addf %113, %118 : vector<8x1xf32>
    %c0_31 = arith.constant 0 : index
    %c0_32 = arith.constant 0 : index
    %120 = vector.load %arg11[%c0_31, %c0_32] : memref<8x1xf32, #tpu.memory_space<vmem>>, vector<8x1xf32>
    %cst_33 = arith.constant 3.125000e-02 : f32
    %121 = vector.broadcast %cst_33 : f32 to vector<8x1xf32>
    %122 = arith.mulf %119, %121 : vector<8x1xf32>
    %cst_34 = arith.constant 9.99999974E-6 : f32
    %123 = vector.broadcast %cst_34 : f32 to vector<8x1xf32>
    %124 = arith.addf %122, %123 : vector<8x1xf32>
    %125 = math.rsqrt %124 : vector<8x1xf32>
    %126 = arith.mulf %120, %125 : vector<8x1xf32>
    %c0_35 = arith.constant 0 : index
    %c0_36 = arith.constant 0 : index
    %127 = vector.load %arg12[%c0_35, %c0_36] : memref<8x1xf32, #tpu.memory_space<vmem>>, vector<8x1xf32>
    %128 = arith.mulf %108, %126 : vector<8x1xf32>
    %129 = arith.subf %127, %128 : vector<8x1xf32>
    %130 = vector.broadcast %126 : vector<8x1xf32> to vector<8x16xf32>
    %131 = arith.mulf %98, %130 : vector<8x16xf32>
    %132 = vector.broadcast %129 : vector<8x1xf32> to vector<8x16xf32>
    %133 = arith.addf %131, %132 : vector<8x16xf32>
    %cst_37 = arith.constant 0.000000e+00 : f32
    %134 = vector.broadcast %cst_37 : f32 to vector<8x16xf32>
    %135 = arith.maximumf %133, %134 : vector<8x16xf32>
    %136 = vector.broadcast %126 : vector<8x1xf32> to vector<8x16xf32>
    %137 = arith.mulf %101, %136 : vector<8x16xf32>
    %138 = vector.broadcast %129 : vector<8x1xf32> to vector<8x16xf32>
    %139 = arith.addf %137, %138 : vector<8x16xf32>
    %cst_38 = arith.constant 0.000000e+00 : f32
    %140 = vector.broadcast %cst_38 : f32 to vector<8x16xf32>
    %141 = arith.maximumf %139, %140 : vector<8x16xf32>
    %142 = tpu.iota {dimensions = array<i32: 1>} : vector<16x64xi32>
    %143 = arith.sitofp %142 : vector<16x64xi32> to vector<16x64xf32>
    %144 = tpu.iota {dimensions = array<i32: 0>} : vector<16x64xi32>
    %145 = arith.sitofp %144 : vector<16x64xi32> to vector<16x64xf32>
    %cst_39 = arith.constant 8.000000e+00 : f32
    %146 = vector.broadcast %cst_39 : f32 to vector<16x64xf32>
    %147 = arith.divf %143, %146 : vector<16x64xf32>
    %148 = math.floor %147 : vector<16x64xf32>
    %cst_40 = arith.constant 8.000000e+00 : f32
    %149 = vector.broadcast %cst_40 : f32 to vector<16x64xf32>
    %150 = arith.mulf %148, %149 : vector<16x64xf32>
    %151 = arith.subf %143, %150 : vector<16x64xf32>
    %cst_41 = arith.constant 5.000000e-01 : f32
    %152 = vector.broadcast %cst_41 : f32 to vector<16x64xf32>
    %153 = arith.mulf %148, %152 : vector<16x64xf32>
    %154 = math.floor %153 : vector<16x64xf32>
    %cst_42 = arith.constant 4.000000e+00 : f32
    %155 = vector.broadcast %cst_42 : f32 to vector<16x64xf32>
    %156 = arith.mulf %154, %155 : vector<16x64xf32>
    %cst_43 = arith.constant 5.000000e-01 : f32
    %157 = vector.broadcast %cst_43 : f32 to vector<16x64xf32>
    %158 = arith.mulf %151, %157 : vector<16x64xf32>
    %159 = math.floor %158 : vector<16x64xf32>
    %160 = arith.addf %156, %159 : vector<16x64xf32>
    %161 = arith.cmpf oeq, %145, %160 : vector<16x64xf32>
    %162 = arith.extui %161 : vector<16x64xi1> to vector<16x64xi32>
    %163 = arith.sitofp %162 : vector<16x64xi32> to vector<16x64xf32>
    %cst_44 = arith.constant dense<0.000000e+00> : vector<8x64xf32>
    %164 = tpu.matmul %135, %163, %cst_44 {dimension_numbers = #tpu.dot_dimension_numbers<[1], [0], [0], [1], [0, 0, 1, 1], [], []>, precision = #tpu.contract_precision<fp32>} : vector<8x16xf32>, vector<16x64xf32>, vector<8x64xf32> -> vector<8x64xf32>
    %cst_45 = arith.constant dense<0.000000e+00> : vector<8x64xf32>
    %165 = tpu.matmul %141, %163, %cst_45 {dimension_numbers = #tpu.dot_dimension_numbers<[1], [0], [0], [1], [0, 0, 1, 1], [], []>, precision = #tpu.contract_precision<fp32>} : vector<8x16xf32>, vector<16x64xf32>, vector<8x64xf32> -> vector<8x64xf32>
    %c0_46 = arith.constant 0 : index
    %c0_47 = arith.constant 0 : index
    %c0_48 = arith.constant 0 : index
    %166 = vector.load %arg1[%c0_46, %c0_47, %c0_48] : memref<2x8x64xf32, #tpu.memory_space<vmem>>, vector<1x8x64xf32>
    %167 = vector.shape_cast %166 : vector<1x8x64xf32> to vector<8x64xf32>
    %c0_49 = arith.constant 0 : index
    %c0_50 = arith.constant 0 : index
    %c0_51 = arith.constant 0 : index
    %168 = vector.load %arg5[%c0_49, %c0_50, %c0_51] : memref<2x4x64xi32, #tpu.memory_space<vmem>>, vector<1x4x64xi32>
    %169 = vector.shape_cast %168 : vector<1x4x64xi32> to vector<4x64xi32>
    %c0_52 = arith.constant 0 : index
    %c0_53 = arith.constant 0 : index
    %c0_54 = arith.constant 0 : index
    %170 = vector.load %arg6[%c0_52, %c0_53, %c0_54] : memref<2x4x64xf32, #tpu.memory_space<vmem>>, vector<1x4x64xf32>
    %171 = vector.shape_cast %170 : vector<1x4x64xf32> to vector<4x64xf32>
    %cst_55 = arith.constant 0.000000e+00 : f32
    %172 = vector.broadcast %cst_55 : f32 to vector<8x64xf32>
    %173 = tpu.iota {dimensions = array<i32: 0>} : vector<64x64xi32>
    %c0_i32_56 = arith.constant 0 : i32
    %174 = vector.broadcast %c0_i32_56 : i32 to vector<64x64xi32>
    %175 = arith.addi %173, %174 : vector<64x64xi32>
    %176 = vector.extract_strided_slice %171 {offsets = [0, 0], sizes = [1, 64], strides = [1, 1]} : vector<4x64xf32> to vector<1x64xf32>
    %177 = vector.extract_strided_slice %169 {offsets = [0, 0], sizes = [1, 64], strides = [1, 1]} : vector<4x64xi32> to vector<1x64xi32>
    %178 = vector.broadcast %177 : vector<1x64xi32> to vector<64x64xi32>
    %179 = arith.cmpi eq, %175, %178 : vector<64x64xi32>
    %180 = arith.extui %179 : vector<64x64xi1> to vector<64x64xi32>
    %181 = arith.sitofp %180 : vector<64x64xi32> to vector<64x64xf32>
    %182 = vector.broadcast %176 : vector<1x64xf32> to vector<64x64xf32>
    %183 = arith.mulf %182, %181 : vector<64x64xf32>
    %184 = vector.extract_strided_slice %171 {offsets = [1, 0], sizes = [1, 64], strides = [1, 1]} : vector<4x64xf32> to vector<1x64xf32>
    %185 = vector.extract_strided_slice %169 {offsets = [1, 0], sizes = [1, 64], strides = [1, 1]} : vector<4x64xi32> to vector<1x64xi32>
    %186 = vector.broadcast %185 : vector<1x64xi32> to vector<64x64xi32>
    %187 = arith.cmpi eq, %175, %186 : vector<64x64xi32>
    %188 = arith.extui %187 : vector<64x64xi1> to vector<64x64xi32>
    %189 = arith.sitofp %188 : vector<64x64xi32> to vector<64x64xf32>
    %190 = vector.broadcast %184 : vector<1x64xf32> to vector<64x64xf32>
    %191 = arith.mulf %190, %189 : vector<64x64xf32>
    %192 = arith.addf %183, %191 : vector<64x64xf32>
    %193 = vector.extract_strided_slice %171 {offsets = [2, 0], sizes = [1, 64], strides = [1, 1]} : vector<4x64xf32> to vector<1x64xf32>
    %194 = vector.extract_strided_slice %169 {offsets = [2, 0], sizes = [1, 64], strides = [1, 1]} : vector<4x64xi32> to vector<1x64xi32>
    %195 = vector.broadcast %194 : vector<1x64xi32> to vector<64x64xi32>
    %196 = arith.cmpi eq, %175, %195 : vector<64x64xi32>
    %197 = arith.extui %196 : vector<64x64xi1> to vector<64x64xi32>
    %198 = arith.sitofp %197 : vector<64x64xi32> to vector<64x64xf32>
    %199 = vector.broadcast %193 : vector<1x64xf32> to vector<64x64xf32>
    %200 = arith.mulf %199, %198 : vector<64x64xf32>
    %201 = arith.addf %192, %200 : vector<64x64xf32>
    %202 = vector.extract_strided_slice %171 {offsets = [3, 0], sizes = [1, 64], strides = [1, 1]} : vector<4x64xf32> to vector<1x64xf32>
    %203 = vector.extract_strided_slice %169 {offsets = [3, 0], sizes = [1, 64], strides = [1, 1]} : vector<4x64xi32> to vector<1x64xi32>
    %204 = vector.broadcast %203 : vector<1x64xi32> to vector<64x64xi32>
    %205 = arith.cmpi eq, %175, %204 : vector<64x64xi32>
    %206 = arith.extui %205 : vector<64x64xi1> to vector<64x64xi32>
    %207 = arith.sitofp %206 : vector<64x64xi32> to vector<64x64xf32>
    %208 = vector.broadcast %202 : vector<1x64xf32> to vector<64x64xf32>
    %209 = arith.mulf %208, %207 : vector<64x64xf32>
    %210 = arith.addf %201, %209 : vector<64x64xf32>
    %cst_57 = arith.constant dense<0.000000e+00> : vector<8x64xf32>
    %211 = tpu.matmul %167, %210, %cst_57 {dimension_numbers = #tpu.dot_dimension_numbers<[1], [0], [0], [1], [0, 0, 1, 1], [], []>, precision = #tpu.contract_precision<fp32>} : vector<8x64xf32>, vector<64x64xf32>, vector<8x64xf32> -> vector<8x64xf32>
    %212 = arith.addf %172, %211 : vector<8x64xf32>
    %c1_58 = arith.constant 1 : index
    %c0_59 = arith.constant 0 : index
    %c0_60 = arith.constant 0 : index
    %213 = vector.load %arg1[%c1_58, %c0_59, %c0_60] : memref<2x8x64xf32, #tpu.memory_space<vmem>>, vector<1x8x64xf32>
    %214 = vector.shape_cast %213 : vector<1x8x64xf32> to vector<8x64xf32>
    %c1_61 = arith.constant 1 : index
    %c0_62 = arith.constant 0 : index
    %c0_63 = arith.constant 0 : index
    %215 = vector.load %arg5[%c1_61, %c0_62, %c0_63] : memref<2x4x64xi32, #tpu.memory_space<vmem>>, vector<1x4x64xi32>
    %216 = vector.shape_cast %215 : vector<1x4x64xi32> to vector<4x64xi32>
    %c1_64 = arith.constant 1 : index
    %c0_65 = arith.constant 0 : index
    %c0_66 = arith.constant 0 : index
    %217 = vector.load %arg6[%c1_64, %c0_65, %c0_66] : memref<2x4x64xf32, #tpu.memory_space<vmem>>, vector<1x4x64xf32>
    %218 = vector.shape_cast %217 : vector<1x4x64xf32> to vector<4x64xf32>
    %cst_67 = arith.constant 0.000000e+00 : f32
    %219 = vector.broadcast %cst_67 : f32 to vector<8x64xf32>
    %220 = tpu.iota {dimensions = array<i32: 0>} : vector<64x64xi32>
    %c0_i32_68 = arith.constant 0 : i32
    %221 = vector.broadcast %c0_i32_68 : i32 to vector<64x64xi32>
    %222 = arith.addi %220, %221 : vector<64x64xi32>
    %223 = vector.extract_strided_slice %218 {offsets = [0, 0], sizes = [1, 64], strides = [1, 1]} : vector<4x64xf32> to vector<1x64xf32>
    %224 = vector.extract_strided_slice %216 {offsets = [0, 0], sizes = [1, 64], strides = [1, 1]} : vector<4x64xi32> to vector<1x64xi32>
    %225 = vector.broadcast %224 : vector<1x64xi32> to vector<64x64xi32>
    %226 = arith.cmpi eq, %222, %225 : vector<64x64xi32>
    %227 = arith.extui %226 : vector<64x64xi1> to vector<64x64xi32>
    %228 = arith.sitofp %227 : vector<64x64xi32> to vector<64x64xf32>
    %229 = vector.broadcast %223 : vector<1x64xf32> to vector<64x64xf32>
    %230 = arith.mulf %229, %228 : vector<64x64xf32>
    %231 = vector.extract_strided_slice %218 {offsets = [1, 0], sizes = [1, 64], strides = [1, 1]} : vector<4x64xf32> to vector<1x64xf32>
    %232 = vector.extract_strided_slice %216 {offsets = [1, 0], sizes = [1, 64], strides = [1, 1]} : vector<4x64xi32> to vector<1x64xi32>
    %233 = vector.broadcast %232 : vector<1x64xi32> to vector<64x64xi32>
    %234 = arith.cmpi eq, %222, %233 : vector<64x64xi32>
    %235 = arith.extui %234 : vector<64x64xi1> to vector<64x64xi32>
    %236 = arith.sitofp %235 : vector<64x64xi32> to vector<64x64xf32>
    %237 = vector.broadcast %231 : vector<1x64xf32> to vector<64x64xf32>
    %238 = arith.mulf %237, %236 : vector<64x64xf32>
    %239 = arith.addf %230, %238 : vector<64x64xf32>
    %240 = vector.extract_strided_slice %218 {offsets = [2, 0], sizes = [1, 64], strides = [1, 1]} : vector<4x64xf32> to vector<1x64xf32>
    %241 = vector.extract_strided_slice %216 {offsets = [2, 0], sizes = [1, 64], strides = [1, 1]} : vector<4x64xi32> to vector<1x64xi32>
    %242 = vector.broadcast %241 : vector<1x64xi32> to vector<64x64xi32>
    %243 = arith.cmpi eq, %222, %242 : vector<64x64xi32>
    %244 = arith.extui %243 : vector<64x64xi1> to vector<64x64xi32>
    %245 = arith.sitofp %244 : vector<64x64xi32> to vector<64x64xf32>
    %246 = vector.broadcast %240 : vector<1x64xf32> to vector<64x64xf32>
    %247 = arith.mulf %246, %245 : vector<64x64xf32>
    %248 = arith.addf %239, %247 : vector<64x64xf32>
    %249 = vector.extract_strided_slice %218 {offsets = [3, 0], sizes = [1, 64], strides = [1, 1]} : vector<4x64xf32> to vector<1x64xf32>
    %250 = vector.extract_strided_slice %216 {offsets = [3, 0], sizes = [1, 64], strides = [1, 1]} : vector<4x64xi32> to vector<1x64xi32>
    %251 = vector.broadcast %250 : vector<1x64xi32> to vector<64x64xi32>
    %252 = arith.cmpi eq, %222, %251 : vector<64x64xi32>
    %253 = arith.extui %252 : vector<64x64xi1> to vector<64x64xi32>
    %254 = arith.sitofp %253 : vector<64x64xi32> to vector<64x64xf32>
    %255 = vector.broadcast %249 : vector<1x64xf32> to vector<64x64xf32>
    %256 = arith.mulf %255, %254 : vector<64x64xf32>
    %257 = arith.addf %248, %256 : vector<64x64xf32>
    %cst_69 = arith.constant dense<0.000000e+00> : vector<8x64xf32>
    %258 = tpu.matmul %214, %257, %cst_69 {dimension_numbers = #tpu.dot_dimension_numbers<[1], [0], [0], [1], [0, 0, 1, 1], [], []>, precision = #tpu.contract_precision<fp32>} : vector<8x64xf32>, vector<64x64xf32>, vector<8x64xf32> -> vector<8x64xf32>
    %259 = arith.addf %219, %258 : vector<8x64xf32>
    %c0_70 = arith.constant 0 : index
    %c0_71 = arith.constant 0 : index
    %260 = vector.load %arg13[%c0_70, %c0_71] : memref<8x16xf32, #tpu.memory_space<vmem>>, vector<8x16xf32>
    %c0_72 = arith.constant 0 : index
    %c0_73 = arith.constant 0 : index
    %261 = vector.load %arg14[%c0_72, %c0_73] : memref<8x1xf32, #tpu.memory_space<vmem>>, vector<8x1xf32>
    %262 = vector.extract_strided_slice %260 {offsets = [0, 0], sizes = [8, 8], strides = [1, 1]} : vector<8x16xf32> to vector<8x8xf32>
    %cst_74 = arith.constant dense<0.000000e+00> : vector<8x64xf32>
    %263 = tpu.matmul %262, %164, %cst_74 {dimension_numbers = #tpu.dot_dimension_numbers<[1], [0], [0], [1], [0, 0, 1, 1], [], []>, precision = #tpu.contract_precision<fp32>} : vector<8x8xf32>, vector<8x64xf32>, vector<8x64xf32> -> vector<8x64xf32>
    %264 = vector.extract_strided_slice %260 {offsets = [0, 8], sizes = [8, 8], strides = [1, 1]} : vector<8x16xf32> to vector<8x8xf32>
    %cst_75 = arith.constant dense<0.000000e+00> : vector<8x64xf32>
    %265 = tpu.matmul %264, %212, %cst_75 {dimension_numbers = #tpu.dot_dimension_numbers<[1], [0], [0], [1], [0, 0, 1, 1], [], []>, precision = #tpu.contract_precision<fp32>} : vector<8x8xf32>, vector<8x64xf32>, vector<8x64xf32> -> vector<8x64xf32>
    %266 = arith.addf %263, %265 : vector<8x64xf32>
    %267 = vector.broadcast %261 : vector<8x1xf32> to vector<8x64xf32>
    %268 = arith.addf %266, %267 : vector<8x64xf32>
    %269 = vector.extract_strided_slice %260 {offsets = [0, 0], sizes = [8, 8], strides = [1, 1]} : vector<8x16xf32> to vector<8x8xf32>
    %cst_76 = arith.constant dense<0.000000e+00> : vector<8x64xf32>
    %270 = tpu.matmul %269, %165, %cst_76 {dimension_numbers = #tpu.dot_dimension_numbers<[1], [0], [0], [1], [0, 0, 1, 1], [], []>, precision = #tpu.contract_precision<fp32>} : vector<8x8xf32>, vector<8x64xf32>, vector<8x64xf32> -> vector<8x64xf32>
    %271 = vector.extract_strided_slice %260 {offsets = [0, 8], sizes = [8, 8], strides = [1, 1]} : vector<8x16xf32> to vector<8x8xf32>
    %cst_77 = arith.constant dense<0.000000e+00> : vector<8x64xf32>
    %272 = tpu.matmul %271, %259, %cst_77 {dimension_numbers = #tpu.dot_dimension_numbers<[1], [0], [0], [1], [0, 0, 1, 1], [], []>, precision = #tpu.contract_precision<fp32>} : vector<8x8xf32>, vector<8x64xf32>, vector<8x64xf32> -> vector<8x64xf32>
    %273 = arith.addf %270, %272 : vector<8x64xf32>
    %274 = vector.broadcast %261 : vector<8x1xf32> to vector<8x64xf32>
    %275 = arith.addf %273, %274 : vector<8x64xf32>
    %cst_78 = arith.constant dense<0.000000e+00> : vector<8xf32>
    %276 = vector.multi_reduction <add>, %268, %cst_78 [1] : vector<8x64xf32> to vector<8xf32>
    %277 = vector.shape_cast %276 : vector<8xf32> to vector<8x1xf32>
    %cst_79 = arith.constant dense<0.000000e+00> : vector<8xf32>
    %278 = vector.multi_reduction <add>, %275, %cst_79 [1] : vector<8x64xf32> to vector<8xf32>
    %279 = vector.shape_cast %278 : vector<8xf32> to vector<8x1xf32>
    %280 = arith.addf %277, %279 : vector<8x1xf32>
    %cst_80 = arith.constant 7.812500e-03 : f32
    %281 = vector.broadcast %cst_80 : f32 to vector<8x1xf32>
    %282 = arith.mulf %280, %281 : vector<8x1xf32>
    %283 = vector.broadcast %282 : vector<8x1xf32> to vector<8x64xf32>
    %284 = arith.subf %268, %283 : vector<8x64xf32>
    %285 = arith.mulf %284, %284 : vector<8x64xf32>
    %cst_81 = arith.constant dense<0.000000e+00> : vector<8xf32>
    %286 = vector.multi_reduction <add>, %285, %cst_81 [1] : vector<8x64xf32> to vector<8xf32>
    %287 = vector.shape_cast %286 : vector<8xf32> to vector<8x1xf32>
    %288 = vector.broadcast %282 : vector<8x1xf32> to vector<8x64xf32>
    %289 = arith.subf %275, %288 : vector<8x64xf32>
    %290 = arith.mulf %289, %289 : vector<8x64xf32>
    %cst_82 = arith.constant dense<0.000000e+00> : vector<8xf32>
    %291 = vector.multi_reduction <add>, %290, %cst_82 [1] : vector<8x64xf32> to vector<8xf32>
    %292 = vector.shape_cast %291 : vector<8xf32> to vector<8x1xf32>
    %293 = arith.addf %287, %292 : vector<8x1xf32>
    %c0_83 = arith.constant 0 : index
    %c0_84 = arith.constant 0 : index
    %294 = vector.load %arg15[%c0_83, %c0_84] : memref<8x1xf32, #tpu.memory_space<vmem>>, vector<8x1xf32>
    %cst_85 = arith.constant 7.812500e-03 : f32
    %295 = vector.broadcast %cst_85 : f32 to vector<8x1xf32>
    %296 = arith.mulf %293, %295 : vector<8x1xf32>
    %cst_86 = arith.constant 9.99999974E-6 : f32
    %297 = vector.broadcast %cst_86 : f32 to vector<8x1xf32>
    %298 = arith.addf %296, %297 : vector<8x1xf32>
    %299 = math.rsqrt %298 : vector<8x1xf32>
    %300 = arith.mulf %294, %299 : vector<8x1xf32>
    %c0_87 = arith.constant 0 : index
    %c0_88 = arith.constant 0 : index
    %301 = vector.load %arg16[%c0_87, %c0_88] : memref<8x1xf32, #tpu.memory_space<vmem>>, vector<8x1xf32>
    %302 = arith.mulf %282, %300 : vector<8x1xf32>
    %303 = arith.subf %301, %302 : vector<8x1xf32>
    %304 = vector.broadcast %300 : vector<8x1xf32> to vector<8x64xf32>
    %305 = arith.mulf %268, %304 : vector<8x64xf32>
    %306 = vector.broadcast %303 : vector<8x1xf32> to vector<8x64xf32>
    %307 = arith.addf %305, %306 : vector<8x64xf32>
    %cst_89 = arith.constant 0.000000e+00 : f32
    %308 = vector.broadcast %cst_89 : f32 to vector<8x64xf32>
    %309 = arith.maximumf %307, %308 : vector<8x64xf32>
    %310 = vector.broadcast %300 : vector<8x1xf32> to vector<8x64xf32>
    %311 = arith.mulf %275, %310 : vector<8x64xf32>
    %312 = vector.broadcast %303 : vector<8x1xf32> to vector<8x64xf32>
    %313 = arith.addf %311, %312 : vector<8x64xf32>
    %cst_90 = arith.constant 0.000000e+00 : f32
    %314 = vector.broadcast %cst_90 : f32 to vector<8x64xf32>
    %315 = arith.maximumf %313, %314 : vector<8x64xf32>
    %316 = tpu.iota {dimensions = array<i32: 1>} : vector<64x256xi32>
    %317 = arith.sitofp %316 : vector<64x256xi32> to vector<64x256xf32>
    %318 = tpu.iota {dimensions = array<i32: 0>} : vector<64x256xi32>
    %319 = arith.sitofp %318 : vector<64x256xi32> to vector<64x256xf32>
    %cst_91 = arith.constant 1.600000e+01 : f32
    %320 = vector.broadcast %cst_91 : f32 to vector<64x256xf32>
    %321 = arith.divf %317, %320 : vector<64x256xf32>
    %322 = math.floor %321 : vector<64x256xf32>
    %cst_92 = arith.constant 1.600000e+01 : f32
    %323 = vector.broadcast %cst_92 : f32 to vector<64x256xf32>
    %324 = arith.mulf %322, %323 : vector<64x256xf32>
    %325 = arith.subf %317, %324 : vector<64x256xf32>
    %cst_93 = arith.constant 5.000000e-01 : f32
    %326 = vector.broadcast %cst_93 : f32 to vector<64x256xf32>
    %327 = arith.mulf %322, %326 : vector<64x256xf32>
    %328 = math.floor %327 : vector<64x256xf32>
    %cst_94 = arith.constant 8.000000e+00 : f32
    %329 = vector.broadcast %cst_94 : f32 to vector<64x256xf32>
    %330 = arith.mulf %328, %329 : vector<64x256xf32>
    %cst_95 = arith.constant 5.000000e-01 : f32
    %331 = vector.broadcast %cst_95 : f32 to vector<64x256xf32>
    %332 = arith.mulf %325, %331 : vector<64x256xf32>
    %333 = math.floor %332 : vector<64x256xf32>
    %334 = arith.addf %330, %333 : vector<64x256xf32>
    %335 = arith.cmpf oeq, %319, %334 : vector<64x256xf32>
    %336 = arith.extui %335 : vector<64x256xi1> to vector<64x256xi32>
    %337 = arith.sitofp %336 : vector<64x256xi32> to vector<64x256xf32>
    %cst_96 = arith.constant dense<0.000000e+00> : vector<8x256xf32>
    %338 = tpu.matmul %309, %337, %cst_96 {dimension_numbers = #tpu.dot_dimension_numbers<[1], [0], [0], [1], [0, 0, 1, 1], [], []>, precision = #tpu.contract_precision<fp32>} : vector<8x64xf32>, vector<64x256xf32>, vector<8x256xf32> -> vector<8x256xf32>
    %cst_97 = arith.constant dense<0.000000e+00> : vector<8x256xf32>
    %339 = tpu.matmul %315, %337, %cst_97 {dimension_numbers = #tpu.dot_dimension_numbers<[1], [0], [0], [1], [0, 0, 1, 1], [], []>, precision = #tpu.contract_precision<fp32>} : vector<8x64xf32>, vector<64x256xf32>, vector<8x256xf32> -> vector<8x256xf32>
    %c0_98 = arith.constant 0 : index
    %c0_99 = arith.constant 0 : index
    %c0_100 = arith.constant 0 : index
    %340 = vector.load %arg0[%c0_98, %c0_99, %c0_100] : memref<2x8x256xf32, #tpu.memory_space<vmem>>, vector<1x8x256xf32>
    %341 = vector.shape_cast %340 : vector<1x8x256xf32> to vector<8x256xf32>
    %c0_101 = arith.constant 0 : index
    %c0_102 = arith.constant 0 : index
    %c0_103 = arith.constant 0 : index
    %342 = vector.load %arg3[%c0_101, %c0_102, %c0_103] : memref<2x4x256xi32, #tpu.memory_space<vmem>>, vector<1x4x256xi32>
    %343 = vector.shape_cast %342 : vector<1x4x256xi32> to vector<4x256xi32>
    %c0_104 = arith.constant 0 : index
    %c0_105 = arith.constant 0 : index
    %c0_106 = arith.constant 0 : index
    %344 = vector.load %arg4[%c0_104, %c0_105, %c0_106] : memref<2x4x256xf32, #tpu.memory_space<vmem>>, vector<1x4x256xf32>
    %345 = vector.shape_cast %344 : vector<1x4x256xf32> to vector<4x256xf32>
    %cst_107 = arith.constant 0.000000e+00 : f32
    %346 = vector.broadcast %cst_107 : f32 to vector<8x256xf32>
    %347 = tpu.iota {dimensions = array<i32: 0>} : vector<256x256xi32>
    %c0_i32_108 = arith.constant 0 : i32
    %348 = vector.broadcast %c0_i32_108 : i32 to vector<256x256xi32>
    %349 = arith.addi %347, %348 : vector<256x256xi32>
    %350 = vector.extract_strided_slice %345 {offsets = [0, 0], sizes = [1, 256], strides = [1, 1]} : vector<4x256xf32> to vector<1x256xf32>
    %351 = vector.extract_strided_slice %343 {offsets = [0, 0], sizes = [1, 256], strides = [1, 1]} : vector<4x256xi32> to vector<1x256xi32>
    %352 = vector.broadcast %351 : vector<1x256xi32> to vector<256x256xi32>
    %353 = arith.cmpi eq, %349, %352 : vector<256x256xi32>
    %354 = arith.extui %353 : vector<256x256xi1> to vector<256x256xi32>
    %355 = arith.sitofp %354 : vector<256x256xi32> to vector<256x256xf32>
    %356 = vector.broadcast %350 : vector<1x256xf32> to vector<256x256xf32>
    %357 = arith.mulf %356, %355 : vector<256x256xf32>
    %358 = vector.extract_strided_slice %345 {offsets = [1, 0], sizes = [1, 256], strides = [1, 1]} : vector<4x256xf32> to vector<1x256xf32>
    %359 = vector.extract_strided_slice %343 {offsets = [1, 0], sizes = [1, 256], strides = [1, 1]} : vector<4x256xi32> to vector<1x256xi32>
    %360 = vector.broadcast %359 : vector<1x256xi32> to vector<256x256xi32>
    %361 = arith.cmpi eq, %349, %360 : vector<256x256xi32>
    %362 = arith.extui %361 : vector<256x256xi1> to vector<256x256xi32>
    %363 = arith.sitofp %362 : vector<256x256xi32> to vector<256x256xf32>
    %364 = vector.broadcast %358 : vector<1x256xf32> to vector<256x256xf32>
    %365 = arith.mulf %364, %363 : vector<256x256xf32>
    %366 = arith.addf %357, %365 : vector<256x256xf32>
    %367 = vector.extract_strided_slice %345 {offsets = [2, 0], sizes = [1, 256], strides = [1, 1]} : vector<4x256xf32> to vector<1x256xf32>
    %368 = vector.extract_strided_slice %343 {offsets = [2, 0], sizes = [1, 256], strides = [1, 1]} : vector<4x256xi32> to vector<1x256xi32>
    %369 = vector.broadcast %368 : vector<1x256xi32> to vector<256x256xi32>
    %370 = arith.cmpi eq, %349, %369 : vector<256x256xi32>
    %371 = arith.extui %370 : vector<256x256xi1> to vector<256x256xi32>
    %372 = arith.sitofp %371 : vector<256x256xi32> to vector<256x256xf32>
    %373 = vector.broadcast %367 : vector<1x256xf32> to vector<256x256xf32>
    %374 = arith.mulf %373, %372 : vector<256x256xf32>
    %375 = arith.addf %366, %374 : vector<256x256xf32>
    %376 = vector.extract_strided_slice %345 {offsets = [3, 0], sizes = [1, 256], strides = [1, 1]} : vector<4x256xf32> to vector<1x256xf32>
    %377 = vector.extract_strided_slice %343 {offsets = [3, 0], sizes = [1, 256], strides = [1, 1]} : vector<4x256xi32> to vector<1x256xi32>
    %378 = vector.broadcast %377 : vector<1x256xi32> to vector<256x256xi32>
    %379 = arith.cmpi eq, %349, %378 : vector<256x256xi32>
    %380 = arith.extui %379 : vector<256x256xi1> to vector<256x256xi32>
    %381 = arith.sitofp %380 : vector<256x256xi32> to vector<256x256xf32>
    %382 = vector.broadcast %376 : vector<1x256xf32> to vector<256x256xf32>
    %383 = arith.mulf %382, %381 : vector<256x256xf32>
    %384 = arith.addf %375, %383 : vector<256x256xf32>
    %cst_109 = arith.constant dense<0.000000e+00> : vector<8x256xf32>
    %385 = tpu.matmul %341, %384, %cst_109 {dimension_numbers = #tpu.dot_dimension_numbers<[1], [0], [0], [1], [0, 0, 1, 1], [], []>, precision = #tpu.contract_precision<fp32>} : vector<8x256xf32>, vector<256x256xf32>, vector<8x256xf32> -> vector<8x256xf32>
    %386 = arith.addf %346, %385 : vector<8x256xf32>
    %c1_110 = arith.constant 1 : index
    %c0_111 = arith.constant 0 : index
    %c0_112 = arith.constant 0 : index
    %387 = vector.load %arg0[%c1_110, %c0_111, %c0_112] : memref<2x8x256xf32, #tpu.memory_space<vmem>>, vector<1x8x256xf32>
    %388 = vector.shape_cast %387 : vector<1x8x256xf32> to vector<8x256xf32>
    %c1_113 = arith.constant 1 : index
    %c0_114 = arith.constant 0 : index
    %c0_115 = arith.constant 0 : index
    %389 = vector.load %arg3[%c1_113, %c0_114, %c0_115] : memref<2x4x256xi32, #tpu.memory_space<vmem>>, vector<1x4x256xi32>
    %390 = vector.shape_cast %389 : vector<1x4x256xi32> to vector<4x256xi32>
    %c1_116 = arith.constant 1 : index
    %c0_117 = arith.constant 0 : index
    %c0_118 = arith.constant 0 : index
    %391 = vector.load %arg4[%c1_116, %c0_117, %c0_118] : memref<2x4x256xf32, #tpu.memory_space<vmem>>, vector<1x4x256xf32>
    %392 = vector.shape_cast %391 : vector<1x4x256xf32> to vector<4x256xf32>
    %cst_119 = arith.constant 0.000000e+00 : f32
    %393 = vector.broadcast %cst_119 : f32 to vector<8x256xf32>
    %394 = tpu.iota {dimensions = array<i32: 0>} : vector<256x256xi32>
    %c0_i32_120 = arith.constant 0 : i32
    %395 = vector.broadcast %c0_i32_120 : i32 to vector<256x256xi32>
    %396 = arith.addi %394, %395 : vector<256x256xi32>
    %397 = vector.extract_strided_slice %392 {offsets = [0, 0], sizes = [1, 256], strides = [1, 1]} : vector<4x256xf32> to vector<1x256xf32>
    %398 = vector.extract_strided_slice %390 {offsets = [0, 0], sizes = [1, 256], strides = [1, 1]} : vector<4x256xi32> to vector<1x256xi32>
    %399 = vector.broadcast %398 : vector<1x256xi32> to vector<256x256xi32>
    %400 = arith.cmpi eq, %396, %399 : vector<256x256xi32>
    %401 = arith.extui %400 : vector<256x256xi1> to vector<256x256xi32>
    %402 = arith.sitofp %401 : vector<256x256xi32> to vector<256x256xf32>
    %403 = vector.broadcast %397 : vector<1x256xf32> to vector<256x256xf32>
    %404 = arith.mulf %403, %402 : vector<256x256xf32>
    %405 = vector.extract_strided_slice %392 {offsets = [1, 0], sizes = [1, 256], strides = [1, 1]} : vector<4x256xf32> to vector<1x256xf32>
    %406 = vector.extract_strided_slice %390 {offsets = [1, 0], sizes = [1, 256], strides = [1, 1]} : vector<4x256xi32> to vector<1x256xi32>
    %407 = vector.broadcast %406 : vector<1x256xi32> to vector<256x256xi32>
    %408 = arith.cmpi eq, %396, %407 : vector<256x256xi32>
    %409 = arith.extui %408 : vector<256x256xi1> to vector<256x256xi32>
    %410 = arith.sitofp %409 : vector<256x256xi32> to vector<256x256xf32>
    %411 = vector.broadcast %405 : vector<1x256xf32> to vector<256x256xf32>
    %412 = arith.mulf %411, %410 : vector<256x256xf32>
    %413 = arith.addf %404, %412 : vector<256x256xf32>
    %414 = vector.extract_strided_slice %392 {offsets = [2, 0], sizes = [1, 256], strides = [1, 1]} : vector<4x256xf32> to vector<1x256xf32>
    %415 = vector.extract_strided_slice %390 {offsets = [2, 0], sizes = [1, 256], strides = [1, 1]} : vector<4x256xi32> to vector<1x256xi32>
    %416 = vector.broadcast %415 : vector<1x256xi32> to vector<256x256xi32>
    %417 = arith.cmpi eq, %396, %416 : vector<256x256xi32>
    %418 = arith.extui %417 : vector<256x256xi1> to vector<256x256xi32>
    %419 = arith.sitofp %418 : vector<256x256xi32> to vector<256x256xf32>
    %420 = vector.broadcast %414 : vector<1x256xf32> to vector<256x256xf32>
    %421 = arith.mulf %420, %419 : vector<256x256xf32>
    %422 = arith.addf %413, %421 : vector<256x256xf32>
    %423 = vector.extract_strided_slice %392 {offsets = [3, 0], sizes = [1, 256], strides = [1, 1]} : vector<4x256xf32> to vector<1x256xf32>
    %424 = vector.extract_strided_slice %390 {offsets = [3, 0], sizes = [1, 256], strides = [1, 1]} : vector<4x256xi32> to vector<1x256xi32>
    %425 = vector.broadcast %424 : vector<1x256xi32> to vector<256x256xi32>
    %426 = arith.cmpi eq, %396, %425 : vector<256x256xi32>
    %427 = arith.extui %426 : vector<256x256xi1> to vector<256x256xi32>
    %428 = arith.sitofp %427 : vector<256x256xi32> to vector<256x256xf32>
    %429 = vector.broadcast %423 : vector<1x256xf32> to vector<256x256xf32>
    %430 = arith.mulf %429, %428 : vector<256x256xf32>
    %431 = arith.addf %422, %430 : vector<256x256xf32>
    %cst_121 = arith.constant dense<0.000000e+00> : vector<8x256xf32>
    %432 = tpu.matmul %388, %431, %cst_121 {dimension_numbers = #tpu.dot_dimension_numbers<[1], [0], [0], [1], [0, 0, 1, 1], [], []>, precision = #tpu.contract_precision<fp32>} : vector<8x256xf32>, vector<256x256xf32>, vector<8x256xf32> -> vector<8x256xf32>
    %433 = arith.addf %393, %432 : vector<8x256xf32>
    %c0_122 = arith.constant 0 : index
    %c0_123 = arith.constant 0 : index
    %434 = vector.load %arg17[%c0_122, %c0_123] : memref<8x16xf32, #tpu.memory_space<vmem>>, vector<8x16xf32>
    %c0_124 = arith.constant 0 : index
    %c0_125 = arith.constant 0 : index
    %435 = vector.load %arg18[%c0_124, %c0_125] : memref<8x1xf32, #tpu.memory_space<vmem>>, vector<8x1xf32>
    %436 = vector.extract_strided_slice %434 {offsets = [0, 0], sizes = [8, 8], strides = [1, 1]} : vector<8x16xf32> to vector<8x8xf32>
    %cst_126 = arith.constant dense<0.000000e+00> : vector<8x256xf32>
    %437 = tpu.matmul %436, %338, %cst_126 {dimension_numbers = #tpu.dot_dimension_numbers<[1], [0], [0], [1], [0, 0, 1, 1], [], []>, precision = #tpu.contract_precision<fp32>} : vector<8x8xf32>, vector<8x256xf32>, vector<8x256xf32> -> vector<8x256xf32>
    %438 = vector.extract_strided_slice %434 {offsets = [0, 8], sizes = [8, 8], strides = [1, 1]} : vector<8x16xf32> to vector<8x8xf32>
    %cst_127 = arith.constant dense<0.000000e+00> : vector<8x256xf32>
    %439 = tpu.matmul %438, %386, %cst_127 {dimension_numbers = #tpu.dot_dimension_numbers<[1], [0], [0], [1], [0, 0, 1, 1], [], []>, precision = #tpu.contract_precision<fp32>} : vector<8x8xf32>, vector<8x256xf32>, vector<8x256xf32> -> vector<8x256xf32>
    %440 = arith.addf %437, %439 : vector<8x256xf32>
    %441 = vector.broadcast %435 : vector<8x1xf32> to vector<8x256xf32>
    %442 = arith.addf %440, %441 : vector<8x256xf32>
    %443 = vector.extract_strided_slice %434 {offsets = [0, 0], sizes = [8, 8], strides = [1, 1]} : vector<8x16xf32> to vector<8x8xf32>
    %cst_128 = arith.constant dense<0.000000e+00> : vector<8x256xf32>
    %444 = tpu.matmul %443, %339, %cst_128 {dimension_numbers = #tpu.dot_dimension_numbers<[1], [0], [0], [1], [0, 0, 1, 1], [], []>, precision = #tpu.contract_precision<fp32>} : vector<8x8xf32>, vector<8x256xf32>, vector<8x256xf32> -> vector<8x256xf32>
    %445 = vector.extract_strided_slice %434 {offsets = [0, 8], sizes = [8, 8], strides = [1, 1]} : vector<8x16xf32> to vector<8x8xf32>
    %cst_129 = arith.constant dense<0.000000e+00> : vector<8x256xf32>
    %446 = tpu.matmul %445, %433, %cst_129 {dimension_numbers = #tpu.dot_dimension_numbers<[1], [0], [0], [1], [0, 0, 1, 1], [], []>, precision = #tpu.contract_precision<fp32>} : vector<8x8xf32>, vector<8x256xf32>, vector<8x256xf32> -> vector<8x256xf32>
    %447 = arith.addf %444, %446 : vector<8x256xf32>
    %448 = vector.broadcast %435 : vector<8x1xf32> to vector<8x256xf32>
    %449 = arith.addf %447, %448 : vector<8x256xf32>
    %cst_130 = arith.constant dense<0.000000e+00> : vector<8xf32>
    %450 = vector.multi_reduction <add>, %442, %cst_130 [1] : vector<8x256xf32> to vector<8xf32>
    %451 = vector.shape_cast %450 : vector<8xf32> to vector<8x1xf32>
    %cst_131 = arith.constant dense<0.000000e+00> : vector<8xf32>
    %452 = vector.multi_reduction <add>, %449, %cst_131 [1] : vector<8x256xf32> to vector<8xf32>
    %453 = vector.shape_cast %452 : vector<8xf32> to vector<8x1xf32>
    %454 = arith.addf %451, %453 : vector<8x1xf32>
    %cst_132 = arith.constant 0.001953125 : f32
    %455 = vector.broadcast %cst_132 : f32 to vector<8x1xf32>
    %456 = arith.mulf %454, %455 : vector<8x1xf32>
    %457 = vector.broadcast %456 : vector<8x1xf32> to vector<8x256xf32>
    %458 = arith.subf %442, %457 : vector<8x256xf32>
    %459 = arith.mulf %458, %458 : vector<8x256xf32>
    %cst_133 = arith.constant dense<0.000000e+00> : vector<8xf32>
    %460 = vector.multi_reduction <add>, %459, %cst_133 [1] : vector<8x256xf32> to vector<8xf32>
    %461 = vector.shape_cast %460 : vector<8xf32> to vector<8x1xf32>
    %462 = vector.broadcast %456 : vector<8x1xf32> to vector<8x256xf32>
    %463 = arith.subf %449, %462 : vector<8x256xf32>
    %464 = arith.mulf %463, %463 : vector<8x256xf32>
    %cst_134 = arith.constant dense<0.000000e+00> : vector<8xf32>
    %465 = vector.multi_reduction <add>, %464, %cst_134 [1] : vector<8x256xf32> to vector<8xf32>
    %466 = vector.shape_cast %465 : vector<8xf32> to vector<8x1xf32>
    %467 = arith.addf %461, %466 : vector<8x1xf32>
    %c0_135 = arith.constant 0 : index
    %c0_136 = arith.constant 0 : index
    %468 = vector.load %arg19[%c0_135, %c0_136] : memref<8x1xf32, #tpu.memory_space<vmem>>, vector<8x1xf32>
    %cst_137 = arith.constant 0.001953125 : f32
    %469 = vector.broadcast %cst_137 : f32 to vector<8x1xf32>
    %470 = arith.mulf %467, %469 : vector<8x1xf32>
    %cst_138 = arith.constant 9.99999974E-6 : f32
    %471 = vector.broadcast %cst_138 : f32 to vector<8x1xf32>
    %472 = arith.addf %470, %471 : vector<8x1xf32>
    %473 = math.rsqrt %472 : vector<8x1xf32>
    %474 = arith.mulf %468, %473 : vector<8x1xf32>
    %c0_139 = arith.constant 0 : index
    %c0_140 = arith.constant 0 : index
    %475 = vector.load %arg20[%c0_139, %c0_140] : memref<8x1xf32, #tpu.memory_space<vmem>>, vector<8x1xf32>
    %476 = arith.mulf %456, %474 : vector<8x1xf32>
    %477 = arith.subf %475, %476 : vector<8x1xf32>
    %478 = vector.broadcast %474 : vector<8x1xf32> to vector<8x256xf32>
    %479 = arith.mulf %442, %478 : vector<8x256xf32>
    %480 = vector.broadcast %477 : vector<8x1xf32> to vector<8x256xf32>
    %481 = arith.addf %479, %480 : vector<8x256xf32>
    %cst_141 = arith.constant 0.000000e+00 : f32
    %482 = vector.broadcast %cst_141 : f32 to vector<8x256xf32>
    %483 = arith.maximumf %481, %482 : vector<8x256xf32>
    %484 = vector.broadcast %474 : vector<8x1xf32> to vector<8x256xf32>
    %485 = arith.mulf %449, %484 : vector<8x256xf32>
    %486 = vector.broadcast %477 : vector<8x1xf32> to vector<8x256xf32>
    %487 = arith.addf %485, %486 : vector<8x256xf32>
    %cst_142 = arith.constant 0.000000e+00 : f32
    %488 = vector.broadcast %cst_142 : f32 to vector<8x256xf32>
    %489 = arith.maximumf %487, %488 : vector<8x256xf32>
    %c0_143 = arith.constant 0 : index
    %c0_144 = arith.constant 0 : index
    %490 = vector.load %arg21[%c0_143, %c0_144] : memref<8x16xf32, #tpu.memory_space<vmem>>, vector<8x16xf32>
    %c0_145 = arith.constant 0 : index
    %c0_146 = arith.constant 0 : index
    %491 = vector.load %arg22[%c0_145, %c0_146] : memref<8x1xf32, #tpu.memory_space<vmem>>, vector<8x1xf32>
    %c0_147 = arith.constant 0 : index
    %c0_148 = arith.constant 0 : index
    %c0_149 = arith.constant 0 : index
    %492 = vector.load %arg23[%c0_147, %c0_148, %c0_149] : memref<2x8x256xf32, #tpu.memory_space<vmem>>, vector<1x8x256xf32>
    %493 = vector.shape_cast %492 : vector<1x8x256xf32> to vector<8x256xf32>
    %494 = vector.shape_cast %386 : vector<8x256xf32> to vector<1x8x256xf32>
    tpu.vector_store %arg23[%c0_147, %c0_148, %c0_149], %494 {strides = array<i32>} : memref<2x8x256xf32, #tpu.memory_space<vmem>>, vector<1x8x256xf32>,
    %495 = vector.extract_strided_slice %490 {offsets = [0, 0], sizes = [8, 8], strides = [1, 1]} : vector<8x16xf32> to vector<8x8xf32>
    %cst_150 = arith.constant dense<0.000000e+00> : vector<8x256xf32>
    %496 = tpu.matmul %495, %483, %cst_150 {dimension_numbers = #tpu.dot_dimension_numbers<[1], [0], [0], [1], [0, 0, 1, 1], [], []>, precision = #tpu.contract_precision<fp32>} : vector<8x8xf32>, vector<8x256xf32>, vector<8x256xf32> -> vector<8x256xf32>
    %497 = vector.extract_strided_slice %490 {offsets = [0, 8], sizes = [8, 8], strides = [1, 1]} : vector<8x16xf32> to vector<8x8xf32>
    %cst_151 = arith.constant dense<0.000000e+00> : vector<8x256xf32>
    %498 = tpu.matmul %497, %386, %cst_151 {dimension_numbers = #tpu.dot_dimension_numbers<[1], [0], [0], [1], [0, 0, 1, 1], [], []>, precision = #tpu.contract_precision<fp32>} : vector<8x8xf32>, vector<8x256xf32>, vector<8x256xf32> -> vector<8x256xf32>
    %499 = arith.addf %496, %498 : vector<8x256xf32>
    %500 = vector.broadcast %491 : vector<8x1xf32> to vector<8x256xf32>
    %501 = arith.addf %499, %500 : vector<8x256xf32>
    %c0_152 = arith.constant 0 : index
    %c0_153 = arith.constant 0 : index
    %c0_154 = arith.constant 0 : index
    %502 = vector.load %arg24[%c0_152, %c0_153, %c0_154] : memref<2x8x256xf32, #tpu.memory_space<vmem>>, vector<1x8x256xf32>
    %503 = vector.shape_cast %502 : vector<1x8x256xf32> to vector<8x256xf32>
    %504 = vector.shape_cast %501 : vector<8x256xf32> to vector<1x8x256xf32>
    tpu.vector_store %arg24[%c0_152, %c0_153, %c0_154], %504 {strides = array<i32>} : memref<2x8x256xf32, #tpu.memory_space<vmem>>, vector<1x8x256xf32>,
    %c1_155 = arith.constant 1 : index
    %c0_156 = arith.constant 0 : index
    %c0_157 = arith.constant 0 : index
    %505 = vector.load %arg23[%c1_155, %c0_156, %c0_157] : memref<2x8x256xf32, #tpu.memory_space<vmem>>, vector<1x8x256xf32>
    %506 = vector.shape_cast %505 : vector<1x8x256xf32> to vector<8x256xf32>
    %507 = vector.shape_cast %433 : vector<8x256xf32> to vector<1x8x256xf32>
    tpu.vector_store %arg23[%c1_155, %c0_156, %c0_157], %507 {strides = array<i32>} : memref<2x8x256xf32, #tpu.memory_space<vmem>>, vector<1x8x256xf32>,
    %508 = vector.extract_strided_slice %490 {offsets = [0, 0], sizes = [8, 8], strides = [1, 1]} : vector<8x16xf32> to vector<8x8xf32>
    %cst_158 = arith.constant dense<0.000000e+00> : vector<8x256xf32>
    %509 = tpu.matmul %508, %489, %cst_158 {dimension_numbers = #tpu.dot_dimension_numbers<[1], [0], [0], [1], [0, 0, 1, 1], [], []>, precision = #tpu.contract_precision<fp32>} : vector<8x8xf32>, vector<8x256xf32>, vector<8x256xf32> -> vector<8x256xf32>
    %510 = vector.extract_strided_slice %490 {offsets = [0, 8], sizes = [8, 8], strides = [1, 1]} : vector<8x16xf32> to vector<8x8xf32>
    %cst_159 = arith.constant dense<0.000000e+00> : vector<8x256xf32>
    %511 = tpu.matmul %510, %433, %cst_159 {dimension_numbers = #tpu.dot_dimension_numbers<[1], [0], [0], [1], [0, 0, 1, 1], [], []>, precision = #tpu.contract_precision<fp32>} : vector<8x8xf32>, vector<8x256xf32>, vector<8x256xf32> -> vector<8x256xf32>
    %512 = arith.addf %509, %511 : vector<8x256xf32>
    %513 = vector.broadcast %491 : vector<8x1xf32> to vector<8x256xf32>
    %514 = arith.addf %512, %513 : vector<8x256xf32>
    %c1_160 = arith.constant 1 : index
    %c0_161 = arith.constant 0 : index
    %c0_162 = arith.constant 0 : index
    %515 = vector.load %arg24[%c1_160, %c0_161, %c0_162] : memref<2x8x256xf32, #tpu.memory_space<vmem>>, vector<1x8x256xf32>
    %516 = vector.shape_cast %515 : vector<1x8x256xf32> to vector<8x256xf32>
    %517 = vector.shape_cast %514 : vector<8x256xf32> to vector<1x8x256xf32>
    tpu.vector_store %arg24[%c1_160, %c0_161, %c0_162], %517 {strides = array<i32>} : memref<2x8x256xf32, #tpu.memory_space<vmem>>, vector<1x8x256xf32>,
    return
  }
}

</mosaic_0001>

<bundles_post_ra>
// kernel: decoder_forward_with_refine.1
= control target key start
LH: loop header
LB: loop body
LE: loop exit
PB: predicated region body
PF: predicated region fallthrough
CT: control target
= control target key end

     0   :  { %v79_v0 = vlaneseq  ;;  %v26085_v1 = vmov 0.0|0.0   ;;  %vm19827_vm0 = vmmov 0   ;;  %v26087_v3 = vmov 0.0   ;;  %s26054_s7 = inlined_call_operand.vmem [shape: s32[2,4,16], index: 7, kind: input, shape index: {}]   ;;  %s26055_s8 = inlined_call_operand.vmem [shape: f32[2,4,16], index: 8, kind: input, shape index: {}]   ;;  %s26056_s2 = inlined_call_operand.vmem [shape: f32[2,8,16], index: 2, kind: input, shape index: {}]   ;;  %s26057_s10 = inlined_call_operand.vmem [shape: f32[8,1], index: 10, kind: input, shape index: {}]   ;;  %s26058_s9 = inlined_call_operand.vmem [shape: f32[8,8], index: 9, kind: input, shape index: {}]   ;;  %s26059_s14 = inlined_call_operand.vmem [shape: f32[8,1], index: 14, kind: input, shape index: {}]   ;;  %s26060_s11 = inlined_call_operand.vmem [shape: f32[8,1], index: 11, kind: input, shape index: {}]   ;;  %s26061_s12 = inlined_call_operand.vmem [shape: f32[8,1], index: 12, kind: input, shape index: {}]   ;;  %s26062_s5 = inlined_call_operand.vmem [shape: s32[2,4,64], index: 5, kind: input, shape index: {}]   ;;  %s26063_s6 = inlined_call_operand.vmem [shape: f32[2,4,64], index: 6, kind: input, shape index: {}]   ;;  %s26064_s13 = inlined_call_operand.vmem [shape: f32[8,16], index: 13, kind: input, shape index: {}]   ;;  %s26065_s1 = inlined_call_operand.vmem [shape: f32[2,8,64], index: 1, kind: input, shape index: {}]   ;;  %s26066_s15 = inlined_call_operand.vmem [shape: f32[8,1], index: 15, kind: input, shape index: {}]   ;;  %s26067_s16 = inlined_call_operand.vmem [shape: f32[8,1], index: 16, kind: input, shape index: {}]   ;;  %s26068_s17 = inlined_call_operand.vmem [shape: f32[8,16], index: 17, kind: input, shape index: {}]   ;;  %s26069_s18 = inlined_call_operand.vmem [shape: f32[8,1], index: 18, kind: input, shape index: {}]   ;;  %s26070_s3 = inlined_call_operand.vmem [shape: s32[2,4,256], index: 3, kind: input, shape index: {}]   ;;  %s26071_s4 = inlined_call_operand.vmem [shape: f32[2,4,256], index: 4, kind: input, shape index: {}]   ;;  %s26072_s0 = inlined_call_operand.vmem [shape: f32[2,8,256], index: 0, kind: input, shape index: {}]   ;;  %s26073_s23 = inlined_call_operand.vmem [shape: f32[2,8,256], index: 23, kind: output, shape index: {0}]   ;;  %s26074_s21 = inlined_call_operand.vmem [shape: f32[8,16], index: 21, kind: input, shape index: {}]   ;;  %s26075_s22 = inlined_call_operand.vmem [shape: f32[8,1], index: 22, kind: input, shape index: {}]   ;;  %s26076_s19 = inlined_call_operand.vmem [shape: f32[8,1], index: 19, kind: input, shape index: {}]   ;;  %s26077_s20 = inlined_call_operand.vmem [shape: f32[8,1], index: 20, kind: input, shape index: {}]   ;;  %s26078_s24 = inlined_call_operand.vmem [shape: f32[2,8,256], index: 24, kind: output, shape index: {1}]  }
   0x1   :  { %26729 = sst [smem:[#allocation205_spill]] %s26054_s7  ;;  %18425 = vmatprep.subr.bf16.mxu0 %v26085_v1  ;;  %18443 = vmatprep.subr.bf16.mxu1 %v26085_v1  ;;  %vm152_vm9 = vcmask 130048  }
   0x2   :  { %26730 = sst [smem:[#allocation206_spill]] %s26055_s8  ;;  %v19960_v2 = vshrl.u32 %v79_v0, 7  ;;  %17853 = vmatprep.mubr.msk.f32.mxu0 %vm19827_vm0, %v26087_v3  ;;  %17895 = vmatprep.mubr.msk.f32.mxu1 %vm19827_vm0, %v26087_v3  ;;  %s26739_s27 = sld [smem:[#allocation205_spill]] }
   0x3   :  { %26731 = sst [smem:[#allocation207_spill]] %s26056_s2  ;;  %s26740_s2 = sld [smem:[#allocation206_spill]] }
   0x4   :  { %26732 = sst [smem:[#allocation208_spill]] %s26057_s10  ;;  %26738 = vst [vmem:[#allocation2_spill] sm:$0xff] %v19960_v2  ;;  %v19973_v6 = vadd.s32 8, %v19960_v2  ;;  %v19976_v7 = vsub.s32 0, %v19960_v2  ;;  %v19979_v8 = vsub.s32 1, %v19960_v2  ;;  %v19982_v9 = vsub.s32 2, %v19960_v2 }
   0x5   :  { %26733 = sst [smem:[#allocation209_spill]] %s26058_s9  ;;  %v19985_v10 = vsub.s32 3, %v19960_v2  ;;  %s26746_s25 = sld [smem:[#allocation207_spill]] }
   0x6   :  { %26734 = sst [smem:[#allocation210_spill]] %s26059_s14  ;;  %26741 = vst [vmem:[#allocation3_spill] sm:$0xff] %v19973_v6  ;;  %26742 = vst [vmem:[#allocation4_spill] sm:$0xff] %v19976_v7 }
   0x7   :  { %26735 = sst [smem:[#allocation211_spill]] %s26060_s11  ;;  %26743 = vst [vmem:[#allocation5_spill] sm:$0xff] %v19979_v8  ;;  %26744 = vst [vmem:[#allocation6_spill] sm:$0xff] %v19982_v9 }
   0x8   :  { %26736 = sst [smem:[#allocation212_spill]] %s26061_s12  ;;  %v77_v4 = vld [vmem:[%s26739_s27] sm:$0xf]  ;;  %26745 = vst [vmem:[#allocation7_spill] sm:$0xff] %v19985_v10  ;;  %v16874_v44 = vld [vmem:[%s26739_s27 + $0x4] sm:$0xf] }
   0x9   :  { %26737 = sst [smem:[#allocation213_spill]] %s26062_s5  ;;  %v78_v5 = vld [vmem:[%s26740_s2] sm:$0xf]  ;;  %v85_v11 = vrot.slane %v77_v4, %v19976_v7  ;;  %v101_v13 = vrot.slane %v77_v4, %v19979_v8  ;;  %v119_v15 = vrot.slane %v77_v4, %v19982_v9  ;;  %v137_v17 = vrot.slane %v77_v4, %v19985_v10  ;;  %v16875_v45 = vld [vmem:[%s26740_s2 + $0x4] sm:$0xf]  ;;  %s26747_s27 = sld [smem:[#allocation208_spill]] }
   0xa   :  { %v95_v12 = vrot.slane %v78_v5, %v19976_v7  ;;  %v111_v14 = vrot.slane %v78_v5, %v19979_v8  ;;  %v129_v16 = vrot.slane %v78_v5, %v19982_v9  ;;  %v147_v18 = vrot.slane %v78_v5, %v19985_v10  ;;  %s26748_s2 = sld [smem:[#allocation209_spill]]  ;;  %s26749_s12 = sld [smem:[#allocation210_spill]] }
   0xb   :  { %vm86_vm1 = vcmp.eq.s32.totalorder %v19960_v2, %v85_v11  ;;  %vm87_vm2 = vcmp.eq.s32.totalorder %v19973_v6, %v85_v11  ;;  %vm102_vm3 = vcmp.eq.s32.totalorder %v19960_v2, %v101_v13  ;;  %vm103_vm4 = vcmp.eq.s32.totalorder %v19973_v6, %v101_v13  ;;  %v76_v62 = vld [vmem:[%s26746_s25] sm:$0xff]  ;;  %v16873_v63 = vld [vmem:[%s26746_s25 + $0x8] sm:$0xff]  ;;  %s26750_s10 = sld [smem:[#allocation211_spill]]  ;;  %s26751_s8 = sld [smem:[#allocation212_spill]] }
   0xc   :  { %v16865_v19 = vsel %vm86_vm1, 1.0, %v26087_v3  ;;  %v16866_v20 = vsel %vm87_vm2, 1.0, %v26087_v3  ;;  %v16867_v21 = vsel %vm102_vm3, 1.0, %v26087_v3  ;;  %v16868_v22 = vsel %vm103_vm4, 1.0, %v26087_v3 }
   0xd   :  { %v96_v23 = vmul.f32 %v16865_v19, %v95_v12  ;;  %v97_v24 = vmul.f32 %v16866_v20, %v95_v12  ;;  %v112_v25 = vmul.f32 %v16867_v21, %v111_v14  ;;  %v113_v26 = vmul.f32 %v16868_v22, %v111_v14 }
   0xe   :  { %vm120_vm5 = vcmp.eq.s32.totalorder %v19960_v2, %v119_v15  ;;  %vm121_vm6 = vcmp.eq.s32.totalorder %v19973_v6, %v119_v15  ;;  %vm138_vm7 = vcmp.eq.s32.totalorder %v19960_v2, %v137_v17  ;;  %vm139_vm8 = vcmp.eq.s32.totalorder %v19973_v6, %v137_v17 }
   0xf   :  { %v114_v27 = vadd.f32 %v112_v25, %v96_v23  ;;  %v115_v28 = vadd.f32 %v113_v26, %v97_v24  ;;  %v16869_v29 = vsel %vm120_vm5, 1.0, %v26087_v3  ;;  %v16870_v30 = vsel %vm121_vm6, 1.0, %v26087_v3 }
  0x10   :  { %v130_v31 = vmul.f32 %v16869_v29, %v129_v16  ;;  %v131_v32 = vmul.f32 %v16870_v30, %v129_v16  ;;  %v16871_v33 = vsel %vm138_vm7, 1.0, %v26087_v3  ;;  %v16872_v34 = vsel %vm139_vm8, 1.0, %v26087_v3 }
  0x11   :  { %v148_v35 = vmul.f32 %v16871_v33, %v147_v18  ;;  %v149_v36 = vmul.f32 %v16872_v34, %v147_v18  ;;  %v624_v46 = vrot.slane %v16874_v44, %v19976_v7  ;;  %v634_v47 = vrot.slane %v16875_v45, %v19976_v7 }
  0x12   :  { %v132_v37 = vadd.f32 %v130_v31, %v114_v27  ;;  %v133_v38 = vadd.f32 %v131_v32, %v115_v28  ;;  %v640_v49 = vrot.slane %v16874_v44, %v19979_v8  ;;  %v650_v50 = vrot.slane %v16875_v45, %v19979_v8 }
  0x13   :  { %v658_v51 = vrot.slane %v16874_v44, %v19982_v9  ;;  %vm625_vm10 = vcmp.eq.s32.totalorder %v19960_v2, %v624_v46  ;;  %vm626_vm11 = vcmp.eq.s32.totalorder %v19973_v6, %v624_v46  ;;  %v668_v53 = vrot.slane %v16875_v45, %v19982_v9 }
  0x14   :  { %v150_v39 = vadd.f32 %v148_v35, %v132_v37  ;;  %v151_v40 = vadd.f32 %v149_v36, %v133_v38  ;;  %v16876_v54 = vsel %vm625_vm10, 1.0, %v26087_v3  ;;  %v16877_v55 = vsel %vm626_vm11, 1.0, %v26087_v3 }
  0x15   :  { %vm641_vm12 = vcmp.eq.s32.totalorder %v19960_v2, %v640_v49  ;;  %vm642_vm13 = vcmp.eq.s32.totalorder %v19973_v6, %v640_v49  ;;  %v635_v56 = vmul.f32 %v16876_v54, %v634_v47  ;;  %v636_v57 = vmul.f32 %v16877_v55, %v634_v47 }
  0x16   :  { %v157_v41 = vand.u32 4294901760, %v150_v39  ;;  %v160_v42 = vand.u32 4294901760, %v151_v40  ;;  %v16878_v58 = vsel %vm641_vm12, 1.0, %v26087_v3  ;;  %v16879_v59 = vsel %vm642_vm13, 1.0, %v26087_v3 }
  0x17   :  { %v651_v60 = vmul.f32 %v16878_v58, %v650_v50  ;;  %v652_v61 = vmul.f32 %v16879_v59, %v650_v50  ;;  %vm659_vm14 = vcmp.eq.s32.totalorder %v19960_v2, %v658_v51  ;;  %vm660_vm15 = vcmp.eq.s32.totalorder %v19973_v6, %v658_v51 }
  0x18   :  { %v20011_v43 = vpack.c.bf16 %v160_v42, %v157_v41  ;;  %v20023_v48 = vsub.f32 %v150_v39, %v157_v41  ;;  %v20028_v52 = vsub.f32 %v151_v40, %v160_v42  ;;  %v16880_v4 = vsel %vm659_vm14, 1.0, %v26087_v3 }
  0x19   :  { %v16881_v5 = vsel %vm660_vm15, 1.0, %v26087_v3  ;;  %v676_v11 = vrot.slane %v16874_v44, %v19985_v10  ;;  %v686_v12 = vrot.slane %v16875_v45, %v19985_v10  ;;  %v653_v13 = vadd.f32 %v651_v60, %v635_v56 }
  0x1a   :  { %18427 = vmatpush3.bf16.msra.mxu0 %v20011_v43  ;;  %v654_v14 = vadd.f32 %v652_v61, %v636_v57  ;;  %v669_v15 = vmul.f32 %v16880_v4, %v668_v53  ;;  %v670_v16 = vmul.f32 %v16881_v5, %v668_v53  ;;  %v154_v17 = vsel %vm152_vm9, %v76_v62, 0  ;;  %v1154_v61 = vld [vmem:[%s26747_s27] sm:$0xff]  ;;  %s26755_s27 = sld [smem:[#allocation213_spill]] }
  0x1b   :  { %18428 = vmatprep.subr.bf16.mxu0 %v26085_v1  ;;  %vm677_vm1 = vcmp.eq.s32.totalorder %v19960_v2, %v676_v11  ;;  %vm678_vm2 = vcmp.eq.s32.totalorder %v19973_v6, %v676_v11  ;;  %v692_v18 = vsel %vm152_vm9, %v16873_v63, 0  ;;  %v20057_v25 = vand.u32 4294901760, %v154_v17  ;;  %v1153_v62 = vld [vmem:[%s26748_s2] sm:$0xff] }
  0x1c   :  { %v671_v19 = vadd.f32 %v669_v15, %v653_v13  ;;  %v672_v20 = vadd.f32 %v670_v16, %v654_v14  ;;  %v16882_v21 = vsel %vm677_vm1, 1.0, %v26087_v3  ;;  %v16883_v22 = vsel %vm678_vm2, 1.0, %v26087_v3 }
  0x1d   :  { %v687_v23 = vmul.f32 %v16882_v21, %v686_v12  ;;  %v688_v24 = vmul.f32 %v16883_v22, %v686_v12  ;;  %v20059_v26 = vand.u32 4294901760, %v692_v18  ;;  %v236_v27 = vand.u32 4294901760, %v20023_v48 }
  0x1e   :  { %v243_v28 = vand.u32 4294901760, %v20028_v52  ;;  %v224_v31 = vsub.f32 %v154_v17, %v20057_v25  ;;  %v18432_v59 = vpack.c.bf16 %v20028_v52, %v20023_v48  ;;  %vm1160_vm3 = vcmask 64512  }
  0x1f   :  { %v689_v29 = vadd.f32 %v687_v23, %v671_v19  ;;  %v690_v30 = vadd.f32 %v688_v24, %v672_v20  ;;  %v762_v32 = vsub.f32 %v692_v18, %v20059_v26  ;;  %v237_v33 = vsub.f32 %v20023_v48, %v236_v27 }
  0x20   :  { %v244_v34 = vsub.f32 %v20028_v52, %v243_v28  ;;  %v225_v37 = vand.u32 4294901760, %v224_v31  ;;  %v18438_v48 = vpack.c.bf16 %v243_v28, %v236_v27  ;;  %v1162_v63 = vsel %vm1160_vm3, %v1153_v62, 0 }
  0x21   :  { %v695_v35 = vand.u32 4294901760, %v689_v29  ;;  %v698_v36 = vand.u32 4294901760, %v690_v30  ;;  %v763_v38 = vand.u32 4294901760, %v762_v32  ;;  %v238_v39 = vand.u32 4294901760, %v237_v33 }
  0x22   :  { %v245_v40 = vand.u32 4294901760, %v244_v34  ;;  %v226_v45 = vsub.f32 %v224_v31, %v225_v37  ;;  %v20119_v4 = vand.u32 4294901760, %v1162_v63 }
  0x23   :  { %v18444_v41 = vpack.c.bf16 %v698_v36, %v695_v35  ;;  %v773_v42 = vsub.f32 %v689_v29, %v695_v35  ;;  %v780_v44 = vsub.f32 %v690_v30, %v698_v36  ;;  %v764_v46 = vsub.f32 %v762_v32, %v763_v38 }
  0x24   :  { %v18429_v47 = vpack.c.bf16 %v245_v40, %v238_v39  ;;  %v227_v49 = vand.u32 4294901760, %v226_v45  ;;  %v1231_v5 = vsub.f32 %v1162_v63, %v20119_v4 }
  0x25   :  { %18445 = vmatpush3.bf16.msra.mxu1 %v18444_v41  ;;  %v774_v50 = vand.u32 4294901760, %v773_v42  ;;  %v781_v51 = vand.u32 4294901760, %v780_v44  ;;  %v765_v53 = vand.u32 4294901760, %v764_v46  ;;  %v18450_v60 = vpack.c.bf16 %v780_v44, %v773_v42 }
  0x26   :  { %18446 = vmatprep.subr.bf16.mxu1 %v26085_v1  ;;  %17854 = vmatmul.mubr.f32.vlgmr.msra.gmra.mrb[0].mxu0 %v227_v49  ;;  %v1232_v11 = vand.u32 4294901760, %v1231_v5 }
  0x27   :  { %v775_v54 = vsub.f32 %v773_v42, %v774_v50  ;;  %v782_v55 = vsub.f32 %v780_v44, %v781_v51  ;;  %18430 = vmatpush3.bf16.msra.mxu0 %v18429_v47  ;;  %17860 = vmatprep.mubr.msk.f32.mxu0 %vm19827_vm0, %v26087_v3  ;;  %v18456_v52 = vpack.c.bf16 %v781_v51, %v774_v50 }
  0x28   :  { %17896 = vmatmul.mubr.f32.vlgmr.msra.gmra.mrb[0].mxu1 %v765_v53  ;;  %18431 = vmatprep.subr.bf16.mxu0 %v26085_v1  ;;  %v1233_v12 = vsub.f32 %v1231_v5, %v1232_v11 }
  0x29   :  { %v776_v56 = vand.u32 4294901760, %v775_v54  ;;  %v783_v57 = vand.u32 4294901760, %v782_v55  ;;  %17902 = vmatprep.mubr.msk.f32.mxu1 %vm19827_vm0, %v26087_v3 }
  0x2a   :  { %v1234_v14 = vand.u32 4294901760, %v1233_v12 }
  0x2b   :  { %v18447_v58 = vpack.c.bf16 %v783_v57, %v776_v56  ;;  %v2075_v56 = vld [vmem:[%s26750_s10] sm:$0xff]  ;;  %v20183_v57 = vand.u32 127, %v79_v0 }
  0x2d   :  { %18448 = vmatpush3.bf16.msra.mxu1 %v18447_v58 }
  0x2e   :  { %18449 = vmatprep.subr.bf16.mxu1 %v26085_v1  ;;  %17861 = vmatmul.mubr.f32.vlgmr.msra.gmra.mrb[0].mxu0 %v20057_v25 }
  0x2f   :  { %18433 = vmatpush3.bf16.msra.mxu0 %v18432_v59  ;;  %17867 = vmatprep.mubr.msk.f32.mxu0 %vm19827_vm0, %v26087_v3  ;;  %v20186_v59 = vcvt.s32.f32 %v20183_v57 }
  0x30   :  { %17903 = vmatmul.mubr.f32.vlgmr.msra.gmra.mrb[0].mxu1 %v20059_v26  ;;  %18434 = vmatprep.subr.bf16.mxu0 %v26085_v1 }
  0x31   :  { %18451 = vmatpush3.bf16.msra.mxu1 %v18450_v60  ;;  %17909 = vmatprep.mubr.msk.f32.mxu1 %vm19827_vm0, %v26087_v3 }
  0x32   :  { %18452 = vmatprep.subr.bf16.mxu1 %v26085_v1 }
  0x36   :  { %17868 = vmatmul.mubr.f32.vlgmr.msra.gmra.mrb[0].mxu0 %v224_v31 }
  0x37   :  { %18436 = vmatpush3.bf16.msra.mxu0 %v20011_v43  ;;  %17874 = vmatprep.mubr.msk.f32.mxu0 %vm19827_vm0, %v26087_v3 }
  0x38   :  { %17910 = vmatmul.mubr.f32.vlgmr.msra.gmra.mrb[0].mxu1 %v762_v32  ;;  %18437 = vmatprep.subr.bf16.mxu0 %v26085_v1 }
  0x39   :  { %18454 = vmatpush3.bf16.msra.mxu1 %v18444_v41  ;;  %17916 = vmatprep.mubr.msk.f32.mxu1 %vm19827_vm0, %v26087_v3 }
  0x3a   :  { %18455 = vmatprep.subr.bf16.mxu1 %v26085_v1 }
  0x3e   :  { %17875 = vmatmul.mubr.f32.vlgmr.msra.gmra.mrb[0].mxu0 %v225_v37  ;;  %v4510_v37 = vld [vmem:[%s26749_s12] sm:$0xff] }
  0x3f   :  { %18439 = vmatpush3.bf16.msra.mxu0 %v18438_v48  ;;  %17881 = vmatprep.mubr.msk.f32.mxu0 %vm19827_vm0, %v26087_v3  ;;  %v2080_v48 = vld [vmem:[%s26751_s8] sm:$0xff] }
  0x40   :  { %17917 = vmatmul.mubr.f32.vlgmr.msra.gmra.mrb[0].mxu1 %v763_v38  ;;  %18440 = vmatprep.subr.bf16.mxu0 %v26085_v1 }
  0x41   :  { %18457 = vmatpush3.bf16.msra.mxu1 %v18456_v52  ;;  %17923 = vmatprep.mubr.msk.f32.mxu1 %vm19827_vm0, %v26087_v3  ;;  %v2105_v52 = vmul.f32 0.125, %v20186_v59 }
  0x42   :  { %18458 = vmatprep.subr.bf16.mxu1 %v26085_v1 }
  0x46   :  { %17882 = vmatmul.mubr.f32.vlgmr.msra.gmra.mrb[0].mxu0 %v20057_v25 }
  0x47   :  { %18442 = vmatpush3.bf16.msra.mxu0 %v20011_v43  ;;  %17888 = vmatprep.mubr.msk.f32.mxu0 %vm19827_vm0, %v26087_v3  ;;  %v19829_v43 = vmov 0  }
  0x48   :  { %17924 = vmatmul.mubr.f32.vlgmr.msra.gmra.mrb[0].mxu1 %v20059_v26  ;;  %17933 = vmatprep.subr.mxu0 %v26087_v3 }
  0x49   :  { %18460 = vmatpush3.bf16.msra.mxu1 %v18444_v41  ;;  %17930 = vmatprep.mubr.msk.f32.mxu1 %vm19827_vm0, %v26087_v3 }
  0x4a   :  { %17963 = vmatprep.subr.mxu1 %v26087_v3  ;;  %19817 = vset.pattern.permute.xlu0 %v19829_v43 }
  0x4b   :  { %19818 = vset.pattern.permute.xlu1 %v19829_v43  ;;  %1157 = vperm.xlu0 %19817, %v1154_v61   ;;  %v2106_v61 = vfloor.f32 %v2105_v52 }
  0x4d   :  { %v2107_v63 = vmul.f32 8.0, %v2106_v61 }
  0x4e   :  { %17889 = vmatmul.mubr.f32.vlgmr.msra.gmra.mrb[0].mxu0 %v20057_v25 }
  0x4f   :  { %17935 = vmatprep.mubr.msk.f32.mxu0 %vm19827_vm0, %v26087_v3  ;;  %v2108_v0 = vsub.f32 %v20186_v59, %v2107_v63 }
  0x50   :  { %17931 = vmatmul.mubr.f32.vlgmr.msra.gmra.mrb[0].mxu1 %v20059_v26 }
  0x51   :  { %17965 = vmatprep.mubr.msk.f32.mxu1 %vm19827_vm0, %v26087_v3 }
  0xca   :  { %v1158_v28 = vpop.permute.xlu0 %1157 }
 0x121   :  { %v611_v13 = vpop.f32.mrb[0].mxu0 }
 0x122   :  { %v1165_v15 = vand.u32 4294901760, %v611_v13  ;;  %v17890_v17 = vpop.f32.mrb[1].mxu0 }
 0x123   :  { %v1149_v16 = vpop.f32.mrb[0].mxu1 }
 0x124   :  { %v1611_v18 = vand.u32 4294901760, %v1149_v16  ;;  %v17932_v19 = vpop.f32.mrb[1].mxu1  ;;  %v1242_v20 = vsub.f32 %v611_v13, %v1165_v15  ;;  %17934 = vmatpush3.msra.mxu0 %v1165_v15 }
 0x125   :  { %17936 = vmatmul.mubr.f32.vlgmr.msra.gmra.mrb[2].mxu0 %v1234_v14  ;;  %17938 = vmatprep.subr.mxu0 %v26087_v3 }
 0x126   :  { %v1688_v21 = vsub.f32 %v1149_v16, %v1611_v18  ;;  %17964 = vmatpush3.msra.mxu1 %v1611_v18  ;;  %v1243_v22 = vand.u32 4294901760, %v1242_v20  ;;  %17940 = vmatprep.mubr.msk.f32.mxu0 %vm19827_vm0, %v26087_v3 }
 0x127   :  { %17966 = vmatmul.mubr.f32.vlgmr.msra.gmra.mrb[2].mxu1 %v1234_v14  ;;  %17968 = vmatprep.subr.mxu1 %v26087_v3  ;;  %v20194_v14 = vcvt.s32.f32 %v19960_v2 }
 0x128   :  { %v1689_v23 = vand.u32 4294901760, %v1688_v21  ;;  %v1244_v24 = vsub.f32 %v1242_v20, %v1243_v22  ;;  %17970 = vmatprep.mubr.msk.f32.mxu1 %vm19827_vm0, %v26087_v3 }
 0x12a   :  { %v1690_v25 = vsub.f32 %v1688_v21, %v1689_v23  ;;  %v1245_v26 = vand.u32 4294901760, %v1244_v24 }
 0x12c   :  { %v1691_v27 = vand.u32 4294901760, %v1690_v25  ;;  %17939 = vmatpush3.msra.mxu0 %v1245_v26 }
 0x12d   :  { %17941 = vmatmul.mubr.f32.vlgmr.msra.gmra.mrb[2].mxu0 %v20119_v4  ;;  %17943 = vmatprep.subr.mxu0 %v26087_v3 }
 0x12e   :  { %17969 = vmatpush3.msra.mxu1 %v1691_v27  ;;  %17944 = vmatpush3.msra.mxu0 %v1242_v20  ;;  %v26083_v20 = vmov 1.0|1.0  }
 0x12f   :  { %17971 = vmatmul.mubr.f32.vlgmr.msra.gmra.mrb[2].mxu1 %v20119_v4  ;;  %17973 = vmatprep.subr.mxu1 %v26087_v3 }
 0x130   :  { %17974 = vmatpush3.msra.mxu1 %v1688_v21  ;;  %17945 = vmatprep.mubr.msk.f32.mxu0 %vm19827_vm0, %v26087_v3 }
 0x131   :  { %17948 = vmatprep.subr.mxu0 %v26087_v3  ;;  %17975 = vmatprep.mubr.msk.f32.mxu1 %vm19827_vm0, %v26087_v3 }
 0x132   :  { %17978 = vmatprep.subr.mxu1 %v26087_v3 }
 0x135   :  { %17946 = vmatmul.mubr.f32.vlgmr.msra.gmra.mrb[2].mxu0 %v1231_v5 }
 0x136   :  { %17949 = vmatpush3.msra.mxu0 %v1165_v15  ;;  %17950 = vmatprep.mubr.msk.f32.mxu0 %vm19827_vm0, %v26087_v3 }
 0x137   :  { %17976 = vmatmul.mubr.f32.vlgmr.msra.gmra.mrb[2].mxu1 %v1231_v5  ;;  %17953 = vmatprep.subr.mxu0 %v26087_v3 }
 0x138   :  { %17979 = vmatpush3.msra.mxu1 %v1611_v18  ;;  %17980 = vmatprep.mubr.msk.f32.mxu1 %vm19827_vm0, %v26087_v3 }
 0x139   :  { %17983 = vmatprep.subr.mxu1 %v26087_v3 }
 0x13d   :  { %17951 = vmatmul.mubr.f32.vlgmr.msra.gmra.mrb[2].mxu0 %v1232_v11 }
 0x13e   :  { %17954 = vmatpush3.msra.mxu0 %v1243_v22  ;;  %17955 = vmatprep.mubr.msk.f32.mxu0 %vm19827_vm0, %v26087_v3 }
 0x13f   :  { %17981 = vmatmul.mubr.f32.vlgmr.msra.gmra.mrb[2].mxu1 %v1232_v11  ;;  %17958 = vmatprep.subr.mxu0 %v26087_v3  ;;  %v2112_v11 = vmul.f32 0.5, %v2108_v0 }
 0x140   :  { %17984 = vmatpush3.msra.mxu1 %v1689_v23  ;;  %17985 = vmatprep.mubr.msk.f32.mxu1 %vm19827_vm0, %v26087_v3 }
 0x141   :  { %17988 = vmatprep.subr.mxu1 %v26087_v3  ;;  %v2113_v13 = vfloor.f32 %v2112_v11 }
 0x145   :  { %17956 = vmatmul.mubr.f32.vlgmr.msra.gmra.mrb[2].mxu0 %v20119_v4 }
 0x146   :  { %17959 = vmatpush3.msra.mxu0 %v1165_v15  ;;  %17960 = vmatprep.mubr.msk.f32.mxu0 %vm19827_vm0, %v26087_v3  ;;  %v20197_v15 = vcvt.s32.f32 %v19973_v6 }
 0x147   :  { %17986 = vmatmul.mubr.f32.vlgmr.msra.gmra.mrb[2].mxu1 %v20119_v4  ;;  %18461 = vmatprep.subr.bf16.mxu0 %v26085_v1 }
 0x148   :  { %17989 = vmatpush3.msra.mxu1 %v1611_v18  ;;  %17990 = vmatprep.mubr.msk.f32.mxu1 %vm19827_vm0, %v26087_v3  ;;  %26752 = vst [vmem:[#allocation8_spill] sm:$0xff] %v20197_v15 }
 0x149   :  { %18479 = vmatprep.subr.bf16.mxu1 %v26085_v1 }
 0x14d   :  { %17961 = vmatmul.mubr.f32.vlgmr.msra.gmra.mrb[2].mxu0 %v20119_v4 }
 0x14e   :  { %17997 = vmatprep.mubr.msk.f32.mxu0 %vm19827_vm0, %v26087_v3 }
 0x14f   :  { %17991 = vmatmul.mubr.f32.vlgmr.msra.gmra.mrb[2].mxu1 %v20119_v4  ;;  %v2109_v4 = vmul.f32 0.5, %v2106_v61 }
 0x150   :  { %18039 = vmatprep.mubr.msk.f32.mxu1 %vm19827_vm0, %v26087_v3 }
 0x151   :  { %v2110_v5 = vfloor.f32 %v2109_v4 }
 0x153   :  { %v2111_v12 = vmul.f32 4.0, %v2110_v5 }
 0x155   :  { %v2114_v16 = vadd.f32 %v2113_v13, %v2111_v12  ;;  %v20315_v12 = vadd.s32 16, %v19960_v2  ;;  %v20318_v13 = vadd.s32 24, %v19960_v2 }
 0x157   :  { %vm2115_vm4 = vcmp.eq.f32.partialorder %v20194_v14, %v2114_v16  ;;  %vm2116_vm5 = vcmp.eq.f32.partialorder %v20197_v15, %v2114_v16  ;;  %26756 = vst [vmem:[#allocation9_spill] sm:$0xff] %v20315_v12  ;;  %26757 = vst [vmem:[#allocation10_spill] sm:$0xff] %v20318_v13 }
 0x158   :  { %v16884_v17 = vsel %vm2115_vm4, 1.0, %v26087_v3  ;;  %v16885_v18 = vsel %vm2116_vm5, 1.0, %v26087_v3  ;;  %vm20203_vm6 = vmpackc.low %vm2116_vm5, %vm2115_vm4 }
 0x159   :  { %18463 = vmatpush3.bf16.msk.msra.mxu0 %vm20203_vm6, %v26083_v20  ;;  %v2203_v21 = vsub.f32 %v16884_v17, %v16884_v17  ;;  %v2210_v22 = vsub.f32 %v16885_v18, %v16885_v18  ;;  %18481 = vmatpush3.bf16.msk.msra.mxu1 %vm20203_vm6, %v26083_v20 }
 0x15a   :  { %18464 = vmatprep.subr.bf16.mxu0 %v26085_v1  ;;  %18482 = vmatprep.subr.bf16.mxu1 %v26085_v1 }
 0x15b   :  { %v2204_v23 = vand.u32 4294901760, %v2203_v21  ;;  %v2211_v24 = vand.u32 4294901760, %v2210_v22 }
 0x15d   :  { %v2205_v25 = vsub.f32 %v2203_v21, %v2204_v23  ;;  %v2212_v26 = vsub.f32 %v2210_v22, %v2211_v24 }
 0x15f   :  { %v2206_v27 = vand.u32 4294901760, %v2205_v25 }
 0x220   :  { %v1606_v29 = vpop.f32.mrb[2].mxu0 }
 0x221   :  { %v20164_v30 = vadd.f32 %v1606_v29, %v1158_v28  ;;  %v17962_v32 = vpop.f32.mrb[3].mxu0 }
 0x222   :  { %v2052_v31 = vpop.f32.mrb[2].mxu1  ;;  %v20219_v32 = vpack.c.bf16 %v2211_v24, %v2204_v23 }
 0x223   :  { %v20166_v33 = vadd.f32 %v2052_v31, %v1158_v28  ;;  %v17992_v34 = vpop.f32.mrb[3].mxu1  ;;  %v2056_v35 = vsel %vm152_vm9, %v20164_v30, 0.0  ;;  %v2213_v28 = vand.u32 4294901760, %v2212_v26  ;;  %v20217_v31 = vpack.c.bf16 %v2210_v22, %v2203_v21 }
 0x224   :  { %2057 = vadd.xlane.f32.xlu0 %v2056_v35  ;;  %v3046_v34 = vld [vmem:[%s26755_s27] sm:$0xf] }
 0x225   :  { %v2059_v36 = vsel %vm152_vm9, %v20166_v33, 0.0  ;;  %v20215_v29 = vpack.c.bf16 %v2213_v28, %v2206_v27  ;;  %v20225_v35 = vrot.slane %v3046_v34, %v19976_v7 }
 0x226   :  { %2060 = vadd.xlane.f32.xlu1 %v2059_v36  ;;  %v20228_v36 = vrot.slane %v3046_v34, %v19979_v8 }
 0x227   :  { %vm3058_vm7 = vcmp.eq.s32.totalorder %v19960_v2, %v20225_v35  ;;  %vm3059_vm10 = vcmp.eq.s32.totalorder %v19973_v6, %v20225_v35 }
 0x228   :  { %vm3098_vm8 = vcmp.eq.s32.totalorder %v19960_v2, %v20228_v36  ;;  %vm3099_vm11 = vcmp.eq.s32.totalorder %v19973_v6, %v20228_v36 }
 0x23a   :  { %5412 = vperm.xlu0 %19817, %v4510_v37   ;;  %v3047_v37 = vld [vmem:[%s26063_s6] sm:$0xf] }
 0x2b1   :  { %v2058_v38 = vpop.xlane.xlu0 %2057 }
 0x2b3   :  { %v2061_v39 = vpop.xlane.xlu1 %2060 }
 0x2b4   :  { %v2062_v40 = vadd.f32 %v2061_v39, %v2058_v38  ;;  %v20238_v38 = vrot.slane %v3046_v34, %v19982_v9  ;;  %v16931_v39 = vld [vmem:[%s26755_s27 + $0x4] sm:$0xf] }
 0x2b6   :  { %v2063_v41 = vmul.f32 0.03125, %v2062_v40  ;;  %v20246_v40 = vrot.slane %v3047_v37, %v19976_v7  ;;  %vm3146_vm12 = vcmp.eq.s32.totalorder %v19960_v2, %v20238_v38  ;;  %vm3147_vm13 = vcmp.eq.s32.totalorder %v19973_v6, %v20238_v38 }
 0x2b8   :  { %v2064_v42 = vsub.f32 %v20164_v30, %v2063_v41  ;;  %v2069_v44 = vsub.f32 %v20166_v33, %v2063_v41 }
 0x2ba   :  { %v2065_v45 = vmul.f32 %v2064_v42, %v2064_v42  ;;  %v2070_v47 = vmul.f32 %v2069_v44, %v2069_v44  ;;  %v16898_v42 = vsel %vm3058_vm7, 1.0, %v26087_v3  ;;  %v16906_v44 = vsel %vm3098_vm8, 1.0, %v26087_v3 }
 0x2bb   :  { %vm3060_vm8 = vcmp.eq.s32.totalorder %v20315_v12, %v20225_v35 }
 0x2bc   :  { %v2066_v46 = vsel %vm152_vm9, %v2065_v45, 0.0  ;;  %v2071_v49 = vsel %vm152_vm9, %v2070_v47, 0.0  ;;  %v20258_v45 = vrot.slane %v3046_v34, %v19985_v10  ;;  %v16899_v47 = vsel %vm3059_vm10, 1.0, %v26087_v3 }
 0x2bd   :  { %2067 = vadd.xlane.f32.xlu1 %v2066_v46  ;;  %v20261_v46 = vrot.slane %v16931_v39, %v19976_v7  ;;  %vm3061_vm10 = vcmp.eq.s32.totalorder %v20318_v13, %v20225_v35 }
 0x2be   :  { %vm3194_vm14 = vcmp.eq.s32.totalorder %v19960_v2, %v20258_v45  ;;  %vm3195_vm1 = vcmp.eq.s32.totalorder %v19973_v6, %v20258_v45 }
 0x2bf   :  { %vm3789_vm15 = vcmp.eq.s32.totalorder %v19960_v2, %v20261_v46  ;;  %vm3790_vm2 = vcmp.eq.s32.totalorder %v19973_v6, %v20261_v46  ;;  %v16922_v63 = vsel %vm3194_vm14, 1.0, %v26087_v3  ;;  %v16923_v18 = vsel %vm3195_vm1, 1.0, %v26087_v3 }
 0x2c0   :  { %v16933_v0 = vsel %vm3789_vm15, 1.0, %v26087_v3  ;;  %v16934_v23 = vsel %vm3790_vm2, 1.0, %v26087_v3  ;;  %vm3148_vm1 = vcmp.eq.s32.totalorder %v20315_v12, %v20238_v38  ;;  %vm3149_vm2 = vcmp.eq.s32.totalorder %v20318_v13, %v20238_v38 }
 0x2c1   :  { %2072 = vadd.xlane.f32.xlu1 %v2071_v49  ;;  %v16907_v49 = vsel %vm3099_vm11, 1.0, %v26087_v3  ;;  %vm3100_vm11 = vcmp.eq.s32.totalorder %v20315_v12, %v20228_v36 }
 0x34a   :  { %v2068_v50 = vpop.xlane.xlu1 %2067 }
 0x34e   :  { %v2073_v51 = vpop.xlane.xlu1 %2072 }
 0x34f   :  { %v2074_v53 = vadd.f32 %v2073_v51, %v2068_v50  ;;  %v20266_v50 = vrot.slane %v16931_v39, %v19979_v8  ;;  %v3086_v51 = vmul.f32 %v16898_v42, %v20246_v40 }
 0x351   :  { %v2076_v54 = vmul.f32 0.03125, %v2074_v53  ;;  %vm3829_vm4 = vcmp.eq.s32.totalorder %v19960_v2, %v20266_v50  ;;  %vm3830_vm5 = vcmp.eq.s32.totalorder %v19973_v6, %v20266_v50 }
 0x352   :  { %v16941_v11 = vsel %vm3829_vm4, 1.0, %v26087_v3  ;;  %v16942_v25 = vsel %vm3830_vm5, 1.0, %v26087_v3  ;;  %vm3196_vm4 = vcmp.eq.s32.totalorder %v20315_v12, %v20258_v45  ;;  %vm3197_vm5 = vcmp.eq.s32.totalorder %v20318_v13, %v20258_v45 }
 0x353   :  { %v2077_v55 = vadd.f32 1e-05, %v2076_v54  ;;  %v20271_v54 = vrot.slane %v3047_v37, %v19982_v9 }
 0x355   :  { %19819 = vrsqrt.f32 %v2077_v55  ;;  %v16914_v55 = vsel %vm3146_vm12, 1.0, %v26087_v3  ;;  %vm3101_vm12 = vcmp.eq.s32.totalorder %v20318_v13, %v20228_v36 }
 0x356   :  { %v3174_v61 = vmul.f32 %v16914_v55, %v20271_v54  ;;  %v16908_v55 = vsel %vm3100_vm11, 1.0, %v26087_v3  ;;  %vm3832_vm11 = vcmp.eq.s32.totalorder %v20318_v13, %v20266_v50 }
 0x35f   :  { %v19820_v58 = vpop.eup %19819 }
 0x360   :  { %v2079_v60 = vmul.f32 %v19820_v58, %v2075_v56  ;;  %v3087_v56 = vmul.f32 %v16899_v47, %v20246_v40 }
 0x362   :  { %2085 = vperm.xlu1 %19818, %v2079_v60   ;;  %v2081_v43 = vmul.f32 %v2079_v60, %v2063_v41  ;;  %v20251_v41 = vrot.slane %v3047_v37, %v19979_v8  ;;  %v20283_v60 = vld [vmem:[%s26063_s6 + $0x4] sm:$0xf] }
 0x363   :  { %v20305_v4 = vrot.slane %v20283_v60, %v19976_v7  ;;  %v20309_v5 = vrot.slane %v20283_v60, %v19979_v8  ;;  %v20337_v27 = vrot.slane %v20283_v60, %v19982_v9 }
 0x364   :  { %v2082_v62 = vsub.f32 %v2080_v48, %v2081_v43  ;;  %v3126_v53 = vmul.f32 %v16906_v44, %v20251_v41  ;;  %v3127_v58 = vmul.f32 %v16907_v49, %v20251_v41  ;;  %v20290_v48 = vrot.slane %v3047_v37, %v19985_v10 }
 0x365   :  { %v16915_v43 = vsel %vm3147_vm13, 1.0, %v26087_v3  ;;  %v3817_v24 = vmul.f32 %v16933_v0, %v20305_v4  ;;  %v3857_v26 = vmul.f32 %v16941_v11, %v20309_v5  ;;  %v20352_v37 = vrot.slane %v16931_v39, %v19985_v10 }
 0x366   :  { %2091 = vperm.xlu1 %19818, %v2082_v62   ;;  %v3134_v52 = vadd.f32 %v3126_v53, %v3086_v51  ;;  %v20299_v62 = vrot.slane %v16931_v39, %v19982_v9  ;;  %v3135_v16 = vadd.f32 %v3127_v58, %v3087_v56  ;;  %v3175_v17 = vmul.f32 %v16915_v43, %v20271_v54 }
 0x367   :  { %v3222_v22 = vmul.f32 %v16922_v63, %v20290_v48  ;;  %v3223_v28 = vmul.f32 %v16923_v18, %v20290_v48  ;;  %v3818_v47 = vmul.f32 %v16934_v23, %v20305_v4  ;;  %v3858_v49 = vmul.f32 %v16942_v25, %v20309_v5 }
 0x368   :  { %v3182_v21 = vadd.f32 %v3174_v61, %v3134_v52  ;;  %vm3877_vm7 = vcmp.eq.s32.totalorder %v19960_v2, %v20299_v62  ;;  %vm3878_vm13 = vcmp.eq.s32.totalorder %v19973_v6, %v20299_v62  ;;  %v3183_v42 = vadd.f32 %v3175_v17, %v3135_v16 }
 0x369   :  { %v16949_v34 = vsel %vm3877_vm7, 1.0, %v26087_v3  ;;  %v16900_v51 = vsel %vm3060_vm8, 1.0, %v26087_v3  ;;  %v16901_v53 = vsel %vm3061_vm10, 1.0, %v26087_v3  ;;  %v16909_v56 = vsel %vm3101_vm12, 1.0, %v26087_v3 }
 0x36a   :  { %v20354_v44 = vadd.f32 %v3222_v22, %v3182_v21  ;;  %v3865_v58 = vadd.f32 %v3857_v26, %v3817_v24  ;;  %v16950_v52 = vsel %vm3878_vm13, 1.0, %v26087_v3  ;;  %v3905_v39 = vmul.f32 %v16949_v34, %v20337_v27 }
 0x36b   :  { %vm3925_vm14 = vcmp.eq.s32.totalorder %v19960_v2, %v20352_v37  ;;  %vm3926_vm15 = vcmp.eq.s32.totalorder %v19973_v6, %v20352_v37  ;;  %v3088_v43 = vmul.f32 %v16900_v51, %v20246_v40  ;;  %v3089_v61 = vmul.f32 %v16901_v53, %v20246_v40 }
 0x36c   :  { %v3128_v63 = vmul.f32 %v16908_v55, %v20251_v41  ;;  %v3129_v0 = vmul.f32 %v16909_v56, %v20251_v41  ;;  %v20376_v16 = vadd.f32 %v3223_v28, %v3183_v42  ;;  %v3866_v18 = vadd.f32 %v3858_v49, %v3818_v47 }
 0x36d   :  { %v3906_v21 = vmul.f32 %v16950_v52, %v20337_v27  ;;  %v16916_v22 = vsel %vm3148_vm1, 1.0, %v26087_v3  ;;  %v16917_v23 = vsel %vm3149_vm2, 1.0, %v26087_v3  ;;  %v3913_v24 = vadd.f32 %v3905_v39, %v3865_v58 }
 0x36e   :  { %v16957_v25 = vsel %vm3925_vm14, 1.0, %v26087_v3  ;;  %v16958_v26 = vsel %vm3926_vm15, 1.0, %v26087_v3  ;;  %v20394_v28 = vrot.slane %v20283_v60, %v19985_v10  ;;  %v3136_v47 = vadd.f32 %v3128_v63, %v3088_v43 }
 0x36f   :  { %v3137_v49 = vadd.f32 %v3129_v0, %v3089_v61  ;;  %v3176_v53 = vmul.f32 %v16916_v22, %v20271_v54  ;;  %v3177_v55 = vmul.f32 %v16917_v23, %v20271_v54  ;;  %v16924_v56 = vsel %vm3196_vm4, 1.0, %v26087_v3 }
 0x370   :  { %vm3791_vm7 = vcmp.eq.s32.totalorder %v20315_v12, %v20261_v46  ;;  %vm3831_vm8 = vcmp.eq.s32.totalorder %v20315_v12, %v20266_v50  ;;  %v3954_v60 = vmul.f32 %v16958_v26, %v20394_v28  ;;  %vm3792_vm10 = vcmp.eq.s32.totalorder %v20318_v13, %v20261_v46 }
 0x371   :  { %v16925_v61 = vsel %vm3197_vm5, 1.0, %v26087_v3  ;;  %v3184_v63 = vadd.f32 %v3176_v53, %v3136_v47  ;;  %v3224_v0 = vmul.f32 %v16924_v56, %v20290_v48  ;;  %v3185_v23 = vadd.f32 %v3177_v55, %v3137_v49 }
 0x372   :  { %vm3879_vm12 = vcmp.eq.s32.totalorder %v20315_v12, %v20299_v62  ;;  %v3225_v47 = vmul.f32 %v16925_v61, %v20290_v48  ;;  %v3246_v56 = vand.u32 4294901760, %v20376_v16  ;;  %vm3927_vm13 = vcmp.eq.s32.totalorder %v20315_v12, %v20352_v37 }
 0x373   :  { %v16951_v61 = vsel %vm3879_vm12, 1.0, %v26087_v3  ;;  %v3232_v20 = vadd.f32 %v3224_v0, %v3184_v63  ;;  %vm3928_vm14 = vcmp.eq.s32.totalorder %v20318_v13, %v20352_v37  ;;  %v20462_v63 = vadd.s32 40, %v19960_v2 }
 0x374   :  { %v3233_v1 = vadd.f32 %v3225_v47, %v3185_v23  ;;  %v26761_v47 = vand.u32 4294901760, %v20354_v44 }
 0x375   :  { %26760 = vst [vmem:[#allocation12_spill] sm:$0xff] %v20462_v63  ;;  %vm3063_vm2 = vcmp.eq.s32.totalorder %v20462_v63, %v20225_v35  ;;  %vm3103_vm4 = vcmp.eq.s32.totalorder %v20462_v63, %v20228_v36  ;;  %vm3199_vm12 = vcmp.eq.s32.totalorder %v20462_v63, %v20258_v45 }
 0x3e1   :  { %v2086_v11 = vpop.permute.xlu1 %2085 }
 0x3e2   :  { %v2088_v34 = vmul.f32 %v20164_v30, %v2086_v11  ;;  %v2096_v42 = vmul.f32 %v20166_v33, %v2086_v11  ;;  %v3914_v30 = vadd.f32 %v3906_v21, %v3866_v18  ;;  %v3953_v33 = vmul.f32 %v16957_v25, %v20394_v28 }
 0x3e3   :  { %v16935_v11 = vsel %vm3791_vm7, 1.0, %v26087_v3  ;;  %v16943_v18 = vsel %vm3831_vm8, 1.0, %v26087_v3  ;;  %v16936_v25 = vsel %vm3792_vm10, 1.0, %v26087_v3  ;;  %vm3151_vm7 = vcmp.eq.s32.totalorder %v20462_v63, %v20238_v38 }
 0x3e4   :  { %v3859_v53 = vmul.f32 %v16943_v18, %v20309_v5 }
 0x3e5   :  { %v2092_v51 = vpop.permute.xlu1 %2091 }
 0x3e6   :  { %v2094_v58 = vadd.f32 %v2092_v51, %v2088_v34  ;;  %v2097_v52 = vadd.f32 %v2096_v42, %v2092_v51  ;;  %v16944_v42 = vsel %vm3832_vm11, 1.0, %v26087_v3  ;;  %v3819_v51 = vmul.f32 %v16935_v11, %v20305_v4 }
 0x3e8   :  { %v2095_v39 = vmax.f32 %v2094_v58, 0.0  ;;  %v2098_v43 = vmax.f32 %v2097_v52, 0.0  ;;  %v20440_v58 = vadd.s32 32, %v19960_v2  ;;  %v3961_v52 = vadd.f32 %v3953_v33, %v3913_v24 }
 0x3e9   :  { %v3867_v17 = vadd.f32 %v3859_v53, %v3819_v51  ;;  %v20470_v51 = vpack.c.bf16 %v3246_v56, %v26761_v47 }
 0x3ea   :  { %v2122_v21 = vsel %vm152_vm9, %v2095_v39, 0  ;;  %v2584_v22 = vsel %vm152_vm9, %v2098_v43, 0  ;;  %vm3880_vm9 = vcmp.eq.s32.totalorder %v20318_v13, %v20299_v62  ;;  %26758 = vst [vmem:[#allocation11_spill] sm:$0xff] %v20440_v58  ;;  %v3820_v39 = vmul.f32 %v16936_v25, %v20305_v4 }
 0x3eb   :  { %v20420_v26 = vand.u32 4294901760, %v2122_v21  ;;  %v20422_v34 = vand.u32 4294901760, %v2584_v22  ;;  %v3860_v43 = vmul.f32 %v16944_v42, %v20309_v5  ;;  %v3907_v25 = vmul.f32 %v16951_v61, %v20337_v27 }
 0x3ec   :  { %vm3062_vm15 = vcmp.eq.s32.totalorder %v20440_v58, %v20225_v35  ;;  %vm3102_vm1 = vcmp.eq.s32.totalorder %v20440_v58, %v20228_v36  ;;  %v3973_v53 = vand.u32 4294901760, %v3961_v52  ;;  %v26762_v61 = vmov %v26761_v47 }
 0x3ed   :  { %v20433_v49 = vsub.f32 %v2122_v21, %v20420_v26  ;;  %v20436_v55 = vsub.f32 %v2584_v22, %v20422_v34  ;;  %v16952_v21 = vsel %vm3880_vm9, 1.0, %v26087_v3  ;;  %v3962_v22 = vadd.f32 %v3954_v60, %v3914_v30 }
 0x3ee   :  { %v3868_v42 = vadd.f32 %v3860_v43, %v3820_v39  ;;  %v3908_v3 = vmul.f32 %v16952_v21, %v20337_v27  ;;  %v26759_v30 = vmov 0.0   ;;  %v20476_v21 = vsub.f32 %v20354_v44, %v26762_v61 }
 0x3ef   :  { %v26090_v11 = vand.u32 4294901760, %v20433_v49  ;;  %v26089_v18 = vand.u32 4294901760, %v20436_v55  ;;  %v16959_v60 = vsel %vm3927_vm13, 1.0, %v26759_v30  ;;  %v3976_v39 = vand.u32 4294901760, %v3962_v22 }
 0x3f0   :  { %v16960_v43 = vsel %vm3928_vm14, 1.0, %v26759_v30  ;;  %v16902_v47 = vsel %vm3062_vm15, 1.0, %v26759_v30  ;;  %v16910_v44 = vsel %vm3102_vm1, 1.0, %v26759_v30  ;;  %vm3150_vm5 = vcmp.eq.s32.totalorder %v20440_v58, %v20238_v38 }
 0x3f1   :  { %v2194_v24 = vsub.f32 %v20433_v49, %v26090_v11  ;;  %v2656_v33 = vsub.f32 %v20436_v55, %v26089_v18  ;;  %v3955_v18 = vmul.f32 %v16959_v60, %v20394_v28  ;;  %v26763_v60 = vmov 0.0|0.0  }
 0x3f2   :  { %v20504_v61 = vsub.f32 %v3961_v52, %v3973_v53  ;;  %v16903_v11 = vsel %vm3063_vm2, 1.0, %v26759_v30  ;;  %v20510_v6 = vsub.f32 %v3962_v22, %v3976_v39  ;;  %vm3793_vm8 = vcmp.eq.s32.totalorder %v20440_v58, %v20261_v46 }
 0x3f3   :  { %v2195_v0 = vand.u32 4294901760, %v2194_v24  ;;  %v2657_v23 = vand.u32 4294901760, %v2656_v33  ;;  %v3249_v24 = vand.u32 4294901760, %v3232_v20  ;;  %v3915_v33 = vadd.f32 %v3907_v25, %v3867_v17 }
 0x3f4   :  { %v3916_v17 = vadd.f32 %v3908_v3, %v3868_v42  ;;  %v3956_v25 = vmul.f32 %v16960_v43, %v20394_v28  ;;  %v3090_v3 = vmul.f32 %v16902_v47, %v20246_v40  ;;  %v16911_v42 = vsel %vm3103_vm4, 1.0, %v26759_v30 }
 0x3f5   :  { %17998 = vmatmul.mubr.f32.vlgmr.msra.gmra.mrb[4].mxu0 %v2195_v0  ;;  %18040 = vmatmul.mubr.f32.vlgmr.msra.gmra.mrb[4].mxu1 %v2657_v23  ;;  %v20500_v0 = vsub.f32 %v20376_v16, %v3246_v56  ;;  %v20502_v23 = vpack.c.bf16 %v3976_v39, %v3973_v53  ;;  %v3130_v43 = vmul.f32 %v16910_v44, %v20251_v41  ;;  %v16918_v16 = vsel %vm3150_vm5, 1.0, %v26759_v30  ;;  %v20549_v39 = vld [vmem:[%s26064_s13] sm:$0xff]  ;;  %s19831_s13 = smov 120  }
 0x3f6   :  { %18466 = vmatpush3.bf16.msra.mxu0 %v20215_v29  ;;  %18484 = vmatpush3.bf16.msra.mxu1 %v20215_v29  ;;  %v3252_v29 = vand.u32 4294901760, %v3233_v1  ;;  %v20512_v10 = vadd.f32 %v3955_v18, %v3915_v33  ;;  %v20519_v52 = vsub.f32 %v3232_v20, %v3249_v24  ;;  %v20523_v47 = vadd.f32 %v3956_v25, %v3916_v17 }
 0x3f7   :  { %18004 = vmatprep.mubr.msk.f32.mxu0 %vm19827_vm0, %v26759_v30  ;;  %18046 = vmatprep.mubr.msk.f32.mxu1 %vm19827_vm0, %v26759_v30  ;;  %v3091_v9 = vmul.f32 %v16903_v11, %v20246_v40  ;;  %v3131_v22 = vmul.f32 %v16911_v42, %v20251_v41  ;;  %vm3833_vm10 = vcmp.eq.s32.totalorder %v20440_v58, %v20266_v50  ;;  %v20564_v33 = vadd.s32 48, %v19960_v2 }
 0x3f8   :  { %18467 = vmatprep.subr.bf16.mxu0 %v26763_v60  ;;  %18485 = vmatprep.subr.bf16.mxu1 %v26763_v60  ;;  %v20517_v56 = vpack.c.bf16 %v3252_v29, %v3249_v24  ;;  %v20521_v53 = vsub.f32 %v3233_v1, %v3252_v29  ;;  %v3138_v20 = vadd.f32 %v3130_v43, %v3090_v3  ;;  %v16919_v1 = vsel %vm3151_vm7, 1.0, %v26759_v30 }
 0x3f9   :  { %v3178_v18 = vmul.f32 %v16918_v16, %v20271_v54  ;;  %vm3198_vm11 = vcmp.eq.s32.totalorder %v20440_v58, %v20258_v45  ;;  %v26097_v11 = vand.u32 4294901760, %v20512_v10  ;;  %vm3794_vm9 = vcmp.eq.s32.totalorder %v20462_v63, %v20261_v46  ;;  %26764 = vst [vmem:[#allocation13_spill] sm:$0xff] %v20564_v33  ;;  %4512 = vrot.lane.b32.xlu1 %v20549_v39, %s19831_s13 }
 0x3fa   :  { %vm3834_vm13 = vcmp.eq.s32.totalorder %v20462_v63, %v20266_v50  ;;  %v16945_v24 = vsel %vm3833_vm10, 1.0, %v26759_v30  ;;  %v20567_v44 = vadd.s32 56, %v19960_v2  ;;  %v3139_v17 = vadd.f32 %v3131_v22, %v3091_v9 }
 0x3fb   :  { %v20574_v29 = vsub.f32 %v20512_v10, %v26097_v11  ;;  %v3179_v25 = vmul.f32 %v16919_v1, %v20271_v54  ;;  %v16926_v3 = vsel %vm3198_vm11, 1.0, %v26759_v30  ;;  %v3186_v42 = vadd.f32 %v3178_v18, %v3138_v20 }
 0x3fc   :  { %26765 = vst [vmem:[#allocation14_spill] sm:$0xff] %v20567_v44  ;;  %v16938_v43 = vsel %vm3794_vm9, 1.0, %v26759_v30  ;;  %v16946_v16 = vsel %vm3834_vm13, 1.0, %v26759_v30  ;;  %vm3881_vm14 = vcmp.eq.s32.totalorder %v20440_v58, %v20299_v62  ;;  %v16927_v9 = vsel %vm3199_vm12, 1.0, %v26759_v30 }
 0x3fd   :  { %18005 = vmatmul.mubr.f32.vlgmr.msra.gmra.mrb[4].mxu0 %v20420_v26  ;;  %18047 = vmatmul.mubr.f32.vlgmr.msra.gmra.mrb[4].mxu1 %v20422_v34  ;;  %v3861_v20 = vmul.f32 %v16945_v24, %v20309_v5  ;;  %vm3882_vm15 = vcmp.eq.s32.totalorder %v20462_v63, %v20299_v62  ;;  %vm3064_vm1 = vcmp.eq.s32.totalorder %v20564_v33, %v20225_v35  ;;  %v16953_v24 = vsel %vm3881_vm14, 1.0, %v26759_v30 }
 0x3fe   :  { %18469 = vmatpush3.bf16.msra.mxu0 %v20217_v31  ;;  %18487 = vmatpush3.bf16.msra.mxu1 %v20217_v31  ;;  %v16937_v31 = vsel %vm3793_vm8, 1.0, %v26759_v30  ;;  %vm3065_vm2 = vcmp.eq.s32.totalorder %v20567_v44, %v20225_v35  ;;  %vm3104_vm4 = vcmp.eq.s32.totalorder %v20564_v33, %v20228_v36  ;;  %vm3105_vm5 = vcmp.eq.s32.totalorder %v20567_v44, %v20228_v36 }
 0x3ff   :  { %18011 = vmatprep.mubr.msk.f32.mxu0 %vm19827_vm0, %v26759_v30  ;;  %18053 = vmatprep.mubr.msk.f32.mxu1 %vm19827_vm0, %v26759_v30  ;;  %v3821_v22 = vmul.f32 %v16937_v31, %v20305_v4  ;;  %v3226_v1 = vmul.f32 %v16926_v3, %v20290_v48  ;;  %v3822_v18 = vmul.f32 %v16938_v43, %v20305_v4  ;;  %v16954_v7 = vsel %vm3882_vm15, 1.0, %v26759_v30 }
 0x400   :  { %18470 = vmatprep.subr.bf16.mxu0 %v26763_v60  ;;  %18488 = vmatprep.subr.bf16.mxu1 %v26763_v60  ;;  %v3862_v31 = vmul.f32 %v16946_v16, %v20309_v5  ;;  %v3187_v11 = vadd.f32 %v3179_v25, %v3139_v17  ;;  %v3227_v8 = vmul.f32 %v16927_v9, %v20290_v48  ;;  %v26766_v2 = vmov 1.0|1.0  }
 0x401   :  { %vm3929_vm7 = vcmp.eq.s32.totalorder %v20440_v58, %v20352_v37  ;;  %v16904_v17 = vsel %vm3064_vm1, 1.0, %v26759_v30  ;;  %v16905_v25 = vsel %vm3065_vm2, 1.0, %v26759_v30  ;;  %v16912_v3 = vsel %vm3104_vm4, 1.0, %v26759_v30 }
 0x402   :  { %v16913_v43 = vsel %vm3105_vm5, 1.0, %v26759_v30  ;;  %v3869_v16 = vadd.f32 %v3861_v20, %v3821_v22  ;;  %v3909_v35 = vmul.f32 %v16953_v24, %v20337_v27  ;;  %vm3152_vm8 = vcmp.eq.s32.totalorder %v20564_v33, %v20238_v38 }
 0x403   :  { %v3870_v9 = vadd.f32 %v3862_v31, %v3822_v18  ;;  %v3910_v36 = vmul.f32 %v16954_v7, %v20337_v27  ;;  %v16961_v13 = vsel %vm3929_vm7, 1.0, %v26759_v30  ;;  %vm3153_vm10 = vcmp.eq.s32.totalorder %v20567_v44, %v20238_v38 }
 0x404   :  { %v3092_v22 = vmul.f32 %v16904_v17, %v20246_v40  ;;  %v3093_v20 = vmul.f32 %v16905_v25, %v20246_v40  ;;  %v3132_v24 = vmul.f32 %v16912_v3, %v20251_v41  ;;  %v3133_v12 = vmul.f32 %v16913_v43, %v20251_v41 }
 0x405   :  { %18012 = vmatmul.mubr.f32.vlgmr.msra.gmra.mrb[4].mxu0 %v20433_v49  ;;  %18054 = vmatmul.mubr.f32.vlgmr.msra.gmra.mrb[4].mxu1 %v20436_v55  ;;  %v20661_v15 = vadd.f32 %v3226_v1, %v3186_v42  ;;  %v20663_v18 = vadd.f32 %v3227_v8, %v3187_v11  ;;  %vm3930_vm11 = vcmp.eq.s32.totalorder %v20462_v63, %v20352_v37  ;;  %v16920_v7 = vsel %vm3152_vm8, 1.0, %v26759_v30 }
 0x406   :  { %18472 = vmatpush3.bf16.msk.msra.mxu0 %vm20203_vm6, %v26766_v2  ;;  %18490 = vmatpush3.bf16.msk.msra.mxu1 %vm20203_vm6, %v26766_v2  ;;  %v3917_v31 = vadd.f32 %v3909_v35, %v3869_v16  ;;  %v16921_v38 = vsel %vm3153_vm10, 1.0, %v26759_v30  ;;  %vm3795_vm12 = vcmp.eq.s32.totalorder %v20564_v33, %v20261_v46  ;;  %vm3835_vm9 = vcmp.eq.s32.totalorder %v20564_v33, %v20266_v50  ;;  %v3045_v35 = vld [vmem:[%s26065_s1] sm:$0xff] }
 0x407   :  { %18018 = vmatprep.mubr.msk.f32.mxu0 %vm19827_vm0, %v26759_v30  ;;  %18060 = vmatprep.mubr.msk.f32.mxu1 %vm19827_vm0, %v26759_v30  ;;  %v20673_v40 = vadd.f32 %v3910_v36, %v3870_v9  ;;  %v3957_v41 = vmul.f32 %v16961_v13, %v20394_v28  ;;  %vm3796_vm13 = vcmp.eq.s32.totalorder %v20567_v44, %v20261_v46  ;;  %v26767_v8 = vand.u32 4294901760, %v20433_v49  ;;  %v16930_v9 = vld [vmem:[%s26065_s1 + $0x8] sm:$0xff] }
 0x408   :  { %18473 = vmatprep.subr.bf16.mxu0 %v26763_v60  ;;  %18491 = vmatprep.subr.bf16.mxu1 %v26763_v60  ;;  %vm3836_vm14 = vcmp.eq.s32.totalorder %v20567_v44, %v20266_v50  ;;  %v26768_v11 = vand.u32 4294901760, %v20436_v55  ;;  %v16962_v42 = vsel %vm3930_vm11, 1.0, %v26759_v30  ;;  %v3140_v1 = vadd.f32 %v3132_v24, %v3092_v22 }
 0x409   :  { %v3141_v17 = vadd.f32 %v3133_v12, %v3093_v20  ;;  %v3180_v25 = vmul.f32 %v16920_v7, %v20271_v54  ;;  %v3181_v13 = vmul.f32 %v16921_v38, %v20271_v54  ;;  %vm3200_vm15 = vcmp.eq.s32.totalorder %v20564_v33, %v20258_v45 }
 0x40a   :  { %v16939_v49 = vsel %vm3795_vm12, 1.0, %v26759_v30  ;;  %v16947_v12 = vsel %vm3835_vm9, 1.0, %v26759_v30  ;;  %vm3201_vm1 = vcmp.eq.s32.totalorder %v20567_v44, %v20258_v45  ;;  %v16948_v54 = vsel %vm3836_vm14, 1.0, %v26759_v30 }
 0x40b   :  { %vm3883_vm2 = vcmp.eq.s32.totalorder %v20564_v33, %v20299_v62  ;;  %v3982_v55 = vand.u32 4294901760, %v20523_v47  ;;  %v3958_v3 = vmul.f32 %v16962_v42, %v20394_v28  ;;  %v20719_v43 = vadd.f32 %v3957_v41, %v3917_v31 }
 0x40c   :  { %vm3884_vm4 = vcmp.eq.s32.totalorder %v20567_v44, %v20299_v62  ;;  %v16928_v46 = vsel %vm3200_vm15, 1.0, %v26759_v30  ;;  %v3823_v50 = vmul.f32 %v16939_v49, %v20305_v4  ;;  %v3863_v16 = vmul.f32 %v16947_v12, %v20309_v5 }
 0x40d   :  { %18019 = vmatmul.mubr.f32.vlgmr.msra.gmra.mrb[4].mxu0 %v26767_v8  ;;  %18061 = vmatmul.mubr.f32.vlgmr.msra.gmra.mrb[4].mxu1 %v26768_v11  ;;  %vm3238_vm5 = vcmask 523264   ;;  %v16929_v36 = vsel %vm3201_vm1, 1.0, %v26759_v30  ;;  %v3864_v20 = vmul.f32 %v16948_v54, %v20309_v5  ;;  %v16955_v24 = vsel %vm3883_vm2, 1.0, %v26759_v30 }
 0x40e   :  { %18475 = vmatpush3.bf16.msra.mxu0 %v20219_v32  ;;  %18493 = vmatpush3.bf16.msra.mxu1 %v20219_v32  ;;  %v16940_v32 = vsel %vm3796_vm13, 1.0, %v26759_v30  ;;  %v3188_v7 = vadd.f32 %v3180_v25, %v3140_v1  ;;  %v3189_v31 = vadd.f32 %v3181_v13, %v3141_v17  ;;  %v16956_v38 = vsel %vm3884_vm4, 1.0, %v26759_v30 }
 0x40f   :  { %18025 = vmatprep.mubr.msk.f32.mxu0 %vm19827_vm0, %v26759_v30  ;;  %18067 = vmatprep.mubr.msk.f32.mxu1 %vm19827_vm0, %v26759_v30  ;;  %v3824_v22 = vmul.f32 %v16940_v32, %v20305_v4  ;;  %vm3931_vm7 = vcmp.eq.s32.totalorder %v20564_v33, %v20352_v37  ;;  %v3228_v41 = vmul.f32 %v16928_v46, %v20290_v48  ;;  %v3240_v45 = vsel %vm3238_vm5, %v3045_v35, 0 }
 0x410   :  { %18476 = vmatprep.subr.bf16.mxu0 %v26763_v60  ;;  %18494 = vmatprep.subr.bf16.mxu1 %v26763_v60  ;;  %vm3932_vm8 = vcmp.eq.s32.totalorder %v20567_v44, %v20352_v37  ;;  %v3970_v4 = vsel %vm3238_vm5, %v16930_v9, 0  ;;  %v3229_v62 = vmul.f32 %v16929_v36, %v20290_v48  ;;  %v3871_v5 = vadd.f32 %v3863_v16, %v3823_v50 }
 0x411   :  { %v3911_v8 = vmul.f32 %v16955_v24, %v20337_v27  ;;  %v26769_v11 = vand.u32 4294901760, %v20512_v10  ;;  %v3872_v1 = vadd.f32 %v3864_v20, %v3824_v22  ;;  %v3912_v17 = vmul.f32 %v16956_v38, %v20337_v27 }
 0x412   :  { %v16963_v48 = vsel %vm3931_vm7, 1.0, %v26759_v30  ;;  %v20774_v25 = vsub.f32 %v20523_v47, %v3982_v55  ;;  %v16964_v10 = vsel %vm3932_vm8, 1.0, %v26759_v30  ;;  %v20780_v19 = vand.u32 4294901760, %v3240_v45 }
 0x413   :  { %v20765_v42 = vpack.c.bf16 %v3982_v55, %v26769_v11  ;;  %v20782_v13 = vand.u32 4294901760, %v3970_v4  ;;  %v3255_v27 = vand.u32 4294901760, %v20661_v15  ;;  %v3258_v49 = vand.u32 4294901760, %v20663_v18 }
 0x414   :  { %v3966_v47 = vadd.f32 %v3958_v3, %v20673_v40  ;;  %v3985_v12 = vand.u32 4294901760, %v20719_v43  ;;  %v3236_v32 = vadd.f32 %v3228_v41, %v3188_v7  ;;  %v3237_v54 = vadd.f32 %v3229_v62, %v3189_v31 }
 0x415   :  { %18026 = vmatmul.mubr.f32.vlgmr.msra.gmra.mrb[4].mxu0 %v20420_v26  ;;  %18068 = vmatmul.mubr.f32.vlgmr.msra.gmra.mrb[4].mxu1 %v20422_v34  ;;  %v3919_v37 = vadd.f32 %v3911_v8, %v3871_v5  ;;  %v3959_v55 = vmul.f32 %v16963_v48, %v20394_v28  ;;  %v3920_v46 = vadd.f32 %v3912_v17, %v3872_v1  ;;  %v26119_v16 = vand.u32 4294901760, %v20476_v21 }
 0x416   :  { %18478 = vmatpush3.bf16.msk.msra.mxu0 %vm20203_vm6, %v26766_v2  ;;  %18496 = vmatpush3.bf16.msk.msra.mxu1 %vm20203_vm6, %v26766_v2  ;;  %v3960_v50 = vmul.f32 %v16964_v10, %v20394_v28  ;;  %v26118_v35 = vand.u32 4294901760, %v20500_v0  ;;  %v20795_v9 = vsub.f32 %v3240_v45, %v20780_v19  ;;  %v20798_v36 = vsub.f32 %v3970_v4, %v20782_v13 }
 0x417   :  { %18032 = vmatprep.mubr.msk.f32.mxu0 %vm19827_vm0, %v26759_v30  ;;  %18074 = vmatprep.mubr.msk.f32.mxu1 %vm19827_vm0, %v26759_v30  ;;  %v26117_v40 = vand.u32 4294901760, %v20504_v61  ;;  %v26116_v3 = vand.u32 4294901760, %v20510_v6  ;;  %v20802_v22 = vpack.c.bf16 %v3258_v49, %v3255_v27  ;;  %v20805_v20 = vsub.f32 %v20661_v15, %v3255_v27 }
 0x418   :  { %18497 = vmatprep.subr.bf16.mxu0 %v26763_v60  ;;  %18569 = vmatprep.subr.bf16.mxu1 %v26763_v60  ;;  %v20808_v28 = vsub.f32 %v20663_v18, %v3258_v49  ;;  %v3988_v24 = vand.u32 4294901760, %v3966_v47  ;;  %v20813_v7 = vsub.f32 %v20719_v43, %v3985_v12  ;;  %v3261_v31 = vand.u32 4294901760, %v3236_v32 }
 0x419   :  { %v3264_v38 = vand.u32 4294901760, %v3237_v54  ;;  %v3967_v41 = vadd.f32 %v3959_v55, %v3919_v37  ;;  %v3968_v15 = vadd.f32 %v3960_v50, %v3920_v46  ;;  %v3329_v18 = vsub.f32 %v20476_v21, %v26119_v16 }
 0x41a   :  { %v26112_v43 = vand.u32 4294901760, %v20798_v36  ;;  %v4059_v45 = vsub.f32 %v20504_v61, %v26117_v40  ;;  %v4066_v4 = vsub.f32 %v20510_v6, %v26116_v3  ;;  %v20833_v62 = vpack.c.bf16 %v3988_v24, %v3985_v12 }
 0x41b   :  { %v26110_v5 = vand.u32 4294901760, %v20519_v52  ;;  %v26111_v8 = vand.u32 4294901760, %v20521_v53  ;;  %v26113_v11 = vand.u32 4294901760, %v20574_v29  ;;  %v20842_v1 = vsub.f32 %v3966_v47, %v3988_v24 }
 0x41c   :  { %v20844_v17 = vpack.c.bf16 %v3264_v38, %v3261_v31  ;;  %v20846_v48 = vsub.f32 %v3236_v32, %v3261_v31  ;;  %v26114_v10 = vand.u32 4294901760, %v20774_v25  ;;  %v3991_v27 = vand.u32 4294901760, %v3967_v41 }
 0x41d   :  { %18033 = vmatmul.mubr.f32.vlgmr.msra.gmra.mrb[4].mxu0 %v20420_v26  ;;  %18075 = vmatmul.mubr.f32.vlgmr.msra.gmra.mrb[4].mxu1 %v20422_v34  ;;  %v3336_v26 = vsub.f32 %v20500_v0, %v26118_v35  ;;  %v26115_v34 = vand.u32 4294901760, %v20795_v9  ;;  %v3994_v49 = vand.u32 4294901760, %v3968_v15  ;;  %v3330_v12 = vand.u32 4294901760, %v3329_v18 }
 0x41e   :  { %18499 = vmatpush3.bf16.msra.mxu0 %v20470_v51  ;;  %18571 = vmatpush3.bf16.msra.mxu1 %v20502_v23  ;;  %v4048_v32 = vsub.f32 %v20798_v36, %v26112_v43  ;;  %v4060_v55 = vand.u32 4294901760, %v4059_v45  ;;  %v4067_v46 = vand.u32 4294901760, %v4066_v4  ;;  %v3343_v50 = vsub.f32 %v20519_v52, %v26110_v5 }
 0x41f   :  { %18500 = vmatprep.subr.bf16.mxu0 %v26763_v60  ;;  %18572 = vmatprep.subr.bf16.mxu1 %v26763_v60  ;;  %v3337_v37 = vand.u32 4294901760, %v3336_v26  ;;  %v3318_v47 = vsub.f32 %v20795_v9, %v26115_v34  ;;  %v3350_v24 = vsub.f32 %v20521_v53, %v26111_v8  ;;  %v4073_v31 = vsub.f32 %v20574_v29, %v26113_v11 }
 0x420   :  { %18093 = vmatprep.mubr.msk.f32.mxu0 %vm19827_vm0, %v26759_v30  ;;  %18207 = vmatprep.mubr.msk.f32.mxu1 %vm19827_vm0, %v26759_v30  ;;  %v3356_v18 = vand.u32 4294901760, %v20805_v20  ;;  %v20869_v26 = vsub.f32 %v3237_v54, %v3264_v38  ;;  %v4080_v45 = vsub.f32 %v20774_v25, %v26114_v10  ;;  %v26122_v4 = vand.u32 4294901760, %v20808_v28 }
 0x421   :  { %v26121_v5 = vand.u32 4294901760, %v20813_v7  ;;  %v20878_v8 = vpack.c.bf16 %v3994_v49, %v3991_v27  ;;  %v20880_v43 = vsub.f32 %v3967_v41, %v3991_v27  ;;  %v20882_v11 = vsub.f32 %v3968_v15, %v3994_v49 }
 0x422   :  { %18502 = vmatpush3.bf16.msra.mxu0 %v20517_v56  ;;  %18574 = vmatpush3.bf16.msra.mxu1 %v20765_v42  ;;  %v26120_v54 = vand.u32 4294901760, %v20842_v1  ;;  %v3319_v38 = vand.u32 4294901760, %v3318_v47  ;;  %v18510_v10 = vpack.c.bf16 %v3337_v37, %v3330_v12  ;;  %v4049_v34 = vand.u32 4294901760, %v4048_v32 }
 0x423   :  { %18503 = vmatprep.subr.bf16.mxu0 %v26763_v60  ;;  %18575 = vmatprep.subr.bf16.mxu1 %v26763_v60  ;;  %v18582_v3 = vpack.c.bf16 %v4067_v46, %v4060_v55  ;;  %v3344_v40 = vand.u32 4294901760, %v3343_v50  ;;  %v3351_v35 = vand.u32 4294901760, %v3350_v24  ;;  %v4074_v16 = vand.u32 4294901760, %v4073_v31 }
 0x424   :  { %v3357_v41 = vsub.f32 %v20805_v20, %v3356_v18  ;;  %v4081_v27 = vand.u32 4294901760, %v4080_v45  ;;  %v3364_v15 = vsub.f32 %v20808_v28, %v26122_v4  ;;  %v4087_v49 = vsub.f32 %v20813_v7, %v26121_v5 }
 0x425   :  { %v3370_v12 = vand.u32 4294901760, %v20846_v48  ;;  %v4094_v37 = vsub.f32 %v20842_v1, %v26120_v54  ;;  %v3377_v47 = vand.u32 4294901760, %v20869_v26  ;;  %v4100_v32 = vand.u32 4294901760, %v20880_v43 }
 0x426   :  { %18505 = vmatpush3.bf16.msra.mxu0 %v20802_v22  ;;  %18577 = vmatpush3.bf16.msra.mxu1 %v20833_v62  ;;  %v4107_v55 = vand.u32 4294901760, %v20882_v11  ;;  %v18513_v46 = vpack.c.bf16 %v3351_v35, %v3344_v40  ;;  %v3358_v50 = vand.u32 4294901760, %v3357_v41  ;;  %v18585_v24 = vpack.c.bf16 %v4081_v27, %v4074_v16 }
 0x427   :  { %18506 = vmatprep.subr.bf16.mxu0 %v26763_v60  ;;  %18578 = vmatprep.subr.bf16.mxu1 %v26763_v60  ;;  %v3365_v31 = vand.u32 4294901760, %v3364_v15  ;;  %v4088_v45 = vand.u32 4294901760, %v4087_v49  ;;  %v3371_v54 = vsub.f32 %v20846_v48, %v3370_v12  ;;  %v4095_v5 = vand.u32 4294901760, %v4094_v37 }
 0x428   :  { %v3378_v4 = vsub.f32 %v20869_v26, %v3377_v47  ;;  %v4101_v35 = vsub.f32 %v20880_v43, %v4100_v32  ;;  %v4108_v16 = vsub.f32 %v20882_v11, %v4107_v55  ;;  %v18597_v49 = vpack.c.bf16 %v20774_v25, %v20574_v29 }
 0x429   :  { %v18516_v40 = vpack.c.bf16 %v3365_v31, %v3358_v50  ;;  %v18528_v37 = vpack.c.bf16 %v20808_v28, %v20805_v20  ;;  %v18531_v50 = vpack.c.bf16 %v20869_v26, %v20846_v48  ;;  %v26770_v31 = vand.u32 4294901760, %v20476_v21 }
 0x42a   :  { %18508 = vmatpush3.bf16.msra.mxu0 %v20844_v17  ;;  %18580 = vmatpush3.bf16.msra.mxu1 %v20878_v8  ;;  %v4109_v41 = vand.u32 4294901760, %v4108_v16  ;;  %v26772_v16 = vand.u32 4294901760, %v20504_v61  ;;  %v18627_v20 = vpack.c.bf16 %v4107_v55, %v4100_v32 }
 0x42b   :  { %18509 = vmatprep.subr.bf16.mxu0 %v26763_v60  ;;  %18581 = vmatprep.subr.bf16.mxu1 %v26763_v60 }
 0x42d   :  { %18094 = vmatmul.mubr.f32.vlgmr.msra.gmra.mrb[6].mxu0 %v3319_v38  ;;  %18208 = vmatmul.mubr.f32.vlgmr.msra.gmra.mrb[6].mxu1 %v4049_v34  ;;  %v18588_v34 = vpack.c.bf16 %v4095_v5, %v4088_v45  ;;  %v4102_v38 = vand.u32 4294901760, %v4101_v35  ;;  %v18522_v5 = vpack.c.bf16 %v20500_v0, %v20476_v21  ;;  %v26771_v45 = vand.u32 4294901760, %v20500_v0 }
 0x42e   :  { %18511 = vmatpush3.bf16.msra.mxu0 %v18510_v10  ;;  %18583 = vmatpush3.bf16.msra.mxu1 %v18582_v3  ;;  %v3372_v3 = vand.u32 4294901760, %v3371_v54  ;;  %v3379_v10 = vand.u32 4294901760, %v3378_v4  ;;  %v18594_v4 = vpack.c.bf16 %v20510_v6, %v20504_v61  ;;  %v18525_v54 = vpack.c.bf16 %v20521_v53, %v20519_v52 }
 0x42f   :  { %18512 = vmatprep.subr.bf16.mxu0 %v26763_v60  ;;  %18584 = vmatprep.subr.bf16.mxu1 %v26763_v60  ;;  %v18591_v15 = vpack.c.bf16 %v4109_v41, %v4102_v38  ;;  %v18546_v35 = vpack.c.bf16 %v26771_v45, %v26770_v31  ;;  %v26776_v21 = vand.u32 4294901760, %v20519_v52  ;;  %v26777_v0 = vand.u32 4294901760, %v20521_v53 }
 0x430   :  { %18112 = vmatprep.mubr.msk.f32.mxu0 %vm19827_vm0, %v26759_v30  ;;  %18226 = vmatprep.mubr.msk.f32.mxu1 %vm19827_vm0, %v26759_v30  ;;  %v18519_v27 = vpack.c.bf16 %v3379_v10, %v3372_v3  ;;  %v26775_v10 = vand.u32 4294901760, %v20798_v36  ;;  %v26779_v38 = vand.u32 4294901760, %v20774_v25  ;;  %v26780_v52 = vand.u32 4294901760, %v20808_v28 }
 0x431   :  { %v18549_v61 = vpack.c.bf16 %v26777_v0, %v26776_v21  ;;  %v26782_v25 = vand.u32 4294901760, %v20842_v1 }
 0x432   :  { %18514 = vmatpush3.bf16.msra.mxu0 %v18513_v46  ;;  %18586 = vmatpush3.bf16.msra.mxu1 %v18585_v24  ;;  %v18600_v46 = vpack.c.bf16 %v20842_v1, %v20813_v7  ;;  %v18603_v24 = vpack.c.bf16 %v20882_v11, %v20880_v43  ;;  %v18552_v53 = vpack.c.bf16 %v26780_v52, %v3356_v18 }
 0x433   :  { %18515 = vmatprep.subr.bf16.mxu0 %v26763_v60  ;;  %18587 = vmatprep.subr.bf16.mxu1 %v26763_v60 }
 0x436   :  { %18517 = vmatpush3.bf16.msra.mxu0 %v18516_v40  ;;  %18589 = vmatpush3.bf16.msra.mxu1 %v18588_v34  ;;  %v26773_v40 = vand.u32 4294901760, %v20510_v6  ;;  %v26774_v34 = vand.u32 4294901760, %v20795_v9  ;;  %v26778_v6 = vand.u32 4294901760, %v20574_v29  ;;  %v26781_v29 = vand.u32 4294901760, %v20813_v7 }
 0x437   :  { %18518 = vmatprep.subr.bf16.mxu0 %v26763_v60  ;;  %18590 = vmatprep.subr.bf16.mxu1 %v26763_v60  ;;  %v4962_v7 = vsel %vm1160_vm3, %v20549_v39, 0 }
 0x438   :  { %v18618_v3 = vpack.c.bf16 %v26773_v40, %v26772_v16  ;;  %v18621_v41 = vpack.c.bf16 %v26779_v38, %v26778_v6 }
 0x43a   :  { %18520 = vmatpush3.bf16.msra.mxu0 %v18519_v27  ;;  %18592 = vmatpush3.bf16.msra.mxu1 %v18591_v15 }
 0x43b   :  { %18521 = vmatprep.subr.bf16.mxu0 %v26763_v60  ;;  %18593 = vmatprep.subr.bf16.mxu1 %v26763_v60 }
 0x43d   :  { %18113 = vmatmul.mubr.f32.vlgmr.msra.gmra.mrb[6].mxu0 %v20780_v19  ;;  %18227 = vmatmul.mubr.f32.vlgmr.msra.gmra.mrb[6].mxu1 %v20782_v13 }
 0x43e   :  { %18523 = vmatpush3.bf16.msra.mxu0 %v18522_v5  ;;  %18595 = vmatpush3.bf16.msra.mxu1 %v18594_v4 }
 0x43f   :  { %18524 = vmatprep.subr.bf16.mxu0 %v26763_v60  ;;  %18596 = vmatprep.subr.bf16.mxu1 %v26763_v60 }
 0x440   :  { %18131 = vmatprep.mubr.msk.f32.mxu0 %vm19827_vm0, %v26759_v30  ;;  %18245 = vmatprep.mubr.msk.f32.mxu1 %vm19827_vm0, %v26759_v30 }
 0x442   :  { %18526 = vmatpush3.bf16.msra.mxu0 %v18525_v54  ;;  %18598 = vmatpush3.bf16.msra.mxu1 %v18597_v49 }
 0x443   :  { %18527 = vmatprep.subr.bf16.mxu0 %v26763_v60  ;;  %18599 = vmatprep.subr.bf16.mxu1 %v26763_v60 }
 0x446   :  { %18529 = vmatpush3.bf16.msra.mxu0 %v18528_v37  ;;  %18601 = vmatpush3.bf16.msra.mxu1 %v18600_v46 }
 0x447   :  { %18530 = vmatprep.subr.bf16.mxu0 %v26763_v60  ;;  %18602 = vmatprep.subr.bf16.mxu1 %v26763_v60 }
 0x44a   :  { %18532 = vmatpush3.bf16.msra.mxu0 %v18531_v50  ;;  %18604 = vmatpush3.bf16.msra.mxu1 %v18603_v24 }
 0x44b   :  { %18533 = vmatprep.subr.bf16.mxu0 %v26763_v60  ;;  %18605 = vmatprep.subr.bf16.mxu1 %v26763_v60 }
 0x44d   :  { %18132 = vmatmul.mubr.f32.vlgmr.msra.gmra.mrb[6].mxu0 %v20795_v9  ;;  %18246 = vmatmul.mubr.f32.vlgmr.msra.gmra.mrb[6].mxu1 %v20798_v36  ;;  %v18624_v9 = vpack.c.bf16 %v26782_v25, %v26781_v29  ;;  %v18555_v36 = vpack.c.bf16 %v3377_v47, %v3370_v12 }
 0x44e   :  { %18535 = vmatpush3.bf16.msra.mxu0 %v20470_v51  ;;  %18607 = vmatpush3.bf16.msra.mxu1 %v20502_v23 }
 0x44f   :  { %18536 = vmatprep.subr.bf16.mxu0 %v26763_v60  ;;  %18608 = vmatprep.subr.bf16.mxu1 %v26763_v60 }
 0x450   :  { %18150 = vmatprep.mubr.msk.f32.mxu0 %vm19827_vm0, %v26759_v30  ;;  %18264 = vmatprep.mubr.msk.f32.mxu1 %vm19827_vm0, %v26759_v30 }
 0x452   :  { %18538 = vmatpush3.bf16.msra.mxu0 %v20517_v56  ;;  %18610 = vmatpush3.bf16.msra.mxu1 %v20765_v42 }
 0x453   :  { %18539 = vmatprep.subr.bf16.mxu0 %v26763_v60  ;;  %18611 = vmatprep.subr.bf16.mxu1 %v26763_v60 }
 0x456   :  { %18541 = vmatpush3.bf16.msra.mxu0 %v20802_v22  ;;  %18613 = vmatpush3.bf16.msra.mxu1 %v20833_v62 }
 0x457   :  { %18542 = vmatprep.subr.bf16.mxu0 %v26763_v60  ;;  %18614 = vmatprep.subr.bf16.mxu1 %v26763_v60 }
 0x45a   :  { %18544 = vmatpush3.bf16.msra.mxu0 %v20844_v17  ;;  %18616 = vmatpush3.bf16.msra.mxu1 %v20878_v8 }
 0x45b   :  { %18545 = vmatprep.subr.bf16.mxu0 %v26763_v60  ;;  %18617 = vmatprep.subr.bf16.mxu1 %v26763_v60 }
 0x45d   :  { %18151 = vmatmul.mubr.f32.vlgmr.msra.gmra.mrb[6].mxu0 %v26774_v34  ;;  %18265 = vmatmul.mubr.f32.vlgmr.msra.gmra.mrb[6].mxu1 %v26775_v10 }
 0x45e   :  { %18547 = vmatpush3.bf16.msra.mxu0 %v18546_v35  ;;  %18619 = vmatpush3.bf16.msra.mxu1 %v18618_v3 }
 0x45f   :  { %18548 = vmatprep.subr.bf16.mxu0 %v26763_v60  ;;  %18620 = vmatprep.subr.bf16.mxu1 %v26763_v60 }
 0x460   :  { %18169 = vmatprep.mubr.msk.f32.mxu0 %vm19827_vm0, %v26759_v30  ;;  %18283 = vmatprep.mubr.msk.f32.mxu1 %vm19827_vm0, %v26759_v30 }
 0x462   :  { %18550 = vmatpush3.bf16.msra.mxu0 %v18549_v61  ;;  %18622 = vmatpush3.bf16.msra.mxu1 %v18621_v41 }
 0x463   :  { %18551 = vmatprep.subr.bf16.mxu0 %v26763_v60  ;;  %18623 = vmatprep.subr.bf16.mxu1 %v26763_v60 }
 0x466   :  { %18553 = vmatpush3.bf16.msra.mxu0 %v18552_v53  ;;  %18625 = vmatpush3.bf16.msra.mxu1 %v18624_v9 }
 0x467   :  { %18554 = vmatprep.subr.bf16.mxu0 %v26763_v60  ;;  %18626 = vmatprep.subr.bf16.mxu1 %v26763_v60 }
 0x46a   :  { %18556 = vmatpush3.bf16.msra.mxu0 %v18555_v36  ;;  %18628 = vmatpush3.bf16.msra.mxu1 %v18627_v20 }
 0x46b   :  { %18557 = vmatprep.subr.bf16.mxu0 %v26763_v60  ;;  %18629 = vmatprep.subr.bf16.mxu1 %v26763_v60 }
 0x46d   :  { %18170 = vmatmul.mubr.f32.vlgmr.msra.gmra.mrb[6].mxu0 %v20780_v19  ;;  %18284 = vmatmul.mubr.f32.vlgmr.msra.gmra.mrb[6].mxu1 %v20782_v13 }
 0x46e   :  { %18559 = vmatpush3.bf16.msra.mxu0 %v20470_v51  ;;  %18631 = vmatpush3.bf16.msra.mxu1 %v20502_v23 }
 0x46f   :  { %18560 = vmatprep.subr.bf16.mxu0 %v26763_v60  ;;  %18632 = vmatprep.subr.bf16.mxu1 %v26763_v60 }
 0x470   :  { %18188 = vmatprep.mubr.msk.f32.mxu0 %vm19827_vm0, %v26759_v30  ;;  %18302 = vmatprep.mubr.msk.f32.mxu1 %vm19827_vm0, %v26759_v30 }
 0x472   :  { %18562 = vmatpush3.bf16.msra.mxu0 %v20517_v56  ;;  %18634 = vmatpush3.bf16.msra.mxu1 %v20765_v42  ;;  %v4513_v42 = vpop.permute.xlu1 %4512 }
 0x473   :  { %18563 = vmatprep.subr.bf16.mxu0 %v26763_v60  ;;  %18635 = vmatprep.subr.bf16.mxu1 %v26763_v60 }
 0x476   :  { %18565 = vmatpush3.bf16.msra.mxu0 %v20802_v22  ;;  %18637 = vmatpush3.bf16.msra.mxu1 %v20833_v62  ;;  %v4514_v22 = vsel %vm1160_vm3, %v4513_v42, 0  ;;  %v21074_v62 = vand.u32 4294901760, %v4962_v7 }
 0x477   :  { %18566 = vmatprep.subr.bf16.mxu0 %v26763_v60  ;;  %18638 = vmatprep.subr.bf16.mxu1 %v26763_v60  ;;  %v21062_v28 = vand.u32 4294901760, %v4514_v22 }
 0x47a   :  { %18568 = vmatpush3.bf16.msra.mxu0 %v20844_v17  ;;  %18640 = vmatpush3.bf16.msra.mxu1 %v20878_v8  ;;  %v21079_v17 = vsub.f32 %v4962_v7, %v21074_v62 }
 0x47b   :  { %18305 = vmatprep.subr.mxu0 %v26759_v30  ;;  %18310 = vmatprep.subr.mxu1 %v26759_v30 }
 0x47c   :  { %v21084_v39 = vand.u32 4294901760, %v21079_v17 }
 0x47d   :  { %18189 = vmatmul.mubr.f32.vlgmr.msra.gmra.mrb[6].mxu0 %v20780_v19  ;;  %18303 = vmatmul.mubr.f32.vlgmr.msra.gmra.mrb[6].mxu1 %v20782_v13  ;;  %v21065_v19 = vsub.f32 %v4514_v22, %v21062_v28 }
 0x47e   :  { %18307 = vmatprep.mubr.msk.f32.mxu0 %vm19827_vm0, %v26759_v30  ;;  %18312 = vmatprep.mubr.msk.f32.mxu1 %vm19827_vm0, %v26759_v30  ;;  %v5033_v5 = vsub.f32 %v21079_v17, %v21084_v39 }
 0x47f   :  { %v21068_v13 = vand.u32 4294901760, %v21065_v19 }
 0x480   :  { %v21098_v54 = vand.u32 4294901760, %v5033_v5 }
 0x481   :  { %v4585_v43 = vsub.f32 %v21065_v19, %v21068_v13 }
 0x483   :  { %v21076_v1 = vand.u32 4294901760, %v4585_v43 }
 0x4f0   :  { %v2579_v51 = vpop.f32.mrb[4].mxu0  ;;  %v21059_v60 = vpop.f32.mrb[4].mxu1 }
 0x4f1   :  { %v18034_v23 = vpop.f32.mrb[5].mxu0  ;;  %v18076_v56 = vpop.f32.mrb[5].mxu1  ;;  %v4965_v12 = vand.u32 4294901760, %v2579_v51  ;;  %v5863_v31 = vand.u32 4294901760, %v21059_v60 }
 0x4f3   :  { %v5042_v55 = vsub.f32 %v2579_v51, %v4965_v12  ;;  %v5940_v35 = vsub.f32 %v21059_v60, %v5863_v31 }
 0x4f5   :  { %v5043_v4 = vand.u32 4294901760, %v5042_v55  ;;  %v5941_v40 = vand.u32 4294901760, %v5940_v35 }
 0x4f7   :  { %v5044_v49 = vsub.f32 %v5042_v55, %v5043_v4  ;;  %v5942_v3 = vsub.f32 %v5940_v35, %v5941_v40 }
 0x4f9   :  { %v5045_v46 = vand.u32 4294901760, %v5044_v49  ;;  %v5943_v34 = vand.u32 4294901760, %v5942_v3 }
 0x550   :  { %v3775_v8 = vpop.f32.mrb[6].mxu0  ;;  %v4505_v11 = vpop.f32.mrb[6].mxu1 }
 0x551   :  { %v4517_v48 = vand.u32 4294901760, %v3775_v8  ;;  %v18190_v18 = vpop.f32.mrb[7].mxu0  ;;  %v18304_v26 = vpop.f32.mrb[7].mxu1  ;;  %v5417_v37 = vand.u32 4294901760, %v4505_v11 }
 0x553   :  { %v4594_v47 = vsub.f32 %v3775_v8, %v4517_v48  ;;  %18306 = vmatpush3.msra.mxu0 %v4517_v48  ;;  %v5494_v50 = vsub.f32 %v4505_v11, %v5417_v37 }
 0x554   :  { %18308 = vmatmul.mubr.f32.vlgmr.msra.gmra.mrb[8].mxu0 %v21076_v1  ;;  %18315 = vmatprep.subr.mxu0 %v26759_v30 }
 0x555   :  { %v4595_v32 = vand.u32 4294901760, %v4594_v47  ;;  %18316 = vmatpush3.msra.mxu0 %v4594_v47  ;;  %18317 = vmatprep.mubr.msk.f32.mxu0 %vm19827_vm0, %v26759_v30  ;;  %v5495_v24 = vand.u32 4294901760, %v5494_v50 }
 0x556   :  { %18325 = vmatprep.subr.mxu0 %v26759_v30 }
 0x557   :  { %v4596_v27 = vsub.f32 %v4594_v47, %v4595_v32  ;;  %v5496_v45 = vsub.f32 %v5494_v50, %v5495_v24 }
 0x558   :  { %18318 = vmatmul.mubr.f32.vlgmr.msra.gmra.mrb[10].mxu0 %v21065_v19 }
 0x559   :  { %v4597_v15 = vand.u32 4294901760, %v4596_v27  ;;  %18326 = vmatpush3.msra.mxu0 %v4595_v32  ;;  %18327 = vmatprep.mubr.msk.f32.mxu0 %vm19827_vm0, %v26759_v30  ;;  %v5497_v16 = vand.u32 4294901760, %v5496_v45  ;;  %v5413_v27 = vpop.permute.xlu0 %5412 }
 0x55a   :  { %18335 = vmatprep.subr.mxu0 %v26759_v30 }
 0x55b   :  { %18311 = vmatpush3.msra.mxu1 %v4597_v15 }
 0x55c   :  { %18313 = vmatmul.mubr.f32.vlgmr.msra.gmra.mrb[8].mxu1 %v21062_v28  ;;  %18320 = vmatprep.subr.mxu1 %v26759_v30 }
 0x55d   :  { %18328 = vmatmul.mubr.f32.vlgmr.msra.gmra.mrb[12].mxu0 %v21062_v28  ;;  %18321 = vmatpush3.msra.mxu1 %v4517_v48 }
 0x55e   :  { %18336 = vmatpush3.msra.mxu0 %v4965_v12  ;;  %18322 = vmatprep.mubr.msk.f32.mxu1 %vm19827_vm0, %v26759_v30 }
 0x55f   :  { %18330 = vmatprep.subr.mxu1 %v26759_v30  ;;  %18337 = vmatprep.mubr.msk.f32.mxu0 %vm19827_vm0, %v26759_v30 }
 0x560   :  { %18345 = vmatprep.subr.mxu0 %v26759_v30  ;;  %18323 = vmatmul.mubr.f32.vlgmr.msra.gmra.mrb[10].mxu1 %v21068_v13 }
 0x561   :  { %18331 = vmatpush3.msra.mxu1 %v4517_v48  ;;  %18338 = vmatmul.mubr.f32.vlgmr.msra.gmra.mrb[14].mxu0 %v21098_v54 }
 0x562   :  { %18346 = vmatpush3.msra.mxu0 %v5042_v55  ;;  %18332 = vmatprep.mubr.msk.f32.mxu1 %vm19827_vm0, %v26759_v30 }
 0x563   :  { %18340 = vmatprep.subr.mxu1 %v26759_v30  ;;  %18347 = vmatprep.mubr.msk.f32.mxu0 %vm19827_vm0, %v26759_v30 }
 0x564   :  { %18355 = vmatprep.subr.mxu0 %v26759_v30  ;;  %18333 = vmatmul.mubr.f32.vlgmr.msra.gmra.mrb[12].mxu1 %v21062_v28 }
 0x565   :  { %18341 = vmatpush3.msra.mxu1 %v5045_v46  ;;  %18348 = vmatmul.mubr.f32.vlgmr.msra.gmra.mrb[16].mxu0 %v21079_v17 }
 0x566   :  { %18356 = vmatpush3.msra.mxu0 %v5043_v4  ;;  %18342 = vmatprep.mubr.msk.f32.mxu1 %vm19827_vm0, %v26759_v30 }
 0x567   :  { %18350 = vmatprep.subr.mxu1 %v26759_v30  ;;  %18357 = vmatprep.mubr.msk.f32.mxu0 %vm19827_vm0, %v26759_v30 }
 0x568   :  { %18365 = vmatprep.subr.mxu0 %v26759_v30  ;;  %18343 = vmatmul.mubr.f32.vlgmr.msra.gmra.mrb[14].mxu1 %v21074_v62 }
 0x569   :  { %18351 = vmatpush3.msra.mxu1 %v4965_v12  ;;  %18358 = vmatmul.mubr.f32.vlgmr.msra.gmra.mrb[18].mxu0 %v21074_v62 }
 0x56a   :  { %18366 = vmatpush3.msra.mxu0 %v5417_v37  ;;  %18352 = vmatprep.mubr.msk.f32.mxu1 %vm19827_vm0, %v26759_v30 }
 0x56b   :  { %18360 = vmatprep.subr.mxu1 %v26759_v30  ;;  %18367 = vmatprep.mubr.msk.f32.mxu0 %vm19827_vm0, %v26759_v30 }
 0x56c   :  { %18375 = vmatprep.subr.mxu0 %v26759_v30  ;;  %18353 = vmatmul.mubr.f32.vlgmr.msra.gmra.mrb[16].mxu1 %v21084_v39 }
 0x56d   :  { %18361 = vmatpush3.msra.mxu1 %v4965_v12  ;;  %18368 = vmatmul.mubr.f32.vlgmr.msra.gmra.mrb[20].mxu0 %v21076_v1 }
 0x56e   :  { %18376 = vmatpush3.msra.mxu0 %v5494_v50  ;;  %18362 = vmatprep.mubr.msk.f32.mxu1 %vm19827_vm0, %v26759_v30 }
 0x56f   :  { %18370 = vmatprep.subr.mxu1 %v26759_v30  ;;  %18377 = vmatprep.mubr.msk.f32.mxu0 %vm19827_vm0, %v26759_v30 }
 0x570   :  { %18385 = vmatprep.subr.mxu0 %v26759_v30  ;;  %18363 = vmatmul.mubr.f32.vlgmr.msra.gmra.mrb[18].mxu1 %v21074_v62 }
 0x571   :  { %18371 = vmatpush3.msra.mxu1 %v5497_v16  ;;  %18378 = vmatmul.mubr.f32.vlgmr.msra.gmra.mrb[22].mxu0 %v21065_v19 }
 0x572   :  { %18386 = vmatpush3.msra.mxu0 %v5495_v24  ;;  %18372 = vmatprep.mubr.msk.f32.mxu1 %vm19827_vm0, %v26759_v30 }
 0x573   :  { %18380 = vmatprep.subr.mxu1 %v26759_v30  ;;  %18387 = vmatprep.mubr.msk.f32.mxu0 %vm19827_vm0, %v26759_v30 }
 0x574   :  { %18395 = vmatprep.subr.mxu0 %v26759_v30  ;;  %18373 = vmatmul.mubr.f32.vlgmr.msra.gmra.mrb[20].mxu1 %v21062_v28 }
 0x575   :  { %18381 = vmatpush3.msra.mxu1 %v5417_v37  ;;  %18388 = vmatmul.mubr.f32.vlgmr.msra.gmra.mrb[24].mxu0 %v21062_v28 }
 0x576   :  { %18396 = vmatpush3.msra.mxu0 %v5863_v31  ;;  %18382 = vmatprep.mubr.msk.f32.mxu1 %vm19827_vm0, %v26759_v30 }
 0x577   :  { %18390 = vmatprep.subr.mxu1 %v26759_v30  ;;  %18397 = vmatprep.mubr.msk.f32.mxu0 %vm19827_vm0, %v26759_v30 }
 0x578   :  { %18405 = vmatprep.subr.mxu0 %v26759_v30  ;;  %18383 = vmatmul.mubr.f32.vlgmr.msra.gmra.mrb[22].mxu1 %v21068_v13 }
 0x579   :  { %18391 = vmatpush3.msra.mxu1 %v5417_v37  ;;  %18398 = vmatmul.mubr.f32.vlgmr.msra.gmra.mrb[26].mxu0 %v21098_v54 }
 0x57a   :  { %18406 = vmatpush3.msra.mxu0 %v5940_v35  ;;  %18392 = vmatprep.mubr.msk.f32.mxu1 %vm19827_vm0, %v26759_v30 }
 0x57b   :  { %18400 = vmatprep.subr.mxu1 %v26759_v30  ;;  %18407 = vmatprep.mubr.msk.f32.mxu0 %vm19827_vm0, %v26759_v30 }
 0x57c   :  { %18415 = vmatprep.subr.mxu0 %v26759_v30  ;;  %18393 = vmatmul.mubr.f32.vlgmr.msra.gmra.mrb[24].mxu1 %v21062_v28 }
 0x57d   :  { %18401 = vmatpush3.msra.mxu1 %v5943_v34  ;;  %18408 = vmatmul.mubr.f32.vlgmr.msra.gmra.mrb[28].mxu0 %v21079_v17 }
 0x57e   :  { %18416 = vmatpush3.msra.mxu0 %v5941_v40  ;;  %18402 = vmatprep.mubr.msk.f32.mxu1 %vm19827_vm0, %v26759_v30 }
 0x57f   :  { %18410 = vmatprep.subr.mxu1 %v26759_v30  ;;  %18417 = vmatprep.mubr.msk.f32.mxu0 %vm19827_vm0, %v26759_v30 }
 0x580   :  { %18403 = vmatmul.mubr.f32.vlgmr.msra.gmra.mrb[26].mxu1 %v21074_v62 }
 0x581   :  { %18411 = vmatpush3.msra.mxu1 %v5863_v31  ;;  %18412 = vmatprep.mubr.msk.f32.mxu1 %vm19827_vm0, %v26759_v30 }
 0x582   :  { %18420 = vmatprep.subr.mxu1 %v26759_v30  ;;  %18418 = vmatmul.mubr.f32.vlgmr.msra.gmra.mrb[30].mxu0 %v21074_v62 }
 0x583   :  { %6512 = vmatprep.mubr.f32.mxu0 %v26759_v30 }
 0x584   :  { %18413 = vmatmul.mubr.f32.vlgmr.msra.gmra.mrb[28].mxu1 %v21084_v39 }
 0x585   :  { %18421 = vmatpush3.msra.mxu1 %v5863_v31  ;;  %18422 = vmatprep.mubr.msk.f32.mxu1 %vm19827_vm0, %v26759_v30 }
 0x588   :  { %18423 = vmatmul.mubr.f32.vlgmr.msra.gmra.mrb[30].mxu1 %v21074_v62 }
 0x589   :  { %7162 = vmatprep.mubr.f32.mxu1 %v26759_v30 }
 0x627   :  { %v4588_v10 = vpop.f32.mrb[8].mxu0 }
 0x628   :  { %v18309_v21 = vpop.f32.mrb[9].mxu0 }
 0x62b   :  { %v4738_v0 = vpop.f32.mrb[10].mxu0 }
 0x62c   :  { %v18319_v61 = vpop.f32.mrb[11].mxu0 }
 0x62f   :  { %v4664_v6 = vpop.f32.mrb[8].mxu1 }
 0x630   :  { %v4665_v38 = vadd.f32 %v4664_v6, %v4588_v10  ;;  %v4886_v41 = vpop.f32.mrb[12].mxu0  ;;  %v18314_v52 = vpop.f32.mrb[9].mxu1 }
 0x631   :  { %v18329_v53 = vpop.f32.mrb[13].mxu0 }
 0x632   :  { %v4739_v29 = vadd.f32 %v4738_v0, %v4665_v38 }
 0x633   :  { %v4812_v25 = vpop.f32.mrb[10].mxu1 }
 0x634   :  { %v4813_v9 = vadd.f32 %v4812_v25, %v4739_v29  ;;  %v18324_v36 = vpop.f32.mrb[11].mxu1  ;;  %v5036_v20 = vpop.f32.mrb[14].mxu0 }
 0x635   :  { %v18339_v51 = vpop.f32.mrb[15].mxu0 }
 0x636   :  { %v4887_v60 = vadd.f32 %v4886_v41, %v4813_v9 }
 0x637   :  { %v4958_v23 = vpop.f32.mrb[12].mxu1 }
 0x638   :  { %v4959_v56 = vadd.f32 %v4958_v23, %v4887_v60  ;;  %v18334_v42 = vpop.f32.mrb[13].mxu1  ;;  %v5186_v22 = vpop.f32.mrb[16].mxu0 }
 0x639   :  { %v18349_v28 = vpop.f32.mrb[17].mxu0 }
 0x63a   :  { %v5037_v19 = vadd.f32 %v5036_v20, %v4959_v56 }
 0x63b   :  { %v5112_v13 = vpop.f32.mrb[14].mxu1 }
 0x63c   :  { %v5113_v7 = vadd.f32 %v5112_v13, %v5037_v19  ;;  %v18344_v43 = vpop.f32.mrb[15].mxu1  ;;  %v5334_v62 = vpop.f32.mrb[18].mxu0 }
 0x63d   :  { %v18359_v8 = vpop.f32.mrb[19].mxu0 }
 0x63e   :  { %v5187_v11 = vadd.f32 %v5186_v22, %v5113_v7 }
 0x63f   :  { %v5260_v1 = vpop.f32.mrb[16].mxu1 }
 0x640   :  { %v5261_v17 = vadd.f32 %v5260_v1, %v5187_v11  ;;  %v5488_v48 = vpop.f32.mrb[20].mxu0  ;;  %v18354_v18 = vpop.f32.mrb[17].mxu1 }
 0x641   :  { %v18369_v26 = vpop.f32.mrb[21].mxu0 }
 0x642   :  { %v5335_v12 = vadd.f32 %v5334_v62, %v5261_v17  ;;  %v6361_v26 = vmul.f32 0.0625, %v20186_v59 }
 0x643   :  { %v5406_v47 = vpop.f32.mrb[18].mxu1 }
 0x644   :  { %v5407_v39 = vadd.f32 %v5406_v47, %v5335_v12  ;;  %v5638_v32 = vpop.f32.mrb[22].mxu0  ;;  %v18364_v55 = vpop.f32.mrb[19].mxu1  ;;  %v6363_v47 = vfloor.f32 %v6361_v26 }
 0x645   :  { %v18379_v15 = vpop.f32.mrb[23].mxu0 }
 0x646   :  { %v21182_v5 = vadd.f32 %v5413_v27, %v5407_v39  ;;  %v6365_v55 = vmul.f32 16.0, %v6363_v47 }
 0x647   :  { %v5564_v4 = vpop.f32.mrb[20].mxu1 }
 0x648   :  { %v5565_v54 = vadd.f32 %v5564_v4, %v5488_v48  ;;  %v5786_v49 = vpop.f32.mrb[24].mxu0  ;;  %v18374_v37 = vpop.f32.mrb[21].mxu1  ;;  %v6309_v46 = vsel %vm3238_vm5, %v21182_v5, 0.0  ;;  %v6352_v48 = vadd.s32 128, %v20183_v57 }
 0x649   :  { %v18389_v50 = vpop.f32.mrb[25].mxu0  ;;  %6310 = vadd.xlane.f32.xlu1 %v6309_v46  ;;  %v6369_v46 = vmul.f32 0.5, %v6363_v47  ;;  %v26810_v47 = vmov 0 }
 0x64a   :  { %v5639_v24 = vadd.f32 %v5638_v32, %v5565_v54  ;;  %v6353_v18 = vcvt.s32.f32 %v6352_v48 }
 0x64b   :  { %v5712_v31 = vpop.f32.mrb[22].mxu1  ;;  %v6371_v57 = vfloor.f32 %v6369_v46 }
 0x64c   :  { %v5713_v45 = vadd.f32 %v5712_v31, %v5639_v24  ;;  %v18384_v35 = vpop.f32.mrb[23].mxu1  ;;  %v5934_v16 = vpop.f32.mrb[26].mxu0  ;;  %v6362_v12 = vmul.f32 0.0625, %v6353_v18 }
 0x64d   :  { %v18399_v40 = vpop.f32.mrb[27].mxu0 }
 0x64e   :  { %v5787_v3 = vadd.f32 %v5786_v49, %v5713_v45  ;;  %v6364_v39 = vfloor.f32 %v6362_v12  ;;  %v6367_v49 = vsub.f32 %v20186_v59, %v6365_v55  ;;  %v26817_v55 = vmov 0 }
 0x64f   :  { %v5858_v34 = vpop.f32.mrb[24].mxu1 }
 0x650   :  { %v5859_v10 = vadd.f32 %v5858_v34, %v5787_v3  ;;  %v18394_v21 = vpop.f32.mrb[25].mxu1  ;;  %v6084_v0 = vpop.f32.mrb[28].mxu0  ;;  %v6370_v50 = vmul.f32 0.5, %v6364_v39  ;;  %v6375_v45 = vmul.f32 0.5, %v6367_v49 }
 0x651   :  { %v18409_v61 = vpop.f32.mrb[29].mxu0 }
 0x652   :  { %v5935_v6 = vadd.f32 %v5934_v16, %v5859_v10  ;;  %v6372_v31 = vfloor.f32 %v6370_v50  ;;  %v6373_v16 = vmul.f32 8.0, %v6371_v57  ;;  %v6377_v3 = vfloor.f32 %v6375_v45  ;;  %v6328_v10 = vld [vmem:[%s26066_s15] sm:$0xff] }
 0x653   :  { %v6010_v38 = vpop.f32.mrb[26].mxu1 }
 0x654   :  { %v6011_v41 = vadd.f32 %v6010_v38, %v5935_v6  ;;  %v18404_v52 = vpop.f32.mrb[27].mxu1  ;;  %v6374_v40 = vmul.f32 8.0, %v6372_v31  ;;  %v21200_v21 = vadd.f32 %v6377_v3, %v6373_v16  ;;  %v6333_v6 = vld [vmem:[%s26067_s16] sm:$0xff] }
 0x655   :  { %v6232_v53 = vpop.f32.mrb[30].mxu0  ;;  %v13038_v52 = vld [vmem:[%s26068_s17] sm:$0xff] }
 0x656   :  { %v6085_v29 = vadd.f32 %v6084_v0, %v6011_v41  ;;  %v18419_v25 = vpop.f32.mrb[31].mxu0  ;;  %v26783_v41 = vld [vmem:[#allocation8_spill] sm:$0xff]  ;;  %vm6381_vm10 = vcmp.eq.f32.partialorder %v20194_v14, %v21200_v21 }
 0x657   :  { %v6158_v9 = vpop.f32.mrb[28].mxu1  ;;  %vm6383_vm12 = vcmp.eq.f32.partialorder %v26783_v41, %v21200_v21  ;;  %v26787_v25 = vmov 0 }
 0x658   :  { %v6159_v36 = vadd.f32 %v6158_v9, %v6085_v29  ;;  %v18414_v20 = vpop.f32.mrb[29].mxu1  ;;  %vm21237_vm9 = vmpackc.low %vm6383_vm12, %vm6381_vm10 }
 0x659   :  { %v26788_v25 = vsel %vm21237_vm9, 4294967295, %v26787_v25 }
 0x65a   :  { %v6233_v51 = vadd.f32 %v6232_v53, %v6159_v36  ;;  %v26784_v53 = vmov 0  ;;  %26789 = vst [vmem:[#allocation15_spill] sm:$0xff] %v26788_v25  ;;  %v26790_v36 = vld [vmem:[#allocation9_spill] sm:$0xff] }
 0x65b   :  { %v6304_v60 = vpop.f32.mrb[30].mxu1  ;;  %v6354_v20 = vcvt.s32.f32 %v26790_v36 }
 0x65c   :  { %v6305_v23 = vadd.f32 %v6304_v60, %v6233_v51  ;;  %v18424_v56 = vpop.f32.mrb[31].mxu1  ;;  %v26791_v51 = vld [vmem:[#allocation10_spill] sm:$0xff] }
 0x65d   :  { %v6355_v60 = vcvt.s32.f32 %v26791_v51  ;;  %vm21283_vm1 = vcmp.eq.f32.partialorder %v6354_v20, %v21200_v21 }
 0x65e   :  { %v21186_v42 = vadd.f32 %v6305_v23, %v5413_v27  ;;  %v6366_v27 = vmul.f32 16.0, %v6364_v39  ;;  %v13039_v23 = vld [vmem:[%s26069_s18] sm:$0xff]  ;;  %v16969_v46 = vsel %vm21283_vm1, 1.0, %v26759_v30 }
 0x65f   :  { %vm21288_vm2 = vcmp.eq.f32.partialorder %v6355_v60, %v21200_v21  ;;  %v21389_v31 = vsub.f32 %v16969_v46, %v16969_v46 }
 0x660   :  { %v6312_v22 = vsel %vm3238_vm5, %v21186_v42, 0.0  ;;  %v6368_v37 = vsub.f32 %v6353_v18, %v6366_v27  ;;  %vm21305_vm4 = vmpackc.low %vm21288_vm2, %vm21283_vm1  ;;  %v6358_v27 = vcvt.s32.f32 %v20564_v33  ;;  %v16971_v50 = vsel %vm21288_vm2, 1.0, %v26759_v30 }
 0x661   :  { %6313 = vadd.xlane.f32.xlu0 %v6312_v22  ;;  %v21391_v45 = vsub.f32 %v16971_v50, %v16971_v50 }
 0x662   :  { %v6376_v35 = vmul.f32 0.5, %v6368_v37  ;;  %vm6393_vm1 = vcmp.eq.f32.partialorder %v6358_v27, %v21200_v21 }
 0x663   :  { %v26130_v18 = vand.u32 4294901760, %v21391_v45 }
 0x664   :  { %v6378_v34 = vfloor.f32 %v6376_v35 }
 0x665   :  { %v6569_v46 = vsub.f32 %v21391_v45, %v26130_v18 }
 0x666   :  { %v21202_v59 = vadd.f32 %v6378_v34, %v6374_v40 }
 0x668   :  { %vm6382_vm0 = vcmp.eq.f32.partialorder %v20194_v14, %v21202_v59  ;;  %vm6384_vm6 = vcmp.eq.f32.partialorder %v26783_v41, %v21202_v59  ;;  %vm21259_vm13 = vcmp.eq.f32.partialorder %v6354_v20, %v21202_v59  ;;  %vm21264_vm14 = vcmp.eq.f32.partialorder %v6355_v60, %v21202_v59 }
 0x669   :  { %vm21219_vm11 = vmpackc.low %vm6384_vm6, %vm6382_vm0  ;;  %v16966_v9 = vsel %vm6382_vm0, 1.0, %v26759_v30  ;;  %v16968_v56 = vsel %vm6384_vm6, 1.0, %v26759_v30  ;;  %v16970_v49 = vsel %vm21259_vm13, 1.0, %v26759_v30  ;;  %v16972_v37 = vsel %vm21264_vm14, 1.0, %v26759_v30 }
 0x66a   :  { %v26785_v53 = vsel %vm21219_vm11, 4294967295, %v26784_v53  ;;  %18642 = vmatprep.subr.msk.bf16.mxu0 %vm21219_vm11, %v26766_v2  ;;  %18738 = vmatprep.subr.msk.bf16.mxu1 %vm21219_vm11, %v26766_v2  ;;  %vm21278_vm15 = vmpackc.low %vm21264_vm14, %vm21259_vm13  ;;  %v21292_v14 = vsub.f32 %v16968_v56, %v16968_v56  ;;  %v21387_v57 = vsub.f32 %v16972_v37, %v16972_v37  ;;  %vm6394_vm13 = vcmp.eq.f32.partialorder %v6358_v27, %v21202_v59 }
 0x66b   :  { %26786 = vst [vmem:[#allocation8_spill] sm:$0xff] %v26785_v53  ;;  %18644 = vmatpush1.bf16.msk.msra.mxu0 %vm21237_vm9, %v26766_v2  ;;  %18740 = vmatpush1.bf16.msk.msra.mxu1 %vm21237_vm9, %v26766_v2  ;;  %v26820_v41 = vmov 0 }
 0x66c   :  { %18646 = vmatprep.subr.msk.bf16.mxu0 %vm21278_vm15, %v26766_v2  ;;  %18742 = vmatprep.subr.msk.bf16.mxu1 %vm21278_vm15, %v26766_v2 }
 0x66f   :  { %18648 = vmatpush1.bf16.msk.msra.mxu0 %vm21305_vm4, %v26766_v2  ;;  %18744 = vmatpush1.bf16.msk.msra.mxu1 %vm21305_vm4, %v26766_v2 }
 0x6d6   :  { %v6311_v28 = vpop.xlane.xlu1 %6310 }
 0x6ee   :  { %v6314_v19 = vpop.xlane.xlu0 %6313 }
 0x6ef   :  { %v6315_v13 = vadd.f32 %v6314_v19, %v6311_v28  ;;  %v21268_v19 = vsub.f32 %v16966_v9, %v16966_v9 }
 0x6f1   :  { %v6316_v7 = vmul.f32 0.0078125, %v6315_v13  ;;  %v16965_v13 = vsel %vm6381_vm10, 1.0, %v26759_v30 }
 0x6f2   :  { %v21330_v26 = vsub.f32 %v16965_v13, %v16965_v13 }
 0x6f3   :  { %v6317_v43 = vsub.f32 %v21182_v5, %v6316_v7  ;;  %v6322_v62 = vsub.f32 %v21186_v42, %v6316_v7 }
 0x6f4   :  { %v6532_v60 = vand.u32 4294901760, %v21330_v26 }
 0x6f5   :  { %v6318_v8 = vmul.f32 %v6317_v43, %v6317_v43  ;;  %v6323_v1 = vmul.f32 %v6322_v62, %v6322_v62  ;;  %v26132_v62 = vand.u32 4294901760, %v21387_v57 }
 0x6f6   :  { %v6533_v13 = vsub.f32 %v21330_v26, %v6532_v60 }
 0x6f7   :  { %v6319_v11 = vsel %vm3238_vm5, %v6318_v8, 0.0  ;;  %v6324_v17 = vsel %vm3238_vm5, %v6323_v1, 0.0  ;;  %v16967_v8 = vsel %vm6383_vm12, 1.0, %v26759_v30  ;;  %v6356_v1 = vcvt.s32.f32 %v20440_v58 }
 0x6f8   :  { %6320 = vadd.xlane.f32.xlu1 %v6319_v11  ;;  %v26803_v11 = vmov 0  ;;  %v21332_v12 = vsub.f32 %v16967_v8, %v16967_v8  ;;  %v26131_v8 = vand.u32 4294901760, %v21389_v31  ;;  %v6534_v39 = vand.u32 4294901760, %v6533_v13 }
 0x6f9   :  { %v26804_v11 = vsel %vm21305_vm4, 4294967295, %v26803_v11  ;;  %vm21321_vm7 = vcmp.eq.f32.partialorder %v6356_v1, %v21202_v59  ;;  %vm21343_vm6 = vcmp.eq.f32.partialorder %v6356_v1, %v21200_v21  ;;  %v6563_v27 = vsub.f32 %v21387_v57, %v26132_v62 }
 0x6fa   :  { %26805 = vst [vmem:[#allocation10_spill] sm:$0xff] %v26804_v11  ;;  %v16974_v35 = vsel %vm21321_vm7, 1.0, %v26759_v30  ;;  %v16973_v40 = vsel %vm21343_vm6, 1.0, %v26759_v30  ;;  %v6544_v28 = vand.u32 4294901760, %v21332_v12 }
 0x6fb   :  { %v21408_v34 = vsub.f32 %v16974_v35, %v16974_v35 }
 0x6fc   :  { %6325 = vadd.xlane.f32.xlu1 %v6324_v17  ;;  %v6357_v17 = vcvt.s32.f32 %v20462_v63  ;;  %v6545_v48 = vsub.f32 %v21332_v12, %v6544_v28  ;;  %v21584_v62 = vpack.c.bf16 %v6544_v28, %v6532_v60  ;;  %v26847_v28 = vld [vmem:[#allocation5_spill] sm:$0xff] }
 0x6fd   :  { %v26126_v50 = vand.u32 4294901760, %v21408_v34 }
 0x6fe   :  { %vm21326_vm8 = vcmp.eq.f32.partialorder %v6357_v17, %v21202_v59  ;;  %vm21348_vm10 = vcmp.eq.f32.partialorder %v6357_v17, %v21200_v21  ;;  %v6546_v37 = vand.u32 4294901760, %v6545_v48 }
 0x6ff   :  { %vm21338_vm0 = vmpackc.low %vm21326_vm8, %vm21321_vm7  ;;  %v16976_v16 = vsel %vm21326_vm8, 1.0, %v26759_v30  ;;  %v16975_v3 = vsel %vm21348_vm10, 1.0, %v26759_v30 }
 0x700   :  { %v26811_v47 = vsel %vm21338_vm0, 4294967295, %v26810_v47  ;;  %18650 = vmatprep.subr.msk.bf16.mxu0 %vm21338_vm0, %v26766_v2  ;;  %18746 = vmatprep.subr.msk.bf16.mxu1 %vm21338_vm0, %v26766_v2  ;;  %vm21362_vm12 = vmpackc.low %vm21348_vm10, %vm21343_vm6 }
 0x701   :  { %26812 = vst [vmem:[#allocation16_spill] sm:$0xff] %v26811_v47  ;;  %v26818_v55 = vsel %vm21362_vm12, 4294967295, %v26817_v55  ;;  %18652 = vmatpush1.bf16.msk.msra.mxu0 %vm21362_vm12, %v26766_v2  ;;  %18748 = vmatpush1.bf16.msk.msra.mxu1 %vm21362_vm12, %v26766_v2 }
 0x702   :  { %26819 = vst [vmem:[#allocation17_spill] sm:$0xff] %v26818_v55  ;;  %v26852_v55 = vld [vmem:[#allocation7_spill] sm:$0xff] }
 0x785   :  { %v6321_v32 = vpop.xlane.xlu1 %6320 }
 0x789   :  { %v6326_v15 = vpop.xlane.xlu1 %6325 }
 0x78a   :  { %v6327_v4 = vadd.f32 %v6326_v15, %v6321_v32  ;;  %v6359_v15 = vcvt.s32.f32 %v20567_v44 }
 0x78c   :  { %v6329_v54 = vmul.f32 0.0078125, %v6327_v4  ;;  %v6526_v4 = vand.u32 4294901760, %v21268_v19  ;;  %vm6396_vm14 = vcmp.eq.f32.partialorder %v6359_v15, %v21202_v59  ;;  %vm6395_vm2 = vcmp.eq.f32.partialorder %v6359_v15, %v21200_v21 }
 0x78d   :  { %vm21422_vm7 = vmpackc.low %vm6396_vm14, %vm6394_vm13  ;;  %v26823_v21 = vmov 0  ;;  %v6557_v15 = vsub.f32 %v21389_v31, %v26131_v8 }
 0x78e   :  { %v6330_v24 = vadd.f32 1e-05, %v6329_v54  ;;  %v6538_v54 = vand.u32 4294901760, %v21292_v14  ;;  %v26821_v41 = vsel %vm21422_vm7, 4294967295, %v26820_v41  ;;  %18654 = vmatprep.subr.msk.bf16.mxu0 %vm21422_vm7, %v26766_v2  ;;  %18750 = vmatprep.subr.msk.bf16.mxu1 %vm21422_vm7, %v26766_v2  ;;  %vm21438_vm8 = vmpackc.low %vm6395_vm2, %vm6393_vm1  ;;  %v6527_v56 = vsub.f32 %v21268_v19, %v6526_v4 }
 0x78f   :  { %26822 = vst [vmem:[#allocation18_spill] sm:$0xff] %v26821_v41  ;;  %v26824_v21 = vsel %vm21438_vm8, 4294967295, %v26823_v21  ;;  %18656 = vmatpush1.bf16.msk.msra.mxu0 %vm21438_vm8, %v26766_v2  ;;  %18752 = vmatpush1.bf16.msk.msra.mxu1 %vm21438_vm8, %v26766_v2 }
 0x790   :  { %19821 = vrsqrt.f32 %v6330_v24  ;;  %v21385_v24 = vsub.f32 %v16970_v49, %v16970_v49  ;;  %26825 = vst [vmem:[#allocation19_spill] sm:$0xff] %v26824_v21  ;;  %v6539_v22 = vsub.f32 %v21292_v14, %v6538_v54  ;;  %v6528_v1 = vand.u32 4294901760, %v6527_v56 }
 0x792   :  { %v26133_v43 = vand.u32 4294901760, %v21385_v24  ;;  %v6540_v17 = vand.u32 4294901760, %v6539_v22  ;;  %v26841_v44 = vand.u32 4294901760, %v21385_v24 }
 0x794   :  { %v6551_v32 = vsub.f32 %v21385_v24, %v26133_v43  ;;  %v18657_v49 = vpack.c.bf16 %v6540_v17, %v6528_v1 }
 0x796   :  { %v6552_v35 = vand.u32 4294901760, %v6551_v32  ;;  %18658 = vmatprep.subr.bf16.mxu0 %v18657_v49  ;;  %18754 = vmatprep.subr.bf16.mxu1 %v18657_v49 }
 0x79a   :  { %v19822_v0 = vpop.eup %19821 }
 0x79b   :  { %v6332_v61 = vmul.f32 %v19822_v0, %v6328_v10  ;;  %v21410_v10 = vsub.f32 %v16976_v16, %v16976_v16  ;;  %v21412_v0 = vsub.f32 %v16973_v40, %v16973_v40  ;;  %v6564_v16 = vand.u32 4294901760, %v6563_v27 }
 0x79c   :  { %v6558_v40 = vand.u32 4294901760, %v6557_v15 }
 0x79d   :  { %6338 = vperm.xlu1 %19818, %v6332_v61   ;;  %v6334_v38 = vmul.f32 %v6332_v61, %v6316_v7  ;;  %v26796_v7 = vmov 0  ;;  %v21414_v61 = vsub.f32 %v16975_v3, %v16975_v3  ;;  %v26125_v3 = vand.u32 4294901760, %v21410_v10 }
 0x79e   :  { %v26797_v7 = vsel %vm21278_vm15, 4294967295, %v26796_v7  ;;  %v21490_v56 = vpack.c.bf16 %v6564_v16, %v6552_v35  ;;  %v26850_v33 = vand.u32 4294901760, %v21410_v10  ;;  %v26853_v11 = vand.u32 4294901760, %v21412_v0 }
 0x79f   :  { %v6335_v29 = vsub.f32 %v6333_v6, %v6334_v38  ;;  %26798 = vst [vmem:[#allocation9_spill] sm:$0xff] %v26797_v7  ;;  %v16978_v6 = vsel %vm6394_vm13, 1.0, %v26759_v30  ;;  %v16980_v38 = vsel %vm6396_vm14, 1.0, %v26759_v30  ;;  %v6587_v22 = vsub.f32 %v21410_v10, %v26125_v3 }
 0x7a0   :  { %v21431_v59 = vsub.f32 %v16978_v6, %v16978_v6  ;;  %v21433_v9 = vsub.f32 %v16980_v38, %v16980_v38  ;;  %v21484_v6 = vpack.c.bf16 %v6546_v37, %v6534_v39  ;;  %v6570_v38 = vand.u32 4294901760, %v6569_v46 }
 0x7a1   :  { %13041 = vrot.lane.b32.xlu1 %v13038_v52, %s19831_s13  ;;  %6344 = vperm.xlu0 %19817, %v6335_v29   ;;  %v16977_v52 = vsel %vm6393_vm1, 1.0, %v26759_v30  ;;  %v16979_v29 = vsel %vm6395_vm2, 1.0, %v26759_v30  ;;  %v6592_v13 = vand.u32 4294901760, %v21414_v61  ;;  %v6588_v27 = vand.u32 4294901760, %v6587_v22 }
 0x7a2   :  { %v21442_v20 = vsub.f32 %v16977_v52, %v16977_v52  ;;  %v6575_v52 = vsub.f32 %v21408_v34, %v26126_v50  ;;  %v26124_v1 = vand.u32 4294901760, %v21431_v59  ;;  %v21497_v17 = vpack.c.bf16 %v6570_v38, %v6558_v40 }
 0x7a3   :  { %v26127_v32 = vand.u32 4294901760, %v21433_v9  ;;  %v6593_v15 = vsub.f32 %v21414_v61, %v6592_v13  ;;  %v21641_v7 = vpack.c.bf16 %v6592_v13, %v26853_v11 }
 0x7a4   :  { %v6576_v48 = vand.u32 4294901760, %v6575_v52  ;;  %v6599_v49 = vsub.f32 %v21431_v59, %v26124_v1  ;;  %v26129_v37 = vand.u32 4294901760, %v21442_v20 }
 0x7a5   :  { %13979 = vperm.xlu1 %19818, %v13039_v23   ;;  %v21448_v23 = vsub.f32 %v16979_v29, %v16979_v29  ;;  %v26123_v29 = vand.u32 4294901760, %v21412_v0  ;;  %v6611_v35 = vsub.f32 %v21433_v9, %v26127_v32  ;;  %v6594_v38 = vand.u32 4294901760, %v6593_v15 }
 0x7a6   :  { %v21512_v40 = vpack.c.bf16 %v6588_v27, %v6576_v48  ;;  %v6600_v52 = vand.u32 4294901760, %v6599_v49  ;;  %v6605_v22 = vsub.f32 %v21442_v20, %v26129_v37  ;;  %v21526_v48 = vpack.c.bf16 %v21292_v14, %v21268_v19  ;;  %v26839_v37 = vld [vmem:[#allocation4_spill] sm:$0xff] }
 0x7a7   :  { %v6581_v39 = vsub.f32 %v21412_v0, %v26123_v29  ;;  %v26128_v16 = vand.u32 4294901760, %v21448_v23  ;;  %v6612_v29 = vand.u32 4294901760, %v6611_v35  ;;  %v21530_v27 = vpack.c.bf16 %v21332_v12, %v21330_v26  ;;  %v26837_v35 = vld [vmem:[#allocation2_spill] sm:$0xff]  ;;  %26840 = vst [vmem:[#allocation4_spill] sm:$0xff] %v21584_v62 }
 0x7a8   :  { %v6606_v3 = vand.u32 4294901760, %v6605_v22  ;;  %26828 = vst [vmem:[#allocation22_spill] sm:$0xff] %v21526_v48  ;;  %v21536_v49 = vpack.c.bf16 %v21387_v57, %v21385_v24  ;;  %v21570_v22 = vsub.s32 5, %v26837_v35  ;;  %v21587_v43 = vsub.s32 6, %v26837_v35 }
 0x7a9   :  { %v6582_v46 = vand.u32 4294901760, %v6581_v39  ;;  %v6617_v1 = vsub.f32 %v21448_v23, %v26128_v16  ;;  %v21522_v50 = vpack.c.bf16 %v6612_v29, %v6600_v52  ;;  %26829 = vst [vmem:[#allocation23_spill] sm:$0xff] %v21530_v27  ;;  %v21544_v29 = vpack.c.bf16 %v21410_v10, %v21408_v34  ;;  %v7731_v52 = vld [vmem:[%s26070_s3] sm:$0xff] }
 0x7aa   :  { %26831 = vst [vmem:[#allocation25_spill] sm:$0xff] %v21536_v49  ;;  %v21576_v16 = vpack.c.bf16 %v6538_v54, %v6526_v4  ;;  %v7760_v18 = vrot.slane %v7731_v52, %v26839_v37  ;;  %v26842_v19 = vand.u32 4294901760, %v21387_v57  ;;  %v26844_v26 = vand.u32 4294901760, %v21389_v31 }
 0x7ab   :  { %v21520_v39 = vpack.c.bf16 %v6594_v38, %v6582_v46  ;;  %26827 = vst [vmem:[#allocation21_spill] sm:$0xff] %v21522_v50  ;;  %v6618_v32 = vand.u32 4294901760, %v6617_v1  ;;  %v21540_v46 = vpack.c.bf16 %v21391_v45, %v21389_v31  ;;  %26833 = vst [vmem:[#allocation27_spill] sm:$0xff] %v21544_v29  ;;  %v21548_v1 = vpack.c.bf16 %v21414_v61, %v21412_v0  ;;  %v21567_v61 = vld [vmem:[%s26071_s4] sm:$0xff] }
 0x7ac   :  { %v21559_v38 = vsub.s32 4, %v26837_v35  ;;  %26838 = vst [vmem:[#allocation31_spill] sm:$0xff] %v21576_v16  ;;  %v21593_v14 = vpack.c.bf16 %v26842_v19, %v26841_v44  ;;  %v7969_v4 = vrot.slane %v21567_v61, %v26839_v37  ;;  %v26845_v12 = vand.u32 4294901760, %v21391_v45 }
 0x7ad   :  { %26826 = vst [vmem:[#allocation20_spill] sm:$0xff] %v21520_v39  ;;  %v21532_v15 = vpack.c.bf16 %v6618_v32, %v6606_v3  ;;  %26832 = vst [vmem:[#allocation26_spill] sm:$0xff] %v21540_v46  ;;  %v21552_v3 = vpack.c.bf16 %v21433_v9, %v21431_v59  ;;  %v21556_v32 = vpack.c.bf16 %v21448_v23, %v21442_v20  ;;  %v8762_v10 = vsub.s32 7, %v26837_v35 }
 0x7ae   :  { %26834 = vst [vmem:[#allocation28_spill] sm:$0xff] %v21548_v1  ;;  %v7764_v8 = vrot.slane %v7731_v52, %v21559_v38  ;;  %26843 = vst [vmem:[#allocation32_spill] sm:$0xff] %v21593_v14  ;;  %v7973_v54 = vrot.slane %v21567_v61, %v21559_v38  ;;  %v21603_v60 = vpack.c.bf16 %v26845_v12, %v26844_v26  ;;  %v26848_v14 = vld [vmem:[#allocation6_spill] sm:$0xff]  ;;  %v26861_v53 = vand.u32 4294901760, %v21448_v23 }
 0x7af   :  { %26830 = vst [vmem:[#allocation24_spill] sm:$0xff] %v21532_v15  ;;  %26835 = vst [vmem:[#allocation29_spill] sm:$0xff] %v21552_v3  ;;  %v8051_v62 = vrot.slane %v7731_v52, %v26847_v28  ;;  %v8055_v24 = vrot.slane %v7731_v52, %v21570_v22  ;;  %v8259_v44 = vrot.slane %v21567_v61, %v26847_v28 }
 0x7b0   :  { %26836 = vst [vmem:[#allocation30_spill] sm:$0xff] %v21556_v32  ;;  %26846 = vst [vmem:[#allocation33_spill] sm:$0xff] %v21603_v60  ;;  %v21610_v57 = vrot.slane %v7760_v18, %v26839_v37  ;;  %v21613_v19 = vrot.slane %v7764_v8, %v26839_v37  ;;  %v8263_v31 = vrot.slane %v21567_v61, %v21570_v22  ;;  %v17335_v18 = vld [vmem:[%s26070_s3 + $0x8] sm:$0xff]  ;;  %v26849_v8 = vand.u32 4294901760, %v21408_v34 }
 0x7b1   :  { %v8405_v45 = vrot.slane %v7731_v52, %v26848_v14  ;;  %v8409_v26 = vrot.slane %v7731_v52, %v21587_v43  ;;  %v8613_v12 = vrot.slane %v21567_v61, %v26848_v14  ;;  %v8617_v60 = vrot.slane %v21567_v61, %v21587_v43  ;;  %26854 = vst [vmem:[#allocation6_spill] sm:$0xff] %v21641_v7 }
 0x7b2   :  { %v21630_v16 = vpack.c.bf16 %v26850_v33, %v26849_v8  ;;  %v21633_v21 = vrot.slane %v7969_v4, %v26839_v37  ;;  %v21636_v41 = vrot.slane %v7973_v54, %v26839_v37  ;;  %v8759_v47 = vrot.slane %v7731_v52, %v26852_v55  ;;  %v21656_v4 = vld [vmem:[%s26071_s4 + $0x8] sm:$0xff] }
 0x7b3   :  { %v21644_v25 = vrot.slane %v8051_v62, %v26847_v28  ;;  %v21647_v34 = vrot.slane %v8055_v24, %v26847_v28  ;;  %v21650_v33 = vrot.slane %v8259_v44, %v26847_v28  ;;  %v21659_v0 = vrot.slane %v8263_v31, %v26847_v28 }
 0x7b4   :  { %26851 = vst [vmem:[#allocation5_spill] sm:$0xff] %v21630_v16  ;;  %v21662_v11 = vrot.slane %v8405_v45, %v26848_v14  ;;  %v8967_v62 = vrot.slane %v21567_v61, %v26852_v55  ;;  %v10404_v13 = vrot.slane %v17335_v18, %v26839_v37  ;;  %v21668_v54 = vrot.slane %v8409_v26, %v26848_v14 }
 0x7b5   :  { %26855 = vst [vmem:[#allocation7_spill] sm:$0xff] %v21659_v0  ;;  %v21671_v24 = vrot.slane %v8613_v12, %v26848_v14  ;;  %v21674_v44 = vrot.slane %v8617_v60, %v26848_v14  ;;  %v26857_v31 = vand.u32 4294901760, %v21431_v59  ;;  %v26858_v8 = vand.u32 4294901760, %v21433_v9 }
 0x7b6   :  { %26856 = vst [vmem:[#allocation34_spill] sm:$0xff] %v21668_v54  ;;  %v21683_v7 = vrot.slane %v8759_v47, %v26852_v55  ;;  %v10408_v16 = vrot.slane %v17335_v18, %v21559_v38  ;;  %v10613_v26 = vrot.slane %v21656_v4, %v26839_v37  ;;  %v26860_v12 = vand.u32 4294901760, %v21442_v20 }
 0x7b7   :  { %v21680_v45 = vpack.c.bf16 %v26858_v8, %v26857_v31  ;;  %v8763_v2 = vrot.slane %v7731_v52, %v8762_v10  ;;  %v8971_v59 = vrot.slane %v21567_v61, %v8762_v10  ;;  %v10617_v9 = vrot.slane %v21656_v4, %v21559_v38 }
 0x7b8   :  { %v21692_v60 = vpack.c.bf16 %v26861_v53, %v26860_v12  ;;  %v10695_v47 = vrot.slane %v17335_v18, %v26847_v28  ;;  %v21699_v31 = vrot.slane %v8967_v62, %v26852_v55  ;;  %v21702_v8 = vrot.slane %v10404_v13, %v26839_v37 }
 0x7b9   :  { %26859 = vst [vmem:[#allocation35_spill] sm:$0xff] %v21680_v45  ;;  %v10699_v20 = vrot.slane %v17335_v18, %v21570_v22  ;;  %v10903_v53 = vrot.slane %v21656_v4, %v26847_v28  ;;  %v10907_v23 = vrot.slane %v21656_v4, %v21570_v22  ;;  %v11049_v52 = vrot.slane %v17335_v18, %v26848_v14 }
 0x7ba   :  { %26862 = vst [vmem:[#allocation36_spill] sm:$0xff] %v21692_v60  ;;  %v11053_v38 = vrot.slane %v17335_v18, %v21587_v43  ;;  %v11257_v61 = vrot.slane %v21656_v4, %v26848_v14  ;;  %v11261_v62 = vrot.slane %v21656_v4, %v21587_v43  ;;  %v11403_v13 = vrot.slane %v17335_v18, %v26852_v55 }
 0x7bb   :  { %v11407_v12 = vrot.slane %v17335_v18, %v8762_v10  ;;  %v11615_v60 = vrot.slane %v21656_v4, %v8762_v10  ;;  %v21718_v45 = vrot.slane %v8763_v2, %v26852_v55  ;;  %v21721_v22 = vrot.slane %v10408_v16, %v26839_v37 }
 0x7bc   :  { %v21724_v32 = vrot.slane %v10613_v26, %v26839_v37  ;;  %v21727_v3 = vrot.slane %v10617_v9, %v26839_v37  ;;  %v21730_v1 = vrot.slane %v8971_v59, %v26852_v55  ;;  %v21733_v43 = vrot.slane %v10695_v47, %v26847_v28 }
 0x7bd   :  { %v21736_v18 = vrot.slane %v10699_v20, %v26847_v28  ;;  %v21739_v2 = vrot.slane %v10903_v53, %v26847_v28  ;;  %v21742_v16 = vrot.slane %v10907_v23, %v26847_v28  ;;  %v21745_v10 = vrot.slane %v11049_v52, %v26848_v14  ;;  %v26867_v20 = vld [vmem:[#allocation3_spill] sm:$0xff] }
 0x7be   :  { %26863 = vst [vmem:[#allocation37_spill] sm:$0xff] %v21733_v43  ;;  %v21748_v37 = vrot.slane %v11053_v38, %v26848_v14  ;;  %v21751_v26 = vrot.slane %v11257_v61, %v26848_v14  ;;  %v21754_v59 = vrot.slane %v11261_v62, %v26848_v14  ;;  %v21757_v9 = vrot.slane %v11403_v13, %v26852_v55 }
 0x7bf   :  { %26864 = vst [vmem:[#allocation38_spill] sm:$0xff] %v21736_v18  ;;  %26865 = vst [vmem:[#allocation39_spill] sm:$0xff] %v21739_v2  ;;  %v21760_v47 = vrot.slane %v11407_v12, %v26852_v55  ;;  %v21763_v28 = vrot.slane %v11615_v60, %v26852_v55  ;;  %vm7774_vm6 = vcmp.eq.s32.totalorder %v26837_v35, %v21613_v19 }
 0x7c0   :  { %26866 = vst [vmem:[#allocation40_spill] sm:$0xff] %v21745_v10  ;;  %vm7776_vm10 = vcmp.eq.s32.totalorder %v26867_v20, %v21613_v19  ;;  %vm8065_vm13 = vcmp.eq.s32.totalorder %v26837_v35, %v21647_v34  ;;  %vm8067_vm14 = vcmp.eq.s32.totalorder %v26867_v20, %v21647_v34  ;;  %v17078_v14 = vsel %vm7774_vm6, 1.0, %v26759_v30 }
 0x7c1   :  { %v17080_v53 = vsel %vm7776_vm10, 1.0, %v26759_v30  ;;  %v17142_v23 = vsel %vm8065_vm13, 1.0, %v26759_v30  ;;  %v17144_v60 = vsel %vm8067_vm14, 1.0, %v26759_v30  ;;  %v7985_v52 = vmul.f32 %v17078_v14, %v21636_v41 }
 0x7c2   :  { %v7987_v38 = vmul.f32 %v17080_v53, %v21636_v41  ;;  %v8275_v61 = vmul.f32 %v17142_v23, %v21659_v0  ;;  %v8277_v62 = vmul.f32 %v17144_v60, %v21659_v0  ;;  %vm8419_vm1 = vcmp.eq.s32.totalorder %v26837_v35, %v21668_v54 }
 0x7c3   :  { %vm8421_vm2 = vcmp.eq.s32.totalorder %v26867_v20, %v21668_v54  ;;  %vm10418_vm6 = vcmp.eq.s32.totalorder %v26837_v35, %v21721_v22  ;;  %vm10420_vm10 = vcmp.eq.s32.totalorder %v26867_v20, %v21721_v22  ;;  %v17206_v14 = vsel %vm8419_vm1, 1.0, %v26759_v30 }
 0x7c4   :  { %v8339_v13 = vadd.f32 %v8275_v61, %v7985_v52  ;;  %v8341_v12 = vadd.f32 %v8277_v62, %v7987_v38  ;;  %v17208_v53 = vsel %vm8421_vm2, 1.0, %v26759_v30  ;;  %v8629_v23 = vmul.f32 %v17206_v14, %v21674_v44 }
 0x7c5   :  { %v8631_v60 = vmul.f32 %v17208_v53, %v21674_v44  ;;  %vm8773_vm13 = vcmp.eq.s32.totalorder %v26837_v35, %v21718_v45  ;;  %vm8775_vm14 = vcmp.eq.s32.totalorder %v26867_v20, %v21718_v45  ;;  %v17338_v52 = vsel %vm10418_vm6, 1.0, %v26759_v30 }
 0x7c6   :  { %v17270_v29 = vsel %vm8773_vm13, 1.0, %v26759_v30  ;;  %v17272_v46 = vsel %vm8775_vm14, 1.0, %v26759_v30  ;;  %v17340_v38 = vsel %vm10420_vm10, 1.0, %v26759_v30  ;;  %v8693_v61 = vadd.f32 %v8629_v23, %v8339_v13 }
 0x7c7   :  { %v8695_v62 = vadd.f32 %v8631_v60, %v8341_v12  ;;  %v8983_v14 = vmul.f32 %v17270_v29, %v21730_v1  ;;  %v8985_v53 = vmul.f32 %v17272_v46, %v21730_v1  ;;  %v10629_v49 = vmul.f32 %v17338_v52, %v21727_v3 }
 0x7c8   :  { %v10631_v27 = vmul.f32 %v17340_v38, %v21727_v3  ;;  %vm10709_vm1 = vcmp.eq.s32.totalorder %v26837_v35, %v21736_v18  ;;  %vm10711_vm2 = vcmp.eq.s32.totalorder %v26867_v20, %v21736_v18  ;;  %vm11063_vm6 = vcmp.eq.s32.totalorder %v26837_v35, %v21748_v37 }
 0x7c9   :  { %v21809_v48 = vadd.f32 %v8983_v14, %v8693_v61  ;;  %v21811_v15 = vadd.f32 %v8985_v53, %v8695_v62  ;;  %v17402_v13 = vsel %vm10709_vm1, 1.0, %v26759_v30  ;;  %v17404_v29 = vsel %vm10711_vm2, 1.0, %v26759_v30 }
 0x7ca   :  { %v10919_v46 = vmul.f32 %v17402_v13, %v21742_v16  ;;  %v10921_v12 = vmul.f32 %v17404_v29, %v21742_v16  ;;  %vm11065_vm10 = vcmp.eq.s32.totalorder %v26867_v20, %v21748_v37  ;;  %v17466_v52 = vsel %vm11063_vm6, 1.0, %v26759_v30 }
 0x7cb   :  { %v26175_v23 = vand.u32 4294901760, %v21809_v48  ;;  %v26174_v60 = vand.u32 4294901760, %v21811_v15  ;;  %v17468_v38 = vsel %vm11065_vm10, 1.0, %v26759_v30  ;;  %v11273_v14 = vmul.f32 %v17466_v52, %v21754_v59 }
 0x7cc   :  { %v10983_v61 = vadd.f32 %v10919_v46, %v10629_v49  ;;  %v10985_v62 = vadd.f32 %v10921_v12, %v10631_v27  ;;  %v11275_v53 = vmul.f32 %v17468_v38, %v21754_v59  ;;  %v11611_v13 = vrot.slane %v21656_v4, %v26852_v55 }
 0x7cd   :  { %v21832_v29 = vsub.f32 %v21809_v48, %v26175_v23  ;;  %v21837_v63 = vsub.f32 %v21811_v15, %v26174_v60  ;;  %vm11417_vm13 = vcmp.eq.s32.totalorder %v26837_v35, %v21760_v47  ;;  %vm11419_vm14 = vcmp.eq.s32.totalorder %v26867_v20, %v21760_v47 }
 0x7ce   :  { %v11337_v27 = vadd.f32 %v11273_v14, %v10983_v61  ;;  %v11339_v49 = vadd.f32 %v11275_v53, %v10985_v62  ;;  %v17530_v4 = vsel %vm11417_vm13, 1.0, %v26759_v30  ;;  %v17532_v46 = vsel %vm11419_vm14, 1.0, %v26759_v30 }
 0x7cf   :  { %26868 = vst [vmem:[#allocation3_spill] sm:$0xff] %v21832_v29  ;;  %26869 = vst [vmem:[#allocation41_spill] sm:$0xff] %v21837_v63  ;;  %v11627_v12 = vmul.f32 %v17530_v4, %v21763_v28  ;;  %vm7773_vm1 = vcmp.eq.s32.totalorder %v26837_v35, %v21610_v57  ;;  %vm7775_vm2 = vcmp.eq.s32.totalorder %v26867_v20, %v21610_v57 }
 0x7d0   :  { %v11629_v52 = vmul.f32 %v17532_v46, %v21763_v28  ;;  %v17077_v38 = vsel %vm7773_vm1, 1.0, %v26759_v30  ;;  %v17079_v61 = vsel %vm7775_vm2, 1.0, %v26759_v30  ;;  %vm8064_vm6 = vcmp.eq.s32.totalorder %v26837_v35, %v21644_v25 }
 0x7d1   :  { %v21855_v62 = vadd.f32 %v11627_v12, %v11337_v27  ;;  %v7984_v14 = vmul.f32 %v17077_v38, %v21633_v21  ;;  %v7986_v53 = vmul.f32 %v17079_v61, %v21633_v21  ;;  %vm8066_vm10 = vcmp.eq.s32.totalorder %v26867_v20, %v21644_v25 }
 0x7d2   :  { %v21861_v4 = vadd.f32 %v11629_v52, %v11339_v49  ;;  %v17141_v46 = vsel %vm8064_vm6, 1.0, %v26759_v30  ;;  %v17143_v60 = vsel %vm8066_vm10, 1.0, %v26759_v30  ;;  %vm8418_vm13 = vcmp.eq.s32.totalorder %v26837_v35, %v21662_v11 }
 0x7d3   :  { %v26182_v23 = vand.u32 4294901760, %v21855_v62  ;;  %v8274_v27 = vmul.f32 %v17141_v46, %v21650_v33  ;;  %v8276_v12 = vmul.f32 %v17143_v60, %v21650_v33  ;;  %vm8420_vm14 = vcmp.eq.s32.totalorder %v26867_v20, %v21662_v11 }
 0x7d4   :  { %v26183_v38 = vand.u32 4294901760, %v21861_v4  ;;  %v17205_v49 = vsel %vm8418_vm13, 1.0, %v26759_v30  ;;  %v17207_v52 = vsel %vm8420_vm14, 1.0, %v26759_v30  ;;  %vm8772_vm1 = vcmp.eq.s32.totalorder %v26837_v35, %v21683_v7 }
 0x7d5   :  { %v21880_v61 = vsub.f32 %v21855_v62, %v26182_v23  ;;  %v8338_v46 = vadd.f32 %v8274_v27, %v7984_v14  ;;  %v8340_v63 = vadd.f32 %v8276_v12, %v7986_v53  ;;  %v8628_v60 = vmul.f32 %v17205_v49, %v21671_v24 }
 0x7d6   :  { %v21884_v29 = vrot.slane %v11611_v13, %v26852_v55  ;;  %v21889_v58 = vsub.f32 %v21861_v4, %v26183_v38  ;;  %v8630_v50 = vmul.f32 %v17207_v52, %v21671_v24  ;;  %vm8774_vm2 = vcmp.eq.s32.totalorder %v26867_v20, %v21683_v7 }
 0x7d7   :  { %26870 = vst [vmem:[#allocation42_spill] sm:$0xff] %v21880_v61  ;;  %v8692_v39 = vadd.f32 %v8628_v60, %v8338_v46  ;;  %v17269_v23 = vsel %vm8772_vm1, 1.0, %v26759_v30  ;;  %v17271_v14 = vsel %vm8774_vm2, 1.0, %v26759_v30  ;;  %vm10417_vm6 = vcmp.eq.s32.totalorder %v26837_v35, %v21702_v8 }
 0x7d8   :  { %26871 = vst [vmem:[#allocation43_spill] sm:$0xff] %v21889_v58  ;;  %v8694_v55 = vadd.f32 %v8630_v50, %v8340_v63  ;;  %v8982_v13 = vmul.f32 %v17269_v23, %v21699_v31  ;;  %v8984_v53 = vmul.f32 %v17271_v14, %v21699_v31  ;;  %vm10419_vm10 = vcmp.eq.s32.totalorder %v26867_v20, %v21702_v8 }
 0x7d9   :  { %v17337_v27 = vsel %vm10417_vm6, 1.0, %v26759_v30  ;;  %v17339_v12 = vsel %vm10419_vm10, 1.0, %v26759_v30  ;;  %vm10708_vm13 = vcmp.eq.s32.totalorder %v26837_v35, %v21733_v43  ;;  %vm10710_vm14 = vcmp.eq.s32.totalorder %v26867_v20, %v21733_v43 }
 0x7da   :  { %v21908_v49 = vadd.f32 %v8982_v13, %v8692_v39  ;;  %v21910_v63 = vadd.f32 %v8984_v53, %v8694_v55  ;;  %v10628_v50 = vmul.f32 %v17337_v27, %v21724_v32  ;;  %v10630_v23 = vmul.f32 %v17339_v12, %v21724_v32 }
 0x7db   :  { %v17401_v52 = vsel %vm10708_vm13, 1.0, %v26759_v30  ;;  %v17403_v46 = vsel %vm10710_vm14, 1.0, %v26759_v30  ;;  %vm11062_vm1 = vcmp.eq.s32.totalorder %v26837_v35, %v21745_v10  ;;  %vm11064_vm2 = vcmp.eq.s32.totalorder %v26867_v20, %v21745_v10 }
 0x7dc   :  { %v26188_v60 = vand.u32 4294901760, %v21908_v49  ;;  %v26187_v39 = vand.u32 4294901760, %v21910_v63  ;;  %v10918_v14 = vmul.f32 %v17401_v52, %v21739_v2  ;;  %v10920_v55 = vmul.f32 %v17403_v46, %v21739_v2 }
 0x7dd   :  { %v17465_v13 = vsel %vm11062_vm1, 1.0, %v26759_v30  ;;  %v17467_v53 = vsel %vm11064_vm2, 1.0, %v26759_v30  ;;  %vm11416_vm6 = vcmp.eq.s32.totalorder %v26837_v35, %v21757_v9  ;;  %vm11418_vm10 = vcmp.eq.s32.totalorder %v26867_v20, %v21757_v9 }
 0x7de   :  { %v21933_v27 = vsub.f32 %v21908_v49, %v26188_v60  ;;  %v21938_v12 = vsub.f32 %v21910_v63, %v26187_v39  ;;  %v10982_v52 = vadd.f32 %v10918_v14, %v10628_v50  ;;  %v10984_v46 = vadd.f32 %v10920_v55, %v10630_v23 }
 0x7df   :  { %v11272_v38 = vmul.f32 %v17465_v13, %v21751_v26  ;;  %v11274_v58 = vmul.f32 %v17467_v53, %v21751_v26  ;;  %v17529_v61 = vsel %vm11416_vm6, 1.0, %v26759_v30  ;;  %v17531_v20 = vsel %vm11418_vm10, 1.0, %v26759_v30 }
 0x7e0   :  { %26872 = vst [vmem:[#allocation44_spill] sm:$0xff] %v21933_v27  ;;  %26873 = vst [vmem:[#allocation45_spill] sm:$0xff] %v21938_v12  ;;  %v11626_v35 = vmul.f32 %v17529_v61, %v21884_v29  ;;  %vm7778_vm13 = vcmp.eq.s32.totalorder %v26790_v36, %v21613_v19  ;;  %vm7780_vm14 = vcmp.eq.s32.totalorder %v26791_v51, %v21613_v19 }
 0x7e1   :  { %v11336_v39 = vadd.f32 %v11272_v38, %v10982_v52  ;;  %v11338_v60 = vadd.f32 %v11274_v58, %v10984_v46  ;;  %v11628_v50 = vmul.f32 %v17531_v20, %v21884_v29  ;;  %v17082_v23 = vsel %vm7778_vm13, 1.0, %v26759_v30 }
 0x7e2   :  { %v17084_v14 = vsel %vm7780_vm14, 1.0, %v26759_v30  ;;  %v7989_v55 = vmul.f32 %v17082_v23, %v21636_v41  ;;  %vm8069_vm1 = vcmp.eq.s32.totalorder %v26790_v36, %v21647_v34  ;;  %vm8071_vm2 = vcmp.eq.s32.totalorder %v26791_v51, %v21647_v34 }
 0x7e3   :  { %v11690_v61 = vadd.f32 %v11626_v35, %v11336_v39  ;;  %v11692_v13 = vadd.f32 %v11628_v50, %v11338_v60  ;;  %v7991_v53 = vmul.f32 %v17084_v14, %v21636_v41  ;;  %v17146_v58 = vsel %vm8069_vm1, 1.0, %v26759_v30 }
 0x7e4   :  { %v17148_v38 = vsel %vm8071_vm2, 1.0, %v26759_v30  ;;  %v8279_v52 = vmul.f32 %v17146_v58, %v21659_v0  ;;  %vm8423_vm6 = vcmp.eq.s32.totalorder %v26790_v36, %v21668_v54  ;;  %vm8425_vm10 = vcmp.eq.s32.totalorder %v26791_v51, %v21668_v54 }
 0x7e5   :  { %v11756_v46 = vand.u32 4294901760, %v11690_v61  ;;  %v11760_v20 = vand.u32 4294901760, %v11692_v13  ;;  %v8281_v23 = vmul.f32 %v17148_v38, %v21659_v0  ;;  %v17210_v35 = vsel %vm8423_vm6, 1.0, %v26759_v30 }
 0x7e6   :  { %v8343_v60 = vadd.f32 %v8279_v52, %v7989_v55  ;;  %v17212_v39 = vsel %vm8425_vm10, 1.0, %v26759_v30  ;;  %v8633_v50 = vmul.f32 %v17210_v35, %v21674_v44  ;;  %vm8777_vm13 = vcmp.eq.s32.totalorder %v26790_v36, %v21718_v45 }
 0x7e7   :  { %v21971_v14 = vsub.f32 %v11690_v61, %v11756_v46  ;;  %v21973_v58 = vsub.f32 %v11692_v13, %v11760_v20  ;;  %v8345_v12 = vadd.f32 %v8281_v23, %v7991_v53  ;;  %v8635_v27 = vmul.f32 %v17212_v39, %v21674_v44 }
 0x7e8   :  { %v8697_v54 = vadd.f32 %v8633_v50, %v8343_v60  ;;  %vm8779_vm14 = vcmp.eq.s32.totalorder %v26791_v51, %v21718_v45  ;;  %v17274_v55 = vsel %vm8777_vm13, 1.0, %v26759_v30  ;;  %vm10422_vm1 = vcmp.eq.s32.totalorder %v26790_v36, %v21721_v22 }
 0x7e9   :  { %26874 = vst [vmem:[#allocation46_spill] sm:$0xff] %v21971_v14  ;;  %26875 = vst [vmem:[#allocation47_spill] sm:$0xff] %v21973_v58  ;;  %v17276_v52 = vsel %vm8779_vm14, 1.0, %v26759_v30  ;;  %v8987_v35 = vmul.f32 %v17274_v55, %v21730_v1  ;;  %vm10424_vm2 = vcmp.eq.s32.totalorder %v26791_v51, %v21721_v22  ;;  %v26876_v13 = vand.u32 4294901760, %v21809_v48 }
 0x7ea   :  { %v26877_v53 = vand.u32 4294901760, %v21811_v15  ;;  %v8699_v60 = vadd.f32 %v8635_v27, %v8345_v12  ;;  %v8989_v39 = vmul.f32 %v17276_v52, %v21730_v1  ;;  %v17342_v55 = vsel %vm10422_vm1, 1.0, %v26759_v30 }
 0x7eb   :  { %v9051_v50 = vadd.f32 %v8987_v35, %v8697_v54  ;;  %v17344_v58 = vsel %vm10424_vm2, 1.0, %v26759_v30  ;;  %vm10713_vm6 = vcmp.eq.s32.totalorder %v26790_v36, %v21736_v18  ;;  %v10633_v48 = vmul.f32 %v17342_v55, %v21727_v3 }
 0x7ec   :  { %v21990_v23 = vpack.c.bf16 %v26877_v53, %v26876_v13  ;;  %vm10715_vm10 = vcmp.eq.s32.totalorder %v26791_v51, %v21736_v18  ;;  %v10635_v12 = vmul.f32 %v17344_v58, %v21727_v3  ;;  %v17406_v54 = vsel %vm10713_vm6, 1.0, %v26759_v30 }
 0x7ed   :  { %v9118_v27 = vand.u32 4294901760, %v9051_v50  ;;  %v17408_v52 = vsel %vm10715_vm10, 1.0, %v26759_v30  ;;  %v26879_v53 = vand.u32 4294901760, %v21855_v62  ;;  %v10923_v55 = vmul.f32 %v17406_v54, %v21742_v16 }
 0x7ee   :  { %26878 = vst [vmem:[#allocation48_spill] sm:$0xff] %v21990_v23  ;;  %v10925_v23 = vmul.f32 %v17408_v52, %v21742_v16  ;;  %vm11067_vm13 = vcmp.eq.s32.totalorder %v26790_v36, %v21748_v37  ;;  %v26884_v62 = vand.u32 4294901760, %v21910_v63  ;;  %vm11069_vm14 = vcmp.eq.s32.totalorder %v26791_v51, %v21748_v37 }
 0x7ef   :  { %vm11421_vm1 = vcmp.eq.s32.totalorder %v26790_v36, %v21760_v47  ;;  %vm7777_vm2 = vcmp.eq.s32.totalorder %v26790_v36, %v21610_v57  ;;  %vm7779_vm6 = vcmp.eq.s32.totalorder %v26791_v51, %v21610_v57  ;;  %vm8068_vm10 = vcmp.eq.s32.totalorder %v26790_v36, %v21644_v25 }
 0x81c   :  { %v6339_v38 = vpop.permute.xlu1 %6338 }
 0x81d   :  { %v6341_v61 = vmul.f32 %v6339_v38, %v21182_v5  ;;  %v6349_v14 = vmul.f32 %v6339_v38, %v21186_v42  ;;  %v9053_v5 = vadd.f32 %v8989_v39, %v8699_v60  ;;  %v26880_v42 = vand.u32 4294901760, %v21861_v4 }
 0x81e   :  { %v22010_v39 = vsub.f32 %v9051_v50, %v9118_v27  ;;  %v10987_v50 = vadd.f32 %v10923_v55, %v10633_v48 }
 0x81f   :  { %v22008_v38 = vpack.c.bf16 %v26880_v42, %v26879_v53  ;;  %v9122_v60 = vand.u32 4294901760, %v9053_v5  ;;  %v10989_v53 = vadd.f32 %v10925_v23, %v10635_v12 }
 0x820   :  { %v6345_v15 = vpop.permute.xlu0 %6344  ;;  %26882 = vst [vmem:[#allocation50_spill] sm:$0xff] %v22010_v39 }
 0x821   :  { %v6347_v35 = vadd.f32 %v6345_v15, %v6341_v61  ;;  %v6350_v13 = vadd.f32 %v6349_v14, %v6345_v15  ;;  %26881 = vst [vmem:[#allocation49_spill] sm:$0xff] %v22008_v38  ;;  %v26883_v14 = vand.u32 4294901760, %v21908_v49  ;;  %v22022_v4 = vsub.f32 %v9053_v5, %v9122_v60 }
 0x822   :  { %v22024_v15 = vpack.c.bf16 %v11760_v20, %v11756_v46  ;;  %v17472_v49 = vsel %vm11069_vm14, 1.0, %v26759_v30  ;;  %v22036_v5 = vpack.c.bf16 %v9122_v60, %v9118_v27  ;;  %v17534_v27 = vsel %vm11421_vm1, 1.0, %v26759_v30 }
 0x823   :  { %v6348_v58 = vmax.f32 %v6347_v35, 0.0  ;;  %v6351_v18 = vmax.f32 %v6350_v13, 0.0  ;;  %v22020_v61 = vpack.c.bf16 %v26884_v62, %v26883_v14  ;;  %26886 = vst [vmem:[#allocation52_spill] sm:$0xff] %v22022_v4  ;;  %v17470_v35 = vsel %vm11067_vm13, 1.0, %v26759_v30 }
 0x824   :  { %26887 = vst [vmem:[#allocation53_spill] sm:$0xff] %v22024_v15  ;;  %26888 = vst [vmem:[#allocation54_spill] sm:$0xff] %v22036_v5  ;;  %v11277_v46 = vmul.f32 %v17470_v35, %v21754_v59  ;;  %v11279_v20 = vmul.f32 %v17472_v49, %v21754_v59  ;;  %v11631_v60 = vmul.f32 %v17534_v27, %v21763_v28  ;;  %v17081_v62 = vsel %vm7777_vm2, 1.0, %v26759_v30 }
 0x825   :  { %26885 = vst [vmem:[#allocation51_spill] sm:$0xff] %v22020_v61  ;;  %v6430_v54 = vsel %vm3238_vm5, %v6348_v58, 0  ;;  %v7080_v52 = vsel %vm3238_vm5, %v6351_v18, 0  ;;  %vm11423_vm5 = vcmp.eq.s32.totalorder %v26791_v51, %v21760_v47  ;;  %vm8070_vm13 = vcmp.eq.s32.totalorder %v26791_v51, %v21644_v25 }
 0x826   :  { %v22032_v63 = vand.u32 4294901760, %v6430_v54  ;;  %v22034_v13 = vand.u32 4294901760, %v7080_v52  ;;  %v11341_v48 = vadd.f32 %v11277_v46, %v10987_v50  ;;  %v11343_v12 = vadd.f32 %v11279_v20, %v10989_v53 }
 0x827   :  { %v17536_v42 = vsel %vm11423_vm5, 1.0, %v26759_v30  ;;  %v17083_v50 = vsel %vm7779_vm6, 1.0, %v26759_v30  ;;  %v7988_v53 = vmul.f32 %v17081_v62, %v21633_v21  ;;  %vm8422_vm14 = vcmp.eq.s32.totalorder %v26790_v36, %v21662_v11 }
 0x828   :  { %v22047_v18 = vsub.f32 %v6430_v54, %v22032_v63  ;;  %v22050_v23 = vsub.f32 %v7080_v52, %v22034_v13  ;;  %v11633_v14 = vmul.f32 %v17536_v42, %v21763_v28  ;;  %v11695_v54 = vadd.f32 %v11631_v60, %v11341_v48 }
 0x829   :  { %v7990_v46 = vmul.f32 %v17083_v50, %v21633_v21  ;;  %v17145_v48 = vsel %vm8068_vm10, 1.0, %v26759_v30  ;;  %v17147_v62 = vsel %vm8070_vm13, 1.0, %v26759_v30  ;;  %vm8424_vm1 = vcmp.eq.s32.totalorder %v26791_v51, %v21662_v11 }
 0x82a   :  { %v26198_v55 = vand.u32 4294901760, %v22047_v18  ;;  %v26199_v58 = vand.u32 4294901760, %v22050_v23  ;;  %v11697_v49 = vadd.f32 %v11633_v14, %v11343_v12  ;;  %v11762_v20 = vand.u32 4294901760, %v11695_v54 }
 0x82b   :  { %v8278_v12 = vmul.f32 %v17145_v48, %v21650_v33  ;;  %v8280_v14 = vmul.f32 %v17147_v62, %v21650_v33  ;;  %vm8776_vm5 = vcmp.eq.s32.totalorder %v26790_v36, %v21683_v7  ;;  %vm8778_vm2 = vcmp.eq.s32.totalorder %v26791_v51, %v21683_v7 }
 0x82c   :  { %v6516_v52 = vsub.f32 %v22047_v18, %v26198_v55  ;;  %v7166_v35 = vsub.f32 %v22050_v23, %v26199_v58  ;;  %v11766_v60 = vand.u32 4294901760, %v11697_v49  ;;  %v22078_v55 = vsub.f32 %v11695_v54, %v11762_v20 }
 0x82d   :  { %v8342_v54 = vadd.f32 %v8278_v12, %v7988_v53  ;;  %v8344_v48 = vadd.f32 %v8280_v14, %v7990_v46  ;;  %v17273_v53 = vsel %vm8776_vm5, 1.0, %v26759_v30  ;;  %vm10421_vm6 = vcmp.eq.s32.totalorder %v26790_v36, %v21702_v8 }
 0x82e   :  { %v6517_v27 = vand.u32 4294901760, %v6516_v52  ;;  %v7167_v42 = vand.u32 4294901760, %v7166_v35  ;;  %26889 = vst [vmem:[#allocation55_spill] sm:$0xff] %v22078_v55  ;;  %v22084_v50 = vpack.c.bf16 %v11766_v60, %v11762_v20  ;;  %v22086_v58 = vsub.f32 %v11697_v49, %v11766_v60 }
 0x82f   :  { %v17209_v52 = vsel %vm8422_vm14, 1.0, %v26759_v30  ;;  %v17211_v35 = vsel %vm8424_vm1, 1.0, %v26759_v30  ;;  %v17275_v49 = vsel %vm8778_vm2, 1.0, %v26759_v30  ;;  %v8986_v46 = vmul.f32 %v17273_v53, %v21699_v31 }
 0x830   :  { %6518 = vmatmul.mubr.f32.vlgmr.msra.gmra.mrb[32].mxu0 %v6517_v27  ;;  %7168 = vmatmul.mubr.f32.vlgmr.msra.gmra.mrb[32].mxu1 %v7167_v42  ;;  %26890 = vst [vmem:[#allocation56_spill] sm:$0xff] %v22084_v50  ;;  %26891 = vst [vmem:[#allocation57_spill] sm:$0xff] %v22086_v58  ;;  %v8632_v62 = vmul.f32 %v17209_v52, %v21671_v24  ;;  %v8634_v20 = vmul.f32 %v17211_v35, %v21671_v24  ;;  %v17341_v42 = vsel %vm10421_vm6, 1.0, %v26759_v30 }
 0x831   :  { %18660 = vmatpush1.bf16.msra.mxu0 %v21484_v6  ;;  %18756 = vmatpush1.bf16.msra.mxu1 %v21484_v6  ;;  %v8988_v27 = vmul.f32 %v17275_v49, %v21699_v31  ;;  %vm10423_vm10 = vcmp.eq.s32.totalorder %v26791_v51, %v21702_v8  ;;  %vm10712_vm13 = vcmp.eq.s32.totalorder %v26790_v36, %v21733_v43 }
 0x832   :  { %18662 = vmatprep.subr.bf16.mxu0 %v21490_v56  ;;  %18758 = vmatprep.subr.bf16.mxu1 %v21490_v56  ;;  %v8696_v6 = vadd.f32 %v8632_v62, %v8342_v54  ;;  %v8698_v56 = vadd.f32 %v8634_v20, %v8344_v48  ;;  %v17343_v60 = vsel %vm10423_vm10, 1.0, %v26759_v30  ;;  %vm10714_vm14 = vcmp.eq.s32.totalorder %v26791_v51, %v21733_v43 }
 0x833   :  { %6668 = vmatprep.mubr.f32.mxu0 %v26759_v30  ;;  %7318 = vmatprep.mubr.f32.mxu1 %v26759_v30  ;;  %v10632_v52 = vmul.f32 %v17341_v42, %v21724_v32  ;;  %v10634_v35 = vmul.f32 %v17343_v60, %v21724_v32  ;;  %v17407_v54 = vsel %vm10714_vm14, 1.0, %v26759_v30  ;;  %vm11066_vm1 = vcmp.eq.s32.totalorder %v26790_v36, %v21745_v10 }
 0x834   :  { %v9050_v12 = vadd.f32 %v8986_v46, %v8696_v6  ;;  %v9052_v14 = vadd.f32 %v8988_v27, %v8698_v56  ;;  %v10924_v53 = vmul.f32 %v17407_v54, %v21739_v2  ;;  %vm11068_vm5 = vcmp.eq.s32.totalorder %v26791_v51, %v21745_v10  ;;  %v26893_v46 = vld [vmem:[#allocation21_spill] sm:$0xff] }
 0x835   :  { %18664 = vmatpush1.bf16.msra.mxu0 %v21497_v17  ;;  %18760 = vmatpush1.bf16.msra.mxu1 %v21497_v17  ;;  %v17405_v17 = vsel %vm10712_vm13, 1.0, %v26759_v30  ;;  %v17469_v49 = vsel %vm11066_vm1, 1.0, %v26759_v30  ;;  %v17471_v56 = vsel %vm11068_vm5, 1.0, %v26759_v30  ;;  %vm11420_vm2 = vcmp.eq.s32.totalorder %v26790_v36, %v21757_v9 }
 0x836   :  { %18666 = vmatprep.subr.bf16.mxu0 %v21512_v40  ;;  %18762 = vmatprep.subr.bf16.mxu1 %v21512_v40  ;;  %v10922_v48 = vmul.f32 %v17405_v17, %v21739_v2  ;;  %v9120_v62 = vand.u32 4294901760, %v9050_v12  ;;  %v9124_v20 = vand.u32 4294901760, %v9052_v14  ;;  %v26892_v40 = vld [vmem:[#allocation20_spill] sm:$0xff]  ;;  %v17533_v17 = vsel %vm11420_vm2, 1.0, %v26759_v30 }
 0x837   :  { %v11276_v54 = vmul.f32 %v17469_v49, %v21751_v26  ;;  %vm11422_vm6 = vcmp.eq.s32.totalorder %v26791_v51, %v21757_v9 }
 0x838   :  { %v10986_v6 = vadd.f32 %v10922_v48, %v10632_v52  ;;  %v22138_v27 = vpack.c.bf16 %v9124_v20, %v9120_v62  ;;  %v22140_v42 = vsub.f32 %v9050_v12, %v9120_v62  ;;  %v22142_v60 = vsub.f32 %v9052_v14, %v9124_v20  ;;  %v26898_v12 = vld [vmem:[#allocation12_spill] sm:$0xff] }
 0x839   :  { %18668 = vmatpush1.bf16.msra.mxu0 %v26892_v40  ;;  %18764 = vmatpush1.bf16.msra.mxu1 %v26892_v40  ;;  %v10988_v52 = vadd.f32 %v10924_v53, %v10634_v35  ;;  %v11278_v48 = vmul.f32 %v17471_v56, %v21751_v26  ;;  %v17535_v36 = vsel %vm11422_vm6, 1.0, %v26759_v30  ;;  %v11630_v40 = vmul.f32 %v17533_v17, %v21884_v29  ;;  %v26899_v14 = vld [vmem:[#allocation24_spill] sm:$0xff]  ;;  %v26900_v53 = vld [vmem:[#allocation22_spill] sm:$0xff] }
 0x83a   :  { %18670 = vmatprep.subr.bf16.mxu0 %v26893_v46  ;;  %18766 = vmatprep.subr.bf16.mxu1 %v26893_v46  ;;  %26894 = vst [vmem:[#allocation20_spill] sm:$0xff] %v22138_v27  ;;  %26895 = vst [vmem:[#allocation21_spill] sm:$0xff] %v22140_v42  ;;  %v26897_v46 = vld [vmem:[#allocation11_spill] sm:$0xff]  ;;  %vm7784_vm13 = vcmp.eq.s32.totalorder %v26898_v12, %v21613_v19  ;;  %v11340_v35 = vadd.f32 %v11276_v54, %v10986_v6 }
 0x83b   :  { %26896 = vst [vmem:[#allocation58_spill] sm:$0xff] %v22142_v60  ;;  %vm7782_vm10 = vcmp.eq.s32.totalorder %v26897_v46, %v21613_v19  ;;  %v11342_v62 = vadd.f32 %v11278_v48, %v10988_v52  ;;  %v11632_v20 = vmul.f32 %v17535_v36, %v21884_v29  ;;  %v17088_v49 = vsel %vm7784_vm13, 1.0, %v26759_v30 }
 0x83c   :  { %v17086_v51 = vsel %vm7782_vm10, 1.0, %v26759_v30  ;;  %vm8073_vm14 = vcmp.eq.s32.totalorder %v26897_v46, %v21647_v34  ;;  %vm8075_vm1 = vcmp.eq.s32.totalorder %v26898_v12, %v21647_v34  ;;  %v11694_v6 = vadd.f32 %v11630_v40, %v11340_v35  ;;  %v26902_v40 = vld [vmem:[#allocation23_spill] sm:$0xff] }
 0x83d   :  { %18672 = vmatpush1.bf16.msra.mxu0 %v26899_v14  ;;  %18768 = vmatpush1.bf16.msra.mxu1 %v26899_v14  ;;  %v7993_v56 = vmul.f32 %v17086_v51, %v21636_v41  ;;  %v11696_v17 = vadd.f32 %v11632_v20, %v11342_v62  ;;  %v7995_v52 = vmul.f32 %v17088_v49, %v21636_v41  ;;  %v17150_v54 = vsel %vm8073_vm14, 1.0, %v26759_v30  ;;  %v26901_v14 = vld [vmem:[#allocation34_spill] sm:$0xff] }
 0x83e   :  { %18674 = vmatprep.subr.bf16.mxu0 %v26900_v53  ;;  %18770 = vmatprep.subr.bf16.mxu1 %v26900_v53  ;;  %v17152_v48 = vsel %vm8075_vm1, 1.0, %v26759_v30  ;;  %v8283_v36 = vmul.f32 %v17150_v54, %v21659_v0  ;;  %vm8427_vm5 = vcmp.eq.s32.totalorder %v26897_v46, %v26901_v14  ;;  %vm8429_vm2 = vcmp.eq.s32.totalorder %v26898_v12, %v26901_v14  ;;  %v26903_v53 = vld [vmem:[#allocation25_spill] sm:$0xff] }
 0x83f   :  { %v11764_v35 = vand.u32 4294901760, %v11694_v6  ;;  %v11768_v62 = vand.u32 4294901760, %v11696_v17  ;;  %v8285_v20 = vmul.f32 %v17152_v48, %v21659_v0  ;;  %v17214_v51 = vsel %vm8427_vm5, 1.0, %v26759_v30 }
 0x840   :  { %6670 = vmatmul.mubr.f32.vlgmr.msra.gmra.mrb[32].mxu0 %v22032_v63  ;;  %7320 = vmatmul.mubr.f32.vlgmr.msra.gmra.mrb[32].mxu1 %v22034_v13  ;;  %v8347_v49 = vadd.f32 %v8283_v36, %v7993_v56  ;;  %v17216_v54 = vsel %vm8429_vm2, 1.0, %v26759_v30  ;;  %v8637_v60 = vmul.f32 %v17214_v51, %v21674_v44  ;;  %vm8781_vm6 = vcmp.eq.s32.totalorder %v26897_v46, %v21718_v45  ;;  %v26907_v51 = vld [vmem:[#allocation26_spill] sm:$0xff] }
 0x841   :  { %18676 = vmatpush1.bf16.msra.mxu0 %v26902_v40  ;;  %18772 = vmatpush1.bf16.msra.mxu1 %v26902_v40  ;;  %v22189_v40 = vpack.c.bf16 %v11768_v62, %v11764_v35  ;;  %v22191_v48 = vsub.f32 %v11694_v6, %v11764_v35  ;;  %v22193_v42 = vsub.f32 %v11696_v17, %v11768_v62  ;;  %v26908_v17 = vld [vmem:[#allocation27_spill] sm:$0xff] }
 0x842   :  { %18678 = vmatprep.subr.bf16.mxu0 %v26903_v53  ;;  %18774 = vmatprep.subr.bf16.mxu1 %v26903_v53  ;;  %v17278_v53 = vsel %vm8781_vm6, 1.0, %v26759_v30  ;;  %v8349_v56 = vadd.f32 %v8285_v20, %v7995_v52  ;;  %v8639_v36 = vmul.f32 %v17216_v54, %v21674_v44  ;;  %v8701_v58 = vadd.f32 %v8637_v60, %v8347_v49 }
 0x843   :  { %6772 = vmatprep.mubr.f32.mxu0 %v26759_v30  ;;  %7422 = vmatprep.mubr.f32.mxu1 %v26759_v30  ;;  %26904 = vst [vmem:[#allocation11_spill] sm:$0xff] %v22189_v40  ;;  %26905 = vst [vmem:[#allocation12_spill] sm:$0xff] %v22191_v48  ;;  %vm8783_vm10 = vcmp.eq.s32.totalorder %v26898_v12, %v21718_v45  ;;  %v8991_v6 = vmul.f32 %v17278_v53, %v21730_v1  ;;  %v26909_v53 = vld [vmem:[#allocation38_spill] sm:$0xff] }
 0x844   :  { %26906 = vst [vmem:[#allocation24_spill] sm:$0xff] %v22193_v42  ;;  %v17280_v55 = vsel %vm8783_vm10, 1.0, %v26759_v30  ;;  %vm10426_vm13 = vcmp.eq.s32.totalorder %v26897_v46, %v21721_v22  ;;  %vm10428_vm14 = vcmp.eq.s32.totalorder %v26898_v12, %v21721_v22  ;;  %v8703_v60 = vadd.f32 %v8639_v36, %v8349_v56 }
 0x845   :  { %18680 = vmatpush1.bf16.msra.mxu0 %v26907_v51  ;;  %18776 = vmatpush1.bf16.msra.mxu1 %v26907_v51  ;;  %v8993_v52 = vmul.f32 %v17280_v55, %v21730_v1  ;;  %v17346_v35 = vsel %vm10426_vm13, 1.0, %v26759_v30  ;;  %v17348_v62 = vsel %vm10428_vm14, 1.0, %v26759_v30  ;;  %v9055_v20 = vadd.f32 %v8991_v6, %v8701_v58  ;;  %v26910_v55 = vld [vmem:[#allocation28_spill] sm:$0xff] }
 0x846   :  { %18682 = vmatprep.subr.bf16.mxu0 %v26908_v17  ;;  %18778 = vmatprep.subr.bf16.mxu1 %v26908_v17  ;;  %v10637_v49 = vmul.f32 %v17346_v35, %v21727_v3  ;;  %v10639_v54 = vmul.f32 %v17348_v62, %v21727_v3  ;;  %vm10717_vm1 = vcmp.eq.s32.totalorder %v26897_v46, %v26909_v53  ;;  %v26911_v17 = vld [vmem:[#allocation29_spill] sm:$0xff] }
 0x847   :  { %v9057_v51 = vadd.f32 %v8993_v52, %v8703_v60  ;;  %vm10719_vm5 = vcmp.eq.s32.totalorder %v26898_v12, %v26909_v53  ;;  %v17410_v56 = vsel %vm10717_vm1, 1.0, %v26759_v30  ;;  %vm11071_vm2 = vcmp.eq.s32.totalorder %v26897_v46, %v21748_v37 }
 0x848   :  { %v9126_v58 = vand.u32 4294901760, %v9055_v20  ;;  %v17412_v36 = vsel %vm10719_vm5, 1.0, %v26759_v30  ;;  %v10927_v6 = vmul.f32 %v17410_v56, %v21742_v16  ;;  %vm11073_vm6 = vcmp.eq.s32.totalorder %v26898_v12, %v21748_v37 }
 0x849   :  { %18684 = vmatpush1.bf16.msra.mxu0 %v26910_v55  ;;  %18780 = vmatpush1.bf16.msra.mxu1 %v26910_v55  ;;  %v9130_v60 = vand.u32 4294901760, %v9057_v51  ;;  %v10929_v52 = vmul.f32 %v17412_v36, %v21742_v16  ;;  %v17474_v35 = vsel %vm11071_vm2, 1.0, %v26759_v30  ;;  %v17476_v62 = vsel %vm11073_vm6, 1.0, %v26759_v30  ;;  %v26915_v36 = vld [vmem:[#allocation30_spill] sm:$0xff] }
 0x84a   :  { %18686 = vmatprep.subr.bf16.mxu0 %v26911_v17  ;;  %18782 = vmatprep.subr.bf16.mxu1 %v26911_v17  ;;  %v22232_v55 = vsub.f32 %v9055_v20, %v9126_v58  ;;  %v10991_v42 = vadd.f32 %v10927_v6, %v10637_v49  ;;  %v11281_v48 = vmul.f32 %v17474_v35, %v21754_v59  ;;  %v26916_v49 = vmov 1.0|1.0  }
 0x84b   :  { %v11283_v56 = vmul.f32 %v17476_v62, %v21754_v59  ;;  %v22236_v4 = vpack.c.bf16 %v9130_v60, %v9126_v58  ;;  %v22238_v39 = vsub.f32 %v9057_v51, %v9130_v60  ;;  %v10993_v40 = vadd.f32 %v10929_v52, %v10639_v54 }
 0x84c   :  { %26912 = vst [vmem:[#allocation22_spill] sm:$0xff] %v22232_v55  ;;  %vm11425_vm10 = vcmp.eq.s32.totalorder %v26897_v46, %v21760_v47  ;;  %v11345_v17 = vadd.f32 %v11281_v48, %v10991_v42  ;;  %vm11427_vm13 = vcmp.eq.s32.totalorder %v26898_v12, %v21760_v47  ;;  %vm7781_vm14 = vcmp.eq.s32.totalorder %v26897_v46, %v21610_v57 }
 0x84d   :  { %26913 = vst [vmem:[#allocation34_spill] sm:$0xff] %v22236_v4  ;;  %26914 = vst [vmem:[#allocation23_spill] sm:$0xff] %v22238_v39  ;;  %18688 = vmatpush1.bf16.msra.mxu0 %v26915_v36  ;;  %18784 = vmatpush1.bf16.msra.mxu1 %v26915_v36  ;;  %v17538_v20 = vsel %vm11425_vm10, 1.0, %v26759_v30  ;;  %v11347_v54 = vadd.f32 %v11283_v56, %v10993_v40  ;;  %v17540_v58 = vsel %vm11427_vm13, 1.0, %v26759_v30  ;;  %v17085_v6 = vsel %vm7781_vm14, 1.0, %v26759_v30 }
 0x84e   :  { %18690 = vmatprep.subr.msk.bf16.mxu0 %vm21219_vm11, %v26916_v49  ;;  %18786 = vmatprep.subr.msk.bf16.mxu1 %vm21219_vm11, %v26916_v49  ;;  %v11635_v42 = vmul.f32 %v17538_v20, %v21763_v28  ;;  %vm7783_vm1 = vcmp.eq.s32.totalorder %v26898_v12, %v21610_v57  ;;  %v11637_v48 = vmul.f32 %v17540_v58, %v21763_v28 }
 0x84f   :  { %v17087_v60 = vsel %vm7783_vm1, 1.0, %v26759_v30  ;;  %vm8072_vm5 = vcmp.eq.s32.totalorder %v26897_v46, %v21644_v25  ;;  %v7992_v52 = vmul.f32 %v17085_v6, %v21633_v21  ;;  %vm8074_vm2 = vcmp.eq.s32.totalorder %v26898_v12, %v21644_v25 }
 0x850   :  { %6775 = vmatmul.mubr.f32.vlgmr.msra.gmra.mrb[32].mxu0 %v22047_v18  ;;  %7425 = vmatmul.mubr.f32.vlgmr.msra.gmra.mrb[32].mxu1 %v22050_v23  ;;  %v11699_v40 = vadd.f32 %v11635_v42, %v11345_v17  ;;  %v7994_v35 = vmul.f32 %v17087_v60, %v21633_v21  ;;  %v17149_v62 = vsel %vm8072_vm5, 1.0, %v26759_v30  ;;  %v11701_v36 = vadd.f32 %v11637_v48, %v11347_v54 }
 0x851   :  { %18692 = vmatpush1.bf16.msk.msra.mxu0 %vm21237_vm9, %v26916_v49  ;;  %18788 = vmatpush1.bf16.msk.msra.mxu1 %vm21237_vm9, %v26916_v49  ;;  %v8282_v17 = vmul.f32 %v17149_v62, %v21650_v33  ;;  %v17151_v42 = vsel %vm8074_vm2, 1.0, %v26759_v30  ;;  %vm8426_vm6 = vcmp.eq.s32.totalorder %v26897_v46, %v21662_v11  ;;  %vm8428_vm10 = vcmp.eq.s32.totalorder %v26898_v12, %v21662_v11 }
 0x852   :  { %18694 = vmatprep.subr.msk.bf16.mxu0 %vm21278_vm15, %v26916_v49  ;;  %18790 = vmatprep.subr.msk.bf16.mxu1 %vm21278_vm15, %v26916_v49  ;;  %v11770_v58 = vand.u32 4294901760, %v11699_v40  ;;  %v11774_v54 = vand.u32 4294901760, %v11701_v36  ;;  %v8284_v48 = vmul.f32 %v17151_v42, %v21650_v33  ;;  %v17213_v60 = vsel %vm8426_vm6, 1.0, %v26759_v30 }
 0x853   :  { %6861 = vmatprep.mubr.f32.mxu0 %v26759_v30  ;;  %7511 = vmatprep.mubr.f32.mxu1 %v26759_v30  ;;  %v8346_v6 = vadd.f32 %v8282_v17, %v7992_v52  ;;  %v17215_v39 = vsel %vm8428_vm10, 1.0, %v26759_v30  ;;  %v8636_v55 = vmul.f32 %v17213_v60, %v21671_v24  ;;  %vm8780_vm13 = vcmp.eq.s32.totalorder %v26897_v46, %v21683_v7 }
 0x854   :  { %v22293_v62 = vsub.f32 %v11699_v40, %v11770_v58  ;;  %v22305_v52 = vpack.c.bf16 %v11774_v54, %v11770_v58  ;;  %v22307_v17 = vsub.f32 %v11701_v36, %v11774_v54  ;;  %v8348_v40 = vadd.f32 %v8284_v48, %v7994_v35 }
 0x855   :  { %18696 = vmatpush1.bf16.msk.msra.mxu0 %vm21305_vm4, %v26916_v49  ;;  %18792 = vmatpush1.bf16.msk.msra.mxu1 %vm21305_vm4, %v26916_v49  ;;  %v17277_v42 = vsel %vm8780_vm13, 1.0, %v26759_v30  ;;  %v8700_v27 = vadd.f32 %v8636_v55, %v8346_v6  ;;  %vm8782_vm14 = vcmp.eq.s32.totalorder %v26898_v12, %v21683_v7  ;;  %vm10425_vm1 = vcmp.eq.s32.totalorder %v26897_v46, %v21702_v8 }
 0x856   :  { %26920 = vst [vmem:[#allocation25_spill] sm:$0xff] %v22293_v62  ;;  %26922 = vst [vmem:[#allocation26_spill] sm:$0xff] %v22305_v52  ;;  %18698 = vmatprep.subr.msk.bf16.mxu0 %vm21338_vm0, %v26916_v49  ;;  %18794 = vmatprep.subr.msk.bf16.mxu1 %vm21338_vm0, %v26916_v49  ;;  %v8638_v62 = vmul.f32 %v17215_v39, %v21671_v24  ;;  %v17279_v36 = vsel %vm8782_vm14, 1.0, %v26759_v30  ;;  %v8990_v35 = vmul.f32 %v17277_v42, %v21699_v31 }
 0x857   :  { %26923 = vst [vmem:[#allocation27_spill] sm:$0xff] %v22307_v17  ;;  %vm10427_vm5 = vcmp.eq.s32.totalorder %v26898_v12, %v21702_v8  ;;  %v8992_v54 = vmul.f32 %v17279_v36, %v21699_v31  ;;  %v17345_v48 = vsel %vm10425_vm1, 1.0, %v26759_v30  ;;  %vm10716_vm2 = vcmp.eq.s32.totalorder %v26897_v46, %v21733_v43 }
 0x858   :  { %v8702_v58 = vadd.f32 %v8638_v62, %v8348_v40  ;;  %v17347_v39 = vsel %vm10427_vm5, 1.0, %v26759_v30  ;;  %v9054_v6 = vadd.f32 %v8990_v35, %v8700_v27  ;;  %v10636_v42 = vmul.f32 %v17345_v48, %v21724_v32  ;;  %v26926_v62 = vld [vmem:[#allocation2_spill] sm:$0xff] }
 0x859   :  { %18700 = vmatpush1.bf16.msk.msra.mxu0 %vm21362_vm12, %v26916_v49  ;;  %18796 = vmatpush1.bf16.msk.msra.mxu1 %vm21362_vm12, %v26916_v49  ;;  %v10638_v17 = vmul.f32 %v17347_v39, %v21724_v32  ;;  %v22337_v40 = vadd.s32 64, %v26926_v62  ;;  %vm10718_vm6 = vcmp.eq.s32.totalorder %v26898_v12, %v21733_v43  ;;  %v22350_v27 = vadd.s32 72, %v26926_v62 }
 0x85a   :  { %18702 = vmatprep.subr.msk.bf16.mxu0 %vm21422_vm7, %v26916_v49  ;;  %18798 = vmatprep.subr.msk.bf16.mxu1 %vm21422_vm7, %v26916_v49  ;;  %v9056_v52 = vadd.f32 %v8992_v54, %v8702_v58  ;;  %v9128_v35 = vand.u32 4294901760, %v9054_v6  ;;  %v17409_v48 = vsel %vm10716_vm2, 1.0, %v26759_v30  ;;  %v17411_v39 = vsel %vm10718_vm6, 1.0, %v26759_v30 }
 0x85b   :  { %26927 = vst [vmem:[#allocation38_spill] sm:$0xff] %v22337_v40  ;;  %26929 = vst [vmem:[#allocation28_spill] sm:$0xff] %v22350_v27  ;;  %vm11070_vm10 = vcmp.eq.s32.totalorder %v26897_v46, %v21745_v10  ;;  %v10926_v58 = vmul.f32 %v17409_v48, %v21739_v2  ;;  %v10928_v54 = vmul.f32 %v17411_v39, %v21739_v2  ;;  %v26932_v48 = vld [vmem:[#allocation31_spill] sm:$0xff]  ;;  %v22599_v50 = vadd.s32 112, %v26926_v62 }
 0x85c   :  { %v9132_v40 = vand.u32 4294901760, %v9056_v52  ;;  %vm11072_vm13 = vcmp.eq.s32.totalorder %v26898_v12, %v21745_v10  ;;  %v22366_v27 = vsub.f32 %v9054_v6, %v9128_v35  ;;  %v17473_v5 = vsel %vm11070_vm10, 1.0, %v26759_v30 }
 0x85d   :  { %18704 = vmatpush1.bf16.msk.msra.mxu0 %vm21438_vm8, %v26916_v49  ;;  %18800 = vmatpush1.bf16.msk.msra.mxu1 %vm21438_vm8, %v26916_v49  ;;  %v17475_v15 = vsel %vm11072_vm13, 1.0, %v26759_v30  ;;  %vm11424_vm14 = vcmp.eq.s32.totalorder %v26897_v46, %v21757_v9  ;;  %v10990_v10 = vadd.f32 %v10926_v58, %v10636_v42  ;;  %v10992_v6 = vadd.f32 %v10928_v54, %v10638_v17 }
 0x85e   :  { %26931 = vst [vmem:[#allocation29_spill] sm:$0xff] %v22366_v27  ;;  %18706 = vmatprep.subr.bf16.mxu0 %v26932_v48  ;;  %18802 = vmatprep.subr.bf16.mxu1 %v26932_v48  ;;  %v22374_v39 = vpack.c.bf16 %v9132_v40, %v9128_v35  ;;  %v22376_v61 = vsub.f32 %v9056_v52, %v9132_v40  ;;  %v17537_v2 = vsel %vm11424_vm14, 1.0, %v26759_v30  ;;  %v26935_v46 = vand.u32 4294901760, %v22047_v18  ;;  %v26937_v40 = vld [vmem:[#allocation13_spill] sm:$0xff]  ;;  %v26940_v35 = vld [vmem:[#allocation32_spill] sm:$0xff] }
 0x85f   :  { %v11280_v27 = vmul.f32 %v17473_v5, %v21751_v26  ;;  %v11282_v43 = vmul.f32 %v17475_v15, %v21751_v26  ;;  %vm11426_vm1 = vcmp.eq.s32.totalorder %v26898_v12, %v21757_v9  ;;  %v26936_v48 = vand.u32 4294901760, %v22050_v23  ;;  %v26938_v5 = vld [vmem:[#allocation14_spill] sm:$0xff]  ;;  %v26939_v15 = vld [vmem:[#allocation4_spill] sm:$0xff] }
 0x860   :  { %26933 = vst [vmem:[#allocation30_spill] sm:$0xff] %v22374_v39  ;;  %26934 = vst [vmem:[#allocation8_spill] sm:$0xff] %v22376_v61  ;;  %6865 = vmatmul.mubr.f32.vlgmr.msra.gmra.mrb[32].mxu0 %v26935_v46  ;;  %v17539_v52 = vsel %vm11426_vm1, 1.0, %v26759_v30  ;;  %v11634_v42 = vmul.f32 %v17537_v2, %v21884_v29  ;;  %vm7786_vm5 = vcmp.eq.s32.totalorder %v26937_v40, %v21613_v19 }
 0x861   :  { %7515 = vmatmul.mubr.f32.vlgmr.msra.gmra.mrb[32].mxu1 %v26936_v48  ;;  %vm7788_vm2 = vcmp.eq.s32.totalorder %v26938_v5, %v21613_v19  ;;  %18708 = vmatpush1.bf16.msra.mxu0 %v26939_v15  ;;  %v11344_v12 = vadd.f32 %v11280_v27, %v10990_v10  ;;  %v11346_v18 = vadd.f32 %v11282_v43, %v10992_v6  ;;  %v17090_v23 = vsel %vm7786_vm5, 1.0, %v26759_v30  ;;  %v26941_v48 = vld [vmem:[#allocation33_spill] sm:$0xff] }
 0x862   :  { %18804 = vmatpush1.bf16.msra.mxu1 %v26939_v15  ;;  %v11636_v17 = vmul.f32 %v17539_v52, %v21884_v29  ;;  %18710 = vmatprep.subr.bf16.mxu0 %v26940_v35  ;;  %v17092_v2 = vsel %vm7788_vm2, 1.0, %v26759_v30  ;;  %v7997_v58 = vmul.f32 %v17090_v23, %v21636_v41  ;;  %vm8077_vm6 = vcmp.eq.s32.totalorder %v26937_v40, %v21647_v34 }
 0x863   :  { %18806 = vmatprep.subr.bf16.mxu1 %v26940_v35  ;;  %vm8079_vm10 = vcmp.eq.s32.totalorder %v26938_v5, %v21647_v34  ;;  %6983 = vmatprep.mubr.f32.mxu0 %v26759_v30  ;;  %v11698_v43 = vadd.f32 %v11634_v42, %v11344_v12  ;;  %v7999_v27 = vmul.f32 %v17092_v2, %v21636_v41  ;;  %v17154_v54 = vsel %vm8077_vm6, 1.0, %v26759_v30 }
 0x864   :  { %7633 = vmatprep.mubr.f32.mxu1 %v26759_v30  ;;  %v11700_v10 = vadd.f32 %v11636_v17, %v11346_v18  ;;  %v17156_v6 = vsel %vm8079_vm10, 1.0, %v26759_v30  ;;  %v8287_v46 = vmul.f32 %v17154_v54, %v21659_v0  ;;  %vm8431_vm13 = vcmp.eq.s32.totalorder %v26937_v40, %v26901_v14  ;;  %v26942_v18 = vld [vmem:[#allocation5_spill] sm:$0xff] }
 0x865   :  { %vm8433_vm14 = vcmp.eq.s32.totalorder %v26938_v5, %v26901_v14  ;;  %18712 = vmatpush1.bf16.msra.mxu0 %v26941_v48  ;;  %v11772_v52 = vand.u32 4294901760, %v11698_v43  ;;  %v8289_v15 = vmul.f32 %v17156_v6, %v21659_v0  ;;  %v17218_v12 = vsel %vm8431_vm13, 1.0, %v26759_v30 }
 0x866   :  { %18808 = vmatpush1.bf16.msra.mxu1 %v26941_v48  ;;  %v11776_v42 = vand.u32 4294901760, %v11700_v10  ;;  %18714 = vmatprep.subr.bf16.mxu0 %v26942_v18  ;;  %v8351_v17 = vadd.f32 %v8287_v46, %v7997_v58  ;;  %v17220_v23 = vsel %vm8433_vm14, 1.0, %v26759_v30  ;;  %v8641_v35 = vmul.f32 %v17218_v12, %v21674_v44  ;;  %v26946_v46 = vld [vmem:[#allocation6_spill] sm:$0xff] }
 0x867   :  { %18810 = vmatprep.subr.bf16.mxu1 %v26942_v18  ;;  %vm8785_vm1 = vcmp.eq.s32.totalorder %v26937_v40, %v21718_v45  ;;  %v22427_v54 = vsub.f32 %v11698_v43, %v11772_v52  ;;  %v8353_v6 = vadd.f32 %v8289_v15, %v7999_v27  ;;  %v8643_v61 = vmul.f32 %v17220_v23, %v21674_v44 }
 0x868   :  { %v22425_v2 = vpack.c.bf16 %v11776_v42, %v11772_v52  ;;  %v22429_v48 = vsub.f32 %v11700_v10, %v11776_v42  ;;  %v8705_v0 = vadd.f32 %v8641_v35, %v8351_v17  ;;  %vm8787_vm5 = vcmp.eq.s32.totalorder %v26938_v5, %v21718_v45  ;;  %v26947_v10 = vld [vmem:[#allocation35_spill] sm:$0xff] }
 0x869   :  { %26944 = vst [vmem:[#allocation9_spill] sm:$0xff] %v22427_v54  ;;  %v17282_v58 = vsel %vm8785_vm1, 1.0, %v26759_v30  ;;  %18716 = vmatpush1.bf16.msra.mxu0 %v26946_v46  ;;  %v17284_v12 = vsel %vm8787_vm5, 1.0, %v26759_v30  ;;  %vm10430_vm2 = vcmp.eq.s32.totalorder %v26937_v40, %v21721_v22  ;;  %vm10432_vm6 = vcmp.eq.s32.totalorder %v26938_v5, %v21721_v22 }
 0x86a   :  { %26943 = vst [vmem:[#allocation15_spill] sm:$0xff] %v22425_v2  ;;  %26945 = vst [vmem:[#allocation10_spill] sm:$0xff] %v22429_v48  ;;  %18812 = vmatpush1.bf16.msra.mxu1 %v26946_v46  ;;  %v8995_v43 = vmul.f32 %v17282_v58, %v21730_v1  ;;  %18718 = vmatprep.subr.bf16.mxu0 %v26947_v10  ;;  %v8707_v27 = vadd.f32 %v8643_v61, %v8353_v6  ;;  %v17350_v42 = vsel %vm10430_vm2, 1.0, %v26759_v30  ;;  %v26948_v6 = vld [vmem:[#allocation36_spill] sm:$0xff] }
 0x86b   :  { %18814 = vmatprep.subr.bf16.mxu1 %v26947_v10  ;;  %v8997_v52 = vmul.f32 %v17284_v12, %v21730_v1  ;;  %v17352_v15 = vsel %vm10432_vm6, 1.0, %v26759_v30  ;;  %v10641_v17 = vmul.f32 %v17350_v42, %v21727_v3  ;;  %vm10721_vm10 = vcmp.eq.s32.totalorder %v26937_v40, %v26909_v53 }
 0x86c   :  { %v9059_v18 = vadd.f32 %v8995_v43, %v8705_v0  ;;  %v10643_v23 = vmul.f32 %v17352_v15, %v21727_v3  ;;  %vm10723_vm13 = vcmp.eq.s32.totalorder %v26938_v5, %v26909_v53  ;;  %v17414_v61 = vsel %vm10721_vm10, 1.0, %v26759_v30 }
 0x86d   :  { %v9061_v35 = vadd.f32 %v8997_v52, %v8707_v27  ;;  %vm11075_vm14 = vcmp.eq.s32.totalorder %v26937_v40, %v21748_v37  ;;  %18720 = vmatpush1.bf16.msra.mxu0 %v26948_v6  ;;  %v17416_v58 = vsel %vm10723_vm13, 1.0, %v26759_v30  ;;  %v10931_v46 = vmul.f32 %v17414_v61, %v21742_v16 }
 0x86e   :  { %18816 = vmatpush1.bf16.msra.mxu1 %v26948_v6  ;;  %v9134_v0 = vand.u32 4294901760, %v9059_v18  ;;  %vm11077_vm1 = vcmp.eq.s32.totalorder %v26938_v5, %v21748_v37  ;;  %18722 = vmatprep.subr.msk.bf16.mxu0 %vm21219_vm11, %v26916_v49  ;;  %v10933_v43 = vmul.f32 %v17416_v58, %v21742_v16  ;;  %v17478_v10 = vsel %vm11075_vm14, 1.0, %v26759_v30 }
 0x86f   :  { %18818 = vmatprep.subr.msk.bf16.mxu1 %vm21219_vm11, %v26916_v49  ;;  %v9138_v12 = vand.u32 4294901760, %v9061_v35  ;;  %v17480_v27 = vsel %vm11077_vm1, 1.0, %v26759_v30  ;;  %v10995_v42 = vadd.f32 %v10931_v46, %v10641_v17  ;;  %v11285_v15 = vmul.f32 %v17478_v10, %v21754_v59 }
 0x870   :  { %v22472_v52 = vsub.f32 %v9059_v18, %v9134_v0  ;;  %v11287_v61 = vmul.f32 %v17480_v27, %v21754_v59  ;;  %6985 = vmatmul.mubr.f32.vlgmr.msra.gmra.mrb[32].mxu0 %v22032_v63  ;;  %v10997_v58 = vadd.f32 %v10933_v43, %v10643_v23  ;;  %v22483_v48 = vadd.s32 80, %v26926_v62 }
 0x871   :  { %7635 = vmatmul.mubr.f32.vlgmr.msra.gmra.mrb[32].mxu1 %v22034_v13  ;;  %v22478_v51 = vpack.c.bf16 %v9138_v12, %v9134_v0  ;;  %v22480_v6 = vsub.f32 %v9061_v35, %v9138_v12  ;;  %18724 = vmatpush1.bf16.msk.msra.mxu0 %vm21237_vm9, %v26916_v49  ;;  %v11349_v18 = vadd.f32 %v11285_v15, %v10995_v42  ;;  %v22496_v17 = vadd.s32 88, %v26926_v62 }
 0x872   :  { %26949 = vst [vmem:[#allocation16_spill] sm:$0xff] %v22472_v52  ;;  %18820 = vmatpush1.bf16.msk.msra.mxu1 %vm21237_vm9, %v26916_v49  ;;  %vm11429_vm11 = vcmp.eq.s32.totalorder %v26937_v40, %v21760_v47  ;;  %vm11431_vm5 = vcmp.eq.s32.totalorder %v26938_v5, %v21760_v47  ;;  %18726 = vmatprep.subr.msk.bf16.mxu0 %vm21278_vm15, %v26916_v49 }
 0x873   :  { %26950 = vst [vmem:[#allocation17_spill] sm:$0xff] %v22478_v51  ;;  %26951 = vst [vmem:[#allocation2_spill] sm:$0xff] %v22480_v6  ;;  %18822 = vmatprep.subr.msk.bf16.mxu1 %vm21278_vm15, %v26916_v49  ;;  %v11351_v56 = vadd.f32 %v11287_v61, %v10997_v58  ;;  %v17542_v23 = vsel %vm11429_vm11, 1.0, %v26759_v30  ;;  %v17544_v35 = vsel %vm11431_vm5, 1.0, %v26759_v30  ;;  %vm7785_vm9 = vcmp.eq.s32.totalorder %v26937_v40, %v21610_v57 }
 0x874   :  { %7071 = vmatprep.mubr.f32.mxu0 %v26759_v30  ;;  %7721 = vmatprep.mubr.f32.mxu1 %v26759_v30  ;;  %v11639_v0 = vmul.f32 %v17542_v23, %v21763_v28  ;;  %v11641_v46 = vmul.f32 %v17544_v35, %v21763_v28  ;;  %vm7787_vm2 = vcmp.eq.s32.totalorder %v26938_v5, %v21610_v57  ;;  %v17089_v20 = vsel %vm7785_vm9, 1.0, %v26759_v30 }
 0x875   :  { %v17091_v12 = vsel %vm7787_vm2, 1.0, %v26759_v30  ;;  %v7996_v43 = vmul.f32 %v17089_v20, %v21633_v21  ;;  %vm8076_vm15 = vcmp.eq.s32.totalorder %v26937_v40, %v21644_v25  ;;  %vm8078_vm6 = vcmp.eq.s32.totalorder %v26938_v5, %v21644_v25  ;;  %18728 = vmatpush1.bf16.msk.msra.mxu0 %vm21305_vm4, %v26916_v49 }
 0x876   :  { %18824 = vmatpush1.bf16.msk.msra.mxu1 %vm21305_vm4, %v26916_v49  ;;  %v11703_v10 = vadd.f32 %v11639_v0, %v11349_v18  ;;  %v11705_v27 = vadd.f32 %v11641_v46, %v11351_v56  ;;  %v7998_v42 = vmul.f32 %v17091_v12, %v21633_v21  ;;  %v17153_v15 = vsel %vm8076_vm15, 1.0, %v26759_v30  ;;  %18730 = vmatprep.subr.msk.bf16.mxu0 %vm21338_vm0, %v26916_v49 }
 0x877   :  { %18826 = vmatprep.subr.msk.bf16.mxu1 %vm21338_vm0, %v26916_v49  ;;  %v17155_v61 = vsel %vm8078_vm6, 1.0, %v26759_v30  ;;  %v8286_v58 = vmul.f32 %v17153_v15, %v21650_v33  ;;  %vm8430_vm4 = vcmp.eq.s32.totalorder %v26937_v40, %v21662_v11  ;;  %vm8432_vm10 = vcmp.eq.s32.totalorder %v26938_v5, %v21662_v11 }
 0x878   :  { %v11778_v4 = vand.u32 4294901760, %v11703_v10  ;;  %v11782_v18 = vand.u32 4294901760, %v11705_v27  ;;  %v8288_v56 = vmul.f32 %v17155_v61, %v21650_v33  ;;  %v17217_v23 = vsel %vm8430_vm4, 1.0, %v26759_v30 }
 0x879   :  { %v8350_v35 = vadd.f32 %v8286_v58, %v7996_v43  ;;  %v17219_v60 = vsel %vm8432_vm10, 1.0, %v26759_v30  ;;  %v8640_v0 = vmul.f32 %v17217_v23, %v21671_v24  ;;  %vm8784_vm0 = vcmp.eq.s32.totalorder %v26937_v40, %v21683_v7  ;;  %18732 = vmatpush1.bf16.msk.msra.mxu0 %vm21362_vm12, %v26916_v49 }
 0x87a   :  { %18828 = vmatpush1.bf16.msk.msra.mxu1 %vm21362_vm12, %v26916_v49  ;;  %v22553_v46 = vpack.c.bf16 %v11782_v18, %v11778_v4  ;;  %v22555_v20 = vsub.f32 %v11703_v10, %v11778_v4  ;;  %v22557_v12 = vsub.f32 %v11705_v27, %v11782_v18  ;;  %v17281_v43 = vsel %vm8784_vm0, 1.0, %v26759_v30  ;;  %18734 = vmatprep.subr.msk.bf16.mxu0 %vm21422_vm7, %v26916_v49 }
 0x87b   :  { %18830 = vmatprep.subr.msk.bf16.mxu1 %vm21422_vm7, %v26916_v49  ;;  %v8352_v15 = vadd.f32 %v8288_v56, %v7998_v42  ;;  %v8642_v55 = vmul.f32 %v17219_v60, %v21671_v24  ;;  %v8704_v61 = vadd.f32 %v8640_v0, %v8350_v35  ;;  %v22568_v58 = vadd.s32 96, %v26926_v62  ;;  %v26955_v60 = vld [vmem:[#allocation48_spill] sm:$0xff] }
 0x87c   :  { %26952 = vst [vmem:[#allocation18_spill] sm:$0xff] %v22553_v46  ;;  %26953 = vst [vmem:[#allocation19_spill] sm:$0xff] %v22555_v20  ;;  %vm8786_vm12 = vcmp.eq.s32.totalorder %v26938_v5, %v21683_v7  ;;  %v8994_v10 = vmul.f32 %v17281_v43, %v21699_v31  ;;  %vm10429_vm13 = vcmp.eq.s32.totalorder %v26937_v40, %v21702_v8  ;;  %v22589_v35 = vadd.s32 104, %v26926_v62  ;;  %v26956_v43 = vld [vmem:[#allocation37_spill] sm:$0xff] }
 0x87d   :  { %26954 = vst [vmem:[#allocation31_spill] sm:$0xff] %v22557_v12  ;;  %vm10431_vm14 = vcmp.eq.s32.totalorder %v26938_v5, %v21702_v8  ;;  %v8706_v36 = vadd.f32 %v8642_v55, %v8352_v15  ;;  %v17283_v27 = vsel %vm8786_vm12, 1.0, %v26759_v30  ;;  %v17349_v42 = vsel %vm10429_vm13, 1.0, %v26759_v30  ;;  %18736 = vmatpush1.bf16.msk.msra.mxu0 %vm21438_vm8, %v26916_v49 }
 0x87e   :  { %v17351_v4 = vsel %vm10431_vm14, 1.0, %v26759_v30  ;;  %18832 = vmatpush1.bf16.msk.msra.mxu1 %vm21438_vm8, %v26916_v49  ;;  %v8996_v18 = vmul.f32 %v17283_v27, %v21699_v31  ;;  %v9058_v56 = vadd.f32 %v8994_v10, %v8704_v61  ;;  %v10640_v23 = vmul.f32 %v17349_v42, %v21724_v32  ;;  %18834 = vmatprep.subr.bf16.mxu0 %v26955_v60  ;;  %v26957_v10 = vld [vmem:[#allocation39_spill] sm:$0xff] }
 0x87f   :  { %19218 = vmatprep.subr.bf16.mxu1 %v22008_v38  ;;  %v10642_v0 = vmul.f32 %v17351_v4, %v21724_v32  ;;  %vm10720_vm7 = vcmp.eq.s32.totalorder %v26937_v40, %v26956_v43  ;;  %vm10722_vm8 = vcmp.eq.s32.totalorder %v26938_v5, %v26956_v43  ;;  %v26958_v4 = vld [vmem:[#allocation40_spill] sm:$0xff]  ;;  %v22610_v38 = vadd.s32 120, %v26926_v62 }
 0x880   :  { %v9060_v49 = vadd.f32 %v8996_v18, %v8706_v36  ;;  %v9136_v15 = vand.u32 4294901760, %v9058_v56  ;;  %v17413_v55 = vsel %vm10720_vm7, 1.0, %v26759_v30  ;;  %v17415_v61 = vsel %vm10722_vm8, 1.0, %v26759_v30  ;;  %7073 = vmatmul.mubr.f32.vlgmr.msra.gmra.mrb[32].mxu0 %v22032_v63  ;;  %v26959_v36 = vld [vmem:[#allocation51_spill] sm:$0xff]  ;;  %v26960_v18 = vld [vmem:[#allocation53_spill] sm:$0xff] }
 0x881   :  { %7723 = vmatmul.mubr.f32.vlgmr.msra.gmra.mrb[32].mxu1 %v22034_v13  ;;  %v10930_v27 = vmul.f32 %v17413_v55, %v26957_v10  ;;  %v10932_v42 = vmul.f32 %v17415_v61, %v26957_v10  ;;  %vm11074_vm1 = vcmp.eq.s32.totalorder %v26937_v40, %v26958_v4  ;;  %18836 = vmatpush1.bf16.msra.mxu0 %v26959_v36  ;;  %v26962_v13 = vld [vmem:[#allocation54_spill] sm:$0xff]  ;;  %v26963_v55 = vld [vmem:[#allocation56_spill] sm:$0xff] }
 0x882   :  { %19220 = vmatpush1.bf16.msra.mxu1 %v26960_v18  ;;  %v9140_v60 = vand.u32 4294901760, %v9060_v49  ;;  %v22614_v12 = vsub.f32 %v9058_v56, %v9136_v15  ;;  %vm11076_vm11 = vcmp.eq.s32.totalorder %v26938_v5, %v26958_v4  ;;  %v17477_v63 = vsel %vm11074_vm1, 1.0, %v26759_v30  ;;  %18838 = vmatprep.subr.bf16.mxu0 %v26962_v13 }
 0x883   :  { %19222 = vmatprep.subr.bf16.mxu1 %v26963_v55  ;;  %v10994_v61 = vadd.f32 %v10930_v27, %v10640_v23  ;;  %v10996_v20 = vadd.f32 %v10932_v42, %v10642_v0  ;;  %v17479_v6 = vsel %vm11076_vm11, 1.0, %v26759_v30  ;;  %v11284_v36 = vmul.f32 %v17477_v63, %v21751_v26  ;;  %v26966_v0 = vld [vmem:[#allocation38_spill] sm:$0xff]  ;;  %v26967_v27 = vld [vmem:[#allocation20_spill] sm:$0xff] }
 0x884   :  { %26961 = vst [vmem:[#allocation13_spill] sm:$0xff] %v22614_v12  ;;  %v22623_v52 = vpack.c.bf16 %v9140_v60, %v9136_v15  ;;  %v22625_v18 = vsub.f32 %v9060_v49, %v9140_v60  ;;  %v11286_v56 = vmul.f32 %v17479_v6, %v21751_v26  ;;  %vm11428_vm5 = vcmp.eq.s32.totalorder %v26937_v40, %v21757_v9  ;;  %v26968_v15 = vld [vmem:[#allocation11_spill] sm:$0xff]  ;;  %v26969_v40 = vld [vmem:[#allocation28_spill] sm:$0xff]  ;;  %v26970_v42 = vld [vmem:[#allocation34_spill] sm:$0xff] }
 0x885   :  { %v11348_v12 = vadd.f32 %v11284_v36, %v10994_v61  ;;  %vm11430_vm9 = vcmp.eq.s32.totalorder %v26938_v5, %v21757_v9  ;;  %v17541_v23 = vsel %vm11428_vm5, 1.0, %v26759_v30  ;;  %vm7790_vm2 = vcmp.eq.s32.totalorder %v26966_v0, %v21613_v19  ;;  %18840 = vmatpush1.bf16.msra.mxu0 %v26967_v27  ;;  %v26971_v5 = vld [vmem:[#allocation26_spill] sm:$0xff] }
 0x886   :  { %26964 = vst [vmem:[#allocation14_spill] sm:$0xff] %v22623_v52  ;;  %26965 = vst [vmem:[#allocation4_spill] sm:$0xff] %v22625_v18  ;;  %19224 = vmatpush1.bf16.msra.mxu1 %v26968_v15  ;;  %v11350_v60 = vadd.f32 %v11286_v56, %v10996_v20  ;;  %v17543_v49 = vsel %vm11430_vm9, 1.0, %v26759_v30  ;;  %v11638_v6 = vmul.f32 %v17541_v23, %v21884_v29  ;;  %18842 = vmatprep.subr.bf16.mxu0 %v26970_v42 }
 0x887   :  { %vm7792_vm15 = vcmp.eq.s32.totalorder %v26969_v40, %v21613_v19  ;;  %19226 = vmatprep.subr.bf16.mxu1 %v26971_v5  ;;  %v11640_v36 = vmul.f32 %v17543_v49, %v21884_v29  ;;  %v17094_v63 = vsel %vm7790_vm2, 1.0, %v26759_v30  ;;  %vm8081_vm6 = vcmp.eq.s32.totalorder %v26966_v0, %v21647_v34 }
 0x888   :  { %v17096_v61 = vsel %vm7792_vm15, 1.0, %v26759_v30  ;;  %v11702_v20 = vadd.f32 %v11638_v6, %v11348_v12  ;;  %v8001_v56 = vmul.f32 %v17094_v63, %v21636_v41  ;;  %vm8083_vm4 = vcmp.eq.s32.totalorder %v26969_v40, %v21647_v34  ;;  %v26972_v6 = vld [vmem:[#allocation7_spill] sm:$0xff] }
 0x889   :  { %v8003_v23 = vmul.f32 %v17096_v61, %v21636_v41  ;;  %v11704_v42 = vadd.f32 %v11640_v36, %v11350_v60  ;;  %v17158_v5 = vsel %vm8081_vm6, 1.0, %v26759_v30  ;;  %v17160_v49 = vsel %vm8083_vm4, 1.0, %v26759_v30  ;;  %18844 = vmatpush1.bf16.msra.mxu0 %v22374_v39 }
 0x88a   :  { %vm8435_vm10 = vcmp.eq.s32.totalorder %v26966_v0, %v26901_v14  ;;  %19228 = vmatpush1.bf16.msra.mxu1 %v22425_v2  ;;  %v11780_v12 = vand.u32 4294901760, %v11702_v20  ;;  %v8291_v63 = vmul.f32 %v17158_v5, %v26972_v6  ;;  %v8293_v61 = vmul.f32 %v17160_v49, %v26972_v6  ;;  %18846 = vmatprep.subr.bf16.mxu0 %v22478_v51 }
 0x88b   :  { %vm8437_vm0 = vcmp.eq.s32.totalorder %v26969_v40, %v26901_v14  ;;  %19230 = vmatprep.subr.bf16.mxu1 %v22553_v46  ;;  %v11784_v60 = vand.u32 4294901760, %v11704_v42  ;;  %v17222_v36 = vsel %vm8435_vm10, 1.0, %v26759_v30  ;;  %vm8789_vm12 = vcmp.eq.s32.totalorder %v26966_v0, %v21718_v45 }
 0x88c   :  { %v17224_v15 = vsel %vm8437_vm0, 1.0, %v26759_v30  ;;  %v22668_v2 = vsub.f32 %v11702_v20, %v11780_v12  ;;  %v8355_v5 = vadd.f32 %v8291_v63, %v8001_v56  ;;  %v8357_v39 = vadd.f32 %v8293_v61, %v8003_v23 }
 0x88d   :  { %v8645_v49 = vmul.f32 %v17222_v36, %v21674_v44  ;;  %v22671_v27 = vpack.c.bf16 %v11784_v60, %v11780_v12  ;;  %v22673_v55 = vsub.f32 %v11704_v42, %v11784_v60  ;;  %v8647_v46 = vmul.f32 %v17224_v15, %v21674_v44  ;;  %18848 = vmatpush1.bf16.msra.mxu0 %v22623_v52 }
 0x88e   :  { %26973 = vst [vmem:[#allocation32_spill] sm:$0xff] %v22668_v2  ;;  %vm8791_vm13 = vcmp.eq.s32.totalorder %v26969_v40, %v21718_v45  ;;  %v17286_v13 = vsel %vm8789_vm12, 1.0, %v26759_v30  ;;  %vm10434_vm14 = vcmp.eq.s32.totalorder %v26966_v0, %v21721_v22  ;;  %vm10436_vm7 = vcmp.eq.s32.totalorder %v26969_v40, %v21721_v22 }
 0x88f   :  { %26974 = vst [vmem:[#allocation33_spill] sm:$0xff] %v22671_v27  ;;  %26975 = vst [vmem:[#allocation5_spill] sm:$0xff] %v22673_v55  ;;  %v8709_v51 = vadd.f32 %v8645_v49, %v8355_v5  ;;  %v17288_v20 = vsel %vm8791_vm13, 1.0, %v26759_v30  ;;  %19232 = vmatpush1.bf16.msra.mxu1 %v22671_v27  ;;  %v8711_v56 = vadd.f32 %v8647_v46, %v8357_v39  ;;  %v17354_v23 = vsel %vm10434_vm14, 1.0, %v26759_v30 }
 0x890   :  { %v8999_v42 = vmul.f32 %v17286_v13, %v21730_v1  ;;  %v9001_v15 = vmul.f32 %v17288_v20, %v21730_v1  ;;  %v17356_v12 = vsel %vm10436_vm7, 1.0, %v26759_v30  ;;  %vm10725_vm8 = vcmp.eq.s32.totalorder %v26966_v0, %v26909_v53 }
 0x891   :  { %vm10727_vm1 = vcmp.eq.s32.totalorder %v26969_v40, %v26909_v53  ;;  %v10645_v39 = vmul.f32 %v17354_v23, %v21727_v3  ;;  %v10647_v46 = vmul.f32 %v17356_v12, %v21727_v3  ;;  %v17418_v13 = vsel %vm10725_vm8, 1.0, %v26759_v30 }
 0x892   :  { %v9063_v63 = vadd.f32 %v8999_v42, %v8709_v51  ;;  %v9065_v61 = vadd.f32 %v9001_v15, %v8711_v56  ;;  %v17420_v60 = vsel %vm10727_vm1, 1.0, %v26759_v30  ;;  %vm11079_vm11 = vcmp.eq.s32.totalorder %v26966_v0, %v21748_v37 }
 0x893   :  { %vm11081_vm5 = vcmp.eq.s32.totalorder %v26969_v40, %v21748_v37  ;;  %v10935_v49 = vmul.f32 %v17418_v13, %v21742_v16  ;;  %v10937_v51 = vmul.f32 %v17420_v60, %v21742_v16  ;;  %v17482_v20 = vsel %vm11079_vm11, 1.0, %v26759_v30 }
 0x894   :  { %v9142_v36 = vand.u32 4294901760, %v9063_v63  ;;  %v9146_v5 = vand.u32 4294901760, %v9065_v61  ;;  %v17484_v56 = vsel %vm11081_vm5, 1.0, %v26759_v30  ;;  %vm11433_vm9 = vcmp.eq.s32.totalorder %v26966_v0, %v21760_v47 }
 0x895   :  { %vm11435_vm2 = vcmp.eq.s32.totalorder %v26969_v40, %v21760_v47  ;;  %v10999_v12 = vadd.f32 %v10935_v49, %v10645_v39  ;;  %v11001_v13 = vadd.f32 %v10937_v51, %v10647_v46  ;;  %v11289_v60 = vmul.f32 %v17482_v20, %v21754_v59 }
 0x896   :  { %v22710_v42 = vpack.c.bf16 %v9146_v5, %v9142_v36  ;;  %v22712_v15 = vsub.f32 %v9063_v63, %v9142_v36  ;;  %v22714_v23 = vsub.f32 %v9065_v61, %v9146_v5  ;;  %v11291_v27 = vmul.f32 %v17484_v56, %v21754_v59 }
 0x897   :  { %v17546_v52 = vsel %vm11433_vm9, 1.0, %v26759_v30  ;;  %v17548_v55 = vsel %vm11435_vm2, 1.0, %v26759_v30  ;;  %vm7789_vm15 = vcmp.eq.s32.totalorder %v26966_v0, %v21610_v57  ;;  %vm7791_vm6 = vcmp.eq.s32.totalorder %v26969_v40, %v21610_v57 }
 0x898   :  { %26976 = vst [vmem:[#allocation6_spill] sm:$0xff] %v22710_v42  ;;  %26977 = vst [vmem:[#allocation35_spill] sm:$0xff] %v22712_v15  ;;  %18850 = vmatprep.subr.bf16.mxu0 %v22710_v42  ;;  %v11643_v2 = vmul.f32 %v17546_v52, %v21763_v28  ;;  %v11353_v63 = vadd.f32 %v11289_v60, %v10999_v12  ;;  %v11355_v61 = vadd.f32 %v11291_v27, %v11001_v13 }
 0x899   :  { %26978 = vst [vmem:[#allocation36_spill] sm:$0xff] %v22714_v23  ;;  %v11645_v39 = vmul.f32 %v17548_v55, %v21763_v28  ;;  %v17093_v46 = vsel %vm7789_vm15, 1.0, %v26759_v30  ;;  %v17095_v36 = vsel %vm7791_vm6, 1.0, %v26759_v30  ;;  %vm8080_vm4 = vcmp.eq.s32.totalorder %v26966_v0, %v21644_v25 }
 0x89a   :  { %v8000_v5 = vmul.f32 %v17093_v46, %v21633_v21  ;;  %vm8082_vm10 = vcmp.eq.s32.totalorder %v26969_v40, %v21644_v25  ;;  %v11707_v52 = vadd.f32 %v11643_v2, %v11353_v63  ;;  %v8002_v51 = vmul.f32 %v17095_v36, %v21633_v21 }
 0x89b   :  { %v11709_v49 = vadd.f32 %v11645_v39, %v11355_v61  ;;  %v17157_v27 = vsel %vm8080_vm4, 1.0, %v26759_v30  ;;  %v17159_v55 = vsel %vm8082_vm10, 1.0, %v26759_v30  ;;  %vm8434_vm0 = vcmp.eq.s32.totalorder %v26966_v0, %v21662_v11 }
 0x89c   :  { %v8290_v20 = vmul.f32 %v17157_v27, %v21650_v33  ;;  %vm8436_vm12 = vcmp.eq.s32.totalorder %v26969_v40, %v21662_v11  ;;  %v11786_v56 = vand.u32 4294901760, %v11707_v52  ;;  %v8292_v13 = vmul.f32 %v17159_v55, %v21650_v33 }
 0x89d   :  { %v11790_v12 = vand.u32 4294901760, %v11709_v49  ;;  %v17221_v2 = vsel %vm8434_vm0, 1.0, %v26759_v30  ;;  %v17223_v63 = vsel %vm8436_vm12, 1.0, %v26759_v30  ;;  %vm8788_vm13 = vcmp.eq.s32.totalorder %v26966_v0, %v21683_v7 }
 0x89e   :  { %v8354_v60 = vadd.f32 %v8290_v20, %v8000_v5  ;;  %v8644_v61 = vmul.f32 %v17221_v2, %v21671_v24  ;;  %v22750_v46 = vsub.f32 %v11707_v52, %v11786_v56  ;;  %v8356_v27 = vadd.f32 %v8292_v13, %v8002_v51 }
 0x89f   :  { %v22748_v39 = vpack.c.bf16 %v11790_v12, %v11786_v56  ;;  %v22752_v36 = vsub.f32 %v11709_v49, %v11790_v12  ;;  %v8646_v42 = vmul.f32 %v17223_v63, %v21671_v24  ;;  %vm8790_vm14 = vcmp.eq.s32.totalorder %v26969_v40, %v21683_v7 }
 0x8a0   :  { %26980 = vst [vmem:[#allocation39_spill] sm:$0xff] %v22750_v46  ;;  %v8708_v55 = vadd.f32 %v8644_v61, %v8354_v60  ;;  %v17285_v5 = vsel %vm8788_vm13, 1.0, %v26759_v30  ;;  %v17287_v20 = vsel %vm8790_vm14, 1.0, %v26759_v30  ;;  %vm10433_vm7 = vcmp.eq.s32.totalorder %v26966_v0, %v21702_v8 }
 0x8a1   :  { %26979 = vst [vmem:[#allocation37_spill] sm:$0xff] %v22748_v39  ;;  %26981 = vst [vmem:[#allocation40_spill] sm:$0xff] %v22752_v36  ;;  %19234 = vmatprep.subr.bf16.mxu1 %v22748_v39  ;;  %v8998_v2 = vmul.f32 %v17285_v5, %v21699_v31  ;;  %vm10435_vm8 = vcmp.eq.s32.totalorder %v26969_v40, %v21702_v8  ;;  %v8710_v52 = vadd.f32 %v8646_v42, %v8356_v27 }
 0x8a2   :  { %v9000_v49 = vmul.f32 %v17287_v20, %v21699_v31  ;;  %v17353_v51 = vsel %vm10433_vm7, 1.0, %v26759_v30  ;;  %v17355_v56 = vsel %vm10435_vm8, 1.0, %v26759_v30  ;;  %vm10724_vm1 = vcmp.eq.s32.totalorder %v26966_v0, %v26956_v43 }
 0x8a3   :  { %v9062_v12 = vadd.f32 %v8998_v2, %v8708_v55  ;;  %v10644_v13 = vmul.f32 %v17353_v51, %v21724_v32  ;;  %v10646_v60 = vmul.f32 %v17355_v56, %v21724_v32  ;;  %vm10726_vm11 = vcmp.eq.s32.totalorder %v26969_v40, %v26956_v43 }
 0x8a4   :  { %v9064_v63 = vadd.f32 %v9000_v49, %v8710_v52  ;;  %v17417_v42 = vsel %vm10724_vm1, 1.0, %v26759_v30  ;;  %vm11078_vm5 = vcmp.eq.s32.totalorder %v26966_v0, %v26958_v4  ;;  %v17419_v27 = vsel %vm10726_vm11, 1.0, %v26759_v30 }
 0x8a5   :  { %v9144_v61 = vand.u32 4294901760, %v9062_v12  ;;  %v10934_v55 = vmul.f32 %v17417_v42, %v26957_v10  ;;  %vm11080_vm9 = vcmp.eq.s32.totalorder %v26969_v40, %v26958_v4  ;;  %v10936_v20 = vmul.f32 %v17419_v27, %v26957_v10 }
 0x8a6   :  { %v9148_v5 = vand.u32 4294901760, %v9064_v63  ;;  %v17481_v2 = vsel %vm11078_vm5, 1.0, %v26759_v30  ;;  %v17483_v52 = vsel %vm11080_vm9, 1.0, %v26759_v30  ;;  %vm11432_vm2 = vcmp.eq.s32.totalorder %v26966_v0, %v21757_v9 }
 0x8a7   :  { %v22784_v49 = vsub.f32 %v9062_v12, %v9144_v61  ;;  %v10998_v51 = vadd.f32 %v10934_v55, %v10644_v13  ;;  %v11288_v56 = vmul.f32 %v17481_v2, %v21751_v26  ;;  %v11290_v39 = vmul.f32 %v17483_v52, %v21751_v26 }
 0x8a8   :  { %v22788_v36 = vpack.c.bf16 %v9148_v5, %v9144_v61  ;;  %v22790_v42 = vsub.f32 %v9064_v63, %v9148_v5  ;;  %v11000_v46 = vadd.f32 %v10936_v20, %v10646_v60  ;;  %vm11434_vm15 = vcmp.eq.s32.totalorder %v26969_v40, %v21757_v9 }
 0x8a9   :  { %26982 = vst [vmem:[#allocation38_spill] sm:$0xff] %v22784_v49  ;;  %v11352_v27 = vadd.f32 %v11288_v56, %v10998_v51  ;;  %v17545_v12 = vsel %vm11432_vm2, 1.0, %v26759_v30  ;;  %vm7794_vm6 = vcmp.eq.s32.totalorder %v22483_v48, %v21613_v19  ;;  %v17547_v61 = vsel %vm11434_vm15, 1.0, %v26759_v30 }
 0x8aa   :  { %26983 = vst [vmem:[#allocation28_spill] sm:$0xff] %v22788_v36  ;;  %26984 = vst [vmem:[#allocation7_spill] sm:$0xff] %v22790_v42  ;;  %18852 = vmatpush1.bf16.msra.mxu0 %v22788_v36  ;;  %v11354_v13 = vadd.f32 %v11290_v39, %v11000_v46  ;;  %v11642_v63 = vmul.f32 %v17545_v12, %v21884_v29  ;;  %vm7796_vm4 = vcmp.eq.s32.totalorder %v22496_v17, %v21613_v19 }
 0x8ab   :  { %v11644_v0 = vmul.f32 %v17547_v61, %v21884_v29  ;;  %v17098_v60 = vsel %vm7794_vm6, 1.0, %v26759_v30  ;;  %v17100_v40 = vsel %vm7796_vm4, 1.0, %v26759_v30  ;;  %vm8085_vm10 = vcmp.eq.s32.totalorder %v22483_v48, %v21647_v34 }
 0x8ac   :  { %v11706_v55 = vadd.f32 %v11642_v63, %v11352_v27  ;;  %v8005_v5 = vmul.f32 %v17098_v60, %v21636_v41  ;;  %v8007_v39 = vmul.f32 %v17100_v40, %v21636_v41  ;;  %vm8087_vm0 = vcmp.eq.s32.totalorder %v22496_v17, %v21647_v34 }
 0x8ad   :  { %v11708_v46 = vadd.f32 %v11644_v0, %v11354_v13  ;;  %v17162_v20 = vsel %vm8085_vm10, 1.0, %v26759_v30  ;;  %v17164_v2 = vsel %vm8087_vm0, 1.0, %v26759_v30  ;;  %vm8439_vm12 = vcmp.eq.s32.totalorder %v22483_v48, %v26901_v14 }
 0x8ae   :  { %v11788_v52 = vand.u32 4294901760, %v11706_v55  ;;  %v8295_v51 = vmul.f32 %v17162_v20, %v26972_v6  ;;  %v8297_v56 = vmul.f32 %v17164_v2, %v26972_v6  ;;  %vm8441_vm13 = vcmp.eq.s32.totalorder %v22496_v17, %v26901_v14 }
 0x8af   :  { %v11792_v27 = vand.u32 4294901760, %v11708_v46  ;;  %v17226_v12 = vsel %vm8439_vm12, 1.0, %v26759_v30  ;;  %v17228_v13 = vsel %vm8441_vm13, 1.0, %v26759_v30  ;;  %vm8793_vm14 = vcmp.eq.s32.totalorder %v22483_v48, %v21718_v45 }
 0x8b0   :  { %v22825_v61 = vsub.f32 %v11706_v55, %v11788_v52  ;;  %v8359_v63 = vadd.f32 %v8295_v51, %v8005_v5  ;;  %v8361_v0 = vadd.f32 %v8297_v56, %v8007_v39  ;;  %v8649_v60 = vmul.f32 %v17226_v12, %v21674_v44 }
 0x8b1   :  { %v22828_v40 = vpack.c.bf16 %v11792_v27, %v11788_v52  ;;  %v22830_v20 = vsub.f32 %v11708_v46, %v11792_v27  ;;  %v8651_v2 = vmul.f32 %v17228_v13, %v21674_v44  ;;  %vm8795_vm7 = vcmp.eq.s32.totalorder %v22496_v17, %v21718_v45 }
 0x8b2   :  { %26985 = vst [vmem:[#allocation59_spill] sm:$0xff] %v22825_v61  ;;  %v8713_v36 = vadd.f32 %v8649_v60, %v8359_v63  ;;  %v17290_v42 = vsel %vm8793_vm14, 1.0, %v26759_v30  ;;  %v17292_v49 = vsel %vm8795_vm7, 1.0, %v26759_v30  ;;  %vm10438_vm8 = vcmp.eq.s32.totalorder %v22483_v48, %v21721_v22 }
 0x8b3   :  { %26986 = vst [vmem:[#allocation60_spill] sm:$0xff] %v22828_v40  ;;  %26987 = vst [vmem:[#allocation61_spill] sm:$0xff] %v22830_v20  ;;  %19236 = vmatpush1.bf16.msra.mxu1 %v22828_v40  ;;  %v8715_v55 = vadd.f32 %v8651_v2, %v8361_v0  ;;  %v9003_v5 = vmul.f32 %v17290_v42, %v21730_v1  ;;  %v9005_v39 = vmul.f32 %v17292_v49, %v21730_v1 }
 0x8b4   :  { %vm10440_vm1 = vcmp.eq.s32.totalorder %v22496_v17, %v21721_v22  ;;  %v17358_v46 = vsel %vm10438_vm8, 1.0, %v26759_v30  ;;  %vm10729_vm11 = vcmp.eq.s32.totalorder %v22483_v48, %v26909_v53  ;;  %vm10731_vm5 = vcmp.eq.s32.totalorder %v22496_v17, %v26909_v53 }
 0x8b5   :  { %v17360_v52 = vsel %vm10440_vm1, 1.0, %v26759_v30  ;;  %v9067_v51 = vadd.f32 %v9003_v5, %v8713_v36  ;;  %v9069_v56 = vadd.f32 %v9005_v39, %v8715_v55  ;;  %v10649_v27 = vmul.f32 %v17358_v46, %v21727_v3 }
 0x8b6   :  { %v10651_v42 = vmul.f32 %v17360_v52, %v21727_v3  ;;  %v17422_v49 = vsel %vm10729_vm11, 1.0, %v26759_v30  ;;  %v17424_v12 = vsel %vm10731_vm5, 1.0, %v26759_v30  ;;  %vm11083_vm9 = vcmp.eq.s32.totalorder %v22483_v48, %v21748_v37 }
 0x8b7   :  { %vm11085_vm2 = vcmp.eq.s32.totalorder %v22496_v17, %v21748_v37  ;;  %v9150_v13 = vand.u32 4294901760, %v9067_v51  ;;  %v9154_v63 = vand.u32 4294901760, %v9069_v56  ;;  %v10939_v0 = vmul.f32 %v17422_v49, %v21742_v16 }
 0x8b8   :  { %v10941_v36 = vmul.f32 %v17424_v12, %v21742_v16  ;;  %v17486_v60 = vsel %vm11083_vm9, 1.0, %v26759_v30  ;;  %v17488_v2 = vsel %vm11085_vm2, 1.0, %v26759_v30  ;;  %vm11437_vm15 = vcmp.eq.s32.totalorder %v22483_v48, %v21760_v47 }
 0x8b9   :  { %vm11439_vm6 = vcmp.eq.s32.totalorder %v22496_v17, %v21760_v47  ;;  %v22866_v55 = vpack.c.bf16 %v9154_v63, %v9150_v13  ;;  %v22868_v5 = vsub.f32 %v9067_v51, %v9150_v13  ;;  %v22870_v39 = vsub.f32 %v9069_v56, %v9154_v63 }
 0x8ba   :  { %v11003_v46 = vadd.f32 %v10939_v0, %v10649_v27  ;;  %v11005_v52 = vadd.f32 %v10941_v36, %v10651_v42  ;;  %v11293_v49 = vmul.f32 %v17486_v60, %v21754_v59  ;;  %v11295_v12 = vmul.f32 %v17488_v2, %v21754_v59 }
 0x8bb   :  { %26988 = vst [vmem:[#allocation62_spill] sm:$0xff] %v22866_v55  ;;  %26989 = vst [vmem:[#allocation63_spill] sm:$0xff] %v22868_v5  ;;  %v17550_v40 = vsel %vm11437_vm15, 1.0, %v26759_v30  ;;  %18854 = vmatprep.subr.bf16.mxu0 %v22866_v55  ;;  %v17552_v20 = vsel %vm11439_vm6, 1.0, %v26759_v30  ;;  %vm7793_vm4 = vcmp.eq.s32.totalorder %v22483_v48, %v21610_v57  ;;  %vm7795_vm10 = vcmp.eq.s32.totalorder %v22496_v17, %v21610_v57 }
 0x8bc   :  { %26990 = vst [vmem:[#allocation64_spill] sm:$0xff] %v22870_v39  ;;  %v11647_v61 = vmul.f32 %v17550_v40, %v21763_v28  ;;  %v11357_v51 = vadd.f32 %v11293_v49, %v11003_v46  ;;  %v11359_v56 = vadd.f32 %v11295_v12, %v11005_v52  ;;  %v11649_v27 = vmul.f32 %v17552_v20, %v21763_v28 }
 0x8bd   :  { %v17097_v42 = vsel %vm7793_vm4, 1.0, %v26759_v30  ;;  %v17099_v13 = vsel %vm7795_vm10, 1.0, %v26759_v30  ;;  %vm8084_vm0 = vcmp.eq.s32.totalorder %v22483_v48, %v21644_v25  ;;  %vm8086_vm12 = vcmp.eq.s32.totalorder %v22496_v17, %v21644_v25 }
 0x8be   :  { %v8004_v63 = vmul.f32 %v17097_v42, %v21633_v21  ;;  %v11711_v40 = vadd.f32 %v11647_v61, %v11357_v51  ;;  %v11713_v0 = vadd.f32 %v11649_v27, %v11359_v56  ;;  %v8006_v36 = vmul.f32 %v17099_v13, %v21633_v21 }
 0x8bf   :  { %v17161_v60 = vsel %vm8084_vm0, 1.0, %v26759_v30  ;;  %v17163_v20 = vsel %vm8086_vm12, 1.0, %v26759_v30  ;;  %vm8438_vm13 = vcmp.eq.s32.totalorder %v22483_v48, %v21662_v11  ;;  %vm8440_vm14 = vcmp.eq.s32.totalorder %v22496_v17, %v21662_v11 }
 0x8c0   :  { %v8294_v2 = vmul.f32 %v17161_v60, %v21650_v33  ;;  %v11794_v46 = vand.u32 4294901760, %v11711_v40  ;;  %v11798_v52 = vand.u32 4294901760, %v11713_v0  ;;  %v8296_v49 = vmul.f32 %v17163_v20, %v21650_v33 }
 0x8c1   :  { %v17225_v61 = vsel %vm8438_vm13, 1.0, %v26759_v30  ;;  %v17227_v51 = vsel %vm8440_vm14, 1.0, %v26759_v30  ;;  %vm8792_vm7 = vcmp.eq.s32.totalorder %v22483_v48, %v21683_v7  ;;  %vm8794_vm8 = vcmp.eq.s32.totalorder %v22496_v17, %v21683_v7 }
 0x8c2   :  { %v8358_v12 = vadd.f32 %v8294_v2, %v8004_v63  ;;  %v8648_v56 = vmul.f32 %v17225_v61, %v21671_v24  ;;  %v22904_v27 = vpack.c.bf16 %v11798_v52, %v11794_v46  ;;  %v22906_v42 = vsub.f32 %v11711_v40, %v11794_v46 }
 0x8c3   :  { %v22908_v13 = vsub.f32 %v11713_v0, %v11798_v52  ;;  %v8360_v60 = vadd.f32 %v8296_v49, %v8006_v36  ;;  %v8650_v55 = vmul.f32 %v17227_v51, %v21671_v24  ;;  %v17289_v63 = vsel %vm8792_vm7, 1.0, %v26759_v30 }
 0x8c4   :  { %26991 = vst [vmem:[#allocation65_spill] sm:$0xff] %v22904_v27  ;;  %26992 = vst [vmem:[#allocation66_spill] sm:$0xff] %v22906_v42  ;;  %v8712_v20 = vadd.f32 %v8648_v56, %v8358_v12  ;;  %19238 = vmatprep.subr.bf16.mxu1 %v22904_v27  ;;  %v17291_v2 = vsel %vm8794_vm8, 1.0, %v26759_v30  ;;  %v9002_v61 = vmul.f32 %v17289_v63, %v21699_v31 }
 0x8c5   :  { %26993 = vst [vmem:[#allocation67_spill] sm:$0xff] %v22908_v13  ;;  %vm10437_vm1 = vcmp.eq.s32.totalorder %v22483_v48, %v21702_v8  ;;  %vm10439_vm11 = vcmp.eq.s32.totalorder %v22496_v17, %v21702_v8  ;;  %v8714_v40 = vadd.f32 %v8650_v55, %v8360_v60  ;;  %v9004_v0 = vmul.f32 %v17291_v2, %v21699_v31 }
 0x8c6   :  { %v17357_v36 = vsel %vm10437_vm1, 1.0, %v26759_v30  ;;  %v17359_v46 = vsel %vm10439_vm11, 1.0, %v26759_v30  ;;  %v9066_v52 = vadd.f32 %v9002_v61, %v8712_v20  ;;  %vm10728_vm5 = vcmp.eq.s32.totalorder %v22483_v48, %v26956_v43 }
 0x8c7   :  { %v10648_v49 = vmul.f32 %v17357_v36, %v21724_v32  ;;  %v10650_v12 = vmul.f32 %v17359_v46, %v21724_v32  ;;  %v9068_v51 = vadd.f32 %v9004_v0, %v8714_v40  ;;  %vm10730_vm9 = vcmp.eq.s32.totalorder %v22496_v17, %v26956_v43 }
 0x8c8   :  { %v17421_v55 = vsel %vm10728_vm5, 1.0, %v26759_v30  ;;  %vm11082_vm2 = vcmp.eq.s32.totalorder %v22483_v48, %v26958_v4  ;;  %v9152_v56 = vand.u32 4294901760, %v9066_v52  ;;  %v17423_v60 = vsel %vm10730_vm9, 1.0, %v26759_v30 }
 0x8c9   :  { %v10938_v20 = vmul.f32 %v17421_v55, %v26957_v10  ;;  %vm11084_vm15 = vcmp.eq.s32.totalorder %v22496_v17, %v26958_v4  ;;  %v9156_v63 = vand.u32 4294901760, %v9068_v51  ;;  %v10940_v2 = vmul.f32 %v17423_v60, %v26957_v10 }
 0x8ca   :  { %v17485_v61 = vsel %vm11082_vm2, 1.0, %v26759_v30  ;;  %v17487_v40 = vsel %vm11084_vm15, 1.0, %v26759_v30  ;;  %v22940_v0 = vsub.f32 %v9066_v52, %v9152_v56  ;;  %vm11436_vm6 = vcmp.eq.s32.totalorder %v22483_v48, %v21757_v9 }
 0x8cb   :  { %v11002_v36 = vadd.f32 %v10938_v20, %v10648_v49  ;;  %v11292_v46 = vmul.f32 %v17485_v61, %v21751_v26  ;;  %v11294_v27 = vmul.f32 %v17487_v40, %v21751_v26  ;;  %v22944_v13 = vpack.c.bf16 %v9156_v63, %v9152_v56 }
 0x8cc   :  { %26994 = vst [vmem:[#allocation68_spill] sm:$0xff] %v22940_v0  ;;  %v22946_v55 = vsub.f32 %v9068_v51, %v9156_v63  ;;  %v11004_v42 = vadd.f32 %v10940_v2, %v10650_v12  ;;  %vm11438_vm4 = vcmp.eq.s32.totalorder %v22496_v17, %v21757_v9  ;;  %v17549_v52 = vsel %vm11436_vm6, 1.0, %v26759_v30 }
 0x8cd   :  { %26995 = vst [vmem:[#allocation69_spill] sm:$0xff] %v22944_v13  ;;  %v11356_v60 = vadd.f32 %v11292_v46, %v11002_v36  ;;  %vm7798_vm10 = vcmp.eq.s32.totalorder %v22568_v58, %v21613_v19  ;;  %18856 = vmatpush1.bf16.msra.mxu0 %v22944_v13  ;;  %v17551_v56 = vsel %vm11438_vm4, 1.0, %v26759_v30  ;;  %v11646_v51 = vmul.f32 %v17549_v52, %v21884_v29 }
 0x8ce   :  { %26996 = vst [vmem:[#allocation70_spill] sm:$0xff] %v22946_v55  ;;  %v11358_v49 = vadd.f32 %v11294_v27, %v11004_v42  ;;  %vm7800_vm0 = vcmp.eq.s32.totalorder %v22589_v35, %v21613_v19  ;;  %v11648_v48 = vmul.f32 %v17551_v56, %v21884_v29  ;;  %v17102_v12 = vsel %vm7798_vm10, 1.0, %v26759_v30 }
 0x8cf   :  { %v17104_v17 = vsel %vm7800_vm0, 1.0, %v26759_v30  ;;  %vm8089_vm12 = vcmp.eq.s32.totalorder %v22568_v58, %v21647_v34  ;;  %v11710_v20 = vadd.f32 %v11646_v51, %v11356_v60  ;;  %v8009_v63 = vmul.f32 %v17102_v12, %v21636_v41 }
 0x8d0   :  { %v8011_v27 = vmul.f32 %v17104_v17, %v21636_v41  ;;  %vm8091_vm13 = vcmp.eq.s32.totalorder %v22589_v35, %v21647_v34  ;;  %v11712_v42 = vadd.f32 %v11648_v48, %v11358_v49  ;;  %v17166_v2 = vsel %vm8089_vm12, 1.0, %v26759_v30 }
 0x8d1   :  { %v17168_v61 = vsel %vm8091_vm13, 1.0, %v26759_v30  ;;  %vm8443_vm14 = vcmp.eq.s32.totalorder %v22568_v58, %v26901_v14  ;;  %v11796_v40 = vand.u32 4294901760, %v11710_v20  ;;  %v8299_v36 = vmul.f32 %v17166_v2, %v26972_v6 }
 0x8d2   :  { %v8301_v46 = vmul.f32 %v17168_v61, %v26972_v6  ;;  %vm8445_vm7 = vcmp.eq.s32.totalorder %v22589_v35, %v26901_v14  ;;  %v11800_v60 = vand.u32 4294901760, %v11712_v42  ;;  %v17230_v52 = vsel %vm8443_vm14, 1.0, %v26759_v30 }
 0x8d3   :  { %v17232_v49 = vsel %vm8445_vm7, 1.0, %v26759_v30  ;;  %vm8797_vm8 = vcmp.eq.s32.totalorder %v22568_v58, %v21718_v45  ;;  %v22981_v56 = vsub.f32 %v11710_v20, %v11796_v40  ;;  %v8363_v51 = vadd.f32 %v8299_v36, %v8009_v63 }
 0x8d4   :  { %v8365_v48 = vadd.f32 %v8301_v46, %v8011_v27  ;;  %v8653_v12 = vmul.f32 %v17230_v52, %v21674_v44  ;;  %v22984_v17 = vpack.c.bf16 %v11800_v60, %v11796_v40  ;;  %v22986_v2 = vsub.f32 %v11712_v42, %v11800_v60 }
 0x8d5   :  { %26997 = vst [vmem:[#allocation71_spill] sm:$0xff] %v22981_v56  ;;  %v8655_v61 = vmul.f32 %v17232_v49, %v21674_v44  ;;  %vm8799_vm1 = vcmp.eq.s32.totalorder %v22589_v35, %v21718_v45  ;;  %v17294_v55 = vsel %vm8797_vm8, 1.0, %v26759_v30  ;;  %vm10442_vm11 = vcmp.eq.s32.totalorder %v22568_v58, %v21721_v22 }
 0x8d6   :  { %26998 = vst [vmem:[#allocation72_spill] sm:$0xff] %v22984_v17  ;;  %26999 = vst [vmem:[#allocation73_spill] sm:$0xff] %v22986_v2  ;;  %v8717_v13 = vadd.f32 %v8653_v12, %v8363_v51  ;;  %v17296_v0 = vsel %vm8799_vm1, 1.0, %v26759_v30  ;;  %19240 = vmatpush1.bf16.msra.mxu1 %v22984_v17  ;;  %v9007_v63 = vmul.f32 %v17294_v55, %v21730_v1  ;;  %v17362_v42 = vsel %vm10442_vm11, 1.0, %v26759_v30 }
 0x8d7   :  { %v8719_v20 = vadd.f32 %v8655_v61, %v8365_v48  ;;  %v9009_v27 = vmul.f32 %v17296_v0, %v21730_v1  ;;  %vm10444_vm5 = vcmp.eq.s32.totalorder %v22589_v35, %v21721_v22  ;;  %vm10733_vm9 = vcmp.eq.s32.totalorder %v22568_v58, %v26909_v53 }
 0x8d8   :  { %v17364_v40 = vsel %vm10444_vm5, 1.0, %v26759_v30  ;;  %vm10735_vm2 = vcmp.eq.s32.totalorder %v22589_v35, %v26909_v53  ;;  %v9071_v36 = vadd.f32 %v9007_v63, %v8717_v13  ;;  %v10653_v60 = vmul.f32 %v17362_v42, %v21727_v3 }
 0x8d9   :  { %v9073_v46 = vadd.f32 %v9009_v27, %v8719_v20  ;;  %v10655_v55 = vmul.f32 %v17364_v40, %v21727_v3  ;;  %v17426_v0 = vsel %vm10733_vm9, 1.0, %v26759_v30  ;;  %v17428_v52 = vsel %vm10735_vm2, 1.0, %v26759_v30 }
 0x8da   :  { %vm11087_vm15 = vcmp.eq.s32.totalorder %v22568_v58, %v21748_v37  ;;  %vm11089_vm6 = vcmp.eq.s32.totalorder %v22589_v35, %v21748_v37  ;;  %v9158_v49 = vand.u32 4294901760, %v9071_v36  ;;  %v10943_v48 = vmul.f32 %v17426_v0, %v21742_v16 }
 0x8db   :  { %v9162_v51 = vand.u32 4294901760, %v9073_v46  ;;  %v10945_v13 = vmul.f32 %v17428_v52, %v21742_v16  ;;  %v17490_v12 = vsel %vm11087_vm15, 1.0, %v26759_v30  ;;  %v17492_v61 = vsel %vm11089_vm6, 1.0, %v26759_v30 }
 0x8dc   :  { %vm11441_vm4 = vcmp.eq.s32.totalorder %v22568_v58, %v21760_v47  ;;  %vm11443_vm10 = vcmp.eq.s32.totalorder %v22589_v35, %v21760_v47  ;;  %v23024_v63 = vsub.f32 %v9071_v36, %v9158_v49  ;;  %v11007_v42 = vadd.f32 %v10943_v48, %v10653_v60 }
 0x8dd   :  { %v23022_v20 = vpack.c.bf16 %v9162_v51, %v9158_v49  ;;  %v23026_v27 = vsub.f32 %v9073_v46, %v9162_v51  ;;  %v11009_v40 = vadd.f32 %v10945_v13, %v10655_v55  ;;  %v11297_v0 = vmul.f32 %v17490_v12, %v21754_v59 }
 0x8de   :  { %27001 = vst [vmem:[#allocation75_spill] sm:$0xff] %v23024_v63  ;;  %v11299_v52 = vmul.f32 %v17492_v61, %v21754_v59  ;;  %v17554_v17 = vsel %vm11441_vm4, 1.0, %v26759_v30  ;;  %v17556_v2 = vsel %vm11443_vm10, 1.0, %v26759_v30  ;;  %vm7797_vm0 = vcmp.eq.s32.totalorder %v22568_v58, %v21610_v57 }
 0x8df   :  { %27000 = vst [vmem:[#allocation74_spill] sm:$0xff] %v23022_v20  ;;  %27002 = vst [vmem:[#allocation76_spill] sm:$0xff] %v23026_v27  ;;  %18858 = vmatprep.subr.bf16.mxu0 %v23022_v20  ;;  %v11651_v56 = vmul.f32 %v17554_v17, %v21763_v28  ;;  %vm7799_vm12 = vcmp.eq.s32.totalorder %v22589_v35, %v21610_v57  ;;  %v11361_v36 = vadd.f32 %v11297_v0, %v11007_v42 }
 0x8e0   :  { %v11363_v46 = vadd.f32 %v11299_v52, %v11009_v40  ;;  %v11653_v60 = vmul.f32 %v17556_v2, %v21763_v28  ;;  %v17101_v55 = vsel %vm7797_vm0, 1.0, %v26759_v30  ;;  %v17103_v49 = vsel %vm7799_vm12, 1.0, %v26759_v30 }
 0x8e1   :  { %v8008_v51 = vmul.f32 %v17101_v55, %v21633_v21  ;;  %vm8088_vm13 = vcmp.eq.s32.totalorder %v22568_v58, %v21644_v25  ;;  %vm8090_vm14 = vcmp.eq.s32.totalorder %v22589_v35, %v21644_v25  ;;  %v11715_v17 = vadd.f32 %v11651_v56, %v11361_v36 }
 0x8e2   :  { %v11717_v48 = vadd.f32 %v11653_v60, %v11363_v46  ;;  %v8010_v13 = vmul.f32 %v17103_v49, %v21633_v21  ;;  %v17165_v12 = vsel %vm8088_vm13, 1.0, %v26759_v30  ;;  %v17167_v2 = vsel %vm8090_vm14, 1.0, %v26759_v30 }
 0x8e3   :  { %v8298_v61 = vmul.f32 %v17165_v12, %v21650_v33  ;;  %vm8442_vm7 = vcmp.eq.s32.totalorder %v22568_v58, %v21662_v11  ;;  %vm8444_vm8 = vcmp.eq.s32.totalorder %v22589_v35, %v21662_v11  ;;  %v11802_v42 = vand.u32 4294901760, %v11715_v17 }
 0x8e4   :  { %v11806_v40 = vand.u32 4294901760, %v11717_v48  ;;  %v8300_v0 = vmul.f32 %v17167_v2, %v21650_v33  ;;  %v17229_v56 = vsel %vm8442_vm7, 1.0, %v26759_v30  ;;  %v17231_v36 = vsel %vm8444_vm8, 1.0, %v26759_v30 }
 0x8e5   :  { %v8362_v52 = vadd.f32 %v8298_v61, %v8008_v51  ;;  %v8652_v46 = vmul.f32 %v17229_v56, %v21671_v24  ;;  %vm8796_vm1 = vcmp.eq.s32.totalorder %v22568_v58, %v21683_v7  ;;  %v23062_v55 = vsub.f32 %v11715_v17, %v11802_v42 }
 0x8e6   :  { %v23060_v60 = vpack.c.bf16 %v11806_v40, %v11802_v42  ;;  %v23064_v49 = vsub.f32 %v11717_v48, %v11806_v40  ;;  %v8364_v12 = vadd.f32 %v8300_v0, %v8010_v13  ;;  %v8654_v20 = vmul.f32 %v17231_v36, %v21671_v24 }
 0x8e7   :  { %27004 = vst [vmem:[#allocation78_spill] sm:$0xff] %v23062_v55  ;;  %v8716_v2 = vadd.f32 %v8652_v46, %v8362_v52  ;;  %vm8798_vm11 = vcmp.eq.s32.totalorder %v22589_v35, %v21683_v7  ;;  %v17293_v51 = vsel %vm8796_vm1, 1.0, %v26759_v30  ;;  %vm10441_vm5 = vcmp.eq.s32.totalorder %v22568_v58, %v21702_v8 }
 0x8e8   :  { %27003 = vst [vmem:[#allocation77_spill] sm:$0xff] %v23060_v60  ;;  %27005 = vst [vmem:[#allocation79_spill] sm:$0xff] %v23064_v49  ;;  %19242 = vmatprep.subr.bf16.mxu1 %v23060_v60  ;;  %v17295_v61 = vsel %vm8798_vm11, 1.0, %v26759_v30  ;;  %v9006_v56 = vmul.f32 %v17293_v51, %v21699_v31  ;;  %vm10443_vm9 = vcmp.eq.s32.totalorder %v22589_v35, %v21702_v8  ;;  %v17361_v13 = vsel %vm10441_vm5, 1.0, %v26759_v30 }
 0x8e9   :  { %v8718_v17 = vadd.f32 %v8654_v20, %v8364_v12  ;;  %v9008_v48 = vmul.f32 %v17295_v61, %v21699_v31  ;;  %v17363_v42 = vsel %vm10443_vm9, 1.0, %v26759_v30  ;;  %v10652_v0 = vmul.f32 %v17361_v13, %v21724_v32 }
 0x8ea   :  { %v9070_v40 = vadd.f32 %v9006_v56, %v8716_v2  ;;  %v10654_v52 = vmul.f32 %v17363_v42, %v21724_v32  ;;  %vm10732_vm2 = vcmp.eq.s32.totalorder %v22568_v58, %v26956_v43  ;;  %vm10734_vm15 = vcmp.eq.s32.totalorder %v22589_v35, %v26956_v43 }
 0x8eb   :  { %v9072_v36 = vadd.f32 %v9008_v48, %v8718_v17  ;;  %v17425_v20 = vsel %vm10732_vm2, 1.0, %v26759_v30  ;;  %vm11086_vm6 = vcmp.eq.s32.totalorder %v22568_v58, %v26958_v4  ;;  %v17427_v12 = vsel %vm10734_vm15, 1.0, %v26759_v30 }
 0x8ec   :  { %v9160_v46 = vand.u32 4294901760, %v9070_v40  ;;  %v10942_v2 = vmul.f32 %v17425_v20, %v26957_v10  ;;  %vm11088_vm4 = vcmp.eq.s32.totalorder %v22589_v35, %v26958_v4  ;;  %v10944_v61 = vmul.f32 %v17427_v12, %v26957_v10 }
 0x8ed   :  { %v9164_v51 = vand.u32 4294901760, %v9072_v36  ;;  %v17489_v56 = vsel %vm11086_vm6, 1.0, %v26759_v30  ;;  %v17491_v17 = vsel %vm11088_vm4, 1.0, %v26759_v30  ;;  %vm11440_vm10 = vcmp.eq.s32.totalorder %v22568_v58, %v21757_v9 }
 0x8ee   :  { %v23096_v48 = vsub.f32 %v9070_v40, %v9160_v46  ;;  %v11006_v13 = vadd.f32 %v10942_v2, %v10652_v0  ;;  %v11296_v42 = vmul.f32 %v17489_v56, %v21751_v26  ;;  %v11298_v60 = vmul.f32 %v17491_v17, %v21751_v26 }
 0x8ef   :  { %v23100_v49 = vpack.c.bf16 %v9164_v51, %v9160_v46  ;;  %v23102_v20 = vsub.f32 %v9072_v36, %v9164_v51  ;;  %v11008_v55 = vadd.f32 %v10944_v61, %v10654_v52  ;;  %vm11442_vm0 = vcmp.eq.s32.totalorder %v22589_v35, %v21757_v9 }
 0x8f0   :  { %27006 = vst [vmem:[#allocation80_spill] sm:$0xff] %v23096_v48  ;;  %v11360_v12 = vadd.f32 %v11296_v42, %v11006_v13  ;;  %v17553_v40 = vsel %vm11440_vm10, 1.0, %v26759_v30  ;;  %vm7802_vm12 = vcmp.eq.s32.totalorder %v22599_v50, %v21613_v19  ;;  %v17555_v46 = vsel %vm11442_vm0, 1.0, %v26759_v30 }
 0x8f1   :  { %27007 = vst [vmem:[#allocation81_spill] sm:$0xff] %v23100_v49  ;;  %27008 = vst [vmem:[#allocation82_spill] sm:$0xff] %v23102_v20  ;;  %18860 = vmatpush1.bf16.msra.mxu0 %v23100_v49  ;;  %v11362_v0 = vadd.f32 %v11298_v60, %v11008_v55  ;;  %v11650_v36 = vmul.f32 %v17553_v40, %v21884_v29  ;;  %vm7804_vm13 = vcmp.eq.s32.totalorder %v22610_v38, %v21613_v19 }
 0x8f2   :  { %v11652_v58 = vmul.f32 %v17555_v46, %v21884_v29  ;;  %v17106_v52 = vsel %vm7802_vm12, 1.0, %v26759_v30  ;;  %v17108_v35 = vsel %vm7804_vm13, 1.0, %v26759_v30  ;;  %vm8093_vm14 = vcmp.eq.s32.totalorder %v22599_v50, %v21647_v34 }
 0x8f3   :  { %v11714_v2 = vadd.f32 %v11650_v36, %v11360_v12  ;;  %v8013_v51 = vmul.f32 %v17106_v52, %v21636_v41  ;;  %v8015_v60 = vmul.f32 %v17108_v35, %v21636_v41  ;;  %vm8095_vm7 = vcmp.eq.s32.totalorder %v22610_v38, %v21647_v34 }
 0x8f4   :  { %v11716_v55 = vadd.f32 %v11652_v58, %v11362_v0  ;;  %v17170_v61 = vsel %vm8093_vm14, 1.0, %v26759_v30  ;;  %v17172_v56 = vsel %vm8095_vm7, 1.0, %v26759_v30  ;;  %vm8447_vm8 = vcmp.eq.s32.totalorder %v22599_v50, %v26901_v14 }
 0x8f5   :  { %v11804_v17 = vand.u32 4294901760, %v11714_v2  ;;  %v8303_v13 = vmul.f32 %v17170_v61, %v26972_v6  ;;  %v8305_v42 = vmul.f32 %v17172_v56, %v26972_v6  ;;  %vm8449_vm1 = vcmp.eq.s32.totalorder %v22610_v38, %v26901_v14 }
 0x8f6   :  { %v11808_v12 = vand.u32 4294901760, %v11716_v55  ;;  %v17234_v40 = vsel %vm8447_vm8, 1.0, %v26759_v30  ;;  %v17236_v0 = vsel %vm8449_vm1, 1.0, %v26759_v30  ;;  %vm8801_vm11 = vcmp.eq.s32.totalorder %v22599_v50, %v21718_v45 }
 0x8f7   :  { %v23137_v46 = vsub.f32 %v11714_v2, %v11804_v17  ;;  %v8367_v36 = vadd.f32 %v8303_v13, %v8013_v51  ;;  %v8369_v58 = vadd.f32 %v8305_v42, %v8015_v60  ;;  %v8657_v52 = vmul.f32 %v17234_v40, %v21674_v44 }
 0x8f8   :  { %v23140_v35 = vpack.c.bf16 %v11808_v12, %v11804_v17  ;;  %v23142_v61 = vsub.f32 %v11716_v55, %v11808_v12  ;;  %v8659_v56 = vmul.f32 %v17236_v0, %v21674_v44  ;;  %vm8803_vm5 = vcmp.eq.s32.totalorder %v22610_v38, %v21718_v45 }
 0x8f9   :  { %27009 = vst [vmem:[#allocation83_spill] sm:$0xff] %v23137_v46  ;;  %v8721_v49 = vadd.f32 %v8657_v52, %v8367_v36  ;;  %v17298_v20 = vsel %vm8801_vm11, 1.0, %v26759_v30  ;;  %v17300_v48 = vsel %vm8803_vm5, 1.0, %v26759_v30  ;;  %vm10446_vm9 = vcmp.eq.s32.totalorder %v22599_v50, %v21721_v22 }
 0x8fa   :  { %27010 = vst [vmem:[#allocation84_spill] sm:$0xff] %v23140_v35  ;;  %27011 = vst [vmem:[#allocation85_spill] sm:$0xff] %v23142_v61  ;;  %19244 = vmatpush1.bf16.msra.mxu1 %v23140_v35  ;;  %v8723_v2 = vadd.f32 %v8659_v56, %v8369_v58  ;;  %v9011_v51 = vmul.f32 %v17298_v20, %v21730_v1  ;;  %v9013_v60 = vmul.f32 %v17300_v48, %v21730_v1 }
 0x8fb   :  { %vm10448_vm2 = vcmp.eq.s32.totalorder %v22610_v38, %v21721_v22  ;;  %v17366_v55 = vsel %vm10446_vm9, 1.0, %v26759_v30  ;;  %vm10737_vm15 = vcmp.eq.s32.totalorder %v22599_v50, %v26909_v53  ;;  %vm10739_vm6 = vcmp.eq.s32.totalorder %v22610_v38, %v26909_v53 }
 0x8fc   :  { %v17368_v17 = vsel %vm10448_vm2, 1.0, %v26759_v30  ;;  %v9075_v13 = vadd.f32 %v9011_v51, %v8721_v49  ;;  %v9077_v42 = vadd.f32 %v9013_v60, %v8723_v2  ;;  %v10657_v12 = vmul.f32 %v17366_v55, %v21727_v3 }
 0x8fd   :  { %v10659_v20 = vmul.f32 %v17368_v17, %v21727_v3  ;;  %v17430_v48 = vsel %vm10737_vm15, 1.0, %v26759_v30  ;;  %v17432_v40 = vsel %vm10739_vm6, 1.0, %v26759_v30  ;;  %vm11091_vm4 = vcmp.eq.s32.totalorder %v22599_v50, %v21748_v37 }
 0x8fe   :  { %vm11093_vm10 = vcmp.eq.s32.totalorder %v22610_v38, %v21748_v37  ;;  %v9166_v0 = vand.u32 4294901760, %v9075_v13  ;;  %v9170_v36 = vand.u32 4294901760, %v9077_v42  ;;  %v10947_v58 = vmul.f32 %v17430_v48, %v21742_v16 }
 0x8ff   :  { %v10949_v49 = vmul.f32 %v17432_v40, %v21742_v16  ;;  %v17494_v52 = vsel %vm11091_vm4, 1.0, %v26759_v30  ;;  %v17496_v56 = vsel %vm11093_vm10, 1.0, %v26759_v30  ;;  %vm11445_vm0 = vcmp.eq.s32.totalorder %v22599_v50, %v21760_v47 }
 0x900   :  { %vm11447_vm12 = vcmp.eq.s32.totalorder %v22610_v38, %v21760_v47  ;;  %v23178_v2 = vpack.c.bf16 %v9170_v36, %v9166_v0  ;;  %v23180_v51 = vsub.f32 %v9075_v13, %v9166_v0  ;;  %v23182_v60 = vsub.f32 %v9077_v42, %v9170_v36 }
 0x901   :  { %v11011_v55 = vadd.f32 %v10947_v58, %v10657_v12  ;;  %v11013_v17 = vadd.f32 %v10949_v49, %v10659_v20  ;;  %v11301_v48 = vmul.f32 %v17494_v52, %v21754_v59  ;;  %v11303_v40 = vmul.f32 %v17496_v56, %v21754_v59 }
 0x902   :  { %27012 = vst [vmem:[#allocation86_spill] sm:$0xff] %v23178_v2  ;;  %27013 = vst [vmem:[#allocation87_spill] sm:$0xff] %v23180_v51  ;;  %v17558_v35 = vsel %vm11445_vm0, 1.0, %v26759_v30  ;;  %18862 = vmatprep.subr.bf16.mxu0 %v23178_v2  ;;  %v17560_v61 = vsel %vm11447_vm12, 1.0, %v26759_v30  ;;  %vm7801_vm13 = vcmp.eq.s32.totalorder %v22599_v50, %v21610_v57  ;;  %vm7803_vm14 = vcmp.eq.s32.totalorder %v22610_v38, %v21610_v57 }
 0x903   :  { %27014 = vst [vmem:[#allocation88_spill] sm:$0xff] %v23182_v60  ;;  %v11655_v46 = vmul.f32 %v17558_v35, %v21763_v28  ;;  %v11365_v13 = vadd.f32 %v11301_v48, %v11011_v55  ;;  %v11367_v42 = vadd.f32 %v11303_v40, %v11013_v17  ;;  %v11657_v12 = vmul.f32 %v17560_v61, %v21763_v28 }
 0x904   :  { %v17105_v20 = vsel %vm7801_vm13, 1.0, %v26759_v30  ;;  %v17107_v0 = vsel %vm7803_vm14, 1.0, %v26759_v30  ;;  %vm8092_vm7 = vcmp.eq.s32.totalorder %v22599_v50, %v21644_v25  ;;  %vm8094_vm8 = vcmp.eq.s32.totalorder %v22610_v38, %v21644_v25 }
 0x905   :  { %v8012_v36 = vmul.f32 %v17105_v20, %v21633_v21  ;;  %v11719_v35 = vadd.f32 %v11655_v46, %v11365_v13  ;;  %v11721_v58 = vadd.f32 %v11657_v12, %v11367_v42  ;;  %v8014_v49 = vmul.f32 %v17107_v0, %v21633_v21 }
 0x906   :  { %v17169_v52 = vsel %vm8092_vm7, 1.0, %v26759_v30  ;;  %v17171_v61 = vsel %vm8094_vm8, 1.0, %v26759_v30  ;;  %vm8446_vm1 = vcmp.eq.s32.totalorder %v22599_v50, %v21662_v11  ;;  %vm8448_vm11 = vcmp.eq.s32.totalorder %v22610_v38, %v21662_v11 }
 0x907   :  { %v8302_v56 = vmul.f32 %v17169_v52, %v21650_v33  ;;  %v11810_v55 = vand.u32 4294901760, %v11719_v35  ;;  %v11814_v17 = vand.u32 4294901760, %v11721_v58  ;;  %v8304_v48 = vmul.f32 %v17171_v61, %v21650_v33 }
 0x908   :  { %v17233_v46 = vsel %vm8446_vm1, 1.0, %v26759_v30  ;;  %v17235_v13 = vsel %vm8448_vm11, 1.0, %v26759_v30  ;;  %vm8800_vm5 = vcmp.eq.s32.totalorder %v22599_v50, %v21683_v7  ;;  %vm8802_vm9 = vcmp.eq.s32.totalorder %v22610_v38, %v21683_v7 }
 0x909   :  { %v8366_v40 = vadd.f32 %v8302_v56, %v8012_v36  ;;  %v8656_v42 = vmul.f32 %v17233_v46, %v21671_v24  ;;  %v23216_v12 = vpack.c.bf16 %v11814_v17, %v11810_v55  ;;  %v23218_v20 = vsub.f32 %v11719_v35, %v11810_v55 }
 0x90a   :  { %v23220_v0 = vsub.f32 %v11721_v58, %v11814_v17  ;;  %v8368_v52 = vadd.f32 %v8304_v48, %v8014_v49  ;;  %v8658_v2 = vmul.f32 %v17235_v13, %v21671_v24  ;;  %v17297_v36 = vsel %vm8800_vm5, 1.0, %v26759_v30 }
 0x90b   :  { %27015 = vst [vmem:[#allocation89_spill] sm:$0xff] %v23216_v12  ;;  %27016 = vst [vmem:[#allocation90_spill] sm:$0xff] %v23218_v20  ;;  %v8720_v61 = vadd.f32 %v8656_v42, %v8366_v40  ;;  %19246 = vmatprep.subr.bf16.mxu1 %v23216_v12  ;;  %v17299_v56 = vsel %vm8802_vm9, 1.0, %v26759_v30  ;;  %v9010_v46 = vmul.f32 %v17297_v36, %v21699_v31 }
 0x90c   :  { %27017 = vst [vmem:[#allocation91_spill] sm:$0xff] %v23220_v0  ;;  %vm10445_vm2 = vcmp.eq.s32.totalorder %v22599_v50, %v21702_v8  ;;  %vm10447_vm15 = vcmp.eq.s32.totalorder %v22610_v38, %v21702_v8  ;;  %v8722_v35 = vadd.f32 %v8658_v2, %v8368_v52  ;;  %v9012_v58 = vmul.f32 %v17299_v56, %v21699_v31 }
 0x90d   :  { %v17365_v49 = vsel %vm10445_vm2, 1.0, %v26759_v30  ;;  %v17367_v55 = vsel %vm10447_vm15, 1.0, %v26759_v30  ;;  %v9074_v17 = vadd.f32 %v9010_v46, %v8720_v61  ;;  %vm10736_vm6 = vcmp.eq.s32.totalorder %v22599_v50, %v26956_v43 }
 0x90e   :  { %v10656_v48 = vmul.f32 %v17365_v49, %v21724_v32  ;;  %v10658_v40 = vmul.f32 %v17367_v55, %v21724_v32  ;;  %v9076_v13 = vadd.f32 %v9012_v58, %v8722_v35  ;;  %vm10738_vm4 = vcmp.eq.s32.totalorder %v22610_v38, %v26956_v43 }
 0x90f   :  { %v17429_v2 = vsel %vm10736_vm6, 1.0, %v26759_v30  ;;  %vm11090_vm10 = vcmp.eq.s32.totalorder %v22599_v50, %v26958_v4  ;;  %v9168_v42 = vand.u32 4294901760, %v9074_v17  ;;  %v17431_v52 = vsel %vm10738_vm4, 1.0, %v26759_v30 }
 0x910   :  { %v10946_v61 = vmul.f32 %v17429_v2, %v26957_v10  ;;  %vm11092_vm0 = vcmp.eq.s32.totalorder %v22610_v38, %v26958_v4  ;;  %v9172_v36 = vand.u32 4294901760, %v9076_v13  ;;  %v10948_v56 = vmul.f32 %v17431_v52, %v26957_v10 }
 0x911   :  { %v17493_v46 = vsel %vm11090_vm10, 1.0, %v26759_v30  ;;  %v17495_v35 = vsel %vm11092_vm0, 1.0, %v26759_v30  ;;  %v23252_v58 = vsub.f32 %v9074_v17, %v9168_v42  ;;  %vm11444_vm12 = vcmp.eq.s32.totalorder %v22599_v50, %v21757_v9 }
 0x912   :  { %v11010_v49 = vadd.f32 %v10946_v61, %v10656_v48  ;;  %v11300_v55 = vmul.f32 %v17493_v46, %v21751_v26  ;;  %v11302_v12 = vmul.f32 %v17495_v35, %v21751_v26  ;;  %v23256_v0 = vpack.c.bf16 %v9172_v36, %v9168_v42 }
 0x913   :  { %27018 = vst [vmem:[#allocation92_spill] sm:$0xff] %v23252_v58  ;;  %v23258_v2 = vsub.f32 %v9076_v13, %v9172_v36  ;;  %v11012_v20 = vadd.f32 %v10948_v56, %v10658_v40  ;;  %vm11446_vm13 = vcmp.eq.s32.totalorder %v22610_v38, %v21757_v9  ;;  %v17557_v17 = vsel %vm11444_vm12, 1.0, %v26759_v30 }
 0x914   :  { %27019 = vst [vmem:[#allocation93_spill] sm:$0xff] %v23256_v0  ;;  %v11364_v52 = vadd.f32 %v11300_v55, %v11010_v49  ;;  %v23266_v48 = vadd.s32 128, %v26926_v62  ;;  %18864 = vmatpush1.bf16.msra.mxu0 %v23256_v0  ;;  %v17559_v42 = vsel %vm11446_vm13, 1.0, %v26759_v30  ;;  %v11654_v13 = vmul.f32 %v17557_v17, %v21884_v29 }
 0x915   :  { %27020 = vst [vmem:[#allocation94_spill] sm:$0xff] %v23258_v2  ;;  %v11366_v61 = vadd.f32 %v11302_v12, %v11012_v20  ;;  %v23272_v40 = vadd.s32 136, %v26926_v62  ;;  %v11656_v50 = vmul.f32 %v17559_v42, %v21884_v29 }
 0x916   :  { %vm7806_vm14 = vcmp.eq.s32.totalorder %v23266_v48, %v21613_v19  ;;  %vm8097_vm7 = vcmp.eq.s32.totalorder %v23266_v48, %v21647_v34  ;;  %vm8451_vm8 = vcmp.eq.s32.totalorder %v23266_v48, %v26901_v14  ;;  %v11718_v38 = vadd.f32 %v11654_v13, %v11364_v52 }
 0x917   :  { %vm7808_vm1 = vcmp.eq.s32.totalorder %v23272_v40, %v21613_v19  ;;  %v17110_v12 = vsel %vm7806_vm14, 1.0, %v26759_v30  ;;  %vm8099_vm11 = vcmp.eq.s32.totalorder %v23272_v40, %v21647_v34  ;;  %v11720_v20 = vadd.f32 %v11656_v50, %v11366_v61 }
 0x918   :  { %v17112_v36 = vsel %vm7808_vm1, 1.0, %v26759_v30  ;;  %v8017_v56 = vmul.f32 %v17110_v12, %v21636_v41  ;;  %v17174_v46 = vsel %vm8097_vm7, 1.0, %v26759_v30  ;;  %v11812_v35 = vand.u32 4294901760, %v11718_v38 }
 0x919   :  { %v8019_v49 = vmul.f32 %v17112_v36, %v21636_v41  ;;  %v17176_v55 = vsel %vm8099_vm11, 1.0, %v26759_v30  ;;  %v8307_v52 = vmul.f32 %v17174_v46, %v26972_v6  ;;  %v11816_v17 = vand.u32 4294901760, %v11720_v20 }
 0x91a   :  { %v8309_v42 = vmul.f32 %v17176_v55, %v26972_v6  ;;  %vm8453_vm5 = vcmp.eq.s32.totalorder %v23272_v40, %v26901_v14  ;;  %v17238_v61 = vsel %vm8451_vm8, 1.0, %v26759_v30  ;;  %v23299_v13 = vsub.f32 %v11718_v38, %v11812_v35 }
 0x91b   :  { %v8371_v50 = vadd.f32 %v8307_v52, %v8017_v56  ;;  %v17240_v12 = vsel %vm8453_vm5, 1.0, %v26759_v30  ;;  %v8661_v36 = vmul.f32 %v17238_v61, %v21674_v44  ;;  %v23303_v0 = vpack.c.bf16 %v11816_v17, %v11812_v35 }
 0x91c   :  { %27021 = vst [vmem:[#allocation95_spill] sm:$0xff] %v23299_v13  ;;  %v23305_v46 = vsub.f32 %v11720_v20, %v11816_v17  ;;  %v8373_v55 = vadd.f32 %v8309_v42, %v8019_v49  ;;  %v8663_v2 = vmul.f32 %v17240_v12, %v21674_v44  ;;  %vm8805_vm9 = vcmp.eq.s32.totalorder %v23266_v48, %v21718_v45 }
 0x91d   :  { %27022 = vst [vmem:[#allocation96_spill] sm:$0xff] %v23303_v0  ;;  %v8725_v58 = vadd.f32 %v8661_v36, %v8371_v50  ;;  %vm8807_vm2 = vcmp.eq.s32.totalorder %v23272_v40, %v21718_v45  ;;  %vm10450_vm15 = vcmp.eq.s32.totalorder %v23266_v48, %v21721_v22  ;;  %19248 = vmatpush1.bf16.msra.mxu1 %v23303_v0  ;;  %v17302_v56 = vsel %vm8805_vm9, 1.0, %v26759_v30 }
 0x91e   :  { %27023 = vst [vmem:[#allocation97_spill] sm:$0xff] %v23305_v46  ;;  %v8727_v38 = vadd.f32 %v8663_v2, %v8373_v55  ;;  %v17304_v20 = vsel %vm8807_vm2, 1.0, %v26759_v30  ;;  %vm10452_vm6 = vcmp.eq.s32.totalorder %v23272_v40, %v21721_v22  ;;  %v9015_v35 = vmul.f32 %v17302_v56, %v21730_v1 }
 0x91f   :  { %v9017_v49 = vmul.f32 %v17304_v20, %v21730_v1  ;;  %v17370_v52 = vsel %vm10450_vm15, 1.0, %v26759_v30  ;;  %v17372_v17 = vsel %vm10452_vm6, 1.0, %v26759_v30  ;;  %vm10741_vm4 = vcmp.eq.s32.totalorder %v23266_v48, %v26909_v53 }
 0x920   :  { %v10661_v42 = vmul.f32 %v17370_v52, %v21727_v3  ;;  %v10663_v61 = vmul.f32 %v17372_v17, %v21727_v3  ;;  %vm10743_vm10 = vcmp.eq.s32.totalorder %v23272_v40, %v26909_v53  ;;  %v9079_v2 = vadd.f32 %v9015_v35, %v8725_v58 }
 0x921   :  { %v9081_v50 = vadd.f32 %v9017_v49, %v8727_v38  ;;  %v17434_v12 = vsel %vm10741_vm4, 1.0, %v26759_v30  ;;  %v17436_v36 = vsel %vm10743_vm10, 1.0, %v26759_v30  ;;  %vm11095_vm0 = vcmp.eq.s32.totalorder %v23266_v48, %v21748_v37 }
 0x922   :  { %v10951_v55 = vmul.f32 %v17434_v12, %v21742_v16  ;;  %v10953_v56 = vmul.f32 %v17436_v36, %v21742_v16  ;;  %vm11097_vm12 = vcmp.eq.s32.totalorder %v23272_v40, %v21748_v37  ;;  %v9174_v20 = vand.u32 4294901760, %v9079_v2 }
 0x923   :  { %v9178_v52 = vand.u32 4294901760, %v9081_v50  ;;  %v17498_v17 = vsel %vm11095_vm0, 1.0, %v26759_v30  ;;  %v17500_v58 = vsel %vm11097_vm12, 1.0, %v26759_v30  ;;  %vm11449_vm13 = vcmp.eq.s32.totalorder %v23266_v48, %v21760_v47 }
 0x924   :  { %v11015_v38 = vadd.f32 %v10951_v55, %v10661_v42  ;;  %v11017_v35 = vadd.f32 %v10953_v56, %v10663_v61  ;;  %v11305_v49 = vmul.f32 %v17498_v17, %v21754_v59  ;;  %v11307_v12 = vmul.f32 %v17500_v58, %v21754_v59 }
 0x925   :  { %v23341_v0 = vpack.c.bf16 %v9178_v52, %v9174_v20  ;;  %v23343_v36 = vsub.f32 %v9079_v2, %v9174_v20  ;;  %v23345_v46 = vsub.f32 %v9081_v50, %v9178_v52  ;;  %vm11451_vm14 = vcmp.eq.s32.totalorder %v23272_v40, %v21760_v47 }
 0x926   :  { %v11369_v13 = vadd.f32 %v11305_v49, %v11015_v38  ;;  %v11371_v60 = vadd.f32 %v11307_v12, %v11017_v35  ;;  %v17562_v42 = vsel %vm11449_vm13, 1.0, %v26759_v30  ;;  %v17564_v61 = vsel %vm11451_vm14, 1.0, %v26759_v30 }
 0x927   :  { %27024 = vst [vmem:[#allocation98_spill] sm:$0xff] %v23341_v0  ;;  %27025 = vst [vmem:[#allocation99_spill] sm:$0xff] %v23343_v36  ;;  %18866 = vmatprep.subr.bf16.mxu0 %v23341_v0  ;;  %v11659_v55 = vmul.f32 %v17562_v42, %v21763_v28  ;;  %vm7805_vm7 = vcmp.eq.s32.totalorder %v23266_v48, %v21610_v57  ;;  %vm7807_vm8 = vcmp.eq.s32.totalorder %v23272_v40, %v21610_v57 }
 0x928   :  { %27026 = vst [vmem:[#allocation100_spill] sm:$0xff] %v23345_v46  ;;  %v11661_v2 = vmul.f32 %v17564_v61, %v21763_v28  ;;  %v17109_v50 = vsel %vm7805_vm7, 1.0, %v26759_v30  ;;  %v17111_v56 = vsel %vm7807_vm8, 1.0, %v26759_v30  ;;  %vm8096_vm1 = vcmp.eq.s32.totalorder %v23266_v48, %v21644_v25 }
 0x929   :  { %v11723_v20 = vadd.f32 %v11659_v55, %v11369_v13  ;;  %v8016_v52 = vmul.f32 %v17109_v50, %v21633_v21  ;;  %v8018_v17 = vmul.f32 %v17111_v56, %v21633_v21  ;;  %vm8098_vm11 = vcmp.eq.s32.totalorder %v23272_v40, %v21644_v25 }
 0x92a   :  { %v11725_v58 = vadd.f32 %v11661_v2, %v11371_v60  ;;  %v17173_v38 = vsel %vm8096_vm1, 1.0, %v26759_v30  ;;  %v17175_v35 = vsel %vm8098_vm11, 1.0, %v26759_v30  ;;  %vm8450_vm5 = vcmp.eq.s32.totalorder %v23266_v48, %v21662_v11 }
 0x92b   :  { %v11818_v49 = vand.u32 4294901760, %v11723_v20  ;;  %v8306_v12 = vmul.f32 %v17173_v38, %v21650_v33  ;;  %v8308_v13 = vmul.f32 %v17175_v35, %v21650_v33  ;;  %vm8452_vm9 = vcmp.eq.s32.totalorder %v23272_v40, %v21662_v11 }
 0x92c   :  { %v11822_v42 = vand.u32 4294901760, %v11725_v58  ;;  %v17237_v61 = vsel %vm8450_vm5, 1.0, %v26759_v30  ;;  %v17239_v60 = vsel %vm8452_vm9, 1.0, %v26759_v30  ;;  %vm8804_vm2 = vcmp.eq.s32.totalorder %v23266_v48, %v21683_v7 }
 0x92d   :  { %v23380_v55 = vsub.f32 %v11723_v20, %v11818_v49  ;;  %v8370_v2 = vadd.f32 %v8306_v12, %v8016_v52  ;;  %v8372_v50 = vadd.f32 %v8308_v13, %v8018_v17  ;;  %v8660_v56 = vmul.f32 %v17237_v61, %v21671_v24 }
 0x92e   :  { %v23383_v38 = vpack.c.bf16 %v11822_v42, %v11818_v49  ;;  %v23385_v35 = vsub.f32 %v11725_v58, %v11822_v42  ;;  %v8662_v0 = vmul.f32 %v17239_v60, %v21671_v24  ;;  %vm8806_vm15 = vcmp.eq.s32.totalorder %v23272_v40, %v21683_v7 }
 0x92f   :  { %27027 = vst [vmem:[#allocation101_spill] sm:$0xff] %v23380_v55  ;;  %v8724_v46 = vadd.f32 %v8660_v56, %v8370_v2  ;;  %v17301_v36 = vsel %vm8804_vm2, 1.0, %v26759_v30  ;;  %v17303_v51 = vsel %vm8806_vm15, 1.0, %v26759_v30  ;;  %vm10449_vm6 = vcmp.eq.s32.totalorder %v23266_v48, %v21702_v8 }
 0x930   :  { %27028 = vst [vmem:[#allocation102_spill] sm:$0xff] %v23383_v38  ;;  %27029 = vst [vmem:[#allocation103_spill] sm:$0xff] %v23385_v35  ;;  %19250 = vmatprep.subr.bf16.mxu1 %v23383_v38  ;;  %v8726_v20 = vadd.f32 %v8662_v0, %v8372_v50  ;;  %v9014_v52 = vmul.f32 %v17301_v36, %v21699_v31  ;;  %v9016_v17 = vmul.f32 %v17303_v51, %v21699_v31 }
 0x931   :  { %vm10451_vm4 = vcmp.eq.s32.totalorder %v23272_v40, %v21702_v8  ;;  %v17369_v58 = vsel %vm10449_vm6, 1.0, %v26759_v30  ;;  %vm10740_vm10 = vcmp.eq.s32.totalorder %v23266_v48, %v26956_v43  ;;  %vm10742_vm0 = vcmp.eq.s32.totalorder %v23272_v40, %v26956_v43 }
 0x932   :  { %v17371_v49 = vsel %vm10451_vm4, 1.0, %v26759_v30  ;;  %v9078_v12 = vadd.f32 %v9014_v52, %v8724_v46  ;;  %v9080_v13 = vadd.f32 %v9016_v17, %v8726_v20  ;;  %v10660_v0 = vmul.f32 %v17369_v58, %v21724_v32 }
 0x933   :  { %v10662_v36 = vmul.f32 %v17371_v49, %v21724_v32  ;;  %v17433_v51 = vsel %vm10740_vm10, 1.0, %v26759_v30  ;;  %v17435_v42 = vsel %vm10742_vm0, 1.0, %v26759_v30  ;;  %vm11094_vm12 = vcmp.eq.s32.totalorder %v23266_v48, %v26958_v4 }
 0x934   :  { %vm11096_vm13 = vcmp.eq.s32.totalorder %v23272_v40, %v26958_v4  ;;  %v9176_v61 = vand.u32 4294901760, %v9078_v12  ;;  %v9180_v60 = vand.u32 4294901760, %v9080_v13  ;;  %v10950_v2 = vmul.f32 %v17433_v51, %v26957_v10 }
 0x935   :  { %v10952_v46 = vmul.f32 %v17435_v42, %v26957_v10  ;;  %v17497_v50 = vsel %vm11094_vm12, 1.0, %v26759_v30  ;;  %v17499_v56 = vsel %vm11096_vm13, 1.0, %v26759_v30  ;;  %vm11448_vm14 = vcmp.eq.s32.totalorder %v23266_v48, %v21757_v9 }
 0x936   :  { %vm11450_vm7 = vcmp.eq.s32.totalorder %v23272_v40, %v21757_v9  ;;  %v23421_v20 = vpack.c.bf16 %v9180_v60, %v9176_v61  ;;  %v23423_v52 = vsub.f32 %v9078_v12, %v9176_v61  ;;  %v23425_v17 = vsub.f32 %v9080_v13, %v9180_v60 }
 0x937   :  { %v11014_v58 = vadd.f32 %v10950_v2, %v10660_v0  ;;  %v11016_v49 = vadd.f32 %v10952_v46, %v10662_v36  ;;  %v11304_v51 = vmul.f32 %v17497_v50, %v21751_v26  ;;  %v11306_v42 = vmul.f32 %v17499_v56, %v21751_v26 }
 0x938   :  { %27030 = vst [vmem:[#allocation104_spill] sm:$0xff] %v23421_v20  ;;  %27031 = vst [vmem:[#allocation105_spill] sm:$0xff] %v23423_v52  ;;  %v17561_v38 = vsel %vm11448_vm14, 1.0, %v26759_v30  ;;  %18868 = vmatpush1.bf16.msra.mxu0 %v23421_v20  ;;  %v17563_v48 = vsel %vm11450_vm7, 1.0, %v26759_v30  ;;  %v23434_v35 = vadd.s32 144, %v26926_v62  ;;  %v23437_v12 = vadd.s32 152, %v26926_v62 }
 0x939   :  { %27032 = vst [vmem:[#allocation106_spill] sm:$0xff] %v23425_v17  ;;  %v11658_v40 = vmul.f32 %v17561_v38, %v21884_v29  ;;  %v11368_v13 = vadd.f32 %v11304_v51, %v11014_v58  ;;  %v11370_v0 = vadd.f32 %v11306_v42, %v11016_v49  ;;  %v11660_v36 = vmul.f32 %v17563_v48, %v21884_v29 }
 0x93a   :  { %v23441_v61 = vadd.s32 160, %v26926_v62  ;;  %vm7810_vm8 = vcmp.eq.s32.totalorder %v23434_v35, %v21613_v19  ;;  %vm7812_vm1 = vcmp.eq.s32.totalorder %v23437_v12, %v21613_v19  ;;  %vm8101_vm11 = vcmp.eq.s32.totalorder %v23434_v35, %v21647_v34 }
 0x93b   :  { %vm8103_vm5 = vcmp.eq.s32.totalorder %v23437_v12, %v21647_v34  ;;  %v11722_v38 = vadd.f32 %v11658_v40, %v11368_v13  ;;  %v11724_v60 = vadd.f32 %v11660_v36, %v11370_v0  ;;  %v17114_v2 = vsel %vm7810_vm8, 1.0, %v26759_v30 }
 0x93c   :  { %v17116_v46 = vsel %vm7812_vm1, 1.0, %v26759_v30  ;;  %v8021_v50 = vmul.f32 %v17114_v2, %v21636_v41  ;;  %v17178_v58 = vsel %vm8101_vm11, 1.0, %v26759_v30  ;;  %v17180_v49 = vsel %vm8103_vm5, 1.0, %v26759_v30 }
 0x93d   :  { %v8023_v56 = vmul.f32 %v17116_v46, %v21636_v41  ;;  %v11820_v51 = vand.u32 4294901760, %v11722_v38  ;;  %v11824_v42 = vand.u32 4294901760, %v11724_v60  ;;  %v8311_v48 = vmul.f32 %v17178_v58, %v26972_v6 }
 0x93e   :  { %v8313_v20 = vmul.f32 %v17180_v49, %v26972_v6  ;;  %vm8455_vm9 = vcmp.eq.s32.totalorder %v23434_v35, %v26901_v14  ;;  %vm8457_vm2 = vcmp.eq.s32.totalorder %v23437_v12, %v26901_v14  ;;  %vm8809_vm15 = vcmp.eq.s32.totalorder %v23434_v35, %v21718_v45 }
 0x93f   :  { %vm8811_vm6 = vcmp.eq.s32.totalorder %v23437_v12, %v21718_v45  ;;  %v23467_v40 = vpack.c.bf16 %v11824_v42, %v11820_v51  ;;  %v23469_v13 = vsub.f32 %v11722_v38, %v11820_v51  ;;  %v23471_v0 = vsub.f32 %v11724_v60, %v11824_v42 }
 0x940   :  { %v8375_v36 = vadd.f32 %v8311_v48, %v8021_v50  ;;  %v8377_v2 = vadd.f32 %v8313_v20, %v8023_v56  ;;  %v17242_v46 = vsel %vm8455_vm9, 1.0, %v26759_v30  ;;  %v17244_v58 = vsel %vm8457_vm2, 1.0, %v26759_v30 }
 0x941   :  { %27033 = vst [vmem:[#allocation107_spill] sm:$0xff] %v23467_v40  ;;  %27034 = vst [vmem:[#allocation108_spill] sm:$0xff] %v23469_v13  ;;  %v17306_v49 = vsel %vm8809_vm15, 1.0, %v26759_v30  ;;  %19252 = vmatpush1.bf16.msra.mxu1 %v23467_v40  ;;  %v8665_v17 = vmul.f32 %v17242_v46, %v21674_v44  ;;  %v8667_v52 = vmul.f32 %v17244_v58, %v21674_v44  ;;  %v17308_v55 = vsel %vm8811_vm6, 1.0, %v26759_v30 }
 0x942   :  { %27035 = vst [vmem:[#allocation109_spill] sm:$0xff] %v23471_v0  ;;  %v9019_v38 = vmul.f32 %v17306_v49, %v21730_v1  ;;  %v9021_v60 = vmul.f32 %v17308_v55, %v21730_v1  ;;  %vm10454_vm4 = vcmp.eq.s32.totalorder %v23434_v35, %v21721_v22  ;;  %vm10456_vm10 = vcmp.eq.s32.totalorder %v23437_v12, %v21721_v22 }
 0x943   :  { %vm10745_vm0 = vcmp.eq.s32.totalorder %v23434_v35, %v26909_v53  ;;  %v8729_v20 = vadd.f32 %v8665_v17, %v8375_v36  ;;  %v8731_v50 = vadd.f32 %v8667_v52, %v8377_v2  ;;  %v17374_v56 = vsel %vm10454_vm4, 1.0, %v26759_v30 }
 0x944   :  { %v17376_v51 = vsel %vm10456_vm10, 1.0, %v26759_v30  ;;  %v10665_v42 = vmul.f32 %v17374_v56, %v21727_v3  ;;  %vm10747_vm12 = vcmp.eq.s32.totalorder %v23437_v12, %v26909_v53  ;;  %v17438_v55 = vsel %vm10745_vm0, 1.0, %v26759_v30 }
 0x945   :  { %v10667_v48 = vmul.f32 %v17376_v51, %v21727_v3  ;;  %v9083_v46 = vadd.f32 %v9019_v38, %v8729_v20  ;;  %v9085_v58 = vadd.f32 %v9021_v60, %v8731_v50  ;;  %v17440_v49 = vsel %vm10747_vm12, 1.0, %v26759_v30 }
 0x946   :  { %v10955_v17 = vmul.f32 %v17438_v55, %v21742_v16  ;;  %v10957_v52 = vmul.f32 %v17440_v49, %v21742_v16  ;;  %vm11099_vm13 = vcmp.eq.s32.totalorder %v23434_v35, %v21748_v37  ;;  %vm11101_vm14 = vcmp.eq.s32.totalorder %v23437_v12, %v21748_v37 }
 0x947   :  { %vm11453_vm7 = vcmp.eq.s32.totalorder %v23434_v35, %v21760_v47  ;;  %v9182_v36 = vand.u32 4294901760, %v9083_v46  ;;  %v9186_v2 = vand.u32 4294901760, %v9085_v58  ;;  %v17502_v38 = vsel %vm11099_vm13, 1.0, %v26759_v30 }
 0x948   :  { %v11019_v56 = vadd.f32 %v10955_v17, %v10665_v42  ;;  %v11021_v60 = vadd.f32 %v10957_v52, %v10667_v48  ;;  %v17504_v20 = vsel %vm11101_vm14, 1.0, %v26759_v30  ;;  %v11309_v50 = vmul.f32 %v17502_v38, %v21754_v59 }
 0x949   :  { %vm11455_vm8 = vcmp.eq.s32.totalorder %v23437_v12, %v21760_v47  ;;  %v23509_v51 = vpack.c.bf16 %v9186_v2, %v9182_v36  ;;  %v23511_v55 = vsub.f32 %v9083_v46, %v9182_v36  ;;  %v23513_v49 = vsub.f32 %v9085_v58, %v9186_v2 }
 0x94a   :  { %v11311_v40 = vmul.f32 %v17504_v20, %v21754_v59  ;;  %v11373_v0 = vadd.f32 %v11309_v50, %v11019_v56  ;;  %v17566_v42 = vsel %vm11453_vm7, 1.0, %v26759_v30  ;;  %v17568_v48 = vsel %vm11455_vm8, 1.0, %v26759_v30 }
 0x94b   :  { %27036 = vst [vmem:[#allocation110_spill] sm:$0xff] %v23509_v51  ;;  %27037 = vst [vmem:[#allocation111_spill] sm:$0xff] %v23511_v55  ;;  %vm7809_vm1 = vcmp.eq.s32.totalorder %v23434_v35, %v21610_v57  ;;  %18870 = vmatprep.subr.bf16.mxu0 %v23509_v51  ;;  %v11663_v52 = vmul.f32 %v17566_v42, %v21763_v28  ;;  %v11665_v46 = vmul.f32 %v17568_v48, %v21763_v28 }
 0x94c   :  { %27038 = vst [vmem:[#allocation112_spill] sm:$0xff] %v23513_v49  ;;  %v11375_v17 = vadd.f32 %v11311_v40, %v11021_v60  ;;  %vm7811_vm11 = vcmp.eq.s32.totalorder %v23437_v12, %v21610_v57  ;;  %v17113_v58 = vsel %vm7809_vm1, 1.0, %v26759_v30  ;;  %vm8100_vm5 = vcmp.eq.s32.totalorder %v23434_v35, %v21644_v25 }
 0x94d   :  { %v17115_v36 = vsel %vm7811_vm11, 1.0, %v26759_v30  ;;  %vm8102_vm9 = vcmp.eq.s32.totalorder %v23437_v12, %v21644_v25  ;;  %v11727_v2 = vadd.f32 %v11663_v52, %v11373_v0  ;;  %v8020_v40 = vmul.f32 %v17113_v58, %v21633_v21 }
 0x94e   :  { %v11729_v56 = vadd.f32 %v11665_v46, %v11375_v17  ;;  %v8022_v38 = vmul.f32 %v17115_v36, %v21633_v21  ;;  %v17177_v60 = vsel %vm8100_vm5, 1.0, %v26759_v30  ;;  %v17179_v20 = vsel %vm8102_vm9, 1.0, %v26759_v30 }
 0x94f   :  { %vm8454_vm2 = vcmp.eq.s32.totalorder %v23434_v35, %v21662_v11  ;;  %vm8456_vm15 = vcmp.eq.s32.totalorder %v23437_v12, %v21662_v11  ;;  %v11826_v50 = vand.u32 4294901760, %v11727_v2  ;;  %v8310_v48 = vmul.f32 %v17177_v60, %v21650_v33 }
 0x950   :  { %v11830_v42 = vand.u32 4294901760, %v11729_v56  ;;  %v8312_v0 = vmul.f32 %v17179_v20, %v21650_v33  ;;  %v17241_v17 = vsel %vm8454_vm2, 1.0, %v26759_v30  ;;  %v17243_v52 = vsel %vm8456_vm15, 1.0, %v26759_v30 }
 0x951   :  { %vm8808_vm6 = vcmp.eq.s32.totalorder %v23434_v35, %v21683_v7  ;;  %vm8810_vm4 = vcmp.eq.s32.totalorder %v23437_v12, %v21683_v7  ;;  %v23549_v58 = vsub.f32 %v11727_v2, %v11826_v50  ;;  %v8374_v51 = vadd.f32 %v8310_v48, %v8020_v40 }
 0x952   :  { %v23547_v46 = vpack.c.bf16 %v11830_v42, %v11826_v50  ;;  %v23551_v36 = vsub.f32 %v11729_v56, %v11830_v42  ;;  %v8376_v60 = vadd.f32 %v8312_v0, %v8022_v38  ;;  %v8664_v20 = vmul.f32 %v17241_v17, %v21671_v24 }
 0x953   :  { %27040 = vst [vmem:[#allocation114_spill] sm:$0xff] %v23549_v58  ;;  %v8666_v49 = vmul.f32 %v17243_v52, %v21671_v24  ;;  %v17305_v55 = vsel %vm8808_vm6, 1.0, %v26759_v30  ;;  %v17307_v13 = vsel %vm8810_vm4, 1.0, %v26759_v30  ;;  %vm10453_vm10 = vcmp.eq.s32.totalorder %v23434_v35, %v21702_v8 }
 0x954   :  { %27039 = vst [vmem:[#allocation113_spill] sm:$0xff] %v23547_v46  ;;  %27041 = vst [vmem:[#allocation115_spill] sm:$0xff] %v23551_v36  ;;  %19254 = vmatprep.subr.bf16.mxu1 %v23547_v46  ;;  %v9018_v27 = vmul.f32 %v17305_v55, %v21699_v31  ;;  %vm10455_vm0 = vcmp.eq.s32.totalorder %v23437_v12, %v21702_v8  ;;  %v8728_v2 = vadd.f32 %v8664_v20, %v8374_v51 }
 0x955   :  { %v8730_v56 = vadd.f32 %v8666_v49, %v8376_v60  ;;  %v9020_v40 = vmul.f32 %v17307_v13, %v21699_v31  ;;  %v17373_v38 = vsel %vm10453_vm10, 1.0, %v26759_v30  ;;  %v17375_v50 = vsel %vm10455_vm0, 1.0, %v26759_v30 }
 0x956   :  { %v10664_v42 = vmul.f32 %v17373_v38, %v21724_v32  ;;  %vm10744_vm12 = vcmp.eq.s32.totalorder %v23434_v35, %v26956_v43  ;;  %vm10746_vm13 = vcmp.eq.s32.totalorder %v23437_v12, %v26956_v43  ;;  %v9082_v55 = vadd.f32 %v9018_v27, %v8728_v2 }
 0x957   :  { %v9084_v48 = vadd.f32 %v9020_v40, %v8730_v56  ;;  %v10666_v0 = vmul.f32 %v17375_v50, %v21724_v32  ;;  %v17437_v51 = vsel %vm10744_vm12, 1.0, %v26759_v30  ;;  %v17439_v13 = vsel %vm10746_vm13, 1.0, %v26759_v30 }
 0x958   :  { %v10954_v49 = vmul.f32 %v17437_v51, %v26957_v10  ;;  %vm11098_vm14 = vcmp.eq.s32.totalorder %v23434_v35, %v26958_v4  ;;  %vm11100_vm7 = vcmp.eq.s32.totalorder %v23437_v12, %v26958_v4  ;;  %v9184_v17 = vand.u32 4294901760, %v9082_v55 }
 0x959   :  { %v9188_v52 = vand.u32 4294901760, %v9084_v48  ;;  %v10956_v60 = vmul.f32 %v17439_v13, %v26957_v10  ;;  %v17501_v27 = vsel %vm11098_vm14, 1.0, %v26759_v30  ;;  %v17503_v2 = vsel %vm11100_vm7, 1.0, %v26759_v30 }
 0x95a   :  { %v11018_v20 = vadd.f32 %v10954_v49, %v10664_v42  ;;  %v11308_v56 = vmul.f32 %v17501_v27, %v21751_v26  ;;  %vm11452_vm8 = vcmp.eq.s32.totalorder %v23434_v35, %v21757_v9  ;;  %v23587_v38 = vsub.f32 %v9082_v55, %v9184_v17 }
 0x95b   :  { %v23585_v40 = vpack.c.bf16 %v9188_v52, %v9184_v17  ;;  %v23589_v50 = vsub.f32 %v9084_v48, %v9188_v52  ;;  %v11020_v51 = vadd.f32 %v10956_v60, %v10666_v0  ;;  %v11310_v46 = vmul.f32 %v17503_v2, %v21751_v26 }
 0x95c   :  { %27043 = vst [vmem:[#allocation117_spill] sm:$0xff] %v23587_v38  ;;  %v11372_v13 = vadd.f32 %v11308_v56, %v11018_v20  ;;  %vm11454_vm1 = vcmp.eq.s32.totalorder %v23437_v12, %v21757_v9  ;;  %v17565_v42 = vsel %vm11452_vm8, 1.0, %v26759_v30  ;;  %v23599_v55 = vadd.s32 168, %v26926_v62 }
 0x95d   :  { %27042 = vst [vmem:[#allocation116_spill] sm:$0xff] %v23585_v40  ;;  %27044 = vst [vmem:[#allocation118_spill] sm:$0xff] %v23589_v50  ;;  %18872 = vmatpush1.bf16.msra.mxu0 %v23585_v40  ;;  %v17567_v49 = vsel %vm11454_vm1, 1.0, %v26759_v30  ;;  %v11662_v35 = vmul.f32 %v17565_v42, %v21884_v29  ;;  %vm7814_vm11 = vcmp.eq.s32.totalorder %v23441_v61, %v21613_v19 }
 0x95e   :  { %v11374_v48 = vadd.f32 %v11310_v46, %v11020_v51  ;;  %v11664_v0 = vmul.f32 %v17567_v49, %v21884_v29  ;;  %v17118_v17 = vsel %vm7814_vm11, 1.0, %v26759_v30  ;;  %vm8105_vm5 = vcmp.eq.s32.totalorder %v23441_v61, %v21647_v34 }
 0x95f   :  { %v11726_v12 = vadd.f32 %v11662_v35, %v11372_v13  ;;  %vm7816_vm9 = vcmp.eq.s32.totalorder %v23599_v55, %v21613_v19  ;;  %v8025_v52 = vmul.f32 %v17118_v17, %v21636_v41  ;;  %vm8107_vm2 = vcmp.eq.s32.totalorder %v23599_v55, %v21647_v34 }
 0x960   :  { %v11728_v60 = vadd.f32 %v11664_v0, %v11374_v48  ;;  %v17120_v27 = vsel %vm7816_vm9, 1.0, %v26759_v30  ;;  %v17182_v46 = vsel %vm8105_vm5, 1.0, %v26759_v30  ;;  %v17184_v20 = vsel %vm8107_vm2, 1.0, %v26759_v30 }
 0x961   :  { %v11828_v2 = vand.u32 4294901760, %v11726_v12  ;;  %v8027_v56 = vmul.f32 %v17120_v27, %v21636_v41  ;;  %v8315_v51 = vmul.f32 %v17182_v46, %v26972_v6  ;;  %v8317_v13 = vmul.f32 %v17184_v20, %v26972_v6 }
 0x962   :  { %v11832_v42 = vand.u32 4294901760, %v11728_v60  ;;  %vm8459_vm15 = vcmp.eq.s32.totalorder %v23441_v61, %v26901_v14  ;;  %vm8461_vm6 = vcmp.eq.s32.totalorder %v23599_v55, %v26901_v14  ;;  %vm8813_vm4 = vcmp.eq.s32.totalorder %v23441_v61, %v21718_v45 }
 0x963   :  { %v23624_v49 = vsub.f32 %v11726_v12, %v11828_v2  ;;  %v8379_v35 = vadd.f32 %v8315_v51, %v8025_v52  ;;  %v8381_v48 = vadd.f32 %v8317_v13, %v8027_v56  ;;  %v17246_v0 = vsel %vm8459_vm15, 1.0, %v26759_v30 }
 0x964   :  { %v23627_v17 = vpack.c.bf16 %v11832_v42, %v11828_v2  ;;  %v23629_v27 = vsub.f32 %v11728_v60, %v11832_v42  ;;  %v17248_v46 = vsel %vm8461_vm6, 1.0, %v26759_v30  ;;  %v8669_v20 = vmul.f32 %v17246_v0, %v21674_v44 }
 0x965   :  { %27045 = vst [vmem:[#allocation119_spill] sm:$0xff] %v23624_v49  ;;  %v8671_v40 = vmul.f32 %v17248_v46, %v21674_v44  ;;  %vm8815_vm10 = vcmp.eq.s32.totalorder %v23599_v55, %v21718_v45  ;;  %v17310_v12 = vsel %vm8813_vm4, 1.0, %v26759_v30  ;;  %vm10458_vm0 = vcmp.eq.s32.totalorder %v23441_v61, %v21721_v22 }
 0x966   :  { %27046 = vst [vmem:[#allocation120_spill] sm:$0xff] %v23627_v17  ;;  %27047 = vst [vmem:[#allocation121_spill] sm:$0xff] %v23629_v27  ;;  %19256 = vmatpush1.bf16.msra.mxu1 %v23627_v17  ;;  %v8733_v52 = vadd.f32 %v8669_v20, %v8379_v35  ;;  %v17312_v60 = vsel %vm8815_vm10, 1.0, %v26759_v30  ;;  %v9023_v2 = vmul.f32 %v17310_v12, %v21730_v1  ;;  %v17378_v13 = vsel %vm10458_vm0, 1.0, %v26759_v30 }
 0x967   :  { %vm10460_vm12 = vcmp.eq.s32.totalorder %v23599_v55, %v21721_v22  ;;  %v8735_v56 = vadd.f32 %v8671_v40, %v8381_v48  ;;  %v9025_v51 = vmul.f32 %v17312_v60, %v21730_v1  ;;  %v10669_v46 = vmul.f32 %v17378_v13, %v21727_v3 }
 0x968   :  { %v17380_v42 = vsel %vm10460_vm12, 1.0, %v26759_v30  ;;  %v9087_v0 = vadd.f32 %v9023_v2, %v8733_v52  ;;  %vm10749_vm13 = vcmp.eq.s32.totalorder %v23441_v61, %v26909_v53  ;;  %vm10751_vm14 = vcmp.eq.s32.totalorder %v23599_v55, %v26909_v53 }
 0x969   :  { %v10671_v17 = vmul.f32 %v17380_v42, %v21727_v3  ;;  %v9089_v35 = vadd.f32 %v9025_v51, %v8735_v56  ;;  %v17442_v40 = vsel %vm10749_vm13, 1.0, %v26759_v30  ;;  %vm11103_vm7 = vcmp.eq.s32.totalorder %v23441_v61, %v21748_v37 }
 0x96a   :  { %v9190_v48 = vand.u32 4294901760, %v9087_v0  ;;  %v17444_v20 = vsel %vm10751_vm14, 1.0, %v26759_v30  ;;  %v10959_v12 = vmul.f32 %v17442_v40, %v21742_v16  ;;  %vm11105_vm8 = vcmp.eq.s32.totalorder %v23599_v55, %v21748_v37 }
 0x96b   :  { %v9194_v52 = vand.u32 4294901760, %v9089_v35  ;;  %v10961_v60 = vmul.f32 %v17444_v20, %v21742_v16  ;;  %v17506_v2 = vsel %vm11103_vm7, 1.0, %v26759_v30  ;;  %v17508_v56 = vsel %vm11105_vm8, 1.0, %v26759_v30 }
 0x96c   :  { %v23663_v51 = vsub.f32 %v9087_v0, %v9190_v48  ;;  %v11023_v13 = vadd.f32 %v10959_v12, %v10669_v46  ;;  %v11313_v42 = vmul.f32 %v17506_v2, %v21754_v59  ;;  %v11315_v27 = vmul.f32 %v17508_v56, %v21754_v59 }
 0x96d   :  { %v23667_v49 = vpack.c.bf16 %v9194_v52, %v9190_v48  ;;  %v23669_v40 = vsub.f32 %v9089_v35, %v9194_v52  ;;  %v11025_v50 = vadd.f32 %v10961_v60, %v10671_v17  ;;  %vm11457_vm1 = vcmp.eq.s32.totalorder %v23441_v61, %v21760_v47 }
 0x96e   :  { %27048 = vst [vmem:[#allocation122_spill] sm:$0xff] %v23663_v51  ;;  %v11377_v20 = vadd.f32 %v11313_v42, %v11023_v13  ;;  %vm11459_vm11 = vcmp.eq.s32.totalorder %v23599_v55, %v21760_v47  ;;  %v17570_v0 = vsel %vm11457_vm1, 1.0, %v26759_v30  ;;  %vm7813_vm5 = vcmp.eq.s32.totalorder %v23441_v61, %v21610_v57 }
 0x96f   :  { %27049 = vst [vmem:[#allocation123_spill] sm:$0xff] %v23667_v49  ;;  %27050 = vst [vmem:[#allocation124_spill] sm:$0xff] %v23669_v40  ;;  %18874 = vmatprep.subr.bf16.mxu0 %v23667_v49  ;;  %v11379_v46 = vadd.f32 %v11315_v27, %v11025_v50  ;;  %v17572_v48 = vsel %vm11459_vm11, 1.0, %v26759_v30  ;;  %v11667_v35 = vmul.f32 %v17570_v0, %v21763_v28  ;;  %v17117_v12 = vsel %vm7813_vm5, 1.0, %v26759_v30 }
 0x970   :  { %vm7815_vm9 = vcmp.eq.s32.totalorder %v23599_v55, %v21610_v57  ;;  %v11669_v17 = vmul.f32 %v17572_v48, %v21763_v28  ;;  %vm8104_vm2 = vcmp.eq.s32.totalorder %v23441_v61, %v21644_v25  ;;  %v8024_v2 = vmul.f32 %v17117_v12, %v21633_v21 }
 0x971   :  { %v17119_v52 = vsel %vm7815_vm9, 1.0, %v26759_v30  ;;  %v11731_v60 = vadd.f32 %v11667_v35, %v11377_v20  ;;  %vm8106_vm15 = vcmp.eq.s32.totalorder %v23599_v55, %v21644_v25  ;;  %v17181_v56 = vsel %vm8104_vm2, 1.0, %v26759_v30 }
 0x972   :  { %v8026_v50 = vmul.f32 %v17119_v52, %v21633_v21  ;;  %v11733_v27 = vadd.f32 %v11669_v17, %v11379_v46  ;;  %v17183_v13 = vsel %vm8106_vm15, 1.0, %v26759_v30  ;;  %vm8458_vm6 = vcmp.eq.s32.totalorder %v23441_v61, %v21662_v11 }
 0x973   :  { %v11834_v42 = vand.u32 4294901760, %v11731_v60  ;;  %v8314_v0 = vmul.f32 %v17181_v56, %v21650_v33  ;;  %v8316_v20 = vmul.f32 %v17183_v13, %v21650_v33  ;;  %vm8460_vm4 = vcmp.eq.s32.totalorder %v23599_v55, %v21662_v11 }
 0x974   :  { %v11838_v48 = vand.u32 4294901760, %v11733_v27  ;;  %v17245_v35 = vsel %vm8458_vm6, 1.0, %v26759_v30  ;;  %v17247_v46 = vsel %vm8460_vm4, 1.0, %v26759_v30  ;;  %vm8812_vm10 = vcmp.eq.s32.totalorder %v23441_v61, %v21683_v7 }
 0x975   :  { %v23704_v17 = vsub.f32 %v11731_v60, %v11834_v42  ;;  %v8378_v12 = vadd.f32 %v8314_v0, %v8024_v2  ;;  %v8380_v52 = vadd.f32 %v8316_v20, %v8026_v50  ;;  %v8668_v49 = vmul.f32 %v17245_v35, %v21671_v24 }
 0x976   :  { %v23707_v56 = vpack.c.bf16 %v11838_v48, %v11834_v42  ;;  %v23709_v13 = vsub.f32 %v11733_v27, %v11838_v48  ;;  %v8670_v40 = vmul.f32 %v17247_v46, %v21671_v24  ;;  %vm8814_vm0 = vcmp.eq.s32.totalorder %v23599_v55, %v21683_v7 }
 0x977   :  { %27051 = vst [vmem:[#allocation125_spill] sm:$0xff] %v23704_v17  ;;  %v8732_v51 = vadd.f32 %v8668_v49, %v8378_v12  ;;  %v17309_v38 = vsel %vm8812_vm10, 1.0, %v26759_v30  ;;  %v17311_v36 = vsel %vm8814_vm0, 1.0, %v26759_v30  ;;  %vm10457_vm12 = vcmp.eq.s32.totalorder %v23441_v61, %v21702_v8 }
 0x978   :  { %27052 = vst [vmem:[#allocation126_spill] sm:$0xff] %v23707_v56  ;;  %27053 = vst [vmem:[#allocation127_spill] sm:$0xff] %v23709_v13  ;;  %19258 = vmatprep.subr.bf16.mxu1 %v23707_v56  ;;  %v8734_v60 = vadd.f32 %v8670_v40, %v8380_v52  ;;  %v9022_v2 = vmul.f32 %v17309_v38, %v21699_v31  ;;  %v9024_v50 = vmul.f32 %v17311_v36, %v21699_v31 }
 0x979   :  { %vm10459_vm13 = vcmp.eq.s32.totalorder %v23599_v55, %v21702_v8  ;;  %v17377_v27 = vsel %vm10457_vm12, 1.0, %v26759_v30  ;;  %vm10748_vm14 = vcmp.eq.s32.totalorder %v23441_v61, %v26956_v43  ;;  %vm10750_vm7 = vcmp.eq.s32.totalorder %v23599_v55, %v26956_v43 }
 0x97a   :  { %v17379_v49 = vsel %vm10459_vm13, 1.0, %v26759_v30  ;;  %v9086_v42 = vadd.f32 %v9022_v2, %v8732_v51  ;;  %v9088_v0 = vadd.f32 %v9024_v50, %v8734_v60  ;;  %v10668_v40 = vmul.f32 %v17377_v27, %v21724_v32 }
 0x97b   :  { %v10670_v38 = vmul.f32 %v17379_v49, %v21724_v32  ;;  %v17441_v36 = vsel %vm10748_vm14, 1.0, %v26759_v30  ;;  %v17443_v20 = vsel %vm10750_vm7, 1.0, %v26759_v30  ;;  %vm11102_vm8 = vcmp.eq.s32.totalorder %v23441_v61, %v26958_v4 }
 0x97c   :  { %vm11104_vm1 = vcmp.eq.s32.totalorder %v23599_v55, %v26958_v4  ;;  %v9192_v48 = vand.u32 4294901760, %v9086_v42  ;;  %v9196_v35 = vand.u32 4294901760, %v9088_v0  ;;  %v10958_v46 = vmul.f32 %v17441_v36, %v26957_v10 }
 0x97d   :  { %v10960_v51 = vmul.f32 %v17443_v20, %v26957_v10  ;;  %v17505_v12 = vsel %vm11102_vm8, 1.0, %v26759_v30  ;;  %v17507_v52 = vsel %vm11104_vm1, 1.0, %v26759_v30  ;;  %vm11456_vm11 = vcmp.eq.s32.totalorder %v23441_v61, %v21757_v9 }
 0x97e   :  { %vm11458_vm5 = vcmp.eq.s32.totalorder %v23599_v55, %v21757_v9  ;;  %v23745_v60 = vpack.c.bf16 %v9196_v35, %v9192_v48  ;;  %v23747_v2 = vsub.f32 %v9086_v42, %v9192_v48  ;;  %v23749_v50 = vsub.f32 %v9088_v0, %v9196_v35 }
 0x97f   :  { %v11022_v27 = vadd.f32 %v10958_v46, %v10668_v40  ;;  %v11024_v49 = vadd.f32 %v10960_v51, %v10670_v38  ;;  %v11312_v36 = vmul.f32 %v17505_v12, %v21751_v26  ;;  %v11314_v20 = vmul.f32 %v17507_v52, %v21751_v26 }
 0x980   :  { %27054 = vst [vmem:[#allocation128_spill] sm:$0xff] %v23745_v60  ;;  %27055 = vst [vmem:[#allocation129_spill] sm:$0xff] %v23747_v2  ;;  %v17569_v56 = vsel %vm11456_vm11, 1.0, %v26759_v30  ;;  %18876 = vmatpush1.bf16.msra.mxu0 %v23745_v60  ;;  %v17571_v61 = vsel %vm11458_vm5, 1.0, %v26759_v30  ;;  %v23758_v13 = vadd.s32 176, %v26926_v62  ;;  %v23761_v42 = vadd.s32 184, %v26926_v62 }
 0x981   :  { %27056 = vst [vmem:[#allocation130_spill] sm:$0xff] %v23749_v50  ;;  %v11666_v55 = vmul.f32 %v17569_v56, %v21884_v29  ;;  %v11376_v0 = vadd.f32 %v11312_v36, %v11022_v27  ;;  %v11378_v40 = vadd.f32 %v11314_v20, %v11024_v49  ;;  %v11668_v38 = vmul.f32 %v17571_v61, %v21884_v29 }
 0x982   :  { %v23765_v48 = vadd.s32 192, %v26926_v62  ;;  %vm7818_vm9 = vcmp.eq.s32.totalorder %v23758_v13, %v21613_v19  ;;  %vm7820_vm2 = vcmp.eq.s32.totalorder %v23761_v42, %v21613_v19  ;;  %vm8109_vm15 = vcmp.eq.s32.totalorder %v23758_v13, %v21647_v34 }
 0x983   :  { %vm8111_vm6 = vcmp.eq.s32.totalorder %v23761_v42, %v21647_v34  ;;  %v11730_v56 = vadd.f32 %v11666_v55, %v11376_v0  ;;  %v11732_v35 = vadd.f32 %v11668_v38, %v11378_v40  ;;  %v17122_v46 = vsel %vm7818_vm9, 1.0, %v26759_v30 }
 0x984   :  { %v17124_v51 = vsel %vm7820_vm2, 1.0, %v26759_v30  ;;  %v8029_v12 = vmul.f32 %v17122_v46, %v21636_v41  ;;  %v17186_v27 = vsel %vm8109_vm15, 1.0, %v26759_v30  ;;  %v17188_v49 = vsel %vm8111_vm6, 1.0, %v26759_v30 }
 0x985   :  { %v8031_v52 = vmul.f32 %v17124_v51, %v21636_v41  ;;  %v11836_v36 = vand.u32 4294901760, %v11730_v56  ;;  %v11840_v20 = vand.u32 4294901760, %v11732_v35  ;;  %v8319_v61 = vmul.f32 %v17186_v27, %v26972_v6 }
 0x986   :  { %v8321_v60 = vmul.f32 %v17188_v49, %v26972_v6  ;;  %vm8463_vm4 = vcmp.eq.s32.totalorder %v23758_v13, %v26901_v14  ;;  %vm8465_vm10 = vcmp.eq.s32.totalorder %v23761_v42, %v26901_v14  ;;  %vm8817_vm0 = vcmp.eq.s32.totalorder %v23758_v13, %v21718_v45 }
 0x987   :  { %vm8819_vm12 = vcmp.eq.s32.totalorder %v23761_v42, %v21718_v45  ;;  %v23791_v55 = vpack.c.bf16 %v11840_v20, %v11836_v36  ;;  %v23793_v0 = vsub.f32 %v11730_v56, %v11836_v36  ;;  %v23795_v40 = vsub.f32 %v11732_v35, %v11840_v20 }
 0x988   :  { %v8383_v38 = vadd.f32 %v8319_v61, %v8029_v12  ;;  %v8385_v46 = vadd.f32 %v8321_v60, %v8031_v52  ;;  %v17250_v51 = vsel %vm8463_vm4, 1.0, %v26759_v30  ;;  %v17252_v27 = vsel %vm8465_vm10, 1.0, %v26759_v30 }
 0x989   :  { %27057 = vst [vmem:[#allocation131_spill] sm:$0xff] %v23791_v55  ;;  %27058 = vst [vmem:[#allocation132_spill] sm:$0xff] %v23793_v0  ;;  %v17314_v49 = vsel %vm8817_vm0, 1.0, %v26759_v30  ;;  %19260 = vmatpush1.bf16.msra.mxu1 %v23791_v55  ;;  %v8673_v50 = vmul.f32 %v17250_v51, %v21674_v44  ;;  %v8675_v2 = vmul.f32 %v17252_v27, %v21674_v44  ;;  %v17316_v17 = vsel %vm8819_vm12, 1.0, %v26759_v30 }
 0x98a   :  { %27059 = vst [vmem:[#allocation133_spill] sm:$0xff] %v23795_v40  ;;  %v9027_v56 = vmul.f32 %v17314_v49, %v21730_v1  ;;  %v9029_v35 = vmul.f32 %v17316_v17, %v21730_v1  ;;  %vm10462_vm13 = vcmp.eq.s32.totalorder %v23758_v13, %v21721_v22  ;;  %vm10464_vm14 = vcmp.eq.s32.totalorder %v23761_v42, %v21721_v22 }
 0x98b   :  { %vm10753_vm7 = vcmp.eq.s32.totalorder %v23758_v13, %v26909_v53  ;;  %v8737_v60 = vadd.f32 %v8673_v50, %v8383_v38  ;;  %v8739_v12 = vadd.f32 %v8675_v2, %v8385_v46  ;;  %v17382_v52 = vsel %vm10462_vm13, 1.0, %v26759_v30 }
 0x98c   :  { %v17384_v36 = vsel %vm10464_vm14, 1.0, %v26759_v30  ;;  %v10673_v20 = vmul.f32 %v17382_v52, %v21727_v3  ;;  %vm10755_vm8 = vcmp.eq.s32.totalorder %v23761_v42, %v26909_v53  ;;  %v17446_v17 = vsel %vm10753_vm7, 1.0, %v26759_v30 }
 0x98d   :  { %v10675_v61 = vmul.f32 %v17384_v36, %v21727_v3  ;;  %v9091_v51 = vadd.f32 %v9027_v56, %v8737_v60  ;;  %v9093_v27 = vadd.f32 %v9029_v35, %v8739_v12  ;;  %v17448_v49 = vsel %vm10755_vm8, 1.0, %v26759_v30 }
 0x98e   :  { %v10963_v50 = vmul.f32 %v17446_v17, %v21742_v16  ;;  %v10965_v2 = vmul.f32 %v17448_v49, %v21742_v16  ;;  %vm11107_vm1 = vcmp.eq.s32.totalorder %v23758_v13, %v21748_v37  ;;  %vm11109_vm11 = vcmp.eq.s32.totalorder %v23761_v42, %v21748_v37 }
 0x98f   :  { %vm11461_vm5 = vcmp.eq.s32.totalorder %v23758_v13, %v21760_v47  ;;  %v9198_v38 = vand.u32 4294901760, %v9091_v51  ;;  %v9202_v46 = vand.u32 4294901760, %v9093_v27  ;;  %v17510_v56 = vsel %vm11107_vm1, 1.0, %v26759_v30 }
 0x990   :  { %v11027_v52 = vadd.f32 %v10963_v50, %v10673_v20  ;;  %v11029_v35 = vadd.f32 %v10965_v2, %v10675_v61  ;;  %v17512_v60 = vsel %vm11109_vm11, 1.0, %v26759_v30  ;;  %v11317_v12 = vmul.f32 %v17510_v56, %v21754_v59 }
 0x991   :  { %vm11463_vm9 = vcmp.eq.s32.totalorder %v23761_v42, %v21760_v47  ;;  %v23833_v36 = vpack.c.bf16 %v9202_v46, %v9198_v38  ;;  %v23835_v17 = vsub.f32 %v9091_v51, %v9198_v38  ;;  %v23837_v49 = vsub.f32 %v9093_v27, %v9202_v46 }
 0x992   :  { %v11319_v55 = vmul.f32 %v17512_v60, %v21754_v59  ;;  %v11381_v40 = vadd.f32 %v11317_v12, %v11027_v52  ;;  %v17574_v20 = vsel %vm11461_vm5, 1.0, %v26759_v30  ;;  %v17576_v61 = vsel %vm11463_vm9, 1.0, %v26759_v30 }
 0x993   :  { %27060 = vst [vmem:[#allocation134_spill] sm:$0xff] %v23833_v36  ;;  %27061 = vst [vmem:[#allocation135_spill] sm:$0xff] %v23835_v17  ;;  %vm7817_vm2 = vcmp.eq.s32.totalorder %v23758_v13, %v21610_v57  ;;  %18878 = vmatprep.subr.bf16.mxu0 %v23833_v36  ;;  %v11671_v2 = vmul.f32 %v17574_v20, %v21763_v28  ;;  %v11673_v51 = vmul.f32 %v17576_v61, %v21763_v28 }
 0x994   :  { %27062 = vst [vmem:[#allocation136_spill] sm:$0xff] %v23837_v49  ;;  %v11383_v50 = vadd.f32 %v11319_v55, %v11029_v35  ;;  %vm7819_vm15 = vcmp.eq.s32.totalorder %v23761_v42, %v21610_v57  ;;  %v17121_v27 = vsel %vm7817_vm2, 1.0, %v26759_v30  ;;  %vm8108_vm6 = vcmp.eq.s32.totalorder %v23758_v13, %v21644_v25 }
 0x995   :  { %v17123_v38 = vsel %vm7819_vm15, 1.0, %v26759_v30  ;;  %vm8110_vm4 = vcmp.eq.s32.totalorder %v23761_v42, %v21644_v25  ;;  %v11735_v46 = vadd.f32 %v11671_v2, %v11381_v40  ;;  %v8028_v55 = vmul.f32 %v17121_v27, %v21633_v21 }
 0x996   :  { %v11737_v52 = vadd.f32 %v11673_v51, %v11383_v50  ;;  %v8030_v56 = vmul.f32 %v17123_v38, %v21633_v21  ;;  %v17185_v35 = vsel %vm8108_vm6, 1.0, %v26759_v30  ;;  %v17187_v60 = vsel %vm8110_vm4, 1.0, %v26759_v30 }
 0x997   :  { %vm8462_vm10 = vcmp.eq.s32.totalorder %v23758_v13, %v21662_v11  ;;  %vm8464_vm0 = vcmp.eq.s32.totalorder %v23761_v42, %v21662_v11  ;;  %v11842_v12 = vand.u32 4294901760, %v11735_v46  ;;  %v8318_v61 = vmul.f32 %v17185_v35, %v21650_v33 }
 0x998   :  { %v11846_v20 = vand.u32 4294901760, %v11737_v52  ;;  %v8320_v40 = vmul.f32 %v17187_v60, %v21650_v33  ;;  %v17249_v50 = vsel %vm8462_vm10, 1.0, %v26759_v30  ;;  %v17251_v2 = vsel %vm8464_vm0, 1.0, %v26759_v30 }
 0x999   :  { %vm8816_vm12 = vcmp.eq.s32.totalorder %v23758_v13, %v21683_v7  ;;  %vm8818_vm13 = vcmp.eq.s32.totalorder %v23761_v42, %v21683_v7  ;;  %v23873_v27 = vsub.f32 %v11735_v46, %v11842_v12  ;;  %v8382_v36 = vadd.f32 %v8318_v61, %v8028_v55 }
 0x99a   :  { %v23871_v51 = vpack.c.bf16 %v11846_v20, %v11842_v12  ;;  %v23875_v38 = vsub.f32 %v11737_v52, %v11846_v20  ;;  %v8384_v35 = vadd.f32 %v8320_v40, %v8030_v56  ;;  %v8672_v60 = vmul.f32 %v17249_v50, %v21671_v24 }
 0x99b   :  { %27064 = vst [vmem:[#allocation138_spill] sm:$0xff] %v23873_v27  ;;  %v8674_v49 = vmul.f32 %v17251_v2, %v21671_v24  ;;  %v17313_v17 = vsel %vm8816_vm12, 1.0, %v26759_v30  ;;  %v17315_v0 = vsel %vm8818_vm13, 1.0, %v26759_v30  ;;  %vm10461_vm14 = vcmp.eq.s32.totalorder %v23758_v13, %v21702_v8 }
 0x99c   :  { %27063 = vst [vmem:[#allocation137_spill] sm:$0xff] %v23871_v51  ;;  %27065 = vst [vmem:[#allocation139_spill] sm:$0xff] %v23875_v38  ;;  %19262 = vmatprep.subr.bf16.mxu1 %v23871_v51  ;;  %v9026_v58 = vmul.f32 %v17313_v17, %v21699_v31  ;;  %vm10463_vm7 = vcmp.eq.s32.totalorder %v23761_v42, %v21702_v8  ;;  %v8736_v46 = vadd.f32 %v8672_v60, %v8382_v36 }
 0x99d   :  { %v8738_v52 = vadd.f32 %v8674_v49, %v8384_v35  ;;  %v9028_v55 = vmul.f32 %v17315_v0, %v21699_v31  ;;  %v17381_v56 = vsel %vm10461_vm14, 1.0, %v26759_v30  ;;  %v17383_v12 = vsel %vm10463_vm7, 1.0, %v26759_v30 }
 0x99e   :  { %v10672_v20 = vmul.f32 %v17381_v56, %v21724_v32  ;;  %vm10752_vm8 = vcmp.eq.s32.totalorder %v23758_v13, %v26956_v43  ;;  %vm10754_vm1 = vcmp.eq.s32.totalorder %v23761_v42, %v26956_v43  ;;  %v9090_v17 = vadd.f32 %v9026_v58, %v8736_v46 }
 0x99f   :  { %v9092_v61 = vadd.f32 %v9028_v55, %v8738_v52  ;;  %v10674_v40 = vmul.f32 %v17383_v12, %v21724_v32  ;;  %v17445_v36 = vsel %vm10752_vm8, 1.0, %v26759_v30  ;;  %v17447_v0 = vsel %vm10754_vm1, 1.0, %v26759_v30 }
 0x9a0   :  { %v10962_v49 = vmul.f32 %v17445_v36, %v26957_v10  ;;  %vm11106_vm11 = vcmp.eq.s32.totalorder %v23758_v13, %v26958_v4  ;;  %vm11108_vm5 = vcmp.eq.s32.totalorder %v23761_v42, %v26958_v4  ;;  %v9200_v50 = vand.u32 4294901760, %v9090_v17 }
 0x9a1   :  { %v9204_v2 = vand.u32 4294901760, %v9092_v61  ;;  %v10964_v35 = vmul.f32 %v17447_v0, %v26957_v10  ;;  %v17509_v58 = vsel %vm11106_vm11, 1.0, %v26759_v30  ;;  %v17511_v46 = vsel %vm11108_vm5, 1.0, %v26759_v30 }
 0x9a2   :  { %v11026_v60 = vadd.f32 %v10962_v49, %v10672_v20  ;;  %v11316_v52 = vmul.f32 %v17509_v58, %v21751_v26  ;;  %vm11460_vm9 = vcmp.eq.s32.totalorder %v23758_v13, %v21757_v9  ;;  %v23911_v56 = vsub.f32 %v9090_v17, %v9200_v50 }
 0x9a3   :  { %v23909_v55 = vpack.c.bf16 %v9204_v2, %v9200_v50  ;;  %v23913_v12 = vsub.f32 %v9092_v61, %v9204_v2  ;;  %v11028_v36 = vadd.f32 %v10964_v35, %v10674_v40  ;;  %v11318_v51 = vmul.f32 %v17511_v46, %v21751_v26 }
 0x9a4   :  { %27067 = vst [vmem:[#allocation141_spill] sm:$0xff] %v23911_v56  ;;  %v11380_v0 = vadd.f32 %v11316_v52, %v11026_v60  ;;  %vm11462_vm2 = vcmp.eq.s32.totalorder %v23761_v42, %v21757_v9  ;;  %v17573_v20 = vsel %vm11460_vm9, 1.0, %v26759_v30  ;;  %v23923_v17 = vadd.s32 200, %v26926_v62 }
 0x9a5   :  { %27066 = vst [vmem:[#allocation140_spill] sm:$0xff] %v23909_v55  ;;  %27068 = vst [vmem:[#allocation142_spill] sm:$0xff] %v23913_v12  ;;  %18880 = vmatpush1.bf16.msra.mxu0 %v23909_v55  ;;  %v17575_v49 = vsel %vm11462_vm2, 1.0, %v26759_v30  ;;  %v11670_v13 = vmul.f32 %v17573_v20, %v21884_v29  ;;  %vm7822_vm15 = vcmp.eq.s32.totalorder %v23765_v48, %v21613_v19 }
 0x9a6   :  { %v11382_v61 = vadd.f32 %v11318_v51, %v11028_v36  ;;  %v11672_v40 = vmul.f32 %v17575_v49, %v21884_v29  ;;  %v17126_v50 = vsel %vm7822_vm15, 1.0, %v26759_v30  ;;  %vm8113_vm6 = vcmp.eq.s32.totalorder %v23765_v48, %v21647_v34 }
 0x9a7   :  { %v11734_v42 = vadd.f32 %v11670_v13, %v11380_v0  ;;  %vm7824_vm4 = vcmp.eq.s32.totalorder %v23923_v17, %v21613_v19  ;;  %v8033_v2 = vmul.f32 %v17126_v50, %v21636_v41  ;;  %vm8115_vm10 = vcmp.eq.s32.totalorder %v23923_v17, %v21647_v34 }
 0x9a8   :  { %v11736_v35 = vadd.f32 %v11672_v40, %v11382_v61  ;;  %v17128_v58 = vsel %vm7824_vm4, 1.0, %v26759_v30  ;;  %v17190_v51 = vsel %vm8113_vm6, 1.0, %v26759_v30  ;;  %v17192_v60 = vsel %vm8115_vm10, 1.0, %v26759_v30 }
 0x9a9   :  { %v11844_v46 = vand.u32 4294901760, %v11734_v42  ;;  %v8035_v52 = vmul.f32 %v17128_v58, %v21636_v41  ;;  %v8323_v36 = vmul.f32 %v17190_v51, %v26972_v6  ;;  %v8325_v0 = vmul.f32 %v17192_v60, %v26972_v6 }
 0x9aa   :  { %v11848_v20 = vand.u32 4294901760, %v11736_v35  ;;  %vm8467_vm0 = vcmp.eq.s32.totalorder %v23765_v48, %v26901_v14  ;;  %vm8469_vm12 = vcmp.eq.s32.totalorder %v23923_v17, %v26901_v14  ;;  %vm8821_vm13 = vcmp.eq.s32.totalorder %v23765_v48, %v21718_v45 }
 0x9ab   :  { %v23948_v49 = vsub.f32 %v11734_v42, %v11844_v46  ;;  %v8387_v13 = vadd.f32 %v8323_v36, %v8033_v2  ;;  %v8389_v61 = vadd.f32 %v8325_v0, %v8035_v52  ;;  %v17254_v40 = vsel %vm8467_vm0, 1.0, %v26759_v30 }
 0x9ac   :  { %v23951_v50 = vpack.c.bf16 %v11848_v20, %v11844_v46  ;;  %v23953_v58 = vsub.f32 %v11736_v35, %v11848_v20  ;;  %v17256_v51 = vsel %vm8469_vm12, 1.0, %v26759_v30  ;;  %v8677_v60 = vmul.f32 %v17254_v40, %v21674_v44 }
 0x9ad   :  { %27069 = vst [vmem:[#allocation143_spill] sm:$0xff] %v23948_v49  ;;  %v8679_v55 = vmul.f32 %v17256_v51, %v21674_v44  ;;  %vm8823_vm14 = vcmp.eq.s32.totalorder %v23923_v17, %v21718_v45  ;;  %v17318_v42 = vsel %vm8821_vm13, 1.0, %v26759_v30  ;;  %vm10466_vm7 = vcmp.eq.s32.totalorder %v23765_v48, %v21721_v22 }
 0x9ae   :  { %27070 = vst [vmem:[#allocation144_spill] sm:$0xff] %v23951_v50  ;;  %27071 = vst [vmem:[#allocation145_spill] sm:$0xff] %v23953_v58  ;;  %19264 = vmatpush1.bf16.msra.mxu1 %v23951_v50  ;;  %v8741_v2 = vadd.f32 %v8677_v60, %v8387_v13  ;;  %v17320_v35 = vsel %vm8823_vm14, 1.0, %v26759_v30  ;;  %v9031_v46 = vmul.f32 %v17318_v42, %v21730_v1  ;;  %v17386_v0 = vsel %vm10466_vm7, 1.0, %v26759_v30 }
 0x9af   :  { %vm10468_vm8 = vcmp.eq.s32.totalorder %v23923_v17, %v21721_v22  ;;  %v8743_v52 = vadd.f32 %v8679_v55, %v8389_v61  ;;  %v9033_v36 = vmul.f32 %v17320_v35, %v21730_v1  ;;  %v10677_v51 = vmul.f32 %v17386_v0, %v21727_v3 }
 0x9b0   :  { %v17388_v20 = vsel %vm10468_vm8, 1.0, %v26759_v30  ;;  %v9095_v40 = vadd.f32 %v9031_v46, %v8741_v2  ;;  %vm10757_vm1 = vcmp.eq.s32.totalorder %v23765_v48, %v26909_v53  ;;  %vm10759_vm11 = vcmp.eq.s32.totalorder %v23923_v17, %v26909_v53 }
 0x9b1   :  { %v10679_v50 = vmul.f32 %v17388_v20, %v21727_v3  ;;  %v9097_v13 = vadd.f32 %v9033_v36, %v8743_v52  ;;  %v17450_v55 = vsel %vm10757_vm1, 1.0, %v26759_v30  ;;  %vm11111_vm5 = vcmp.eq.s32.totalorder %v23765_v48, %v21748_v37 }
 0x9b2   :  { %v9206_v61 = vand.u32 4294901760, %v9095_v40  ;;  %v17452_v60 = vsel %vm10759_vm11, 1.0, %v26759_v30  ;;  %v10967_v42 = vmul.f32 %v17450_v55, %v21742_v16  ;;  %vm11113_vm9 = vcmp.eq.s32.totalorder %v23923_v17, %v21748_v37 }
 0x9b3   :  { %v9210_v2 = vand.u32 4294901760, %v9097_v13  ;;  %v10969_v35 = vmul.f32 %v17452_v60, %v21742_v16  ;;  %v17514_v46 = vsel %vm11111_vm5, 1.0, %v26759_v30  ;;  %v17516_v52 = vsel %vm11113_vm9, 1.0, %v26759_v30 }
 0x9b4   :  { %v23987_v36 = vsub.f32 %v9095_v40, %v9206_v61  ;;  %v11031_v0 = vadd.f32 %v10967_v42, %v10677_v51  ;;  %v11321_v20 = vmul.f32 %v17514_v46, %v21754_v59  ;;  %v11323_v58 = vmul.f32 %v17516_v52, %v21754_v59 }
 0x9b5   :  { %v23991_v49 = vpack.c.bf16 %v9210_v2, %v9206_v61  ;;  %v23993_v55 = vsub.f32 %v9097_v13, %v9210_v2  ;;  %v11033_v12 = vadd.f32 %v10969_v35, %v10679_v50  ;;  %vm11465_vm2 = vcmp.eq.s32.totalorder %v23765_v48, %v21760_v47 }
 0x9b6   :  { %27072 = vst [vmem:[#allocation146_spill] sm:$0xff] %v23987_v36  ;;  %v11385_v60 = vadd.f32 %v11321_v20, %v11031_v0  ;;  %vm11467_vm15 = vcmp.eq.s32.totalorder %v23923_v17, %v21760_v47  ;;  %v17578_v40 = vsel %vm11465_vm2, 1.0, %v26759_v30  ;;  %vm7821_vm6 = vcmp.eq.s32.totalorder %v23765_v48, %v21610_v57 }
 0x9b7   :  { %27073 = vst [vmem:[#allocation147_spill] sm:$0xff] %v23991_v49  ;;  %27074 = vst [vmem:[#allocation148_spill] sm:$0xff] %v23993_v55  ;;  %18882 = vmatprep.subr.bf16.mxu0 %v23991_v49  ;;  %v11387_v51 = vadd.f32 %v11323_v58, %v11033_v12  ;;  %v17580_v61 = vsel %vm11467_vm15, 1.0, %v26759_v30  ;;  %v11675_v13 = vmul.f32 %v17578_v40, %v21763_v28  ;;  %v17125_v42 = vsel %vm7821_vm6, 1.0, %v26759_v30 }
 0x9b8   :  { %vm7823_vm4 = vcmp.eq.s32.totalorder %v23923_v17, %v21610_v57  ;;  %v11677_v50 = vmul.f32 %v17580_v61, %v21763_v28  ;;  %vm8112_vm10 = vcmp.eq.s32.totalorder %v23765_v48, %v21644_v25  ;;  %v8032_v46 = vmul.f32 %v17125_v42, %v21633_v21 }
 0x9b9   :  { %v17127_v2 = vsel %vm7823_vm4, 1.0, %v26759_v30  ;;  %v11739_v35 = vadd.f32 %v11675_v13, %v11385_v60  ;;  %vm8114_vm0 = vcmp.eq.s32.totalorder %v23923_v17, %v21644_v25  ;;  %v17189_v52 = vsel %vm8112_vm10, 1.0, %v26759_v30 }
 0x9ba   :  { %v8034_v12 = vmul.f32 %v17127_v2, %v21633_v21  ;;  %v11741_v58 = vadd.f32 %v11677_v50, %v11387_v51  ;;  %v17191_v0 = vsel %vm8114_vm0, 1.0, %v26759_v30  ;;  %vm8466_vm12 = vcmp.eq.s32.totalorder %v23765_v48, %v21662_v11 }
 0x9bb   :  { %v11850_v20 = vand.u32 4294901760, %v11739_v35  ;;  %v8322_v40 = vmul.f32 %v17189_v52, %v21650_v33  ;;  %v8324_v60 = vmul.f32 %v17191_v0, %v21650_v33  ;;  %vm8468_vm13 = vcmp.eq.s32.totalorder %v23923_v17, %v21662_v11 }
 0x9bc   :  { %v11854_v61 = vand.u32 4294901760, %v11741_v58  ;;  %v17253_v13 = vsel %vm8466_vm12, 1.0, %v26759_v30  ;;  %v17255_v51 = vsel %vm8468_vm13, 1.0, %v26759_v30  ;;  %vm8820_vm14 = vcmp.eq.s32.totalorder %v23765_v48, %v21683_v7 }
 0x9bd   :  { %v24028_v50 = vsub.f32 %v11739_v35, %v11850_v20  ;;  %v8386_v42 = vadd.f32 %v8322_v40, %v8032_v46  ;;  %v8388_v2 = vadd.f32 %v8324_v60, %v8034_v12  ;;  %v8676_v49 = vmul.f32 %v17253_v13, %v21671_v24 }
 0x9be   :  { %v24031_v52 = vpack.c.bf16 %v11854_v61, %v11850_v20  ;;  %v24033_v0 = vsub.f32 %v11741_v58, %v11854_v61  ;;  %v8678_v55 = vmul.f32 %v17255_v51, %v21671_v24  ;;  %vm8822_vm7 = vcmp.eq.s32.totalorder %v23923_v17, %v21683_v7 }
 0x9bf   :  { %27075 = vst [vmem:[#allocation149_spill] sm:$0xff] %v24028_v50  ;;  %v8740_v36 = vadd.f32 %v8676_v49, %v8386_v42  ;;  %v17317_v56 = vsel %vm8820_vm14, 1.0, %v26759_v30  ;;  %v17319_v38 = vsel %vm8822_vm7, 1.0, %v26759_v30  ;;  %vm10465_vm8 = vcmp.eq.s32.totalorder %v23765_v48, %v21702_v8 }
 0x9c0   :  { %27076 = vst [vmem:[#allocation150_spill] sm:$0xff] %v24031_v52  ;;  %27077 = vst [vmem:[#allocation151_spill] sm:$0xff] %v24033_v0  ;;  %19266 = vmatprep.subr.bf16.mxu1 %v24031_v52  ;;  %v8742_v35 = vadd.f32 %v8678_v55, %v8388_v2  ;;  %v9030_v46 = vmul.f32 %v17317_v56, %v21699_v31  ;;  %v9032_v12 = vmul.f32 %v17319_v38, %v21699_v31 }
 0x9c1   :  { %vm10467_vm1 = vcmp.eq.s32.totalorder %v23923_v17, %v21702_v8  ;;  %v17385_v58 = vsel %vm10465_vm8, 1.0, %v26759_v30  ;;  %vm10756_vm11 = vcmp.eq.s32.totalorder %v23765_v48, %v26956_v43  ;;  %vm10758_vm5 = vcmp.eq.s32.totalorder %v23923_v17, %v26956_v43 }
 0x9c2   :  { %v17387_v49 = vsel %vm10467_vm1, 1.0, %v26759_v30  ;;  %v9094_v20 = vadd.f32 %v9030_v46, %v8740_v36  ;;  %v9096_v40 = vadd.f32 %v9032_v12, %v8742_v35  ;;  %v10676_v55 = vmul.f32 %v17385_v58, %v21724_v32 }
 0x9c3   :  { %v10678_v56 = vmul.f32 %v17387_v49, %v21724_v32  ;;  %v17449_v38 = vsel %vm10756_vm11, 1.0, %v26759_v30  ;;  %v17451_v60 = vsel %vm10758_vm5, 1.0, %v26759_v30  ;;  %vm11110_vm9 = vcmp.eq.s32.totalorder %v23765_v48, %v26958_v4 }
 0x9c4   :  { %vm11112_vm2 = vcmp.eq.s32.totalorder %v23923_v17, %v26958_v4  ;;  %v9208_v61 = vand.u32 4294901760, %v9094_v20  ;;  %v9212_v13 = vand.u32 4294901760, %v9096_v40  ;;  %v10966_v51 = vmul.f32 %v17449_v38, %v26957_v10 }
 0x9c5   :  { %v10968_v36 = vmul.f32 %v17451_v60, %v26957_v10  ;;  %v17513_v42 = vsel %vm11110_vm9, 1.0, %v26759_v30  ;;  %v17515_v2 = vsel %vm11112_vm2, 1.0, %v26759_v30  ;;  %vm11464_vm15 = vcmp.eq.s32.totalorder %v23765_v48, %v21757_v9 }
 0x9c6   :  { %vm11466_vm6 = vcmp.eq.s32.totalorder %v23923_v17, %v21757_v9  ;;  %v24069_v35 = vpack.c.bf16 %v9212_v13, %v9208_v61  ;;  %v24071_v46 = vsub.f32 %v9094_v20, %v9208_v61  ;;  %v24073_v12 = vsub.f32 %v9096_v40, %v9212_v13 }
 0x9c7   :  { %v11030_v58 = vadd.f32 %v10966_v51, %v10676_v55  ;;  %v11032_v49 = vadd.f32 %v10968_v36, %v10678_v56  ;;  %v11320_v38 = vmul.f32 %v17513_v42, %v21751_v26  ;;  %v11322_v60 = vmul.f32 %v17515_v2, %v21751_v26 }
 0x9c8   :  { %27078 = vst [vmem:[#allocation152_spill] sm:$0xff] %v24069_v35  ;;  %27079 = vst [vmem:[#allocation153_spill] sm:$0xff] %v24071_v46  ;;  %v17577_v52 = vsel %vm11464_vm15, 1.0, %v26759_v30  ;;  %18884 = vmatpush1.bf16.msra.mxu0 %v24069_v35  ;;  %v17579_v48 = vsel %vm11466_vm6, 1.0, %v26759_v30  ;;  %v24082_v0 = vadd.s32 208, %v26926_v62  ;;  %v24085_v20 = vadd.s32 216, %v26926_v62 }
 0x9c9   :  { %27080 = vst [vmem:[#allocation154_spill] sm:$0xff] %v24073_v12  ;;  %v11674_v17 = vmul.f32 %v17577_v52, %v21884_v29  ;;  %v11384_v40 = vadd.f32 %v11320_v38, %v11030_v58  ;;  %v11386_v55 = vadd.f32 %v11322_v60, %v11032_v49  ;;  %v11676_v56 = vmul.f32 %v17579_v48, %v21884_v29 }
 0x9ca   :  { %v24089_v61 = vadd.s32 224, %v26926_v62  ;;  %vm7826_vm4 = vcmp.eq.s32.totalorder %v24082_v0, %v21613_v19  ;;  %vm7828_vm10 = vcmp.eq.s32.totalorder %v24085_v20, %v21613_v19  ;;  %vm8117_vm0 = vcmp.eq.s32.totalorder %v24082_v0, %v21647_v34 }
 0x9cb   :  { %vm8119_vm12 = vcmp.eq.s32.totalorder %v24085_v20, %v21647_v34  ;;  %v11738_v52 = vadd.f32 %v11674_v17, %v11384_v40  ;;  %v11740_v13 = vadd.f32 %v11676_v56, %v11386_v55  ;;  %v17130_v51 = vsel %vm7826_vm4, 1.0, %v26759_v30 }
 0x9cc   :  { %v17132_v36 = vsel %vm7828_vm10, 1.0, %v26759_v30  ;;  %v8037_v42 = vmul.f32 %v17130_v51, %v21636_v41  ;;  %v17194_v58 = vsel %vm8117_vm0, 1.0, %v26759_v30  ;;  %v17196_v49 = vsel %vm8119_vm12, 1.0, %v26759_v30 }
 0x9cd   :  { %v8039_v2 = vmul.f32 %v17132_v36, %v21636_v41  ;;  %v11852_v38 = vand.u32 4294901760, %v11738_v52  ;;  %v11856_v60 = vand.u32 4294901760, %v11740_v13  ;;  %v8327_v48 = vmul.f32 %v17194_v58, %v26972_v6 }
 0x9ce   :  { %v8329_v35 = vmul.f32 %v17196_v49, %v26972_v6  ;;  %vm8471_vm13 = vcmp.eq.s32.totalorder %v24082_v0, %v26901_v14  ;;  %vm8473_vm14 = vcmp.eq.s32.totalorder %v24085_v20, %v26901_v14  ;;  %vm8825_vm7 = vcmp.eq.s32.totalorder %v24082_v0, %v21718_v45 }
 0x9cf   :  { %vm8827_vm8 = vcmp.eq.s32.totalorder %v24085_v20, %v21718_v45  ;;  %v24115_v17 = vpack.c.bf16 %v11856_v60, %v11852_v38  ;;  %v24117_v40 = vsub.f32 %v11738_v52, %v11852_v38  ;;  %v24119_v55 = vsub.f32 %v11740_v13, %v11856_v60 }
 0x9d0   :  { %v8391_v56 = vadd.f32 %v8327_v48, %v8037_v42  ;;  %v8393_v51 = vadd.f32 %v8329_v35, %v8039_v2  ;;  %v17258_v36 = vsel %vm8471_vm13, 1.0, %v26759_v30  ;;  %v17260_v58 = vsel %vm8473_vm14, 1.0, %v26759_v30 }
 0x9d1   :  { %27081 = vst [vmem:[#allocation155_spill] sm:$0xff] %v24115_v17  ;;  %27082 = vst [vmem:[#allocation156_spill] sm:$0xff] %v24117_v40  ;;  %v17322_v49 = vsel %vm8825_vm7, 1.0, %v26759_v30  ;;  %19268 = vmatpush1.bf16.msra.mxu1 %v24115_v17  ;;  %v8681_v12 = vmul.f32 %v17258_v36, %v21674_v44  ;;  %v8683_v46 = vmul.f32 %v17260_v58, %v21674_v44  ;;  %v17324_v50 = vsel %vm8827_vm8, 1.0, %v26759_v30 }
 0x9d2   :  { %27083 = vst [vmem:[#allocation157_spill] sm:$0xff] %v24119_v55  ;;  %v9035_v52 = vmul.f32 %v17322_v49, %v21730_v1  ;;  %v9037_v13 = vmul.f32 %v17324_v50, %v21730_v1  ;;  %vm10470_vm1 = vcmp.eq.s32.totalorder %v24082_v0, %v21721_v22  ;;  %vm10472_vm11 = vcmp.eq.s32.totalorder %v24085_v20, %v21721_v22 }
 0x9d3   :  { %vm10761_vm5 = vcmp.eq.s32.totalorder %v24082_v0, %v26909_v53  ;;  %v8745_v35 = vadd.f32 %v8681_v12, %v8391_v56  ;;  %v8747_v42 = vadd.f32 %v8683_v46, %v8393_v51  ;;  %v17390_v2 = vsel %vm10470_vm1, 1.0, %v26759_v30 }
 0x9d4   :  { %v17392_v38 = vsel %vm10472_vm11, 1.0, %v26759_v30  ;;  %v10681_v60 = vmul.f32 %v17390_v2, %v21727_v3  ;;  %vm10763_vm9 = vcmp.eq.s32.totalorder %v24085_v20, %v26909_v53  ;;  %v17454_v50 = vsel %vm10761_vm5, 1.0, %v26759_v30 }
 0x9d5   :  { %v10683_v48 = vmul.f32 %v17392_v38, %v21727_v3  ;;  %v9099_v36 = vadd.f32 %v9035_v52, %v8745_v35  ;;  %v9101_v58 = vadd.f32 %v9037_v13, %v8747_v42  ;;  %v17456_v49 = vsel %vm10763_vm9, 1.0, %v26759_v30 }
 0x9d6   :  { %v10971_v12 = vmul.f32 %v17454_v50, %v21742_v16  ;;  %v10973_v46 = vmul.f32 %v17456_v49, %v21742_v16  ;;  %vm11115_vm2 = vcmp.eq.s32.totalorder %v24082_v0, %v21748_v37  ;;  %vm11117_vm15 = vcmp.eq.s32.totalorder %v24085_v20, %v21748_v37 }
 0x9d7   :  { %vm11469_vm6 = vcmp.eq.s32.totalorder %v24082_v0, %v21760_v47  ;;  %v9214_v56 = vand.u32 4294901760, %v9099_v36  ;;  %v9218_v51 = vand.u32 4294901760, %v9101_v58  ;;  %v17518_v52 = vsel %vm11115_vm2, 1.0, %v26759_v30 }
 0x9d8   :  { %v11035_v2 = vadd.f32 %v10971_v12, %v10681_v60  ;;  %v11037_v13 = vadd.f32 %v10973_v46, %v10683_v48  ;;  %v17520_v35 = vsel %vm11117_vm15, 1.0, %v26759_v30  ;;  %v11325_v42 = vmul.f32 %v17518_v52, %v21754_v59 }
 0x9d9   :  { %vm11471_vm4 = vcmp.eq.s32.totalorder %v24085_v20, %v21760_v47  ;;  %v24157_v38 = vpack.c.bf16 %v9218_v51, %v9214_v56  ;;  %v24159_v50 = vsub.f32 %v9099_v36, %v9214_v56  ;;  %v24161_v49 = vsub.f32 %v9101_v58, %v9218_v51 }
 0x9da   :  { %v11327_v17 = vmul.f32 %v17520_v35, %v21754_v59  ;;  %v11389_v55 = vadd.f32 %v11325_v42, %v11035_v2  ;;  %v17582_v60 = vsel %vm11469_vm6, 1.0, %v26759_v30  ;;  %v17584_v48 = vsel %vm11471_vm4, 1.0, %v26759_v30 }
 0x9db   :  { %27084 = vst [vmem:[#allocation158_spill] sm:$0xff] %v24157_v38  ;;  %27085 = vst [vmem:[#allocation159_spill] sm:$0xff] %v24159_v50  ;;  %vm7825_vm10 = vcmp.eq.s32.totalorder %v24082_v0, %v21610_v57  ;;  %18886 = vmatprep.subr.bf16.mxu0 %v24157_v38  ;;  %v11679_v46 = vmul.f32 %v17582_v60, %v21763_v28  ;;  %v11681_v36 = vmul.f32 %v17584_v48, %v21763_v28 }
 0x9dc   :  { %27086 = vst [vmem:[#allocation160_spill] sm:$0xff] %v24161_v49  ;;  %v11391_v12 = vadd.f32 %v11327_v17, %v11037_v13  ;;  %vm7827_vm0 = vcmp.eq.s32.totalorder %v24085_v20, %v21610_v57  ;;  %v17129_v58 = vsel %vm7825_vm10, 1.0, %v26759_v30  ;;  %vm8116_vm12 = vcmp.eq.s32.totalorder %v24082_v0, %v21644_v25 }
 0x9dd   :  { %v17131_v56 = vsel %vm7827_vm0, 1.0, %v26759_v30  ;;  %vm8118_vm13 = vcmp.eq.s32.totalorder %v24085_v20, %v21644_v25  ;;  %v11743_v51 = vadd.f32 %v11679_v46, %v11389_v55  ;;  %v8036_v17 = vmul.f32 %v17129_v58, %v21633_v21 }
 0x9de   :  { %v11745_v2 = vadd.f32 %v11681_v36, %v11391_v12  ;;  %v8038_v52 = vmul.f32 %v17131_v56, %v21633_v21  ;;  %v17193_v13 = vsel %vm8116_vm12, 1.0, %v26759_v30  ;;  %v17195_v35 = vsel %vm8118_vm13, 1.0, %v26759_v30 }
 0x9df   :  { %vm8470_vm14 = vcmp.eq.s32.totalorder %v24082_v0, %v21662_v11  ;;  %vm8472_vm7 = vcmp.eq.s32.totalorder %v24085_v20, %v21662_v11  ;;  %v11858_v42 = vand.u32 4294901760, %v11743_v51  ;;  %v8326_v48 = vmul.f32 %v17193_v13, %v21650_v33 }
 0x9e0   :  { %v11862_v60 = vand.u32 4294901760, %v11745_v2  ;;  %v8328_v55 = vmul.f32 %v17195_v35, %v21650_v33  ;;  %v17257_v12 = vsel %vm8470_vm14, 1.0, %v26759_v30  ;;  %v17259_v46 = vsel %vm8472_vm7, 1.0, %v26759_v30 }
 0x9e1   :  { %vm8824_vm8 = vcmp.eq.s32.totalorder %v24082_v0, %v21683_v7  ;;  %vm8826_vm1 = vcmp.eq.s32.totalorder %v24085_v20, %v21683_v7  ;;  %v24197_v58 = vsub.f32 %v11743_v51, %v11858_v42  ;;  %v8390_v38 = vadd.f32 %v8326_v48, %v8036_v17 }
 0x9e2   :  { %v24195_v36 = vpack.c.bf16 %v11862_v60, %v11858_v42  ;;  %v24199_v56 = vsub.f32 %v11745_v2, %v11862_v60  ;;  %v8392_v13 = vadd.f32 %v8328_v55, %v8038_v52  ;;  %v8680_v35 = vmul.f32 %v17257_v12, %v21671_v24 }
 0x9e3   :  { %27088 = vst [vmem:[#allocation162_spill] sm:$0xff] %v24197_v58  ;;  %v8682_v49 = vmul.f32 %v17259_v46, %v21671_v24  ;;  %v17321_v50 = vsel %vm8824_vm8, 1.0, %v26759_v30  ;;  %v17323_v40 = vsel %vm8826_vm1, 1.0, %v26759_v30  ;;  %vm10469_vm11 = vcmp.eq.s32.totalorder %v24082_v0, %v21702_v8 }
 0x9e4   :  { %27087 = vst [vmem:[#allocation161_spill] sm:$0xff] %v24195_v36  ;;  %27089 = vst [vmem:[#allocation163_spill] sm:$0xff] %v24199_v56  ;;  %19270 = vmatprep.subr.bf16.mxu1 %v24195_v36  ;;  %v9034_v27 = vmul.f32 %v17321_v50, %v21699_v31  ;;  %vm10471_vm5 = vcmp.eq.s32.totalorder %v24085_v20, %v21702_v8  ;;  %v8744_v51 = vadd.f32 %v8680_v35, %v8390_v38 }
 0x9e5   :  { %v8746_v2 = vadd.f32 %v8682_v49, %v8392_v13  ;;  %v9036_v17 = vmul.f32 %v17323_v40, %v21699_v31  ;;  %v17389_v52 = vsel %vm10469_vm11, 1.0, %v26759_v30  ;;  %v17391_v42 = vsel %vm10471_vm5, 1.0, %v26759_v30 }
 0x9e6   :  { %v10680_v60 = vmul.f32 %v17389_v52, %v21724_v32  ;;  %vm10760_vm9 = vcmp.eq.s32.totalorder %v24082_v0, %v26956_v43  ;;  %vm10762_vm2 = vcmp.eq.s32.totalorder %v24085_v20, %v26956_v43  ;;  %v9098_v50 = vadd.f32 %v9034_v27, %v8744_v51 }
 0x9e7   :  { %v9100_v48 = vadd.f32 %v9036_v17, %v8746_v2  ;;  %v10682_v55 = vmul.f32 %v17391_v42, %v21724_v32  ;;  %v17453_v38 = vsel %vm10760_vm9, 1.0, %v26759_v30  ;;  %v17455_v40 = vsel %vm10762_vm2, 1.0, %v26759_v30 }
 0x9e8   :  { %v10970_v49 = vmul.f32 %v17453_v38, %v26957_v10  ;;  %vm11114_vm15 = vcmp.eq.s32.totalorder %v24082_v0, %v26958_v4  ;;  %vm11116_vm6 = vcmp.eq.s32.totalorder %v24085_v20, %v26958_v4  ;;  %v9216_v12 = vand.u32 4294901760, %v9098_v50 }
 0x9e9   :  { %v9220_v46 = vand.u32 4294901760, %v9100_v48  ;;  %v10972_v13 = vmul.f32 %v17455_v40, %v26957_v10  ;;  %v17517_v27 = vsel %vm11114_vm15, 1.0, %v26759_v30  ;;  %v17519_v51 = vsel %vm11116_vm6, 1.0, %v26759_v30 }
 0x9ea   :  { %v11034_v35 = vadd.f32 %v10970_v49, %v10680_v60  ;;  %v11324_v2 = vmul.f32 %v17517_v27, %v21751_v26  ;;  %vm11468_vm4 = vcmp.eq.s32.totalorder %v24082_v0, %v21757_v9  ;;  %v24235_v52 = vsub.f32 %v9098_v50, %v9216_v12 }
 0x9eb   :  { %v24233_v17 = vpack.c.bf16 %v9220_v46, %v9216_v12  ;;  %v24237_v42 = vsub.f32 %v9100_v48, %v9220_v46  ;;  %v11036_v38 = vadd.f32 %v10972_v13, %v10682_v55  ;;  %v11326_v36 = vmul.f32 %v17519_v51, %v21751_v26 }
 0x9ec   :  { %27091 = vst [vmem:[#allocation165_spill] sm:$0xff] %v24235_v52  ;;  %v11388_v40 = vadd.f32 %v11324_v2, %v11034_v35  ;;  %vm11470_vm10 = vcmp.eq.s32.totalorder %v24085_v20, %v21757_v9  ;;  %v17581_v60 = vsel %vm11468_vm4, 1.0, %v26759_v30  ;;  %v24247_v50 = vadd.s32 232, %v26926_v62 }
 0x9ed   :  { %27090 = vst [vmem:[#allocation164_spill] sm:$0xff] %v24233_v17  ;;  %27092 = vst [vmem:[#allocation166_spill] sm:$0xff] %v24237_v42  ;;  %18888 = vmatpush1.bf16.msra.mxu0 %v24233_v17  ;;  %v17583_v49 = vsel %vm11470_vm10, 1.0, %v26759_v30  ;;  %v11678_v0 = vmul.f32 %v17581_v60, %v21884_v29  ;;  %vm7830_vm0 = vcmp.eq.s32.totalorder %v24089_v61, %v21613_v19 }
 0x9ee   :  { %v11390_v48 = vadd.f32 %v11326_v36, %v11036_v38  ;;  %v11680_v55 = vmul.f32 %v17583_v49, %v21884_v29  ;;  %v17134_v12 = vsel %vm7830_vm0, 1.0, %v26759_v30  ;;  %vm8121_vm12 = vcmp.eq.s32.totalorder %v24089_v61, %v21647_v34 }
 0x9ef   :  { %v11742_v20 = vadd.f32 %v11678_v0, %v11388_v40  ;;  %vm7832_vm13 = vcmp.eq.s32.totalorder %v24247_v50, %v21613_v19  ;;  %v8041_v46 = vmul.f32 %v17134_v12, %v21636_v41  ;;  %vm8123_vm14 = vcmp.eq.s32.totalorder %v24247_v50, %v21647_v34 }
 0x9f0   :  { %v11744_v13 = vadd.f32 %v11680_v55, %v11390_v48  ;;  %v17136_v27 = vsel %vm7832_vm13, 1.0, %v26759_v30  ;;  %v17198_v36 = vsel %vm8121_vm12, 1.0, %v26759_v30  ;;  %v17200_v35 = vsel %vm8123_vm14, 1.0, %v26759_v30 }
 0x9f1   :  { %v11860_v51 = vand.u32 4294901760, %v11742_v20  ;;  %v8043_v2 = vmul.f32 %v17136_v27, %v21636_v41  ;;  %v8331_v38 = vmul.f32 %v17198_v36, %v26972_v6  ;;  %v8333_v40 = vmul.f32 %v17200_v35, %v26972_v6 }
 0x9f2   :  { %v11864_v60 = vand.u32 4294901760, %v11744_v13  ;;  %vm8475_vm7 = vcmp.eq.s32.totalorder %v24089_v61, %v26901_v14  ;;  %vm8477_vm8 = vcmp.eq.s32.totalorder %v24247_v50, %v26901_v14  ;;  %vm8829_vm1 = vcmp.eq.s32.totalorder %v24089_v61, %v21718_v45 }
 0x9f3   :  { %v24272_v49 = vsub.f32 %v11742_v20, %v11860_v51  ;;  %v8395_v0 = vadd.f32 %v8331_v38, %v8041_v46  ;;  %v8397_v48 = vadd.f32 %v8333_v40, %v8043_v2  ;;  %v17262_v55 = vsel %vm8475_vm7, 1.0, %v26759_v30 }
 0x9f4   :  { %v24275_v12 = vpack.c.bf16 %v11864_v60, %v11860_v51  ;;  %v24277_v27 = vsub.f32 %v11744_v13, %v11864_v60  ;;  %v17264_v36 = vsel %vm8477_vm8, 1.0, %v26759_v30  ;;  %v8685_v35 = vmul.f32 %v17262_v55, %v21674_v44 }
 0x9f5   :  { %27093 = vst [vmem:[#allocation167_spill] sm:$0xff] %v24272_v49  ;;  %v8687_v17 = vmul.f32 %v17264_v36, %v21674_v44  ;;  %vm8831_vm11 = vcmp.eq.s32.totalorder %v24247_v50, %v21718_v45  ;;  %v17326_v20 = vsel %vm8829_vm1, 1.0, %v26759_v30  ;;  %vm10474_vm5 = vcmp.eq.s32.totalorder %v24089_v61, %v21721_v22 }
 0x9f6   :  { %27094 = vst [vmem:[#allocation168_spill] sm:$0xff] %v24275_v12  ;;  %27095 = vst [vmem:[#allocation169_spill] sm:$0xff] %v24277_v27  ;;  %19272 = vmatpush1.bf16.msra.mxu1 %v24275_v12  ;;  %v8749_v46 = vadd.f32 %v8685_v35, %v8395_v0  ;;  %v17328_v13 = vsel %vm8831_vm11, 1.0, %v26759_v30  ;;  %v9039_v51 = vmul.f32 %v17326_v20, %v21730_v1  ;;  %v17394_v40 = vsel %vm10474_vm5, 1.0, %v26759_v30 }
 0x9f7   :  { %vm10476_vm9 = vcmp.eq.s32.totalorder %v24247_v50, %v21721_v22  ;;  %v8751_v2 = vadd.f32 %v8687_v17, %v8397_v48  ;;  %v9041_v38 = vmul.f32 %v17328_v13, %v21730_v1  ;;  %v10685_v36 = vmul.f32 %v17394_v40, %v21727_v3 }
 0x9f8   :  { %v17396_v60 = vsel %vm10476_vm9, 1.0, %v26759_v30  ;;  %v9103_v55 = vadd.f32 %v9039_v51, %v8749_v46  ;;  %vm10765_vm2 = vcmp.eq.s32.totalorder %v24089_v61, %v26909_v53  ;;  %vm10767_vm15 = vcmp.eq.s32.totalorder %v24247_v50, %v26909_v53 }
 0x9f9   :  { %v10687_v12 = vmul.f32 %v17396_v60, %v21727_v3  ;;  %v9105_v0 = vadd.f32 %v9041_v38, %v8751_v2  ;;  %v17458_v17 = vsel %vm10765_vm2, 1.0, %v26759_v30  ;;  %vm11119_vm6 = vcmp.eq.s32.totalorder %v24089_v61, %v21748_v37 }
 0x9fa   :  { %v9222_v48 = vand.u32 4294901760, %v9103_v55  ;;  %v17460_v35 = vsel %vm10767_vm15, 1.0, %v26759_v30  ;;  %v10975_v20 = vmul.f32 %v17458_v17, %v21742_v16  ;;  %vm11121_vm4 = vcmp.eq.s32.totalorder %v24247_v50, %v21748_v37 }
 0x9fb   :  { %v9226_v46 = vand.u32 4294901760, %v9105_v0  ;;  %v10977_v13 = vmul.f32 %v17460_v35, %v21742_v16  ;;  %v17522_v51 = vsel %vm11119_vm6, 1.0, %v26759_v30  ;;  %v17524_v2 = vsel %vm11121_vm4, 1.0, %v26759_v30 }
 0x9fc   :  { %v24311_v38 = vsub.f32 %v9103_v55, %v9222_v48  ;;  %v11039_v40 = vadd.f32 %v10975_v20, %v10685_v36  ;;  %v11329_v60 = vmul.f32 %v17522_v51, %v21754_v59  ;;  %v11331_v27 = vmul.f32 %v17524_v2, %v21754_v59 }
 0x9fd   :  { %v24315_v49 = vpack.c.bf16 %v9226_v46, %v9222_v48  ;;  %v24317_v17 = vsub.f32 %v9105_v0, %v9226_v46  ;;  %v11041_v42 = vadd.f32 %v10977_v13, %v10687_v12  ;;  %vm11473_vm10 = vcmp.eq.s32.totalorder %v24089_v61, %v21760_v47 }
 0x9fe   :  { %27096 = vst [vmem:[#allocation170_spill] sm:$0xff] %v24311_v38  ;;  %v11393_v35 = vadd.f32 %v11329_v60, %v11039_v40  ;;  %vm11475_vm0 = vcmp.eq.s32.totalorder %v24247_v50, %v21760_v47  ;;  %v17586_v55 = vsel %vm11473_vm10, 1.0, %v26759_v30  ;;  %vm7829_vm12 = vcmp.eq.s32.totalorder %v24089_v61, %v21610_v57 }
 0x9ff   :  { %27097 = vst [vmem:[#allocation171_spill] sm:$0xff] %v24315_v49  ;;  %27098 = vst [vmem:[#allocation172_spill] sm:$0xff] %v24317_v17  ;;  %18890 = vmatprep.subr.bf16.mxu0 %v24315_v49  ;;  %v11395_v36 = vadd.f32 %v11331_v27, %v11041_v42  ;;  %v17588_v48 = vsel %vm11475_vm0, 1.0, %v26759_v30  ;;  %v11683_v0 = vmul.f32 %v17586_v55, %v21763_v28  ;;  %v17133_v20 = vsel %vm7829_vm12, 1.0, %v26759_v30 }
 0xa00   :  { %vm7831_vm13 = vcmp.eq.s32.totalorder %v24247_v50, %v21610_v57  ;;  %v11685_v12 = vmul.f32 %v17588_v48, %v21763_v28  ;;  %vm8120_vm14 = vcmp.eq.s32.totalorder %v24089_v61, %v21644_v25  ;;  %v8040_v51 = vmul.f32 %v17133_v20, %v21633_v21 }
 0xa01   :  { %v17135_v46 = vsel %vm7831_vm13, 1.0, %v26759_v30  ;;  %v11747_v13 = vadd.f32 %v11683_v0, %v11393_v35  ;;  %vm8122_vm7 = vcmp.eq.s32.totalorder %v24247_v50, %v21644_v25  ;;  %v17197_v2 = vsel %vm8120_vm14, 1.0, %v26759_v30 }
 0xa02   :  { %v8042_v42 = vmul.f32 %v17135_v46, %v21633_v21  ;;  %v11749_v27 = vadd.f32 %v11685_v12, %v11395_v36  ;;  %v17199_v40 = vsel %vm8122_vm7, 1.0, %v26759_v30  ;;  %vm8474_vm8 = vcmp.eq.s32.totalorder %v24089_v61, %v21662_v11 }
 0xa03   :  { %v11866_v60 = vand.u32 4294901760, %v11747_v13  ;;  %v8330_v55 = vmul.f32 %v17197_v2, %v21650_v33  ;;  %v8332_v35 = vmul.f32 %v17199_v40, %v21650_v33  ;;  %vm8476_vm1 = vcmp.eq.s32.totalorder %v24247_v50, %v21662_v11 }
 0xa04   :  { %v11870_v48 = vand.u32 4294901760, %v11749_v27  ;;  %v17261_v0 = vsel %vm8474_vm8, 1.0, %v26759_v30  ;;  %v17263_v36 = vsel %vm8476_vm1, 1.0, %v26759_v30  ;;  %vm8828_vm11 = vcmp.eq.s32.totalorder %v24089_v61, %v21683_v7 }
 0xa05   :  { %v24352_v12 = vsub.f32 %v11747_v13, %v11866_v60  ;;  %v8394_v20 = vadd.f32 %v8330_v55, %v8040_v51  ;;  %v8396_v46 = vadd.f32 %v8332_v35, %v8042_v42  ;;  %v8684_v49 = vmul.f32 %v17261_v0, %v21671_v24 }
 0xa06   :  { %v24355_v2 = vpack.c.bf16 %v11870_v48, %v11866_v60  ;;  %v24357_v40 = vsub.f32 %v11749_v27, %v11870_v48  ;;  %v8686_v17 = vmul.f32 %v17263_v36, %v21671_v24  ;;  %vm8830_vm5 = vcmp.eq.s32.totalorder %v24247_v50, %v21683_v7 }
 0xa07   :  { %27099 = vst [vmem:[#allocation173_spill] sm:$0xff] %v24352_v12  ;;  %v8748_v38 = vadd.f32 %v8684_v49, %v8394_v20  ;;  %v17325_v52 = vsel %vm8828_vm11, 1.0, %v26759_v30  ;;  %v17327_v56 = vsel %vm8830_vm5, 1.0, %v26759_v30  ;;  %vm10473_vm9 = vcmp.eq.s32.totalorder %v24089_v61, %v21702_v8 }
 0xa08   :  { %27100 = vst [vmem:[#allocation174_spill] sm:$0xff] %v24355_v2  ;;  %27101 = vst [vmem:[#allocation175_spill] sm:$0xff] %v24357_v40  ;;  %19274 = vmatprep.subr.bf16.mxu1 %v24355_v2  ;;  %v8750_v13 = vadd.f32 %v8686_v17, %v8396_v46  ;;  %v9038_v51 = vmul.f32 %v17325_v52, %v21699_v31  ;;  %v9040_v42 = vmul.f32 %v17327_v56, %v21699_v31 }
 0xa09   :  { %vm10475_vm2 = vcmp.eq.s32.totalorder %v24247_v50, %v21702_v8  ;;  %v17393_v27 = vsel %vm10473_vm9, 1.0, %v26759_v30  ;;  %vm10764_vm15 = vcmp.eq.s32.totalorder %v24089_v61, %v26956_v43  ;;  %vm10766_vm6 = vcmp.eq.s32.totalorder %v24247_v50, %v26956_v43 }
 0xa0a   :  { %v17395_v49 = vsel %vm10475_vm2, 1.0, %v26759_v30  ;;  %v9102_v60 = vadd.f32 %v9038_v51, %v8748_v38  ;;  %v9104_v55 = vadd.f32 %v9040_v42, %v8750_v13  ;;  %v10684_v17 = vmul.f32 %v17393_v27, %v21724_v32 }
 0xa0b   :  { %v10686_v52 = vmul.f32 %v17395_v49, %v21724_v32  ;;  %v17457_v56 = vsel %vm10764_vm15, 1.0, %v26759_v30  ;;  %v17459_v35 = vsel %vm10766_vm6, 1.0, %v26759_v30  ;;  %vm11118_vm4 = vcmp.eq.s32.totalorder %v24089_v61, %v26958_v4  ;;  %v24402_v49 = vld [vmem:[%s26072_s0 + $0x8] sm:$0xff] }
 0xa0c   :  { %vm11120_vm10 = vcmp.eq.s32.totalorder %v24247_v50, %v26958_v4  ;;  %v9224_v48 = vand.u32 4294901760, %v9102_v60  ;;  %v9228_v0 = vand.u32 4294901760, %v9104_v55  ;;  %v10974_v36 = vmul.f32 %v17457_v56, %v26957_v10 }
 0xa0d   :  { %v10976_v38 = vmul.f32 %v17459_v35, %v26957_v10  ;;  %v17521_v20 = vsel %vm11118_vm4, 1.0, %v26759_v30  ;;  %v17523_v46 = vsel %vm11120_vm10, 1.0, %v26759_v30  ;;  %vm11472_vm0 = vcmp.eq.s32.totalorder %v24089_v61, %v21757_v9 }
 0xa0e   :  { %vm11474_vm12 = vcmp.eq.s32.totalorder %v24247_v50, %v21757_v9  ;;  %v24393_v13 = vpack.c.bf16 %v9228_v0, %v9224_v48  ;;  %v24395_v51 = vsub.f32 %v9102_v60, %v9224_v48  ;;  %v24397_v42 = vsub.f32 %v9104_v55, %v9228_v0 }
 0xa0f   :  { %v11038_v27 = vadd.f32 %v10974_v36, %v10684_v17  ;;  %v11040_v56 = vadd.f32 %v10976_v38, %v10686_v52  ;;  %v11328_v35 = vmul.f32 %v17521_v20, %v21751_v26  ;;  %v11330_v61 = vmul.f32 %v17523_v46, %v21751_v26 }
 0xa10   :  { %27102 = vst [vmem:[#allocation176_spill] sm:$0xff] %v24393_v13  ;;  %27103 = vst [vmem:[#allocation177_spill] sm:$0xff] %v24395_v51  ;;  %v17585_v2 = vsel %vm11472_vm0, 1.0, %v26759_v30  ;;  %18892 = vmatpush1.bf16.msra.mxu0 %v24393_v13  ;;  %v17587_v50 = vsel %vm11474_vm12, 1.0, %v26759_v30  ;;  %v24411_v55 = vadd.s32 240, %v26926_v62  ;;  %v24414_v17 = vadd.s32 248, %v26926_v62 }
 0xa11   :  { %27104 = vst [vmem:[#allocation178_spill] sm:$0xff] %v24397_v42  ;;  %v11682_v60 = vmul.f32 %v17585_v2, %v21884_v29  ;;  %v11392_v48 = vadd.f32 %v11328_v35, %v11038_v27  ;;  %v11394_v52 = vadd.f32 %v11330_v61, %v11040_v56  ;;  %v11684_v0 = vmul.f32 %v17587_v50, %v21884_v29 }
 0xa12   :  { %v24418_v36 = vand.u32 4294901760, %v24402_v49  ;;  %vm7834_vm13 = vcmp.eq.s32.totalorder %v24411_v55, %v21613_v19  ;;  %vm7836_vm14 = vcmp.eq.s32.totalorder %v24414_v17, %v21613_v19  ;;  %vm8125_vm7 = vcmp.eq.s32.totalorder %v24411_v55, %v21647_v34 }
 0xa13   :  { %vm8127_vm8 = vcmp.eq.s32.totalorder %v24414_v17, %v21647_v34  ;;  %v11746_v62 = vadd.f32 %v11682_v60, %v11392_v48  ;;  %v11748_v2 = vadd.f32 %v11684_v0, %v11394_v52  ;;  %v17138_v38 = vsel %vm7834_vm13, 1.0, %v26759_v30 }
 0xa14   :  { %27105 = vst [vmem:[#allocation179_spill] sm:$0xff] %v24418_v36  ;;  %v17140_v20 = vsel %vm7836_vm14, 1.0, %v26759_v30  ;;  %v8045_v46 = vmul.f32 %v17138_v38, %v21636_v41  ;;  %v17202_v56 = vsel %vm8125_vm7, 1.0, %v26759_v30  ;;  %v17204_v19 = vsel %vm8127_vm8, 1.0, %v26759_v30 }
 0xa15   :  { %v8047_v27 = vmul.f32 %v17140_v20, %v21636_v41  ;;  %v11868_v35 = vand.u32 4294901760, %v11746_v62  ;;  %v11872_v61 = vand.u32 4294901760, %v11748_v2  ;;  %v8335_v50 = vmul.f32 %v17202_v56, %v26972_v6 }
 0xa16   :  { %v8337_v34 = vmul.f32 %v17204_v19, %v26972_v6  ;;  %vm8479_vm1 = vcmp.eq.s32.totalorder %v24411_v55, %v26901_v14  ;;  %vm8481_vm11 = vcmp.eq.s32.totalorder %v24414_v17, %v26901_v14  ;;  %vm8833_vm5 = vcmp.eq.s32.totalorder %v24411_v55, %v21718_v45 }
 0xa17   :  { %vm8835_vm9 = vcmp.eq.s32.totalorder %v24414_v17, %v21718_v45  ;;  %v24444_v41 = vpack.c.bf16 %v11872_v61, %v11868_v35  ;;  %v24446_v60 = vsub.f32 %v11746_v62, %v11868_v35  ;;  %v24448_v48 = vsub.f32 %v11748_v2, %v11872_v61 }
 0xa18   :  { %v8399_v52 = vadd.f32 %v8335_v50, %v8045_v46  ;;  %v8401_v6 = vadd.f32 %v8337_v34, %v8047_v27  ;;  %v17266_v0 = vsel %vm8479_vm1, 1.0, %v26759_v30  ;;  %v17268_v38 = vsel %vm8481_vm11, 1.0, %v26759_v30 }
 0xa19   :  { %27106 = vst [vmem:[#allocation180_spill] sm:$0xff] %v24444_v41  ;;  %27107 = vst [vmem:[#allocation181_spill] sm:$0xff] %v24446_v60  ;;  %v17330_v14 = vsel %vm8833_vm5, 1.0, %v26759_v30  ;;  %19276 = vmatpush1.bf16.msra.mxu1 %v24444_v41  ;;  %v8689_v20 = vmul.f32 %v17266_v0, %v21674_v44  ;;  %v8691_v45 = vmul.f32 %v17268_v38, %v21674_v44  ;;  %v17332_v56 = vsel %vm8835_vm9, 1.0, %v26759_v30  ;;  %v27145_v41 = vld [vmem:[#allocation23_spill] sm:$0xff] }
 0xa1a   :  { %27108 = vst [vmem:[#allocation182_spill] sm:$0xff] %v24448_v48  ;;  %v9043_v62 = vmul.f32 %v17330_v14, %v21730_v1  ;;  %v9045_v2 = vmul.f32 %v17332_v56, %v21730_v1  ;;  %vm10478_vm2 = vcmp.eq.s32.totalorder %v24411_v55, %v21721_v22  ;;  %vm10480_vm15 = vcmp.eq.s32.totalorder %v24414_v17, %v21721_v22 }
 0xa1b   :  { %vm10769_vm6 = vcmp.eq.s32.totalorder %v24411_v55, %v26909_v53  ;;  %v8753_v46 = vadd.f32 %v8689_v20, %v8399_v52  ;;  %v8755_v27 = vadd.f32 %v8691_v45, %v8401_v6  ;;  %v17398_v19 = vsel %vm10478_vm2, 1.0, %v26759_v30 }
 0xa1c   :  { %v17400_v44 = vsel %vm10480_vm15, 1.0, %v26759_v30  ;;  %v10689_v35 = vmul.f32 %v17398_v19, %v21727_v3  ;;  %vm10771_vm4 = vcmp.eq.s32.totalorder %v24414_v17, %v26909_v53  ;;  %v17462_v1 = vsel %vm10769_vm6, 1.0, %v26759_v30 }
 0xa1d   :  { %v10691_v61 = vmul.f32 %v17400_v44, %v21727_v3  ;;  %v9107_v50 = vadd.f32 %v9043_v62, %v8753_v46  ;;  %v9109_v22 = vadd.f32 %v9045_v2, %v8755_v27  ;;  %v17464_v34 = vsel %vm10771_vm4, 1.0, %v26759_v30 }
 0xa1e   :  { %v10979_v52 = vmul.f32 %v17462_v1, %v21742_v16  ;;  %v10981_v6 = vmul.f32 %v17464_v34, %v21742_v16  ;;  %vm11123_vm10 = vcmp.eq.s32.totalorder %v24411_v55, %v21748_v37  ;;  %vm11125_vm0 = vcmp.eq.s32.totalorder %v24414_v17, %v21748_v37 }
 0xa1f   :  { %vm11477_vm12 = vcmp.eq.s32.totalorder %v24411_v55, %v21760_v47  ;;  %v9230_v3 = vand.u32 4294901760, %v9107_v50  ;;  %v9234_v53 = vand.u32 4294901760, %v9109_v22  ;;  %v17526_v38 = vsel %vm11123_vm10, 1.0, %v26759_v30 }
 0xa20   :  { %v11043_v0 = vadd.f32 %v10979_v52, %v10689_v35  ;;  %v11045_v14 = vadd.f32 %v10981_v6, %v10691_v61  ;;  %v17528_v20 = vsel %vm11125_vm0, 1.0, %v26759_v30  ;;  %v11333_v45 = vmul.f32 %v17526_v38, %v21754_v59 }
 0xa21   :  { %vm11479_vm13 = vcmp.eq.s32.totalorder %v24414_v17, %v21760_v47  ;;  %v24486_v16 = vpack.c.bf16 %v9234_v53, %v9230_v3  ;;  %v24488_v56 = vsub.f32 %v9107_v50, %v9230_v3  ;;  %v24490_v37 = vsub.f32 %v9109_v22, %v9234_v53 }
 0xa22   :  { %v11335_v62 = vmul.f32 %v17528_v20, %v21754_v59  ;;  %v11397_v2 = vadd.f32 %v11333_v45, %v11043_v0  ;;  %v17590_v46 = vsel %vm11477_vm12, 1.0, %v26759_v30  ;;  %v17592_v27 = vsel %vm11479_vm13, 1.0, %v26759_v30 }
 0xa23   :  { %27109 = vst [vmem:[#allocation183_spill] sm:$0xff] %v24486_v16  ;;  %27110 = vst [vmem:[#allocation184_spill] sm:$0xff] %v24488_v56  ;;  %vm7833_vm14 = vcmp.eq.s32.totalorder %v24411_v55, %v21610_v57  ;;  %18894 = vmatprep.subr.bf16.mxu0 %v24486_v16  ;;  %v11687_v47 = vmul.f32 %v17590_v46, %v21763_v28  ;;  %v11689_v44 = vmul.f32 %v17592_v27, %v21763_v28 }
 0xa24   :  { %27111 = vst [vmem:[#allocation185_spill] sm:$0xff] %v24490_v37  ;;  %v11399_v19 = vadd.f32 %v11335_v62, %v11045_v14  ;;  %vm7835_vm7 = vcmp.eq.s32.totalorder %v24414_v17, %v21610_v57  ;;  %v17137_v59 = vsel %vm7833_vm14, 1.0, %v26759_v30  ;;  %vm8124_vm8 = vcmp.eq.s32.totalorder %v24411_v55, %v21644_v25 }
 0xa25   :  { %v17139_v35 = vsel %vm7835_vm7, 1.0, %v26759_v30  ;;  %vm8126_vm1 = vcmp.eq.s32.totalorder %v24414_v17, %v21644_v25  ;;  %v11751_v61 = vadd.f32 %v11687_v47, %v11397_v2  ;;  %v8044_v50 = vmul.f32 %v17137_v59, %v21633_v21 }
 0xa26   :  { %v11753_v1 = vadd.f32 %v11689_v44, %v11399_v19  ;;  %v8046_v22 = vmul.f32 %v17139_v35, %v21633_v21  ;;  %v17201_v28 = vsel %vm8124_vm8, 1.0, %v26759_v30  ;;  %v17203_v57 = vsel %vm8126_vm1, 1.0, %v26759_v30 }
 0xa27   :  { %vm8478_vm11 = vcmp.eq.s32.totalorder %v24411_v55, %v21662_v11  ;;  %vm8480_vm5 = vcmp.eq.s32.totalorder %v24414_v17, %v21662_v11  ;;  %v11874_v34 = vand.u32 4294901760, %v11751_v61  ;;  %v8334_v25 = vmul.f32 %v17201_v28, %v21650_v33 }
 0xa28   :  { %v11878_v52 = vand.u32 4294901760, %v11753_v1  ;;  %v8336_v6 = vmul.f32 %v17203_v57, %v21650_v33  ;;  %v17265_v3 = vsel %vm8478_vm11, 1.0, %v26759_v30  ;;  %v17267_v21 = vsel %vm8480_vm5, 1.0, %v26759_v30 }
 0xa29   :  { %vm8832_vm9 = vcmp.eq.s32.totalorder %v24411_v55, %v21683_v7  ;;  %vm8834_vm2 = vcmp.eq.s32.totalorder %v24414_v17, %v21683_v7  ;;  %v24526_v0 = vsub.f32 %v11751_v61, %v11874_v34  ;;  %v8398_v38 = vadd.f32 %v8334_v25, %v8044_v50 }
 0xa2a   :  { %v24524_v53 = vpack.c.bf16 %v11878_v52, %v11874_v34  ;;  %v24528_v11 = vsub.f32 %v11753_v1, %v11878_v52  ;;  %v8400_v14 = vadd.f32 %v8336_v6, %v8046_v22  ;;  %v8688_v33 = vmul.f32 %v17265_v3, %v21671_v24 }
 0xa2b   :  { %27113 = vst [vmem:[#allocation187_spill] sm:$0xff] %v24526_v0  ;;  %v8690_v20 = vmul.f32 %v17267_v21, %v21671_v24  ;;  %v17329_v45 = vsel %vm8832_vm9, 1.0, %v26759_v30  ;;  %v17331_v62 = vsel %vm8834_vm2, 1.0, %v26759_v30  ;;  %vm10477_vm15 = vcmp.eq.s32.totalorder %v24411_v55, %v21702_v8 }
 0xa2c   :  { %27112 = vst [vmem:[#allocation186_spill] sm:$0xff] %v24524_v53  ;;  %27114 = vst [vmem:[#allocation188_spill] sm:$0xff] %v24528_v11  ;;  %19278 = vmatprep.subr.bf16.mxu1 %v24524_v53  ;;  %v9042_v7 = vmul.f32 %v17329_v45, %v21699_v31  ;;  %vm10479_vm6 = vcmp.eq.s32.totalorder %v24414_v17, %v21702_v8  ;;  %v8752_v2 = vadd.f32 %v8688_v33, %v8398_v38  ;;  %v27119_v33 = vld [vmem:[#allocation3_spill] sm:$0xff] }
 0xa2d   :  { %v8754_v46 = vadd.f32 %v8690_v20, %v8400_v14  ;;  %v9044_v27 = vmul.f32 %v17331_v62, %v21699_v31  ;;  %v17397_v24 = vsel %vm10477_vm15, 1.0, %v26759_v30  ;;  %v17399_v19 = vsel %vm10479_vm6, 1.0, %v26759_v30  ;;  %v27120_v62 = vld [vmem:[#allocation41_spill] sm:$0xff] }
 0xa2e   :  { %v10688_v47 = vmul.f32 %v17397_v24, %v21724_v32  ;;  %vm10768_vm4 = vcmp.eq.s32.totalorder %v24411_v55, %v26956_v43  ;;  %vm10770_vm10 = vcmp.eq.s32.totalorder %v24414_v17, %v26956_v43  ;;  %v9106_v44 = vadd.f32 %v9042_v7, %v8752_v2 }
 0xa2f   :  { %v9108_v59 = vadd.f32 %v9044_v27, %v8754_v46  ;;  %v10690_v8 = vmul.f32 %v17399_v19, %v21724_v32  ;;  %v17461_v35 = vsel %vm10768_vm4, 1.0, %v26759_v30  ;;  %v17463_v31 = vsel %vm10770_vm10, 1.0, %v26759_v30  ;;  %v27122_v27 = vld [vmem:[#allocation42_spill] sm:$0xff] }
 0xa30   :  { %v10978_v61 = vmul.f32 %v17461_v35, %v26957_v10  ;;  %vm11122_vm0 = vcmp.eq.s32.totalorder %v24411_v55, %v26958_v4  ;;  %vm11124_vm12 = vcmp.eq.s32.totalorder %v24414_v17, %v26958_v4  ;;  %v9232_v1 = vand.u32 4294901760, %v9106_v44 }
 0xa31   :  { %v9236_v50 = vand.u32 4294901760, %v9108_v59  ;;  %v10980_v43 = vmul.f32 %v17463_v31, %v26957_v10  ;;  %v17525_v22 = vsel %vm11122_vm0, 1.0, %v26759_v30  ;;  %v17527_v32 = vsel %vm11124_vm12, 1.0, %v26759_v30  ;;  %v17334_v10 = vld [vmem:[%s26072_s0 + $0x18] sm:$0xff] }
 0xa32   :  { %v11042_v28 = vadd.f32 %v10978_v61, %v10688_v47  ;;  %v11332_v57 = vmul.f32 %v17525_v22, %v21751_v26  ;;  %vm11476_vm13 = vcmp.eq.s32.totalorder %v24411_v55, %v21757_v9  ;;  %v24564_v52 = vsub.f32 %v9106_v44, %v9232_v1  ;;  %v27124_v47 = vld [vmem:[#allocation43_spill] sm:$0xff] }
 0xa33   :  { %v24562_v34 = vpack.c.bf16 %v9236_v50, %v9232_v1  ;;  %v24566_v25 = vsub.f32 %v9108_v59, %v9236_v50  ;;  %v11044_v4 = vadd.f32 %v10980_v43, %v10690_v8  ;;  %v11334_v6 = vmul.f32 %v17527_v32, %v21751_v26  ;;  %v7729_v59 = vld [vmem:[%s26072_s0] sm:$0xff] }
 0xa34   :  { %27116 = vst [vmem:[#allocation190_spill] sm:$0xff] %v24564_v52  ;;  %v11396_v3 = vadd.f32 %v11332_v57, %v11042_v28  ;;  %vm11478_vm14 = vcmp.eq.s32.totalorder %v24414_v17, %v21757_v9  ;;  %v17589_v21 = vsel %vm11476_vm13, 1.0, %v26759_v30  ;;  %v24580_v14 = vsub.f32 %v24402_v49, %v24418_v36 }
 0xa35   :  { %27115 = vst [vmem:[#allocation189_spill] sm:$0xff] %v24562_v34  ;;  %27117 = vst [vmem:[#allocation191_spill] sm:$0xff] %v24566_v25  ;;  %18896 = vmatpush1.bf16.msra.mxu0 %v24562_v34  ;;  %v17591_v55 = vsel %vm11478_vm14, 1.0, %v26759_v30  ;;  %v11686_v38 = vmul.f32 %v17589_v21, %v21884_v29  ;;  %v26419_v20 = vand.u32 4294901760, %v27119_v33  ;;  %v11398_v45 = vadd.f32 %v11334_v6, %v11044_v4  ;;  %v27138_v30 = vld [vmem:[#allocation55_spill] sm:$0xff] }
 0xa36   :  { %27118 = vst [vmem:[#allocation192_spill] sm:$0xff] %v24580_v14  ;;  %v11688_v26 = vmul.f32 %v17591_v55, %v21884_v29  ;;  %v26418_v7 = vand.u32 4294901760, %v27120_v62  ;;  %v24585_v9 = vand.u32 4294901760, %v17334_v10  ;;  %v26423_v2 = vand.u32 4294901760, %v24580_v14 }
 0xa37   :  { %v11750_v17 = vadd.f32 %v11686_v38, %v11396_v3  ;;  %v9258_v46 = vsub.f32 %v27119_v33, %v26419_v20  ;;  %v26417_v24 = vand.u32 4294901760, %v27122_v27  ;;  %v26414_v44 = vand.u32 4294901760, %v27124_v47 }
 0xa38   :  { %27121 = vst [vmem:[#allocation193_spill] sm:$0xff] %v24585_v9  ;;  %v11752_v49 = vadd.f32 %v11688_v26, %v11398_v45  ;;  %v9270_v19 = vsub.f32 %v27120_v62, %v26418_v7  ;;  %v24596_v29 = vsub.f32 %v17334_v10, %v24585_v9  ;;  %v9241_v35 = vsub.f32 %v24580_v14, %v26423_v2  ;;  %v17333_v10 = vld [vmem:[%s26072_s0 + $0x10] sm:$0xff]  ;;  %v27152_v14 = vld [vmem:[#allocation2_spill] sm:$0xff] }
 0xa39   :  { %v11876_v8 = vand.u32 4294901760, %v11750_v17  ;;  %v9259_v31 = vand.u32 4294901760, %v9258_v46  ;;  %v11902_v61 = vsub.f32 %v27122_v27, %v26417_v24  ;;  %v11914_v22 = vsub.f32 %v27124_v47, %v26414_v44  ;;  %v27130_v26 = vld [vmem:[#allocation44_spill] sm:$0xff]  ;;  %v27131_v46 = vld [vmem:[#allocation45_spill] sm:$0xff] }
 0xa3a   :  { %27123 = vst [vmem:[#allocation194_spill] sm:$0xff] %v24596_v29  ;;  %v11880_v1 = vand.u32 4294901760, %v11752_v49  ;;  %v9271_v50 = vand.u32 4294901760, %v9270_v19  ;;  %v26420_v43 = vand.u32 4294901760, %v24596_v29  ;;  %v9242_v32 = vand.u32 4294901760, %v9241_v35  ;;  %v27133_v35 = vld [vmem:[#allocation46_spill] sm:$0xff] }
 0xa3b   :  { %v24612_v28 = vsub.f32 %v11750_v17, %v11876_v8  ;;  %v11903_v57 = vand.u32 4294901760, %v11902_v61  ;;  %v24614_v4 = vand.u32 4294901760, %v7729_v59  ;;  %v11915_v38 = vand.u32 4294901760, %v11914_v22  ;;  %v27134_v61 = vld [vmem:[#allocation47_spill] sm:$0xff]  ;;  %v27137_v24 = vld [vmem:[#allocation52_spill] sm:$0xff] }
 0xa3c   :  { %v24619_v6 = vpack.c.bf16 %v11880_v1, %v11876_v8  ;;  %v24621_v3 = vsub.f32 %v11752_v49, %v11880_v1  ;;  %v18897_v21 = vpack.c.bf16 %v9271_v50, %v9259_v31  ;;  %v11885_v55 = vsub.f32 %v24596_v29, %v26420_v43  ;;  %9243 = vmatprep.mubr.f32.mxu0 %v9242_v32  ;;  %v27149_v29 = vld [vmem:[#allocation8_spill] sm:$0xff] }
 0xa3d   :  { %27125 = vst [vmem:[#allocation195_spill] sm:$0xff] %v24612_v28  ;;  %27126 = vst [vmem:[#allocation196_spill] sm:$0xff] %v24614_v4  ;;  %v24627_v45 = vsub.f32 %v7729_v59, %v24614_v4  ;;  %v26415_v17 = vand.u32 4294901760, %v27130_v26  ;;  %v26416_v19 = vand.u32 4294901760, %v27131_v46  ;;  %v24632_v49 = vand.u32 4294901760, %v17333_v10 }
 0xa3e   :  { %27127 = vst [vmem:[#allocation197_spill] sm:$0xff] %v24619_v6  ;;  %27128 = vst [vmem:[#allocation198_spill] sm:$0xff] %v24621_v3  ;;  %19280 = vmatpush1.bf16.msra.mxu1 %v24619_v6  ;;  %18898 = vmatprep.subr.bf16.mxu0 %v18897_v21  ;;  %v11886_v8 = vand.u32 4294901760, %v11885_v55  ;;  %v26421_v31 = vand.u32 4294901760, %v27133_v35  ;;  %v26422_v1 = vand.u32 4294901760, %v27134_v61  ;;  %v19281_v50 = vpack.c.bf16 %v11915_v38, %v11903_v57  ;;  %v27136_v38 = vld [vmem:[#allocation50_spill] sm:$0xff] }
 0xa3f   :  { %27129 = vst [vmem:[#allocation199_spill] sm:$0xff] %v24627_v45  ;;  %27132 = vst [vmem:[#allocation200_spill] sm:$0xff] %v24632_v49  ;;  %v26425_v22 = vand.u32 4294901760, %v24627_v45  ;;  %v9264_v59 = vsub.f32 %v27130_v26, %v26415_v17  ;;  %v9276_v32 = vsub.f32 %v27131_v46, %v26416_v19  ;;  %v24644_v21 = vsub.f32 %v17333_v10, %v24632_v49 }
 0xa40   :  { %11887 = vmatprep.mubr.f32.mxu1 %v11886_v8  ;;  %v11908_v55 = vsub.f32 %v27133_v35, %v26421_v31  ;;  %v11920_v57 = vsub.f32 %v27134_v61, %v26422_v1  ;;  %v26430_v44 = vand.u32 4294901760, %v27136_v38  ;;  %19282 = vmatprep.subr.bf16.mxu1 %v19281_v50  ;;  %v26431_v10 = vand.u32 4294901760, %v27137_v24 }
 0xa41   :  { %27135 = vst [vmem:[#allocation201_spill] sm:$0xff] %v24644_v21  ;;  %v9247_v17 = vsub.f32 %v24627_v45, %v26425_v22  ;;  %v9265_v19 = vand.u32 4294901760, %v9264_v59  ;;  %v9277_v8 = vand.u32 4294901760, %v9276_v32  ;;  %v26434_v7 = vand.u32 4294901760, %v24644_v21 }
 0xa42   :  { %v11909_v20 = vand.u32 4294901760, %v11908_v55  ;;  %v11921_v43 = vand.u32 4294901760, %v11920_v57  ;;  %v9282_v31 = vsub.f32 %v27136_v38, %v26430_v44  ;;  %v9294_v50 = vsub.f32 %v27137_v24, %v26431_v10  ;;  %v27139_v55 = vld [vmem:[#allocation57_spill] sm:$0xff]  ;;  %v27141_v44 = vld [vmem:[#allocation58_spill] sm:$0xff] }
 0xa43   :  { %v9248_v1 = vand.u32 4294901760, %v9247_v17  ;;  %v18899_v2 = vpack.c.bf16 %v9277_v8, %v9265_v19  ;;  %v26437_v22 = vand.u32 4294901760, %v27138_v30  ;;  %v11891_v59 = vsub.f32 %v24644_v21, %v26434_v7  ;;  %v27140_v19 = vld [vmem:[#allocation21_spill] sm:$0xff] }
 0xa44   :  { %v19283_v32 = vpack.c.bf16 %v11921_v43, %v11909_v20  ;;  %v9283_v6 = vand.u32 4294901760, %v9282_v31  ;;  %v26438_v57 = vand.u32 4294901760, %v27139_v55  ;;  %v9295_v34 = vand.u32 4294901760, %v9294_v50  ;;  %v27142_v20 = vld [vmem:[#allocation12_spill] sm:$0xff]  ;;  %v27146_v21 = vld [vmem:[#allocation25_spill] sm:$0xff] }
 0xa45   :  { %9249 = vmatmul.mubr.f32.vlgmr.msra.gmra.mrb[34].mxu0 %v9248_v1  ;;  %v11926_v17 = vsub.f32 %v27138_v30, %v26437_v22  ;;  %v26441_v8 = vand.u32 4294901760, %v27140_v19  ;;  %v26448_v10 = vand.u32 4294901760, %v27141_v44  ;;  %v11892_v53 = vand.u32 4294901760, %v11891_v59  ;;  %v27143_v31 = vld [vmem:[#allocation24_spill] sm:$0xff] }
 0xa46   :  { %18900 = vmatpush1.bf16.msra.mxu0 %v18899_v2  ;;  %v11938_v7 = vsub.f32 %v27139_v55, %v26438_v57  ;;  %v26451_v43 = vand.u32 4294901760, %v27142_v20  ;;  %v26452_v16 = vand.u32 4294901760, %v27143_v31  ;;  %9640 = vmatprep.mubr.f32.mxu0 %v24418_v36  ;;  %v18901_v1 = vpack.c.bf16 %v9295_v34, %v9283_v6  ;;  %v27144_v34 = vld [vmem:[#allocation22_spill] sm:$0xff] }
 0xa47   :  { %v11927_v50 = vand.u32 4294901760, %v11926_v17  ;;  %v9288_v22 = vsub.f32 %v27140_v19, %v26441_v8  ;;  %v9300_v2 = vsub.f32 %v27141_v44, %v26448_v10  ;;  %11893 = vmatmul.mubr.f32.vlgmr.msra.gmra.mrb[34].mxu1 %v11892_v53  ;;  %v26455_v6 = vand.u32 4294901760, %v27144_v34 }
 0xa48   :  { %v11939_v59 = vand.u32 4294901760, %v11938_v7  ;;  %v11932_v57 = vsub.f32 %v27142_v20, %v26451_v43  ;;  %v11944_v36 = vsub.f32 %v27143_v31, %v26452_v16  ;;  %19284 = vmatpush1.bf16.msra.mxu1 %v19283_v32  ;;  %18902 = vmatprep.subr.bf16.mxu0 %v18901_v1  ;;  %v26458_v13 = vand.u32 4294901760, %v27145_v41  ;;  %v27147_v1 = vld [vmem:[#allocation27_spill] sm:$0xff] }
 0xa49   :  { %v9289_v17 = vand.u32 4294901760, %v9288_v22  ;;  %v9301_v8 = vand.u32 4294901760, %v9300_v2  ;;  %v26459_v10 = vand.u32 4294901760, %v27146_v21  ;;  %v9306_v43 = vsub.f32 %v27144_v34, %v26455_v6  ;;  %12284 = vmatprep.mubr.f32.mxu1 %v24585_v9 }
 0xa4a   :  { %v19285_v53 = vpack.c.bf16 %v11939_v59, %v11927_v50  ;;  %v11933_v7 = vand.u32 4294901760, %v11932_v57  ;;  %v11945_v45 = vand.u32 4294901760, %v11944_v36  ;;  %v9318_v32 = vsub.f32 %v27145_v41, %v26458_v13  ;;  %v27148_v50 = vld [vmem:[#allocation29_spill] sm:$0xff] }
 0xa4b   :  { %v18903_v16 = vpack.c.bf16 %v9301_v8, %v9289_v17  ;;  %v11950_v22 = vsub.f32 %v27146_v21, %v26459_v10  ;;  %v26460_v2 = vand.u32 4294901760, %v27147_v1  ;;  %v9307_v36 = vand.u32 4294901760, %v9306_v43  ;;  %v27150_v43 = vld [vmem:[#allocation10_spill] sm:$0xff] }
 0xa4c   :  { %19286 = vmatprep.subr.bf16.mxu1 %v19285_v53  ;;  %v19287_v57 = vpack.c.bf16 %v11945_v45, %v11933_v7  ;;  %v26465_v59 = vand.u32 4294901760, %v27148_v50  ;;  %v26466_v6 = vand.u32 4294901760, %v27149_v29  ;;  %v9319_v9 = vand.u32 4294901760, %v9318_v32 }
 0xa4d   :  { %18904 = vmatpush1.bf16.msra.mxu0 %v18903_v16  ;;  %v11951_v8 = vand.u32 4294901760, %v11950_v22  ;;  %v11962_v17 = vsub.f32 %v27147_v1, %v26460_v2  ;;  %v26468_v13 = vand.u32 4294901760, %v22427_v54  ;;  %v26473_v7 = vand.u32 4294901760, %v27150_v43  ;;  %v27151_v16 = vld [vmem:[#allocation16_spill] sm:$0xff] }
 0xa4e   :  { %19288 = vmatpush1.bf16.msra.mxu1 %v19287_v57  ;;  %v9312_v53 = vsub.f32 %v27148_v50, %v26465_v59  ;;  %v9324_v45 = vsub.f32 %v27149_v29, %v26466_v6  ;;  %v26474_v32 = vand.u32 4294901760, %v27151_v16  ;;  %v18905_v22 = vpack.c.bf16 %v9319_v9, %v9307_v36  ;;  %v27154_v50 = vld [vmem:[#allocation31_spill] sm:$0xff] }
 0xa4f   :  { %v11963_v10 = vand.u32 4294901760, %v11962_v17  ;;  %v11956_v2 = vsub.f32 %v22427_v54, %v26468_v13  ;;  %v26475_v57 = vand.u32 4294901760, %v27152_v14  ;;  %v11968_v59 = vsub.f32 %v27150_v43, %v26473_v7  ;;  %v27153_v17 = vld [vmem:[#allocation19_spill] sm:$0xff] }
 0xa50   :  { %v9313_v1 = vand.u32 4294901760, %v9312_v53  ;;  %v9325_v21 = vand.u32 4294901760, %v9324_v45  ;;  %v9330_v6 = vsub.f32 %v27151_v16, %v26474_v32  ;;  %18906 = vmatprep.subr.bf16.mxu0 %v18905_v22  ;;  %v26476_v13 = vand.u32 4294901760, %v27153_v17  ;;  %v27155_v22 = vld [vmem:[#allocation13_spill] sm:$0xff] }
 0xa51   :  { %v19289_v29 = vpack.c.bf16 %v11963_v10, %v11951_v8  ;;  %v11957_v9 = vand.u32 4294901760, %v11956_v2  ;;  %v9342_v36 = vsub.f32 %v27152_v14, %v26475_v57  ;;  %v11969_v53 = vand.u32 4294901760, %v11968_v59  ;;  %v27157_v59 = vld [vmem:[#allocation5_spill] sm:$0xff] }
 0xa52   :  { %v18907_v54 = vpack.c.bf16 %v9325_v21, %v9313_v1  ;;  %v9331_v45 = vand.u32 4294901760, %v9330_v6  ;;  %v26479_v41 = vand.u32 4294901760, %v27154_v50  ;;  %v11974_v32 = vsub.f32 %v27153_v17, %v26476_v13  ;;  %v27156_v1 = vld [vmem:[#allocation32_spill] sm:$0xff] }
 0xa53   :  { %19290 = vmatprep.subr.bf16.mxu1 %v19289_v29  ;;  %v9343_v7 = vand.u32 4294901760, %v9342_v36  ;;  %v26478_v10 = vand.u32 4294901760, %v27155_v22  ;;  %v26481_v2 = vand.u32 4294901760, %v22625_v18  ;;  %v19291_v8 = vpack.c.bf16 %v11969_v53, %v11957_v9 }
 0xa54   :  { %18908 = vmatpush1.bf16.msra.mxu0 %v18907_v54  ;;  %v11986_v21 = vsub.f32 %v27154_v50, %v26479_v41  ;;  %v26482_v6 = vand.u32 4294901760, %v27156_v1  ;;  %v26484_v57 = vand.u32 4294901760, %v27157_v59  ;;  %v11975_v36 = vand.u32 4294901760, %v11974_v32  ;;  %v27158_v41 = vld [vmem:[#allocation39_spill] sm:$0xff] }
 0xa55   :  { %v18909_v29 = vpack.c.bf16 %v9343_v7, %v9331_v45  ;;  %v9336_v13 = vsub.f32 %v27155_v22, %v26478_v10  ;;  %v9348_v17 = vsub.f32 %v22625_v18, %v26481_v2  ;;  %19292 = vmatpush1.bf16.msra.mxu1 %v19291_v8  ;;  %v26488_v7 = vand.u32 4294901760, %v22712_v15 }
 0xa56   :  { %v11987_v54 = vand.u32 4294901760, %v11986_v21  ;;  %v11980_v9 = vsub.f32 %v27156_v1, %v26482_v6  ;;  %v11992_v53 = vsub.f32 %v27157_v59, %v26484_v57  ;;  %v26489_v10 = vand.u32 4294901760, %v22714_v23 }
 0xa57   :  { %18910 = vmatprep.subr.bf16.mxu0 %v18909_v29  ;;  %v9337_v32 = vand.u32 4294901760, %v9336_v13  ;;  %v9349_v45 = vand.u32 4294901760, %v9348_v17  ;;  %v26493_v22 = vand.u32 4294901760, %v27158_v41  ;;  %v9354_v6 = vsub.f32 %v22712_v15, %v26488_v7  ;;  %v27159_v17 = vld [vmem:[#allocation40_spill] sm:$0xff] }
 0xa58   :  { %v19293_v2 = vpack.c.bf16 %v11987_v54, %v11975_v36  ;;  %v11981_v8 = vand.u32 4294901760, %v11980_v9  ;;  %v11993_v21 = vand.u32 4294901760, %v11992_v53  ;;  %v9366_v57 = vsub.f32 %v22714_v23, %v26489_v10  ;;  %v27160_v54 = vld [vmem:[#allocation38_spill] sm:$0xff]  ;;  %v27161_v53 = vld [vmem:[#allocation7_spill] sm:$0xff] }
 0xa59   :  { %v18911_v1 = vpack.c.bf16 %v9349_v45, %v9337_v32  ;;  %v11998_v13 = vsub.f32 %v27158_v41, %v26493_v22  ;;  %v26492_v29 = vand.u32 4294901760, %v27159_v17  ;;  %v9355_v36 = vand.u32 4294901760, %v9354_v6  ;;  %v27162_v10 = vld [vmem:[#allocation59_spill] sm:$0xff] }
 0xa5a   :  { %19294 = vmatprep.subr.bf16.mxu1 %v19293_v2  ;;  %v19295_v59 = vpack.c.bf16 %v11993_v21, %v11981_v8  ;;  %v26495_v9 = vand.u32 4294901760, %v27160_v54  ;;  %v26496_v18 = vand.u32 4294901760, %v27161_v53  ;;  %v9367_v7 = vand.u32 4294901760, %v9366_v57  ;;  %v27163_v8 = vld [vmem:[#allocation61_spill] sm:$0xff] }
 0xa5b   :  { %18912 = vmatpush1.bf16.msra.mxu0 %v18911_v1  ;;  %v11999_v32 = vand.u32 4294901760, %v11998_v13  ;;  %v12010_v45 = vsub.f32 %v27159_v17, %v26492_v29  ;;  %v26498_v23 = vand.u32 4294901760, %v27162_v10  ;;  %v26502_v21 = vand.u32 4294901760, %v27163_v8 }
 0xa5c   :  { %19296 = vmatpush1.bf16.msra.mxu1 %v19295_v59  ;;  %v9360_v2 = vsub.f32 %v27160_v54, %v26495_v9  ;;  %v9372_v6 = vsub.f32 %v27161_v53, %v26496_v18  ;;  %v26503_v57 = vand.u32 4294901760, %v22868_v5  ;;  %v18913_v1 = vpack.c.bf16 %v9367_v7, %v9355_v36  ;;  %v27165_v54 = vld [vmem:[#allocation67_spill] sm:$0xff] }
 0xa5d   :  { %v12011_v13 = vand.u32 4294901760, %v12010_v45  ;;  %v12004_v29 = vsub.f32 %v27162_v10, %v26498_v23  ;;  %v26506_v59 = vand.u32 4294901760, %v22870_v39  ;;  %v12016_v9 = vsub.f32 %v27163_v8, %v26502_v21  ;;  %v27164_v45 = vld [vmem:[#allocation66_spill] sm:$0xff] }
 0xa5e   :  { %v9361_v22 = vand.u32 4294901760, %v9360_v2  ;;  %v9373_v17 = vand.u32 4294901760, %v9372_v6  ;;  %v9378_v18 = vsub.f32 %v22868_v5, %v26503_v57  ;;  %18914 = vmatprep.subr.bf16.mxu0 %v18913_v1  ;;  %v26507_v23 = vand.u32 4294901760, %v27164_v45  ;;  %v27166_v1 = vld [vmem:[#allocation68_spill] sm:$0xff] }
 0xa5f   :  { %v19297_v53 = vpack.c.bf16 %v12011_v13, %v11999_v32  ;;  %v12005_v7 = vand.u32 4294901760, %v12004_v29  ;;  %v9390_v36 = vsub.f32 %v22870_v39, %v26506_v59  ;;  %v12017_v2 = vand.u32 4294901760, %v12016_v9  ;;  %v27167_v29 = vld [vmem:[#allocation70_spill] sm:$0xff]  ;;  %v27169_v9 = vld [vmem:[#allocation73_spill] sm:$0xff] }
 0xa60   :  { %v18915_v10 = vpack.c.bf16 %v9373_v17, %v9361_v22  ;;  %v9379_v6 = vand.u32 4294901760, %v9378_v18  ;;  %v26510_v41 = vand.u32 4294901760, %v27165_v54  ;;  %v12022_v57 = vsub.f32 %v27164_v45, %v26507_v23  ;;  %v27168_v17 = vld [vmem:[#allocation71_spill] sm:$0xff] }
 0xa61   :  { %19298 = vmatprep.subr.bf16.mxu1 %v19297_v53  ;;  %v9391_v21 = vand.u32 4294901760, %v9390_v36  ;;  %v26509_v32 = vand.u32 4294901760, %v27166_v1  ;;  %v26513_v13 = vand.u32 4294901760, %v27167_v29  ;;  %v19299_v5 = vpack.c.bf16 %v12017_v2, %v12005_v7 }
 0xa62   :  { %18916 = vmatpush1.bf16.msra.mxu0 %v18915_v10  ;;  %v12034_v22 = vsub.f32 %v27165_v54, %v26510_v41  ;;  %v26514_v18 = vand.u32 4294901760, %v27168_v17  ;;  %v26516_v59 = vand.u32 4294901760, %v27169_v9  ;;  %v12023_v36 = vand.u32 4294901760, %v12022_v57 }
 0xa63   :  { %v18917_v53 = vpack.c.bf16 %v9391_v21, %v9379_v6  ;;  %v9384_v23 = vsub.f32 %v27166_v1, %v26509_v32  ;;  %v9396_v45 = vsub.f32 %v27167_v29, %v26513_v13  ;;  %19300 = vmatpush1.bf16.msra.mxu1 %v19299_v5  ;;  %v26519_v21 = vand.u32 4294901760, %v23024_v63  ;;  %v27170_v32 = vld [vmem:[#allocation76_spill] sm:$0xff]  ;;  %v27171_v1 = vld [vmem:[#allocation78_spill] sm:$0xff] }
 0xa64   :  { %v12035_v10 = vand.u32 4294901760, %v12034_v22  ;;  %v12028_v7 = vsub.f32 %v27168_v17, %v26514_v18  ;;  %v12040_v2 = vsub.f32 %v27169_v9, %v26516_v59  ;;  %v26520_v41 = vand.u32 4294901760, %v27170_v32 }
 0xa65   :  { %18918 = vmatprep.subr.bf16.mxu0 %v18917_v53  ;;  %v9385_v57 = vand.u32 4294901760, %v9384_v23  ;;  %v9397_v6 = vand.u32 4294901760, %v9396_v45  ;;  %v26522_v54 = vand.u32 4294901760, %v27171_v1  ;;  %v9402_v18 = vsub.f32 %v23024_v63, %v26519_v21  ;;  %v27172_v45 = vld [vmem:[#allocation79_spill] sm:$0xff] }
 0xa66   :  { %v19301_v13 = vpack.c.bf16 %v12035_v10, %v12023_v36  ;;  %v12029_v5 = vand.u32 4294901760, %v12028_v7  ;;  %v12041_v22 = vand.u32 4294901760, %v12040_v2  ;;  %v9414_v59 = vsub.f32 %v27170_v32, %v26520_v41  ;;  %v27173_v10 = vld [vmem:[#allocation80_spill] sm:$0xff]  ;;  %v27174_v2 = vld [vmem:[#allocation82_spill] sm:$0xff]  ;;  %v27175_v41 = vld [vmem:[#allocation83_spill] sm:$0xff] }
 0xa67   :  { %v18919_v17 = vpack.c.bf16 %v9397_v6, %v9385_v57  ;;  %v12046_v23 = vsub.f32 %v27171_v1, %v26522_v54  ;;  %v26523_v53 = vand.u32 4294901760, %v27172_v45  ;;  %v9403_v36 = vand.u32 4294901760, %v9402_v18 }
 0xa68   :  { %19302 = vmatprep.subr.bf16.mxu1 %v19301_v13  ;;  %v19303_v9 = vpack.c.bf16 %v12041_v22, %v12029_v5  ;;  %v26528_v7 = vand.u32 4294901760, %v27173_v10  ;;  %v26529_v29 = vand.u32 4294901760, %v27174_v2  ;;  %v9415_v21 = vand.u32 4294901760, %v9414_v59  ;;  %v27176_v5 = vld [vmem:[#allocation85_spill] sm:$0xff] }
 0xa69   :  { %18920 = vmatpush1.bf16.msra.mxu0 %v18919_v17  ;;  %v12047_v57 = vand.u32 4294901760, %v12046_v23  ;;  %v12058_v6 = vsub.f32 %v27172_v45, %v26523_v53  ;;  %v26531_v32 = vand.u32 4294901760, %v27175_v41  ;;  %v26536_v22 = vand.u32 4294901760, %v27176_v5  ;;  %v27177_v17 = vld [vmem:[#allocation87_spill] sm:$0xff]  ;;  %v27178_v45 = vld [vmem:[#allocation88_spill] sm:$0xff] }
 0xa6a   :  { %19304 = vmatpush1.bf16.msra.mxu1 %v19303_v9  ;;  %v9408_v13 = vsub.f32 %v27173_v10, %v26528_v7  ;;  %v9420_v18 = vsub.f32 %v27174_v2, %v26529_v29  ;;  %v26537_v59 = vand.u32 4294901760, %v27177_v17  ;;  %v18921_v23 = vpack.c.bf16 %v9415_v21, %v9403_v36  ;;  %v27180_v10 = vld [vmem:[#allocation91_spill] sm:$0xff] }
 0xa6b   :  { %v12059_v54 = vand.u32 4294901760, %v12058_v6  ;;  %v12052_v53 = vsub.f32 %v27175_v41, %v26531_v32  ;;  %v26539_v9 = vand.u32 4294901760, %v27178_v45  ;;  %v12064_v7 = vsub.f32 %v27176_v5, %v26536_v22  ;;  %v27179_v6 = vld [vmem:[#allocation90_spill] sm:$0xff] }
 0xa6c   :  { %v9409_v1 = vand.u32 4294901760, %v9408_v13  ;;  %v9421_v63 = vand.u32 4294901760, %v9420_v18  ;;  %v9426_v29 = vsub.f32 %v27177_v17, %v26537_v59  ;;  %18922 = vmatprep.subr.bf16.mxu0 %v18921_v23  ;;  %v26540_v32 = vand.u32 4294901760, %v27179_v6  ;;  %v27181_v23 = vld [vmem:[#allocation92_spill] sm:$0xff] }
 0xa6d   :  { %v19305_v2 = vpack.c.bf16 %v12059_v54, %v12047_v57  ;;  %v12053_v21 = vand.u32 4294901760, %v12052_v53  ;;  %v9438_v36 = vsub.f32 %v27178_v45, %v26539_v9  ;;  %v12065_v13 = vand.u32 4294901760, %v12064_v7  ;;  %v27182_v53 = vld [vmem:[#allocation94_spill] sm:$0xff]  ;;  %v27184_v7 = vld [vmem:[#allocation97_spill] sm:$0xff] }
 0xa6e   :  { %v18923_v41 = vpack.c.bf16 %v9421_v63, %v9409_v1  ;;  %v9427_v18 = vand.u32 4294901760, %v9426_v29  ;;  %v26542_v39 = vand.u32 4294901760, %v27180_v10  ;;  %v12070_v59 = vsub.f32 %v27179_v6, %v26540_v32  ;;  %v27183_v1 = vld [vmem:[#allocation95_spill] sm:$0xff] }
 0xa6f   :  { %19306 = vmatprep.subr.bf16.mxu1 %v19305_v2  ;;  %v9439_v22 = vand.u32 4294901760, %v9438_v36  ;;  %v26543_v54 = vand.u32 4294901760, %v27181_v23  ;;  %v26547_v57 = vand.u32 4294901760, %v27182_v53  ;;  %v19307_v17 = vpack.c.bf16 %v12065_v13, %v12053_v21 }
 0xa70   :  { %18924 = vmatpush1.bf16.msra.mxu0 %v18923_v41  ;;  %v12082_v63 = vsub.f32 %v27180_v10, %v26542_v39  ;;  %v26548_v29 = vand.u32 4294901760, %v27183_v1  ;;  %v26550_v9 = vand.u32 4294901760, %v27184_v7  ;;  %v12071_v36 = vand.u32 4294901760, %v12070_v59  ;;  %v27187_v10 = vld [vmem:[#allocation101_spill] sm:$0xff] }
 0xa71   :  { %v18925_v2 = vpack.c.bf16 %v9439_v22, %v9427_v18  ;;  %v9432_v32 = vsub.f32 %v27181_v23, %v26543_v54  ;;  %v9444_v6 = vsub.f32 %v27182_v53, %v26547_v57  ;;  %19308 = vmatpush1.bf16.msra.mxu1 %v19307_v17  ;;  %v27185_v22 = vld [vmem:[#allocation99_spill] sm:$0xff]  ;;  %v27186_v54 = vld [vmem:[#allocation100_spill] sm:$0xff]  ;;  %v26556_v45 = vand.u32 4294901760, %v27187_v10 }
 0xa72   :  { %v12083_v41 = vand.u32 4294901760, %v12082_v63  ;;  %v12076_v21 = vsub.f32 %v27183_v1, %v26548_v29  ;;  %v12088_v13 = vsub.f32 %v27184_v7, %v26550_v9  ;;  %v26553_v59 = vand.u32 4294901760, %v27185_v22 }
 0xa73   :  { %18926 = vmatprep.subr.bf16.mxu0 %v18925_v2  ;;  %v9433_v18 = vand.u32 4294901760, %v9432_v32  ;;  %v9445_v39 = vand.u32 4294901760, %v9444_v6  ;;  %v26554_v23 = vand.u32 4294901760, %v27186_v54  ;;  %v12094_v32 = vsub.f32 %v27187_v10, %v26556_v45  ;;  %v27188_v6 = vld [vmem:[#allocation103_spill] sm:$0xff] }
 0xa74   :  { %v19309_v57 = vpack.c.bf16 %v12083_v41, %v12071_v36  ;;  %v12077_v17 = vand.u32 4294901760, %v12076_v21  ;;  %v12089_v63 = vand.u32 4294901760, %v12088_v13  ;;  %v9450_v29 = vsub.f32 %v27185_v22, %v26553_v59  ;;  %v27189_v41 = vld [vmem:[#allocation105_spill] sm:$0xff]  ;;  %v27190_v13 = vld [vmem:[#allocation106_spill] sm:$0xff] }
 0xa75   :  { %v18927_v1 = vpack.c.bf16 %v9445_v39, %v9433_v18  ;;  %v9462_v9 = vsub.f32 %v27186_v54, %v26554_v23  ;;  %v26557_v2 = vand.u32 4294901760, %v27188_v6  ;;  %v26561_v21 = vand.u32 4294901760, %v27189_v41  ;;  %v27191_v23 = vld [vmem:[#allocation108_spill] sm:$0xff] }
 0xa76   :  { %19310 = vmatprep.subr.bf16.mxu1 %v19309_v57  ;;  %v19311_v7 = vpack.c.bf16 %v12089_v63, %v12077_v17  ;;  %v9451_v36 = vand.u32 4294901760, %v9450_v29  ;;  %v26562_v53 = vand.u32 4294901760, %v27190_v13  ;;  %v12095_v39 = vand.u32 4294901760, %v12094_v32  ;;  %v27192_v17 = vld [vmem:[#allocation109_spill] sm:$0xff] }
 0xa77   :  { %18928 = vmatpush1.bf16.msra.mxu0 %v18927_v1  ;;  %v9463_v59 = vand.u32 4294901760, %v9462_v9  ;;  %v12106_v18 = vsub.f32 %v27188_v6, %v26557_v2  ;;  %v26564_v54 = vand.u32 4294901760, %v27191_v23  ;;  %v9456_v57 = vsub.f32 %v27189_v41, %v26561_v21  ;;  %v27193_v1 = vld [vmem:[#allocation111_spill] sm:$0xff]  ;;  %v27194_v6 = vld [vmem:[#allocation112_spill] sm:$0xff] }
 0xa78   :  { %19312 = vmatpush1.bf16.msra.mxu1 %v19311_v7  ;;  %v9468_v29 = vsub.f32 %v27190_v13, %v26562_v53  ;;  %v26568_v63 = vand.u32 4294901760, %v27192_v17  ;;  %v26569_v9 = vand.u32 4294901760, %v27193_v1  ;;  %v26571_v7 = vand.u32 4294901760, %v27194_v6 }
 0xa79   :  { %v18929_v32 = vpack.c.bf16 %v9463_v59, %v9451_v36  ;;  %v12107_v45 = vand.u32 4294901760, %v12106_v18  ;;  %v12100_v2 = vsub.f32 %v27191_v23, %v26564_v54  ;;  %v9457_v10 = vand.u32 4294901760, %v9456_v57  ;;  %v27195_v18 = vld [vmem:[#allocation114_spill] sm:$0xff]  ;;  %v27196_v23 = vld [vmem:[#allocation115_spill] sm:$0xff] }
 0xa7a   :  { %v9469_v22 = vand.u32 4294901760, %v9468_v29  ;;  %v12112_v21 = vsub.f32 %v27192_v17, %v26568_v63  ;;  %v9474_v53 = vsub.f32 %v27193_v1, %v26569_v9  ;;  %v9486_v36 = vsub.f32 %v27194_v6, %v26571_v7  ;;  %v24964_v17 = vpop.f32.mrb[32].mxu0 }
 0xa7b   :  { %18930 = vmatprep.subr.bf16.mxu0 %v18929_v32  ;;  %v19313_v5 = vpack.c.bf16 %v12107_v45, %v12095_v39  ;;  %v12101_v59 = vand.u32 4294901760, %v12100_v2  ;;  %v26572_v54 = vand.u32 4294901760, %v27195_v18  ;;  %v26574_v13 = vand.u32 4294901760, %v27196_v23  ;;  %v27197_v32 = vld [vmem:[#allocation117_spill] sm:$0xff]  ;;  %v27198_v2 = vld [vmem:[#allocation118_spill] sm:$0xff]  ;;  %27207 = vst [vmem:[#allocation105_spill] sm:$0xff] %v24964_v17 }
 0xa7c   :  { %v18931_v8 = vpack.c.bf16 %v9469_v22, %v9457_v10  ;;  %v12113_v57 = vand.u32 4294901760, %v12112_v21  ;;  %v9475_v29 = vand.u32 4294901760, %v9474_v53  ;;  %v9487_v63 = vand.u32 4294901760, %v9486_v36  ;;  %v27199_v22 = vld [vmem:[#allocation119_spill] sm:$0xff]  ;;  %v27200_v21 = vld [vmem:[#allocation121_spill] sm:$0xff] }
 0xa7d   :  { %19314 = vmatprep.subr.bf16.mxu1 %v19313_v5  ;;  %v12118_v9 = vsub.f32 %v27195_v18, %v26572_v54  ;;  %v26575_v45 = vand.u32 4294901760, %v27197_v32  ;;  %v26579_v39 = vand.u32 4294901760, %v27198_v2  ;;  %v12130_v10 = vsub.f32 %v27196_v23, %v26574_v13  ;;  %v27203_v23 = vld [vmem:[#allocation125_spill] sm:$0xff] }
 0xa7e   :  { %18932 = vmatpush1.bf16.msra.mxu0 %v18931_v8  ;;  %v19315_v1 = vpack.c.bf16 %v12113_v57, %v12101_v59  ;;  %v26580_v53 = vand.u32 4294901760, %v27199_v22  ;;  %v26582_v7 = vand.u32 4294901760, %v27200_v21  ;;  %v18933_v5 = vpack.c.bf16 %v9487_v63, %v9475_v29  ;;  %v27201_v63 = vld [vmem:[#allocation122_spill] sm:$0xff] }
 0xa7f   :  { %v12119_v36 = vand.u32 4294901760, %v12118_v9  ;;  %v9480_v54 = vsub.f32 %v27197_v32, %v26575_v45  ;;  %v9492_v18 = vsub.f32 %v27198_v2, %v26579_v39  ;;  %v12131_v8 = vand.u32 4294901760, %v12130_v10  ;;  %v27202_v45 = vld [vmem:[#allocation124_spill] sm:$0xff] }
 0xa80   :  { %19316 = vmatpush1.bf16.msra.mxu1 %v19315_v1  ;;  %v12124_v59 = vsub.f32 %v27199_v22, %v26580_v53  ;;  %v12136_v57 = vsub.f32 %v27200_v21, %v26582_v7  ;;  %v26588_v9 = vand.u32 4294901760, %v27201_v63  ;;  %18934 = vmatprep.subr.bf16.mxu0 %v18933_v5  ;;  %v26586_v32 = vand.u32 4294901760, %v27202_v45 }
 0xa81   :  { %v9481_v29 = vand.u32 4294901760, %v9480_v54  ;;  %v9493_v13 = vand.u32 4294901760, %v9492_v18  ;;  %v26587_v6 = vand.u32 4294901760, %v27203_v23  ;;  %v19317_v39 = vpack.c.bf16 %v12131_v8, %v12119_v36  ;;  %v27204_v18 = vld [vmem:[#allocation127_spill] sm:$0xff]  ;;  %v27205_v8 = vld [vmem:[#allocation129_spill] sm:$0xff] }
 0xa82   :  { %v12125_v1 = vand.u32 4294901760, %v12124_v59  ;;  %v12137_v10 = vand.u32 4294901760, %v12136_v57  ;;  %v9498_v53 = vsub.f32 %v27201_v63, %v26588_v9  ;;  %v9510_v7 = vsub.f32 %v27202_v45, %v26586_v32  ;;  %v27206_v57 = vld [vmem:[#allocation130_spill] sm:$0xff]  ;;  %v27209_v9 = vld [vmem:[#allocation132_spill] sm:$0xff] }
 0xa83   :  { %v18935_v22 = vpack.c.bf16 %v9493_v13, %v9481_v29  ;;  %v12142_v54 = vsub.f32 %v27203_v23, %v26587_v6  ;;  %v26591_v5 = vand.u32 4294901760, %v27204_v18  ;;  %19318 = vmatprep.subr.bf16.mxu1 %v19317_v39  ;;  %v26597_v59 = vand.u32 4294901760, %v27205_v8  ;;  %v24966_v13 = vpop.f32.mrb[32].mxu1  ;;  %v24972_v39 = vpop.f32.mrb[33].mxu0 }
 0xa84   :  { %v19319_v21 = vpack.c.bf16 %v12137_v10, %v12125_v1  ;;  %v9499_v36 = vand.u32 4294901760, %v9498_v53  ;;  %v26598_v2 = vand.u32 4294901760, %v27206_v57  ;;  %27208 = vst [vmem:[#allocation202_spill] sm:$0xff] %v24966_v13  ;;  %v9511_v29 = vand.u32 4294901760, %v9510_v7  ;;  %27210 = vst [vmem:[#allocation203_spill] sm:$0xff] %v24972_v39  ;;  %v24974_v53 = vpop.f32.mrb[33].mxu1 }
 0xa85   :  { %18936 = vmatpush1.bf16.msra.mxu0 %v18935_v22  ;;  %v12143_v32 = vand.u32 4294901760, %v12142_v54  ;;  %v12154_v6 = vsub.f32 %v27204_v18, %v26591_v5  ;;  %v26600_v23 = vand.u32 4294901760, %v27209_v9  ;;  %27211 = vst [vmem:[#allocation204_spill] sm:$0xff] %v24974_v53  ;;  %v9504_v1 = vsub.f32 %v27205_v8, %v26597_v59  ;;  %v27212_v22 = vld [vmem:[#allocation133_spill] sm:$0xff]  ;;  %v27213_v54 = vld [vmem:[#allocation135_spill] sm:$0xff]  ;;  %v27214_v53 = vld [vmem:[#allocation136_spill] sm:$0xff] }
 0xa86   :  { %19320 = vmatpush1.bf16.msra.mxu1 %v19319_v21  ;;  %v9516_v7 = vsub.f32 %v27206_v57, %v26598_v2  ;;  %v26604_v10 = vand.u32 4294901760, %v27212_v22  ;;  %v26605_v13 = vand.u32 4294901760, %v27213_v54  ;;  %v18937_v5 = vpack.c.bf16 %v9511_v29, %v9499_v36  ;;  %v27215_v29 = vld [vmem:[#allocation138_spill] sm:$0xff]  ;;  %v27216_v8 = vld [vmem:[#allocation139_spill] sm:$0xff] }
 0xa87   :  { %v12155_v17 = vand.u32 4294901760, %v12154_v6  ;;  %v12148_v39 = vsub.f32 %v27209_v9, %v26600_v23  ;;  %v26607_v21 = vand.u32 4294901760, %v27214_v53  ;;  %v9505_v18 = vand.u32 4294901760, %v9504_v1 }
 0xa88   :  { %v9517_v45 = vand.u32 4294901760, %v9516_v7  ;;  %v12160_v59 = vsub.f32 %v27212_v22, %v26604_v10  ;;  %v9522_v2 = vsub.f32 %v27213_v54, %v26605_v13  ;;  %18938 = vmatprep.subr.bf16.mxu0 %v18937_v5  ;;  %v26608_v23 = vand.u32 4294901760, %v27215_v29  ;;  %v27217_v5 = vld [vmem:[#allocation141_spill] sm:$0xff]  ;;  %v27299_v22 = vld [vmem:[#allocation66_spill] sm:$0xff] }
 0xa89   :  { %v19321_v57 = vpack.c.bf16 %v12155_v17, %v12143_v32  ;;  %v12149_v36 = vand.u32 4294901760, %v12148_v39  ;;  %v9534_v6 = vsub.f32 %v27214_v53, %v26607_v21  ;;  %v26610_v63 = vand.u32 4294901760, %v27216_v8  ;;  %v27218_v32 = vld [vmem:[#allocation142_spill] sm:$0xff] }
 0xa8a   :  { %v18939_v9 = vpack.c.bf16 %v9517_v45, %v9505_v18  ;;  %v12161_v1 = vand.u32 4294901760, %v12160_v59  ;;  %v9523_v7 = vand.u32 4294901760, %v9522_v2  ;;  %v12166_v13 = vsub.f32 %v27215_v29, %v26608_v23  ;;  %v27219_v18 = vld [vmem:[#allocation143_spill] sm:$0xff]  ;;  %v27220_v59 = vld [vmem:[#allocation145_spill] sm:$0xff] }
 0xa8b   :  { %19322 = vmatprep.subr.bf16.mxu1 %v19321_v57  ;;  %v9535_v10 = vand.u32 4294901760, %v9534_v6  ;;  %v26611_v17 = vand.u32 4294901760, %v27217_v5  ;;  %v26615_v39 = vand.u32 4294901760, %v27218_v32  ;;  %v12178_v45 = vsub.f32 %v27216_v8, %v26610_v63  ;;  %v27223_v8 = vld [vmem:[#allocation149_spill] sm:$0xff] }
 0xa8c   :  { %18940 = vmatpush1.bf16.msra.mxu0 %v18939_v9  ;;  %v19323_v54 = vpack.c.bf16 %v12161_v1, %v12149_v36  ;;  %v26616_v2 = vand.u32 4294901760, %v27219_v18  ;;  %v26618_v21 = vand.u32 4294901760, %v27220_v59  ;;  %v12167_v6 = vand.u32 4294901760, %v12166_v13 }
 0xa8d   :  { %v18941_v57 = vpack.c.bf16 %v9535_v10, %v9523_v7  ;;  %v9528_v23 = vsub.f32 %v27217_v5, %v26611_v17  ;;  %v9540_v29 = vsub.f32 %v27218_v32, %v26615_v39  ;;  %v12179_v9 = vand.u32 4294901760, %v12178_v45  ;;  %v27221_v10 = vld [vmem:[#allocation146_spill] sm:$0xff]  ;;  %v27222_v17 = vld [vmem:[#allocation148_spill] sm:$0xff] }
 0xa8e   :  { %19324 = vmatpush1.bf16.msra.mxu1 %v19323_v54  ;;  %v12172_v36 = vsub.f32 %v27219_v18, %v26616_v2  ;;  %v12184_v1 = vsub.f32 %v27220_v59, %v26618_v21  ;;  %v26621_v13 = vand.u32 4294901760, %v27221_v10  ;;  %v26622_v5 = vand.u32 4294901760, %v27222_v17 }
 0xa8f   :  { %18942 = vmatprep.subr.bf16.mxu0 %v18941_v57  ;;  %v9529_v7 = vand.u32 4294901760, %v9528_v23  ;;  %v9541_v63 = vand.u32 4294901760, %v9540_v29  ;;  %v26624_v53 = vand.u32 4294901760, %v27223_v8  ;;  %v19325_v39 = vpack.c.bf16 %v12179_v9, %v12167_v6  ;;  %v27224_v29 = vld [vmem:[#allocation151_spill] sm:$0xff]  ;;  %v27225_v9 = vld [vmem:[#allocation153_spill] sm:$0xff] }
 0xa90   :  { %v12173_v54 = vand.u32 4294901760, %v12172_v36  ;;  %v12185_v45 = vand.u32 4294901760, %v12184_v1  ;;  %v9546_v2 = vsub.f32 %v27221_v10, %v26621_v13  ;;  %v9558_v21 = vsub.f32 %v27222_v17, %v26622_v5  ;;  %v27226_v1 = vld [vmem:[#allocation154_spill] sm:$0xff]  ;;  %v27227_v5 = vld [vmem:[#allocation156_spill] sm:$0xff] }
 0xa91   :  { %v18943_v18 = vpack.c.bf16 %v9541_v63, %v9529_v7  ;;  %v12190_v23 = vsub.f32 %v27223_v8, %v26624_v53  ;;  %v26625_v57 = vand.u32 4294901760, %v27224_v29  ;;  %19326 = vmatprep.subr.bf16.mxu1 %v19325_v39  ;;  %v26629_v36 = vand.u32 4294901760, %v27225_v9 }
 0xa92   :  { %v19327_v59 = vpack.c.bf16 %v12185_v45, %v12173_v54  ;;  %v9547_v6 = vand.u32 4294901760, %v9546_v2  ;;  %v26630_v32 = vand.u32 4294901760, %v27226_v1  ;;  %v9559_v13 = vand.u32 4294901760, %v9558_v21  ;;  %v27228_v54 = vld [vmem:[#allocation157_spill] sm:$0xff] }
 0xa93   :  { %18944 = vmatpush1.bf16.msra.mxu0 %v18943_v18  ;;  %v12191_v63 = vand.u32 4294901760, %v12190_v23  ;;  %v12202_v7 = vsub.f32 %v27224_v29, %v26625_v57  ;;  %v26632_v17 = vand.u32 4294901760, %v27227_v5  ;;  %v9552_v39 = vsub.f32 %v27225_v9, %v26629_v36  ;;  %v27229_v18 = vld [vmem:[#allocation159_spill] sm:$0xff]  ;;  %v27230_v29 = vld [vmem:[#allocation160_spill] sm:$0xff] }
 0xa94   :  { %19328 = vmatpush1.bf16.msra.mxu1 %v19327_v59  ;;  %v9564_v2 = vsub.f32 %v27226_v1, %v26630_v32  ;;  %v26635_v45 = vand.u32 4294901760, %v27228_v54  ;;  %v26636_v21 = vand.u32 4294901760, %v27229_v18  ;;  %v18945_v23 = vpack.c.bf16 %v9559_v13, %v9547_v6 }
 0xa95   :  { %v12203_v53 = vand.u32 4294901760, %v12202_v7  ;;  %v12196_v57 = vsub.f32 %v27227_v5, %v26632_v17  ;;  %v26638_v59 = vand.u32 4294901760, %v27230_v29  ;;  %v9553_v8 = vand.u32 4294901760, %v9552_v39  ;;  %v27231_v5 = vld [vmem:[#allocation163_spill] sm:$0xff] }
 0xa96   :  { %v9565_v10 = vand.u32 4294901760, %v9564_v2  ;;  %v12208_v36 = vsub.f32 %v27228_v54, %v26635_v45  ;;  %v9570_v32 = vsub.f32 %v27229_v18, %v26636_v21  ;;  %18946 = vmatprep.subr.bf16.mxu0 %v18945_v23  ;;  %v26639_v7 = vand.u32 4294901760, %v24197_v58  ;;  %v27232_v23 = vld [vmem:[#allocation165_spill] sm:$0xff] }
 0xa97   :  { %v19329_v1 = vpack.c.bf16 %v12203_v53, %v12191_v63  ;;  %v12197_v13 = vand.u32 4294901760, %v12196_v57  ;;  %v9582_v6 = vsub.f32 %v27230_v29, %v26638_v59  ;;  %v26642_v9 = vand.u32 4294901760, %v27231_v5  ;;  %v27233_v57 = vld [vmem:[#allocation166_spill] sm:$0xff] }
 0xa98   :  { %v18947_v17 = vpack.c.bf16 %v9565_v10, %v9553_v8  ;;  %v12209_v39 = vand.u32 4294901760, %v12208_v36  ;;  %v9571_v2 = vand.u32 4294901760, %v9570_v32  ;;  %v12214_v21 = vsub.f32 %v24197_v58, %v26639_v7  ;;  %v27234_v10 = vld [vmem:[#allocation167_spill] sm:$0xff]  ;;  %v27235_v36 = vld [vmem:[#allocation169_spill] sm:$0xff] }
 0xa99   :  { %19330 = vmatprep.subr.bf16.mxu1 %v19329_v1  ;;  %v9583_v45 = vand.u32 4294901760, %v9582_v6  ;;  %v26643_v53 = vand.u32 4294901760, %v27232_v23  ;;  %v26646_v63 = vand.u32 4294901760, %v27233_v57  ;;  %v12226_v8 = vsub.f32 %v27231_v5, %v26642_v9 }
 0xa9a   :  { %18948 = vmatpush1.bf16.msra.mxu0 %v18947_v17  ;;  %v19331_v18 = vpack.c.bf16 %v12209_v39, %v12197_v13  ;;  %v26647_v32 = vand.u32 4294901760, %v27234_v10  ;;  %v26649_v59 = vand.u32 4294901760, %v27235_v36  ;;  %v12215_v6 = vand.u32 4294901760, %v12214_v21 }
 0xa9b   :  { %v18949_v1 = vpack.c.bf16 %v9583_v45, %v9571_v2  ;;  %v9576_v7 = vsub.f32 %v27232_v23, %v26643_v53  ;;  %v9588_v58 = vsub.f32 %v27233_v57, %v26646_v63  ;;  %v12227_v17 = vand.u32 4294901760, %v12226_v8  ;;  %v27236_v45 = vld [vmem:[#allocation170_spill] sm:$0xff]  ;;  %v27237_v53 = vld [vmem:[#allocation172_spill] sm:$0xff] }
 0xa9c   :  { %19332 = vmatpush1.bf16.msra.mxu1 %v19331_v18  ;;  %v12220_v13 = vsub.f32 %v27234_v10, %v26647_v32  ;;  %v12232_v39 = vsub.f32 %v27235_v36, %v26649_v59  ;;  %v26655_v21 = vand.u32 4294901760, %v27236_v45  ;;  %v26650_v23 = vand.u32 4294901760, %v27237_v53 }
 0xa9d   :  { %18950 = vmatprep.subr.bf16.mxu0 %v18949_v1  ;;  %v9577_v2 = vand.u32 4294901760, %v9576_v7  ;;  %v9589_v9 = vand.u32 4294901760, %v9588_v58  ;;  %v26652_v5 = vand.u32 4294901760, %v24352_v12  ;;  %v19333_v63 = vpack.c.bf16 %v12227_v17, %v12215_v6 }
 0xa9e   :  { %v12221_v18 = vand.u32 4294901760, %v12220_v13  ;;  %v12233_v8 = vand.u32 4294901760, %v12232_v39  ;;  %v9594_v32 = vsub.f32 %v27236_v45, %v26655_v21  ;;  %v9606_v59 = vsub.f32 %v27237_v53, %v26650_v23 }
 0xa9f   :  { %v18951_v10 = vpack.c.bf16 %v9589_v9, %v9577_v2  ;;  %v12238_v58 = vsub.f32 %v24352_v12, %v26652_v5  ;;  %v26651_v7 = vand.u32 4294901760, %v24357_v40  ;;  %19334 = vmatprep.subr.bf16.mxu1 %v19333_v63  ;;  %v26653_v17 = vand.u32 4294901760, %v24395_v51 }
 0xaa0   :  { %v19335_v1 = vpack.c.bf16 %v12233_v8, %v12221_v18  ;;  %v9595_v6 = vand.u32 4294901760, %v9594_v32  ;;  %v26654_v13 = vand.u32 4294901760, %v24397_v42  ;;  %v9607_v39 = vand.u32 4294901760, %v9606_v59 }
 0xaa1   :  { %18952 = vmatpush1.bf16.msra.mxu0 %v18951_v10  ;;  %v12239_v9 = vand.u32 4294901760, %v12238_v58  ;;  %v12250_v2 = vsub.f32 %v24357_v40, %v26651_v7  ;;  %v26656_v23 = vand.u32 4294901760, %v24446_v60  ;;  %v9600_v63 = vsub.f32 %v24395_v51, %v26653_v17 }
 0xaa2   :  { %19336 = vmatpush1.bf16.msra.mxu1 %v19335_v1  ;;  %v9612_v32 = vsub.f32 %v24397_v42, %v26654_v13  ;;  %v26659_v18 = vand.u32 4294901760, %v24448_v48  ;;  %v26660_v59 = vand.u32 4294901760, %v24488_v56  ;;  %v18953_v10 = vpack.c.bf16 %v9607_v39, %v9595_v6 }
 0xaa3   :  { %v12251_v8 = vand.u32 4294901760, %v12250_v2  ;;  %v12244_v58 = vsub.f32 %v24446_v60, %v26656_v23  ;;  %v26667_v1 = vand.u32 4294901760, %v24490_v37  ;;  %v9601_v7 = vand.u32 4294901760, %v9600_v63 }
 0xaa4   :  { %v9613_v5 = vand.u32 4294901760, %v9612_v32  ;;  %v12256_v17 = vsub.f32 %v24448_v48, %v26659_v18  ;;  %v9618_v13 = vsub.f32 %v24488_v56, %v26660_v59  ;;  %18954 = vmatprep.subr.bf16.mxu0 %v18953_v10  ;;  %v26663_v2 = vand.u32 4294901760, %v24526_v0 }
 0xaa5   :  { %v19337_v21 = vpack.c.bf16 %v12251_v8, %v12239_v9  ;;  %v12245_v6 = vand.u32 4294901760, %v12244_v58  ;;  %v9630_v39 = vsub.f32 %v24490_v37, %v26667_v1  ;;  %v26661_v60 = vand.u32 4294901760, %v24528_v11  ;;  %v27245_v1 = vld [vmem:[#allocation13_spill] sm:$0xff]  ;;  %v27297_v37 = vld [vmem:[#allocation63_spill] sm:$0xff] }
 0xaa6   :  { %v18955_v23 = vpack.c.bf16 %v9613_v5, %v9601_v7  ;;  %v12257_v63 = vand.u32 4294901760, %v12256_v17  ;;  %v9619_v32 = vand.u32 4294901760, %v9618_v13  ;;  %v12262_v59 = vsub.f32 %v24526_v0, %v26663_v2  ;;  %v27300_v0 = vld [vmem:[#allocation67_spill] sm:$0xff] }
 0xaa7   :  { %19338 = vmatprep.subr.bf16.mxu1 %v19337_v21  ;;  %v9631_v18 = vand.u32 4294901760, %v9630_v39  ;;  %v26662_v9 = vand.u32 4294901760, %v24564_v52  ;;  %v26664_v10 = vand.u32 4294901760, %v24566_v25  ;;  %v12274_v5 = vsub.f32 %v24528_v11, %v26661_v60 }
 0xaa8   :  { %18956 = vmatpush1.bf16.msra.mxu0 %v18955_v23  ;;  %v19339_v8 = vpack.c.bf16 %v12257_v63, %v12245_v6  ;;  %v26665_v7 = vand.u32 4294901760, %v24612_v28  ;;  %v26666_v17 = vand.u32 4294901760, %v24621_v3  ;;  %v12263_v13 = vand.u32 4294901760, %v12262_v59 }
 0xaa9   :  { %v18957_v21 = vpack.c.bf16 %v9631_v18, %v9619_v32  ;;  %v9624_v58 = vsub.f32 %v24564_v52, %v26662_v9  ;;  %v9636_v39 = vsub.f32 %v24566_v25, %v26664_v10  ;;  %v12275_v23 = vand.u32 4294901760, %v12274_v5  ;;  %v27302_v52 = vld [vmem:[#allocation70_spill] sm:$0xff] }
 0xaaa   :  { %19340 = vmatpush1.bf16.msra.mxu1 %v19339_v8  ;;  %v12268_v6 = vsub.f32 %v24612_v28, %v26665_v7  ;;  %v12280_v63 = vsub.f32 %v24621_v3, %v26666_v17  ;;  %v18961_v2 = vpack.c.bf16 %v27120_v62, %v27119_v33  ;;  %v19345_v8 = vpack.c.bf16 %v27124_v47, %v27122_v27  ;;  %v27275_v62 = vld [vmem:[#allocation143_spill] sm:$0xff]  ;;  %v27288_v33 = vld [vmem:[#allocation165_spill] sm:$0xff]  ;;  %v27293_v47 = vld [vmem:[#allocation38_spill] sm:$0xff] }
 0xaab   :  { %18958 = vmatprep.subr.bf16.mxu0 %v18957_v21  ;;  %v9625_v18 = vand.u32 4294901760, %v9624_v58  ;;  %v9637_v59 = vand.u32 4294901760, %v9636_v39  ;;  %v19341_v32 = vpack.c.bf16 %v12275_v23, %v12263_v13  ;;  %v18963_v7 = vpack.c.bf16 %v27131_v46, %v27130_v26  ;;  %v27239_v39 = vld [vmem:[#allocation25_spill] sm:$0xff]  ;;  %v27240_v23 = vld [vmem:[#allocation27_spill] sm:$0xff]  ;;  %v27285_v46 = vld [vmem:[#allocation162_spill] sm:$0xff] }
 0xaac   :  { %v12269_v60 = vand.u32 4294901760, %v12268_v6  ;;  %v12281_v9 = vand.u32 4294901760, %v12280_v63  ;;  %v19347_v21 = vpack.c.bf16 %v27134_v61, %v27133_v35  ;;  %v18965_v13 = vpack.c.bf16 %v27137_v24, %v27136_v38  ;;  %v27241_v63 = vld [vmem:[#allocation29_spill] sm:$0xff]  ;;  %v27270_v35 = vld [vmem:[#allocation136_spill] sm:$0xff]  ;;  %v27272_v26 = vld [vmem:[#allocation139_spill] sm:$0xff] }
 0xaad   :  { %v18959_v10 = vpack.c.bf16 %v9637_v59, %v9625_v18  ;;  %19342 = vmatprep.subr.bf16.mxu1 %v19341_v32  ;;  %v19349_v58 = vpack.c.bf16 %v27139_v55, %v27138_v30  ;;  %v19353_v6 = vpack.c.bf16 %v27240_v23, %v27239_v39  ;;  %v27242_v18 = vld [vmem:[#allocation8_spill] sm:$0xff]  ;;  %v27243_v32 = vld [vmem:[#allocation9_spill] sm:$0xff]  ;;  %v27280_v24 = vld [vmem:[#allocation151_spill] sm:$0xff]  ;;  %v19365_v11 = vpack.c.bf16 %v27300_v0, %v27299_v22 }
 0xaae   :  { %v19343_v5 = vpack.c.bf16 %v12281_v9, %v12269_v60  ;;  %v18967_v60 = vpack.c.bf16 %v27141_v44, %v27140_v19  ;;  %v19351_v9 = vpack.c.bf16 %v27143_v31, %v27142_v20  ;;  %v18971_v59 = vpack.c.bf16 %v27242_v18, %v27241_v63  ;;  %v27248_v23 = vld [vmem:[#allocation5_spill] sm:$0xff]  ;;  %v27249_v18 = vld [vmem:[#allocation36_spill] sm:$0xff]  ;;  %v27286_v27 = vld [vmem:[#allocation163_spill] sm:$0xff] }
 0xaaf   :  { %18960 = vmatpush1.bf16.msra.mxu0 %v18959_v10  ;;  %v27257_v20 = vld [vmem:[#allocation117_spill] sm:$0xff]  ;;  %v27259_v44 = vld [vmem:[#allocation192_spill] sm:$0xff]  ;;  %v27287_v19 = vld [vmem:[#allocation194_spill] sm:$0xff] }
 0xab0   :  { %19344 = vmatpush1.bf16.msra.mxu1 %v19343_v5  ;;  %18962 = vmatprep.subr.bf16.mxu0 %v18961_v2  ;;  %v27238_v2 = vld [vmem:[#allocation23_spill] sm:$0xff]  ;;  %v18973_v5 = vpack.c.bf16 %v27152_v14, %v27151_v16  ;;  %v27254_v16 = vld [vmem:[#allocation112_spill] sm:$0xff]  ;;  %v27264_v55 = vld [vmem:[#allocation125_spill] sm:$0xff] }
 0xab1   :  { %19346 = vmatprep.subr.bf16.mxu1 %v19345_v8  ;;  %v18969_v10 = vpack.c.bf16 %v27238_v2, %v27144_v34  ;;  %v19355_v8 = vpack.c.bf16 %v27150_v43, %v27243_v32  ;;  %v27247_v2 = vld [vmem:[#allocation32_spill] sm:$0xff]  ;;  %v27252_v32 = vld [vmem:[#allocation109_spill] sm:$0xff]  ;;  %v27253_v14 = vld [vmem:[#allocation111_spill] sm:$0xff] }
 0xab2   :  { %9642 = vmatmul.mubr.f32.vlgmr.msra.gmra.mrb[34].mxu0 %v24614_v4  ;;  %v19359_v39 = vpack.c.bf16 %v27248_v23, %v27247_v2  ;;  %v27251_v43 = vld [vmem:[#allocation108_spill] sm:$0xff]  ;;  %v27260_v23 = vld [vmem:[#allocation119_spill] sm:$0xff]  ;;  %v27262_v2 = vld [vmem:[#allocation122_spill] sm:$0xff] }
 0xab3   :  { %18964 = vmatpush1.bf16.msra.mxu0 %v18963_v7  ;;  %12286 = vmatmul.mubr.f32.vlgmr.msra.gmra.mrb[34].mxu1 %v24632_v49  ;;  %v27244_v7 = vld [vmem:[#allocation19_spill] sm:$0xff]  ;;  %v27246_v49 = vld [vmem:[#allocation4_spill] sm:$0xff]  ;;  %v27276_v30 = vld [vmem:[#allocation145_spill] sm:$0xff] }
 0xab4   :  { %19348 = vmatpush1.bf16.msra.mxu1 %v19347_v21  ;;  %18966 = vmatprep.subr.bf16.mxu0 %v18965_v13  ;;  %v19357_v17 = vpack.c.bf16 %v27154_v50, %v27244_v7  ;;  %v18975_v4 = vpack.c.bf16 %v27246_v49, %v27245_v1  ;;  %v18977_v21 = vpack.c.bf16 %v27249_v18, %v22712_v15  ;;  %v27250_v13 = vld [vmem:[#allocation106_spill] sm:$0xff]  ;;  %v27261_v18 = vld [vmem:[#allocation121_spill] sm:$0xff]  ;;  %v27263_v63 = vld [vmem:[#allocation124_spill] sm:$0xff] }
 0xab5   :  { %19350 = vmatprep.subr.bf16.mxu1 %v19349_v58  ;;  %v27255_v50 = vld [vmem:[#allocation114_spill] sm:$0xff]  ;;  %v27256_v58 = vld [vmem:[#allocation115_spill] sm:$0xff]  ;;  %9842 = vmatprep.mubr.f32.mxu0 %v27259_v44  ;;  %v27278_v38 = vld [vmem:[#allocation148_spill] sm:$0xff] }
 0xab6   :  { %v27258_v49 = vld [vmem:[#allocation118_spill] sm:$0xff]  ;;  %v27265_v34 = vld [vmem:[#allocation127_spill] sm:$0xff]  ;;  %v27281_v1 = vld [vmem:[#allocation153_spill] sm:$0xff]  ;;  %12486 = vmatprep.mubr.f32.mxu1 %v27287_v19 }
 0xab7   :  { %18968 = vmatpush1.bf16.msra.mxu0 %v18967_v60  ;;  %v27282_v7 = vld [vmem:[#allocation154_spill] sm:$0xff]  ;;  %v27283_v60 = vld [vmem:[#allocation156_spill] sm:$0xff]  ;;  %v27284_v15 = vld [vmem:[#allocation159_spill] sm:$0xff] }
 0xab8   :  { %19352 = vmatpush1.bf16.msra.mxu1 %v19351_v9  ;;  %18970 = vmatprep.subr.bf16.mxu0 %v18969_v10  ;;  %v27279_v10 = vld [vmem:[#allocation149_spill] sm:$0xff]  ;;  %v27291_v19 = vld [vmem:[#allocation39_spill] sm:$0xff]  ;;  %v27292_v31 = vld [vmem:[#allocation40_spill] sm:$0xff] }
 0xab9   :  { %19354 = vmatprep.subr.bf16.mxu1 %v19353_v6  ;;  %v27290_v6 = vld [vmem:[#allocation181_spill] sm:$0xff]  ;;  %v19361_v44 = vpack.c.bf16 %v27292_v31, %v27291_v19  ;;  %v27294_v61 = vld [vmem:[#allocation7_spill] sm:$0xff]  ;;  %v27298_v31 = vld [vmem:[#allocation64_spill] sm:$0xff] }
 0xaba   :  { %v27295_v9 = vld [vmem:[#allocation59_spill] sm:$0xff]  ;;  %v18981_v19 = vpack.c.bf16 %v27298_v31, %v27297_v37  ;;  %v27310_v37 = vld [vmem:[#allocation82_spill] sm:$0xff] }
 0xabb   :  { %18972 = vmatpush1.bf16.msra.mxu0 %v18971_v59  ;;  %v18979_v59 = vpack.c.bf16 %v27294_v61, %v27293_v47  ;;  %v27304_v61 = vld [vmem:[#allocation73_spill] sm:$0xff]  ;;  %v27306_v47 = vld [vmem:[#allocation76_spill] sm:$0xff] }
 0xabc   :  { %19356 = vmatpush1.bf16.msra.mxu1 %v19355_v8  ;;  %18974 = vmatprep.subr.bf16.mxu0 %v18973_v5  ;;  %v27301_v8 = vld [vmem:[#allocation68_spill] sm:$0xff] }
 0xabd   :  { %19358 = vmatprep.subr.bf16.mxu1 %v19357_v17  ;;  %v27296_v17 = vld [vmem:[#allocation61_spill] sm:$0xff]  ;;  %v18983_v5 = vpack.c.bf16 %v27302_v52, %v27301_v8  ;;  %v27314_v8 = vld [vmem:[#allocation88_spill] sm:$0xff] }
 0xabe   :  { %v19363_v56 = vpack.c.bf16 %v27296_v17, %v27295_v9  ;;  %v27307_v17 = vld [vmem:[#allocation78_spill] sm:$0xff]  ;;  %v27308_v9 = vld [vmem:[#allocation79_spill] sm:$0xff]  ;;  %v27312_v52 = vld [vmem:[#allocation85_spill] sm:$0xff] }
 0xabf   :  { %18976 = vmatpush1.bf16.msra.mxu0 %v18975_v4  ;;  %v27303_v4 = vld [vmem:[#allocation71_spill] sm:$0xff]  ;;  %v19369_v31 = vpack.c.bf16 %v27308_v9, %v27307_v17 }
 0xac0   :  { %19360 = vmatpush1.bf16.msra.mxu1 %v19359_v39  ;;  %18978 = vmatprep.subr.bf16.mxu0 %v18977_v21  ;;  %v19367_v39 = vpack.c.bf16 %v27304_v61, %v27303_v4  ;;  %v27305_v21 = vld [vmem:[#allocation75_spill] sm:$0xff]  ;;  %v27315_v61 = vld [vmem:[#allocation90_spill] sm:$0xff] }
 0xac1   :  { %19362 = vmatprep.subr.bf16.mxu1 %v19361_v44  ;;  %v18985_v28 = vpack.c.bf16 %v27306_v47, %v27305_v21  ;;  %v27309_v44 = vld [vmem:[#allocation80_spill] sm:$0xff]  ;;  %v27316_v4 = vld [vmem:[#allocation91_spill] sm:$0xff]  ;;  %v27318_v21 = vld [vmem:[#allocation94_spill] sm:$0xff] }
 0xac2   :  { %v18987_v0 = vpack.c.bf16 %v27310_v37, %v27309_v44  ;;  %v19373_v47 = vpack.c.bf16 %v27316_v4, %v27315_v61  ;;  %v27320_v37 = vld [vmem:[#allocation97_spill] sm:$0xff]  ;;  %v27322_v44 = vld [vmem:[#allocation100_spill] sm:$0xff] }
 0xac3   :  { %18980 = vmatpush1.bf16.msra.mxu0 %v18979_v59  ;;  %v27311_v59 = vld [vmem:[#allocation83_spill] sm:$0xff] }
 0xac4   :  { %19364 = vmatpush1.bf16.msra.mxu1 %v19363_v56  ;;  %18982 = vmatprep.subr.bf16.mxu0 %v18981_v19  ;;  %v19371_v56 = vpack.c.bf16 %v27312_v52, %v27311_v59  ;;  %v27313_v19 = vld [vmem:[#allocation87_spill] sm:$0xff]  ;;  %v27323_v52 = vld [vmem:[#allocation101_spill] sm:$0xff] }
 0xac5   :  { %19366 = vmatprep.subr.bf16.mxu1 %v19365_v11  ;;  %v18989_v22 = vpack.c.bf16 %v27314_v8, %v27313_v19  ;;  %v27317_v11 = vld [vmem:[#allocation92_spill] sm:$0xff]  ;;  %v27324_v59 = vld [vmem:[#allocation103_spill] sm:$0xff] }
 0xac6   :  { %v18991_v9 = vpack.c.bf16 %v27318_v21, %v27317_v11  ;;  %v19377_v8 = vpack.c.bf16 %v27324_v59, %v27323_v52 }
 0xac7   :  { %18984 = vmatpush1.bf16.msra.mxu0 %v18983_v5  ;;  %v27319_v5 = vld [vmem:[#allocation95_spill] sm:$0xff] }
 0xac8   :  { %19368 = vmatpush1.bf16.msra.mxu1 %v19367_v39  ;;  %18986 = vmatprep.subr.bf16.mxu0 %v18985_v28  ;;  %v19375_v39 = vpack.c.bf16 %v27320_v37, %v27319_v5  ;;  %v27321_v28 = vld [vmem:[#allocation99_spill] sm:$0xff] }
 0xac9   :  { %19370 = vmatprep.subr.bf16.mxu1 %v19369_v31  ;;  %v18993_v17 = vpack.c.bf16 %v27322_v44, %v27321_v28  ;;  %v27326_v31 = vpack.c.bf16 %v27252_v32, %v27251_v43 }
 0xacb   :  { %18988 = vmatpush1.bf16.msra.mxu0 %v18987_v0  ;;  %v27325_v0 = vpack.c.bf16 %v27250_v13, %v27189_v41 }
 0xacc   :  { %19372 = vmatpush1.bf16.msra.mxu1 %v19371_v56  ;;  %18990 = vmatprep.subr.bf16.mxu0 %v18989_v22  ;;  %v27327_v22 = vpack.c.bf16 %v27254_v16, %v27253_v14  ;;  %v27332_v56 = vpack.c.bf16 %v27265_v34, %v27264_v55 }
 0xacd   :  { %19374 = vmatprep.subr.bf16.mxu1 %v19373_v47  ;;  %v27328_v47 = vpack.c.bf16 %v27256_v58, %v27255_v50 }
 0xacf   :  { %18992 = vmatpush1.bf16.msra.mxu0 %v18991_v9  ;;  %v27329_v9 = vpack.c.bf16 %v27258_v49, %v27257_v20 }
 0xad0   :  { %19376 = vmatpush1.bf16.msra.mxu1 %v19375_v39  ;;  %18994 = vmatprep.subr.bf16.mxu0 %v18993_v17  ;;  %v27331_v17 = vpack.c.bf16 %v27263_v63, %v27262_v2  ;;  %v27333_v39 = vld [vmem:[#allocation130_spill] sm:$0xff]  ;;  %v27344_v2 = vld [vmem:[#allocation141_spill] sm:$0xff] }
 0xad1   :  { %19378 = vmatprep.subr.bf16.mxu1 %v19377_v8  ;;  %v27330_v8 = vpack.c.bf16 %v27261_v18, %v27260_v23 }
 0xad3   :  { %18996 = vmatpush1.bf16.msra.mxu0 %v27325_v0  ;;  %v27334_v0 = vld [vmem:[#allocation129_spill] sm:$0xff] }
 0xad4   :  { %19380 = vmatpush1.bf16.msra.mxu1 %v27326_v31  ;;  %18998 = vmatprep.subr.bf16.mxu0 %v27327_v22  ;;  %v27335_v31 = vpack.c.bf16 %v27333_v39, %v27334_v0  ;;  %v27336_v22 = vld [vmem:[#allocation133_spill] sm:$0xff] }
 0xad5   :  { %19382 = vmatprep.subr.bf16.mxu1 %v27328_v47  ;;  %v27337_v47 = vld [vmem:[#allocation132_spill] sm:$0xff] }
 0xad6   :  { %v27338_v49 = vpack.c.bf16 %v27336_v22, %v27337_v47 }
 0xad7   :  { %19000 = vmatpush1.bf16.msra.mxu0 %v27329_v9  ;;  %v27339_v9 = vld [vmem:[#allocation135_spill] sm:$0xff] }
 0xad8   :  { %19384 = vmatpush1.bf16.msra.mxu1 %v27330_v8  ;;  %19002 = vmatprep.subr.bf16.mxu0 %v27331_v17  ;;  %v27340_v18 = vpack.c.bf16 %v27270_v35, %v27339_v9  ;;  %v27341_v8 = vld [vmem:[#allocation138_spill] sm:$0xff] }
 0xad9   :  { %19386 = vmatprep.subr.bf16.mxu1 %v27332_v56  ;;  %v27342_v63 = vpack.c.bf16 %v27272_v26, %v27341_v8  ;;  %v27343_v17 = vld [vmem:[#allocation142_spill] sm:$0xff]  ;;  %v27346_v56 = vpack.c.bf16 %v27276_v30, %v27275_v62 }
 0xada   :  { %v27345_v34 = vpack.c.bf16 %v27343_v17, %v27344_v2 }
 0xadb   :  { %19004 = vmatpush1.bf16.msra.mxu0 %v27335_v31  ;;  %v27347_v31 = vld [vmem:[#allocation146_spill] sm:$0xff] }
 0xadc   :  { %19388 = vmatpush1.bf16.msra.mxu1 %v27338_v49  ;;  %19006 = vmatprep.subr.bf16.mxu0 %v27340_v18  ;;  %v27348_v22 = vpack.c.bf16 %v27278_v38, %v27347_v31  ;;  %v27349_v49 = vpack.c.bf16 %v27280_v24, %v27279_v10  ;;  %v27350_v18 = vpack.c.bf16 %v27282_v7, %v27281_v1 }
 0xadd   :  { %19390 = vmatprep.subr.bf16.mxu1 %v27342_v63  ;;  %v27351_v63 = vpack.c.bf16 %v27228_v54, %v27283_v60 }
 0xadf   :  { %19008 = vmatpush1.bf16.msra.mxu0 %v27345_v34  ;;  %v27352_v34 = vpack.c.bf16 %v27230_v29, %v27284_v15 }
 0xae0   :  { %19392 = vmatpush1.bf16.msra.mxu1 %v27346_v56  ;;  %19010 = vmatprep.subr.bf16.mxu0 %v27348_v22  ;;  %v27353_v56 = vpack.c.bf16 %v27286_v27, %v27285_v46  ;;  %v27354_v22 = vpack.c.bf16 %v27233_v57, %v27288_v33  ;;  %v27362_v57 = vld [vmem:[#allocation184_spill] sm:$0xff]  ;;  %v27457_v27 = vld [vmem:[#allocation50_spill] sm:$0xff] }
 0xae1   :  { %19394 = vmatprep.subr.bf16.mxu1 %v27349_v49  ;;  %v27355_v49 = vld [vmem:[#allocation167_spill] sm:$0xff]  ;;  %v27459_v46 = vld [vmem:[#allocation52_spill] sm:$0xff] }
 0xae2   :  { %v27356_v7 = vpack.c.bf16 %v27235_v36, %v27355_v49  ;;  %v27365_v49 = vld [vmem:[#allocation187_spill] sm:$0xff] }
 0xae3   :  { %19012 = vmatpush1.bf16.msra.mxu0 %v27350_v18  ;;  %v27357_v18 = vpack.c.bf16 %v27237_v53, %v27236_v45  ;;  %v27450_v45 = vld [vmem:[#allocation45_spill] sm:$0xff] }
 0xae4   :  { %19396 = vmatpush1.bf16.msra.mxu1 %v27351_v63  ;;  %19014 = vmatprep.subr.bf16.mxu0 %v27352_v34  ;;  %v27358_v63 = vpack.c.bf16 %v24357_v40, %v24352_v12  ;;  %v27359_v34 = vpack.c.bf16 %v24397_v42, %v24395_v51  ;;  %v27447_v12 = vld [vmem:[#allocation189_spill] sm:$0xff] }
 0xae5   :  { %19398 = vmatprep.subr.bf16.mxu1 %v27353_v56  ;;  %v27360_v56 = vpack.c.bf16 %v24448_v48, %v27290_v6  ;;  %v27372_v48 = vld [vmem:[#allocation49_spill] sm:$0xff] }
 0xae7   :  { %19016 = vmatpush1.bf16.msra.mxu0 %v27354_v22  ;;  %v27361_v22 = vld [vmem:[#allocation185_spill] sm:$0xff] }
 0xae8   :  { %19400 = vmatpush1.bf16.msra.mxu1 %v27356_v7  ;;  %19018 = vmatprep.subr.bf16.mxu0 %v27357_v18  ;;  %v27363_v36 = vpack.c.bf16 %v27361_v22, %v27362_v57  ;;  %v27364_v7 = vld [vmem:[#allocation188_spill] sm:$0xff]  ;;  %v27367_v18 = vld [vmem:[#allocation190_spill] sm:$0xff]  ;;  %v27374_v22 = vld [vmem:[#allocation51_spill] sm:$0xff] }
 0xae9   :  { %19402 = vmatprep.subr.bf16.mxu1 %v27358_v63  ;;  %v27366_v53 = vpack.c.bf16 %v27364_v7, %v27365_v49  ;;  %v27368_v40 = vpack.c.bf16 %v24566_v25, %v27367_v18  ;;  %v27369_v63 = vld [vmem:[#allocation195_spill] sm:$0xff]  ;;  %v27376_v7 = vld [vmem:[#allocation53_spill] sm:$0xff]  ;;  %v27378_v25 = vld [vmem:[#allocation56_spill] sm:$0xff] }
 0xaea   :  { %v27370_v42 = vpack.c.bf16 %v24621_v3, %v27369_v63  ;;  %v27385_v63 = vld [vmem:[#allocation34_spill] sm:$0xff] }
 0xaeb   :  { %19020 = vmatpush1.bf16.msra.mxu0 %v27359_v34  ;;  %v27371_v34 = vld [vmem:[#allocation48_spill] sm:$0xff]  ;;  %v27387_v49 = vld [vmem:[#allocation30_spill] sm:$0xff] }
 0xaec   :  { %19404 = vmatpush1.bf16.msra.mxu1 %v27360_v56  ;;  %19022 = vmatprep.subr.bf16.mxu0 %v27363_v36  ;;  %v27373_v56 = vld [vmem:[#allocation199_spill] sm:$0xff]  ;;  %v27375_v36 = vld [vmem:[#allocation201_spill] sm:$0xff] }
 0xaed   :  { %19406 = vmatprep.subr.bf16.mxu1 %v27366_v53  ;;  %v27377_v53 = vld [vmem:[#allocation54_spill] sm:$0xff] }
 0xaef   :  { %19024 = vmatpush1.bf16.msra.mxu0 %v27368_v40  ;;  %v27379_v40 = vld [vmem:[#allocation192_spill] sm:$0xff] }
 0xaf0   :  { %19408 = vmatpush1.bf16.msra.mxu1 %v27370_v42  ;;  %19026 = vmatprep.subr.bf16.mxu0 %v27371_v34  ;;  %v27380_v18 = vand.u32 4294901760, %v27379_v40  ;;  %v27381_v42 = vld [vmem:[#allocation194_spill] sm:$0xff]  ;;  %v27383_v34 = vld [vmem:[#allocation20_spill] sm:$0xff]  ;;  %v27392_v40 = vld [vmem:[#allocation33_spill] sm:$0xff] }
 0xaf1   :  { %19410 = vmatprep.subr.bf16.mxu1 %v27372_v48  ;;  %v27382_v3 = vand.u32 4294901760, %v27381_v42  ;;  %v27384_v48 = vld [vmem:[#allocation11_spill] sm:$0xff]  ;;  %v27394_v42 = vld [vmem:[#allocation37_spill] sm:$0xff] }
 0xaf2   :  { %9845 = vmatmul.mubr.f32.vlgmr.msra.gmra.mrb[34].mxu0 %v27373_v56 }
 0xaf3   :  { %19028 = vmatpush1.bf16.msra.mxu0 %v27374_v22  ;;  %12489 = vmatmul.mubr.f32.vlgmr.msra.gmra.mrb[34].mxu1 %v27375_v36  ;;  %v27386_v22 = vld [vmem:[#allocation26_spill] sm:$0xff] }
 0xaf4   :  { %19412 = vmatpush1.bf16.msra.mxu1 %v27376_v7  ;;  %19030 = vmatprep.subr.bf16.mxu0 %v27377_v53  ;;  %v27388_v7 = vld [vmem:[#allocation15_spill] sm:$0xff]  ;;  %v27389_v53 = vld [vmem:[#allocation17_spill] sm:$0xff] }
 0xaf5   :  { %19414 = vmatprep.subr.bf16.mxu1 %v27378_v25  ;;  %9982 = vmatprep.mubr.f32.mxu0 %v27380_v18  ;;  %v27390_v25 = vld [vmem:[#allocation18_spill] sm:$0xff] }
 0xaf6   :  { %12626 = vmatprep.mubr.f32.mxu1 %v27382_v3  ;;  %v27391_v18 = vld [vmem:[#allocation14_spill] sm:$0xff] }
 0xaf7   :  { %19032 = vmatpush1.bf16.msra.mxu0 %v27383_v34  ;;  %v27393_v3 = vld [vmem:[#allocation6_spill] sm:$0xff]  ;;  %v27440_v34 = vld [vmem:[#allocation41_spill] sm:$0xff] }
 0xaf8   :  { %19416 = vmatpush1.bf16.msra.mxu1 %v27384_v48  ;;  %19034 = vmatprep.subr.bf16.mxu0 %v27385_v63  ;;  %v27395_v48 = vld [vmem:[#allocation28_spill] sm:$0xff] }
 0xaf9   :  { %19418 = vmatprep.subr.bf16.mxu1 %v27386_v22  ;;  %v27396_v63 = vld [vmem:[#allocation60_spill] sm:$0xff]  ;;  %v27397_v22 = vld [vmem:[#allocation62_spill] sm:$0xff] }
 0xafb   :  { %19036 = vmatpush1.bf16.msra.mxu0 %v27387_v49  ;;  %v27398_v49 = vld [vmem:[#allocation65_spill] sm:$0xff] }
 0xafc   :  { %19420 = vmatpush1.bf16.msra.mxu1 %v27388_v7  ;;  %19038 = vmatprep.subr.bf16.mxu0 %v27389_v53  ;;  %v27399_v7 = vld [vmem:[#allocation69_spill] sm:$0xff]  ;;  %v27400_v53 = vld [vmem:[#allocation72_spill] sm:$0xff] }
 0xafd   :  { %19422 = vmatprep.subr.bf16.mxu1 %v27390_v25  ;;  %v27401_v25 = vld [vmem:[#allocation74_spill] sm:$0xff] }
 0xaff   :  { %19040 = vmatpush1.bf16.msra.mxu0 %v27391_v18  ;;  %v27402_v18 = vld [vmem:[#allocation77_spill] sm:$0xff] }
 0xb00   :  { %19424 = vmatpush1.bf16.msra.mxu1 %v27392_v40  ;;  %19042 = vmatprep.subr.bf16.mxu0 %v27393_v3  ;;  %v27403_v40 = vld [vmem:[#allocation81_spill] sm:$0xff]  ;;  %v27404_v3 = vld [vmem:[#allocation84_spill] sm:$0xff] }
 0xb01   :  { %19426 = vmatprep.subr.bf16.mxu1 %v27394_v42  ;;  %v27405_v42 = vld [vmem:[#allocation86_spill] sm:$0xff] }
 0xb03   :  { %19044 = vmatpush1.bf16.msra.mxu0 %v27395_v48  ;;  %v27406_v48 = vld [vmem:[#allocation89_spill] sm:$0xff] }
 0xb04   :  { %19428 = vmatpush1.bf16.msra.mxu1 %v27396_v63  ;;  %19046 = vmatprep.subr.bf16.mxu0 %v27397_v22  ;;  %v27407_v63 = vld [vmem:[#allocation93_spill] sm:$0xff]  ;;  %v27408_v22 = vld [vmem:[#allocation96_spill] sm:$0xff] }
 0xb05   :  { %19430 = vmatprep.subr.bf16.mxu1 %v27398_v49  ;;  %v27409_v49 = vld [vmem:[#allocation98_spill] sm:$0xff] }
 0xb07   :  { %19048 = vmatpush1.bf16.msra.mxu0 %v27399_v7  ;;  %v27410_v7 = vld [vmem:[#allocation102_spill] sm:$0xff] }
 0xb08   :  { %19432 = vmatpush1.bf16.msra.mxu1 %v27400_v53  ;;  %19050 = vmatprep.subr.bf16.mxu0 %v27401_v25  ;;  %v27411_v53 = vld [vmem:[#allocation104_spill] sm:$0xff]  ;;  %v27412_v25 = vld [vmem:[#allocation107_spill] sm:$0xff] }
 0xb09   :  { %19434 = vmatprep.subr.bf16.mxu1 %v27402_v18  ;;  %v27413_v18 = vld [vmem:[#allocation110_spill] sm:$0xff] }
 0xb0b   :  { %19052 = vmatpush1.bf16.msra.mxu0 %v27403_v40  ;;  %v27414_v40 = vld [vmem:[#allocation113_spill] sm:$0xff] }
 0xb0c   :  { %19436 = vmatpush1.bf16.msra.mxu1 %v27404_v3  ;;  %19054 = vmatprep.subr.bf16.mxu0 %v27405_v42  ;;  %v27415_v3 = vld [vmem:[#allocation116_spill] sm:$0xff] }
 0xb0d   :  { %19438 = vmatprep.subr.bf16.mxu1 %v27406_v48  ;;  %v27416_v42 = vld [vmem:[#allocation120_spill] sm:$0xff]  ;;  %v27417_v48 = vld [vmem:[#allocation123_spill] sm:$0xff] }
 0xb0f   :  { %19056 = vmatpush1.bf16.msra.mxu0 %v27407_v63  ;;  %v27418_v63 = vld [vmem:[#allocation126_spill] sm:$0xff] }
 0xb10   :  { %19440 = vmatpush1.bf16.msra.mxu1 %v27408_v22  ;;  %19058 = vmatprep.subr.bf16.mxu0 %v27409_v49  ;;  %v27419_v22 = vld [vmem:[#allocation128_spill] sm:$0xff]  ;;  %v27420_v49 = vld [vmem:[#allocation131_spill] sm:$0xff] }
 0xb11   :  { %19442 = vmatprep.subr.bf16.mxu1 %v27410_v7  ;;  %v27421_v7 = vld [vmem:[#allocation134_spill] sm:$0xff] }
 0xb13   :  { %19060 = vmatpush1.bf16.msra.mxu0 %v27411_v53  ;;  %v27422_v53 = vld [vmem:[#allocation137_spill] sm:$0xff] }
 0xb14   :  { %19444 = vmatpush1.bf16.msra.mxu1 %v27412_v25  ;;  %19062 = vmatprep.subr.bf16.mxu0 %v27413_v18  ;;  %v27423_v25 = vld [vmem:[#allocation140_spill] sm:$0xff] }
 0xb15   :  { %19446 = vmatprep.subr.bf16.mxu1 %v27414_v40  ;;  %v27424_v18 = vld [vmem:[#allocation144_spill] sm:$0xff]  ;;  %v27425_v40 = vld [vmem:[#allocation147_spill] sm:$0xff] }
 0xb17   :  { %19064 = vmatpush1.bf16.msra.mxu0 %v27415_v3  ;;  %v27426_v3 = vld [vmem:[#allocation150_spill] sm:$0xff] }
 0xb18   :  { %19448 = vmatpush1.bf16.msra.mxu1 %v27416_v42  ;;  %19066 = vmatprep.subr.bf16.mxu0 %v27417_v48  ;;  %v27427_v42 = vld [vmem:[#allocation152_spill] sm:$0xff]  ;;  %v27428_v48 = vld [vmem:[#allocation155_spill] sm:$0xff] }
 0xb19   :  { %19450 = vmatprep.subr.bf16.mxu1 %v27418_v63  ;;  %v27429_v63 = vld [vmem:[#allocation158_spill] sm:$0xff] }
 0xb1b   :  { %19068 = vmatpush1.bf16.msra.mxu0 %v27419_v22  ;;  %v27430_v22 = vld [vmem:[#allocation161_spill] sm:$0xff] }
 0xb1c   :  { %19452 = vmatpush1.bf16.msra.mxu1 %v27420_v49  ;;  %19070 = vmatprep.subr.bf16.mxu0 %v27421_v7  ;;  %v27431_v49 = vld [vmem:[#allocation164_spill] sm:$0xff] }
 0xb1d   :  { %19454 = vmatprep.subr.bf16.mxu1 %v27422_v53  ;;  %v27432_v7 = vld [vmem:[#allocation168_spill] sm:$0xff]  ;;  %v27433_v53 = vld [vmem:[#allocation171_spill] sm:$0xff] }
 0xb1f   :  { %19072 = vmatpush1.bf16.msra.mxu0 %v27423_v25  ;;  %v27434_v25 = vld [vmem:[#allocation174_spill] sm:$0xff] }
 0xb20   :  { %19456 = vmatpush1.bf16.msra.mxu1 %v27424_v18  ;;  %19074 = vmatprep.subr.bf16.mxu0 %v27425_v40  ;;  %v27435_v18 = vld [vmem:[#allocation176_spill] sm:$0xff] }
 0xb21   :  { %19458 = vmatprep.subr.bf16.mxu1 %v27426_v3  ;;  %v27436_v40 = vld [vmem:[#allocation180_spill] sm:$0xff]  ;;  %v27437_v3 = vld [vmem:[#allocation183_spill] sm:$0xff] }
 0xb23   :  { %19076 = vmatpush1.bf16.msra.mxu0 %v27427_v42  ;;  %v27438_v42 = vld [vmem:[#allocation3_spill] sm:$0xff] }
 0xb24   :  { %19460 = vmatpush1.bf16.msra.mxu1 %v27428_v48  ;;  %19078 = vmatprep.subr.bf16.mxu0 %v27429_v63  ;;  %v27439_v48 = vand.u32 4294901760, %v27438_v42  ;;  %v27441_v63 = vand.u32 4294901760, %v27440_v34  ;;  %v27453_v42 = vld [vmem:[#allocation46_spill] sm:$0xff] }
 0xb25   :  { %19462 = vmatprep.subr.bf16.mxu1 %v27430_v22  ;;  %v27442_v22 = vld [vmem:[#allocation186_spill] sm:$0xff]  ;;  %v27454_v34 = vand.u32 4294901760, %v27453_v42 }
 0xb26   :  { %v19089_v57 = vpack.c.bf16 %v27441_v63, %v27439_v48  ;;  %v27455_v48 = vld [vmem:[#allocation47_spill] sm:$0xff] }
 0xb27   :  { %19080 = vmatpush1.bf16.msra.mxu0 %v27431_v49  ;;  %v27443_v49 = vld [vmem:[#allocation42_spill] sm:$0xff]  ;;  %v27456_v63 = vand.u32 4294901760, %v27455_v48 }
 0xb28   :  { %19464 = vmatpush1.bf16.msra.mxu1 %v27432_v7  ;;  %19082 = vmatprep.subr.bf16.mxu0 %v27433_v53  ;;  %v27444_v6 = vand.u32 4294901760, %v27443_v49  ;;  %v27445_v7 = vld [vmem:[#allocation43_spill] sm:$0xff]  ;;  %v27458_v49 = vand.u32 4294901760, %v27457_v27 }
 0xb29   :  { %19466 = vmatprep.subr.bf16.mxu1 %v27434_v25  ;;  %v27446_v51 = vand.u32 4294901760, %v27445_v7  ;;  %v27448_v25 = vld [vmem:[#allocation44_spill] sm:$0xff]  ;;  %v27460_v7 = vand.u32 4294901760, %v27459_v46 }
 0xb2a   :  { %v27471_v46 = vld [vmem:[#allocation12_spill] sm:$0xff] }
 0xb2b   :  { %19084 = vmatpush1.bf16.msra.mxu0 %v27435_v18  ;;  %v19473_v53 = vpack.c.bf16 %v27446_v51, %v27444_v6  ;;  %v27449_v18 = vand.u32 4294901760, %v27448_v25  ;;  %v19093_v51 = vpack.c.bf16 %v27460_v7, %v27458_v49  ;;  %v27461_v6 = vld [vmem:[#allocation55_spill] sm:$0xff]  ;;  %v27463_v25 = vld [vmem:[#allocation57_spill] sm:$0xff] }
 0xb2c   :  { %19468 = vmatpush1.bf16.msra.mxu1 %v27436_v40  ;;  %19086 = vmatprep.subr.bf16.mxu0 %v27437_v3  ;;  %v27451_v40 = vand.u32 4294901760, %v27450_v45  ;;  %v27452_v3 = vld [vmem:[#allocation197_spill] sm:$0xff]  ;;  %v27464_v29 = vand.u32 4294901760, %v27463_v25 }
 0xb2d   :  { %19470 = vmatprep.subr.bf16.mxu1 %v27442_v22  ;;  %v19475_v22 = vpack.c.bf16 %v27456_v63, %v27454_v34  ;;  %v27469_v34 = vld [vmem:[#allocation58_spill] sm:$0xff]  ;;  %v27473_v63 = vld [vmem:[#allocation24_spill] sm:$0xff] }
 0xb2e   :  { %v19091_v33 = vpack.c.bf16 %v27451_v40, %v27449_v18  ;;  %v27465_v18 = vand.u32 4294901760, %v27373_v56  ;;  %v27467_v40 = vld [vmem:[#allocation21_spill] sm:$0xff]  ;;  %v27470_v27 = vand.u32 4294901760, %v27469_v34  ;;  %v27474_v49 = vand.u32 4294901760, %v27473_v63  ;;  %v27477_v56 = vld [vmem:[#allocation23_spill] sm:$0xff] }
 0xb2f   :  { %19088 = vmatpush1.bf16.msra.mxu0 %v27447_v12  ;;  %v27462_v12 = vand.u32 4294901760, %v27461_v6  ;;  %v27468_v42 = vand.u32 4294901760, %v27467_v40  ;;  %v27478_v6 = vand.u32 4294901760, %v27477_v56  ;;  %v27483_v34 = vld [vmem:[#allocation179_spill] sm:$0xff]  ;;  %v27489_v63 = vld [vmem:[#allocation9_spill] sm:$0xff]  ;;  %v27493_v56 = vld [vmem:[#allocation16_spill] sm:$0xff] }
 0xb30   :  { %19472 = vmatpush1.bf16.msra.mxu1 %v27452_v3  ;;  %19090 = vmatprep.subr.bf16.mxu0 %v19089_v57  ;;  %v27466_v57 = vand.u32 4294901760, %v27375_v36  ;;  %v27479_v36 = vld [vmem:[#allocation25_spill] sm:$0xff]  ;;  %v27499_v3 = vld [vmem:[#allocation31_spill] sm:$0xff] }
 0xb31   :  { %19474 = vmatprep.subr.bf16.mxu1 %v19473_v53  ;;  %v19477_v45 = vpack.c.bf16 %v27464_v29, %v27462_v12  ;;  %v19095_v48 = vpack.c.bf16 %v27470_v27, %v27468_v42  ;;  %v27472_v53 = vand.u32 4294901760, %v27471_v46  ;;  %v27475_v12 = vld [vmem:[#allocation22_spill] sm:$0xff]  ;;  %v27480_v25 = vand.u32 4294901760, %v27479_v36  ;;  %v27487_v27 = vld [vmem:[#allocation8_spill] sm:$0xff] }
 0xb32   :  { %9986 = vmatmul.mubr.f32.vlgmr.msra.gmra.mrb[34].mxu0 %v27465_v18  ;;  %v27476_v29 = vand.u32 4294901760, %v27475_v12  ;;  %v27481_v18 = vld [vmem:[#allocation27_spill] sm:$0xff]  ;;  %v27488_v46 = vand.u32 4294901760, %v27487_v27  ;;  %v27495_v36 = vld [vmem:[#allocation2_spill] sm:$0xff] }
 0xb33   :  { %19092 = vmatpush1.bf16.msra.mxu0 %v19091_v33  ;;  %12630 = vmatmul.mubr.f32.vlgmr.msra.gmra.mrb[34].mxu1 %v27466_v57  ;;  %v19479_v7 = vpack.c.bf16 %v27474_v49, %v27472_v53  ;;  %v27482_v57 = vand.u32 4294901760, %v27481_v18  ;;  %v27490_v49 = vand.u32 4294901760, %v27489_v63  ;;  %v27505_v63 = vld [vmem:[#allocation32_spill] sm:$0xff] }
 0xb34   :  { %19476 = vmatpush1.bf16.msra.mxu1 %v19475_v22  ;;  %19094 = vmatprep.subr.bf16.mxu0 %v19093_v51  ;;  %v19097_v33 = vpack.c.bf16 %v27478_v6, %v27476_v29  ;;  %v27484_v22 = vld [vmem:[#allocation193_spill] sm:$0xff]  ;;  %v27494_v6 = vand.u32 4294901760, %v27493_v56 }
 0xb35   :  { %19478 = vmatprep.subr.bf16.mxu1 %v19477_v45  ;;  %v19481_v40 = vpack.c.bf16 %v27482_v57, %v27480_v25  ;;  %10249 = vmatprep.mubr.f32.mxu0 %v27483_v34  ;;  %v27485_v51 = vld [vmem:[#allocation29_spill] sm:$0xff]  ;;  %v27491_v45 = vld [vmem:[#allocation10_spill] sm:$0xff]  ;;  %v27496_v25 = vand.u32 4294901760, %v27495_v36  ;;  %v27497_v57 = vld [vmem:[#allocation19_spill] sm:$0xff] }
 0xb36   :  { %12893 = vmatprep.mubr.f32.mxu1 %v27484_v22  ;;  %v27486_v42 = vand.u32 4294901760, %v27485_v51  ;;  %v27492_v12 = vand.u32 4294901760, %v27491_v45  ;;  %v27500_v51 = vand.u32 4294901760, %v27499_v3  ;;  %v27507_v45 = vld [vmem:[#allocation5_spill] sm:$0xff]  ;;  %v27511_v36 = vld [vmem:[#allocation36_spill] sm:$0xff]  ;;  %v27513_v3 = vld [vmem:[#allocation39_spill] sm:$0xff] }
 0xb37   :  { %19096 = vmatpush1.bf16.msra.mxu0 %v19095_v48  ;;  %v19101_v18 = vpack.c.bf16 %v27496_v25, %v27494_v6  ;;  %v27498_v48 = vand.u32 4294901760, %v27497_v57  ;;  %v27509_v6 = vld [vmem:[#allocation35_spill] sm:$0xff]  ;;  %v27512_v25 = vand.u32 4294901760, %v27511_v36  ;;  %v27527_v36 = vld [vmem:[#allocation64_spill] sm:$0xff] }
 0xb38   :  { %v19099_v53 = vpack.c.bf16 %v27488_v46, %v27486_v42  ;;  %19480 = vmatpush1.bf16.msra.mxu1 %v19479_v7  ;;  %19098 = vmatprep.subr.bf16.mxu0 %v19097_v33  ;;  %v19483_v29 = vpack.c.bf16 %v27492_v12, %v27490_v49  ;;  %v27501_v42 = vld [vmem:[#allocation13_spill] sm:$0xff]  ;;  %v27503_v33 = vld [vmem:[#allocation4_spill] sm:$0xff]  ;;  %v27506_v49 = vand.u32 4294901760, %v27505_v63  ;;  %v27508_v12 = vand.u32 4294901760, %v27507_v45  ;;  %v27521_v63 = vld [vmem:[#allocation59_spill] sm:$0xff] }
 0xb39   :  { %19482 = vmatprep.subr.bf16.mxu1 %v19481_v40  ;;  %v19485_v22 = vpack.c.bf16 %v27500_v51, %v27498_v48  ;;  %v27502_v7 = vand.u32 4294901760, %v27501_v42  ;;  %v27504_v27 = vand.u32 4294901760, %v27503_v33  ;;  %v27510_v40 = vand.u32 4294901760, %v27509_v6  ;;  %v27515_v48 = vld [vmem:[#allocation40_spill] sm:$0xff]  ;;  %v27523_v45 = vld [vmem:[#allocation61_spill] sm:$0xff] }
 0xb3a   :  { %v19487_v56 = vpack.c.bf16 %v27508_v12, %v27506_v49  ;;  %v27516_v51 = vand.u32 4294901760, %v27515_v48  ;;  %v27522_v49 = vand.u32 4294901760, %v27521_v63  ;;  %v27524_v12 = vand.u32 4294901760, %v27523_v45  ;;  %v27531_v48 = vld [vmem:[#allocation67_spill] sm:$0xff]  ;;  %v27539_v45 = vld [vmem:[#allocation73_spill] sm:$0xff] }
 0xb3b   :  { %19100 = vmatpush1.bf16.msra.mxu0 %v19099_v53  ;;  %v19103_v46 = vpack.c.bf16 %v27504_v27, %v27502_v7  ;;  %v19105_v57 = vpack.c.bf16 %v27512_v25, %v27510_v40  ;;  %v27514_v53 = vand.u32 4294901760, %v27513_v3  ;;  %v27517_v7 = vld [vmem:[#allocation38_spill] sm:$0xff]  ;;  %v27525_v40 = vld [vmem:[#allocation63_spill] sm:$0xff]  ;;  %v27528_v25 = vand.u32 4294901760, %v27527_v36  ;;  %v27543_v36 = vld [vmem:[#allocation76_spill] sm:$0xff] }
 0xb3c   :  { %19484 = vmatpush1.bf16.msra.mxu1 %v19483_v29  ;;  %19102 = vmatprep.subr.bf16.mxu0 %v19101_v18  ;;  %v27518_v29 = vand.u32 4294901760, %v27517_v7  ;;  %v27519_v18 = vld [vmem:[#allocation7_spill] sm:$0xff]  ;;  %v19491_v6 = vpack.c.bf16 %v27524_v12, %v27522_v49  ;;  %v27540_v12 = vand.u32 4294901760, %v27539_v45  ;;  %v27555_v45 = vld [vmem:[#allocation85_spill] sm:$0xff] }
 0xb3d   :  { %19486 = vmatprep.subr.bf16.mxu1 %v19485_v22  ;;  %v19489_v42 = vpack.c.bf16 %v27516_v51, %v27514_v53  ;;  %v27520_v33 = vand.u32 4294901760, %v27519_v18  ;;  %v27526_v22 = vand.u32 4294901760, %v27525_v40  ;;  %v27529_v53 = vld [vmem:[#allocation66_spill] sm:$0xff]  ;;  %v27532_v51 = vand.u32 4294901760, %v27531_v48  ;;  %v27537_v63 = vld [vmem:[#allocation71_spill] sm:$0xff] }
 0xb3e   :  { %v27538_v49 = vand.u32 4294901760, %v27537_v63  ;;  %v27547_v48 = vld [vmem:[#allocation79_spill] sm:$0xff] }
 0xb3f   :  { %19104 = vmatpush1.bf16.msra.mxu0 %v19103_v46  ;;  %v19107_v27 = vpack.c.bf16 %v27520_v33, %v27518_v29  ;;  %v19109_v3 = vpack.c.bf16 %v27528_v25, %v27526_v22  ;;  %v27530_v46 = vand.u32 4294901760, %v27529_v53  ;;  %v27533_v29 = vld [vmem:[#allocation68_spill] sm:$0xff]  ;;  %v27541_v22 = vld [vmem:[#allocation75_spill] sm:$0xff]  ;;  %v27544_v25 = vand.u32 4294901760, %v27543_v36 }
 0xb40   :  { %19488 = vmatpush1.bf16.msra.mxu1 %v19487_v56  ;;  %19106 = vmatprep.subr.bf16.mxu0 %v19105_v57  ;;  %v27534_v56 = vand.u32 4294901760, %v27533_v29  ;;  %v27535_v57 = vld [vmem:[#allocation70_spill] sm:$0xff]  ;;  %v19495_v40 = vpack.c.bf16 %v27540_v12, %v27538_v49  ;;  %v27553_v63 = vld [vmem:[#allocation83_spill] sm:$0xff]  ;;  %v27556_v12 = vand.u32 4294901760, %v27555_v45 }
 0xb41   :  { %19490 = vmatprep.subr.bf16.mxu1 %v19489_v42  ;;  %v19493_v7 = vpack.c.bf16 %v27532_v51, %v27530_v46  ;;  %v27536_v18 = vand.u32 4294901760, %v27535_v57  ;;  %v27542_v42 = vand.u32 4294901760, %v27541_v22  ;;  %v27545_v46 = vld [vmem:[#allocation78_spill] sm:$0xff]  ;;  %v27548_v51 = vand.u32 4294901760, %v27547_v48 }
 0xb42   :  { %v27554_v49 = vand.u32 4294901760, %v27553_v63  ;;  %v27579_v45 = vld [vmem:[#allocation118_spill] sm:$0xff] }
 0xb43   :  { %19108 = vmatpush1.bf16.msra.mxu0 %v19107_v27  ;;  %v19111_v33 = vpack.c.bf16 %v27536_v18, %v27534_v56  ;;  %v19113_v53 = vpack.c.bf16 %v27544_v25, %v27542_v42  ;;  %v27546_v27 = vand.u32 4294901760, %v27545_v46  ;;  %v27549_v56 = vld [vmem:[#allocation80_spill] sm:$0xff]  ;;  %v27561_v46 = vand.u32 4294901760, %v27316_v4 }
 0xb44   :  { %19492 = vmatpush1.bf16.msra.mxu1 %v19491_v6  ;;  %19110 = vmatprep.subr.bf16.mxu0 %v19109_v3  ;;  %v27550_v6 = vand.u32 4294901760, %v27549_v56  ;;  %v27551_v3 = vld [vmem:[#allocation82_spill] sm:$0xff]  ;;  %v19499_v22 = vpack.c.bf16 %v27556_v12, %v27554_v49  ;;  %v27558_v42 = vld [vmem:[#allocation88_spill] sm:$0xff]  ;;  %v27568_v4 = vand.u32 4294901760, %v27323_v52  ;;  %v27575_v52 = vand.u32 4294901760, %v27254_v16 }
 0xb45   :  { %19494 = vmatprep.subr.bf16.mxu1 %v19493_v7  ;;  %v19497_v29 = vpack.c.bf16 %v27548_v51, %v27546_v27  ;;  %v27552_v57 = vand.u32 4294901760, %v27551_v3  ;;  %v27557_v7 = vand.u32 4294901760, %v27313_v19  ;;  %v27559_v36 = vand.u32 4294901760, %v27558_v42 }
 0xb46   :  { %v27564_v51 = vand.u32 4294901760, %v27319_v5  ;;  %v27565_v19 = vand.u32 4294901760, %v27320_v37  ;;  %v27572_v37 = vand.u32 4294901760, %v27251_v43  ;;  %v27580_v12 = vand.u32 4294901760, %v27579_v45 }
 0xb47   :  { %19112 = vmatpush1.bf16.msra.mxu0 %v19111_v33  ;;  %v19115_v18 = vpack.c.bf16 %v27552_v57, %v27550_v6  ;;  %v19117_v25 = vpack.c.bf16 %v27559_v36, %v27557_v7  ;;  %v27560_v33 = vand.u32 4294901760, %v27315_v61  ;;  %v27567_v61 = vand.u32 4294901760, %v27322_v44  ;;  %v27584_v7 = vld [vmem:[#allocation122_spill] sm:$0xff]  ;;  %v27586_v36 = vld [vmem:[#allocation124_spill] sm:$0xff] }
 0xb48   :  { %19496 = vmatpush1.bf16.msra.mxu1 %v19495_v40  ;;  %19114 = vmatprep.subr.bf16.mxu0 %v19113_v53  ;;  %v27562_v40 = vand.u32 4294901760, %v27317_v11  ;;  %v27563_v53 = vand.u32 4294901760, %v27318_v21  ;;  %v19503_v56 = vpack.c.bf16 %v27565_v19, %v27564_v51  ;;  %v27569_v11 = vand.u32 4294901760, %v27324_v59 }
 0xb49   :  { %19498 = vmatprep.subr.bf16.mxu1 %v19497_v29  ;;  %v19501_v27 = vpack.c.bf16 %v27561_v46, %v27560_v33  ;;  %v27566_v29 = vand.u32 4294901760, %v27321_v28  ;;  %v27570_v21 = vand.u32 4294901760, %v27189_v41  ;;  %v27571_v57 = vand.u32 4294901760, %v27250_v13  ;;  %v27589_v33 = vld [vmem:[#allocation127_spill] sm:$0xff] }
 0xb4a   :  { %v19119_v48 = vpack.c.bf16 %v27563_v53, %v27562_v40  ;;  %v19505_v3 = vpack.c.bf16 %v27569_v11, %v27568_v4  ;;  %v27573_v28 = vand.u32 4294901760, %v27252_v32  ;;  %v27576_v59 = vand.u32 4294901760, %v27255_v50 }
 0xb4b   :  { %19116 = vmatpush1.bf16.msra.mxu0 %v19115_v18  ;;  %v19121_v6 = vpack.c.bf16 %v27567_v61, %v27566_v29  ;;  %v19123_v5 = vpack.c.bf16 %v27571_v57, %v27570_v21  ;;  %v27574_v18 = vand.u32 4294901760, %v27253_v14  ;;  %v27577_v41 = vand.u32 4294901760, %v27256_v58  ;;  %v27582_v14 = vld [vmem:[#allocation121_spill] sm:$0xff] }
 0xb4c   :  { %19500 = vmatpush1.bf16.msra.mxu1 %v19499_v22  ;;  %19118 = vmatprep.subr.bf16.mxu0 %v19117_v25  ;;  %v19507_v44 = vpack.c.bf16 %v27573_v28, %v27572_v37  ;;  %v27578_v13 = vand.u32 4294901760, %v27257_v20  ;;  %v27581_v32 = vand.u32 4294901760, %v27260_v23  ;;  %v27583_v22 = vand.u32 4294901760, %v27582_v14  ;;  %v27628_v14 = vld [vmem:[#allocation170_spill] sm:$0xff] }
 0xb4d   :  { %19502 = vmatprep.subr.bf16.mxu1 %v19501_v27  ;;  %v19125_v63 = vpack.c.bf16 %v27575_v52, %v27574_v18  ;;  %v19509_v49 = vpack.c.bf16 %v27577_v41, %v27576_v59  ;;  %v27585_v42 = vand.u32 4294901760, %v27584_v7  ;;  %v27587_v50 = vand.u32 4294901760, %v27586_v36  ;;  %v27620_v41 = vld [vmem:[#allocation165_spill] sm:$0xff] }
 0xb4e   :  { %v19127_v43 = vpack.c.bf16 %v27580_v12, %v27578_v13  ;;  %v19511_v16 = vpack.c.bf16 %v27583_v22, %v27581_v32  ;;  %v27588_v58 = vand.u32 4294901760, %v27264_v55  ;;  %v27590_v20 = vand.u32 4294901760, %v27589_v33  ;;  %v27622_v13 = vld [vmem:[#allocation166_spill] sm:$0xff]  ;;  %v27632_v36 = vld [vmem:[#allocation173_spill] sm:$0xff] }
 0xb4f   :  { %19120 = vmatpush1.bf16.msra.mxu0 %v19119_v48  ;;  %v19129_v25 = vpack.c.bf16 %v27587_v50, %v27585_v42  ;;  %v27591_v27 = vand.u32 4294901760, %v27334_v0  ;;  %v27592_v40 = vand.u32 4294901760, %v27333_v39  ;;  %v27593_v53 = vand.u32 4294901760, %v27337_v47  ;;  %v27594_v48 = vld [vmem:[#allocation133_spill] sm:$0xff] }
 0xb50   :  { %19504 = vmatpush1.bf16.msra.mxu1 %v19503_v56  ;;  %19122 = vmatprep.subr.bf16.mxu0 %v19121_v6  ;;  %v19513_v46 = vpack.c.bf16 %v27590_v20, %v27588_v58  ;;  %v27595_v51 = vand.u32 4294901760, %v27594_v48  ;;  %v27596_v56 = vand.u32 4294901760, %v27339_v9  ;;  %v27597_v55 = vand.u32 4294901760, %v27270_v35  ;;  %v27636_v20 = vld [vmem:[#allocation177_spill] sm:$0xff] }
 0xb51   :  { %19506 = vmatprep.subr.bf16.mxu1 %v19505_v3  ;;  %v19131_v23 = vpack.c.bf16 %v27592_v40, %v27591_v27  ;;  %v27598_v61 = vand.u32 4294901760, %v27341_v8  ;;  %v27599_v0 = vand.u32 4294901760, %v27272_v26  ;;  %v27600_v39 = vand.u32 4294901760, %v27344_v2  ;;  %v27638_v27 = vld [vmem:[#allocation178_spill] sm:$0xff] }
 0xb52   :  { %v19515_v19 = vpack.c.bf16 %v27595_v51, %v27593_v53  ;;  %v19133_v29 = vpack.c.bf16 %v27597_v55, %v27596_v56  ;;  %v27601_v4 = vand.u32 4294901760, %v27343_v17  ;;  %v27602_v11 = vand.u32 4294901760, %v27275_v62  ;;  %v27640_v53 = vld [vmem:[#allocation181_spill] sm:$0xff]  ;;  %v27642_v51 = vld [vmem:[#allocation182_spill] sm:$0xff]  ;;  %v27644_v55 = vld [vmem:[#allocation184_spill] sm:$0xff] }
 0xb53   :  { %19124 = vmatpush1.bf16.msra.mxu0 %v19123_v5  ;;  %v19517_v6 = vpack.c.bf16 %v27599_v0, %v27598_v61  ;;  %v27603_v9 = vand.u32 4294901760, %v27276_v30  ;;  %v27604_v3 = vand.u32 4294901760, %v27347_v31  ;;  %v27605_v8 = vand.u32 4294901760, %v27278_v38  ;;  %v27609_v5 = vld [vmem:[#allocation154_spill] sm:$0xff]  ;;  %v27646_v61 = vld [vmem:[#allocation185_spill] sm:$0xff] }
 0xb54   :  { %19508 = vmatpush1.bf16.msra.mxu1 %v19507_v44  ;;  %19126 = vmatprep.subr.bf16.mxu0 %v19125_v63  ;;  %v19135_v47 = vpack.c.bf16 %v27601_v4, %v27600_v39  ;;  %v27606_v26 = vand.u32 4294901760, %v27279_v10  ;;  %v27607_v2 = vand.u32 4294901760, %v27280_v24  ;;  %v27608_v17 = vand.u32 4294901760, %v27281_v1  ;;  %v27614_v44 = vld [vmem:[#allocation160_spill] sm:$0xff]  ;;  %v27616_v24 = vld [vmem:[#allocation162_spill] sm:$0xff]  ;;  %v27618_v63 = vld [vmem:[#allocation163_spill] sm:$0xff] }
 0xb55   :  { %19510 = vmatprep.subr.bf16.mxu1 %v19509_v49  ;;  %v19519_v35 = vpack.c.bf16 %v27603_v9, %v27602_v11  ;;  %v19137_v21 = vpack.c.bf16 %v27605_v8, %v27604_v3  ;;  %v27610_v37 = vand.u32 4294901760, %v27609_v5  ;;  %v27611_v30 = vand.u32 4294901760, %v27283_v60  ;;  %v27648_v39 = vld [vmem:[#allocation187_spill] sm:$0xff] }
 0xb56   :  { %v19521_v57 = vpack.c.bf16 %v27607_v2, %v27606_v26  ;;  %v27612_v31 = vand.u32 4294901760, %v27228_v54  ;;  %v27613_v28 = vand.u32 4294901760, %v27284_v15  ;;  %v27615_v10 = vand.u32 4294901760, %v27614_v44  ;;  %v27624_v54 = vld [vmem:[#allocation167_spill] sm:$0xff]  ;;  %v27626_v15 = vld [vmem:[#allocation169_spill] sm:$0xff] }
 0xb57   :  { %19128 = vmatpush1.bf16.msra.mxu0 %v19127_v43  ;;  %v19139_v62 = vpack.c.bf16 %v27610_v37, %v27608_v17  ;;  %v27617_v52 = vand.u32 4294901760, %v27616_v24  ;;  %v27619_v1 = vand.u32 4294901760, %v27618_v63  ;;  %v27621_v49 = vand.u32 4294901760, %v27620_v41  ;;  %v27654_v8 = vld [vmem:[#allocation191_spill] sm:$0xff]  ;;  %v27658_v17 = vld [vmem:[#allocation198_spill] sm:$0xff]  ;;  %v27665_v44 = vld [vmem:[#allocation53_spill] sm:$0xff] }
 0xb58   :  { %19512 = vmatpush1.bf16.msra.mxu1 %v19511_v16  ;;  %19130 = vmatprep.subr.bf16.mxu0 %v19129_v25  ;;  %v19523_v38 = vpack.c.bf16 %v27612_v31, %v27611_v30  ;;  %v19141_v18 = vpack.c.bf16 %v27615_v10, %v27613_v28  ;;  %v27623_v45 = vand.u32 4294901760, %v27622_v13  ;;  %v27625_v12 = vand.u32 4294901760, %v27624_v54  ;;  %v27630_v16 = vld [vmem:[#allocation172_spill] sm:$0xff]  ;;  %v27634_v25 = vld [vmem:[#allocation175_spill] sm:$0xff]  ;;  %v27661_v30 = vld [vmem:[#allocation49_spill] sm:$0xff] }
 0xb59   :  { %19514 = vmatprep.subr.bf16.mxu1 %v19513_v46  ;;  %v19525_v59 = vpack.c.bf16 %v27619_v1, %v27617_v52  ;;  %v27627_v43 = vand.u32 4294901760, %v27626_v15  ;;  %v27629_v22 = vand.u32 4294901760, %v27628_v14  ;;  %v27631_v7 = vand.u32 4294901760, %v27630_v16  ;;  %v27656_v2 = vld [vmem:[#allocation195_spill] sm:$0xff]  ;;  %v27662_v31 = vld [vmem:[#allocation196_spill] sm:$0xff]  ;;  %v27666_v10 = vld [vmem:[#allocation54_spill] sm:$0xff] }
 0xb5a   :  { %v19143_v60 = vpack.c.bf16 %v27623_v45, %v27621_v49  ;;  %v27633_v50 = vand.u32 4294901760, %v27632_v36  ;;  %v27635_v58 = vand.u32 4294901760, %v27634_v25  ;;  %v27637_v46 = vand.u32 4294901760, %v27636_v20  ;;  %v27664_v28 = vld [vmem:[#allocation200_spill] sm:$0xff]  ;;  %v27668_v24 = vld [vmem:[#allocation193_spill] sm:$0xff]  ;;  %v27670_v63 = vld [vmem:[#allocation11_spill] sm:$0xff] }
 0xb5b   :  { %19132 = vmatpush1.bf16.msra.mxu0 %v19131_v23  ;;  %v19527_v32 = vpack.c.bf16 %v27627_v43, %v27625_v12  ;;  %v19145_v42 = vpack.c.bf16 %v27631_v7, %v27629_v22  ;;  %v27639_v40 = vand.u32 4294901760, %v27638_v27  ;;  %v27641_v48 = vand.u32 4294901760, %v27640_v53  ;;  %v27669_v52 = vld [vmem:[#allocation20_spill] sm:$0xff]  ;;  %v27671_v1 = vld [vmem:[#allocation34_spill] sm:$0xff]  ;;  %v27674_v49 = vld [vmem:[#allocation15_spill] sm:$0xff] }
 0xb5c   :  { %19516 = vmatpush1.bf16.msra.mxu1 %v19515_v19  ;;  %19134 = vmatprep.subr.bf16.mxu0 %v19133_v29  ;;  %v19529_v33 = vpack.c.bf16 %v27635_v58, %v27633_v50  ;;  %v27643_v19 = vand.u32 4294901760, %v27642_v51  ;;  %v27645_v29 = vand.u32 4294901760, %v27644_v55  ;;  %v27647_v0 = vand.u32 4294901760, %v27646_v61  ;;  %v27673_v41 = vld [vmem:[#allocation30_spill] sm:$0xff]  ;;  %v27675_v13 = vld [vmem:[#allocation17_spill] sm:$0xff]  ;;  %v27681_v15 = vld [vmem:[#allocation28_spill] sm:$0xff] }
 0xb5d   :  { %19518 = vmatprep.subr.bf16.mxu1 %v19517_v6  ;;  %v19147_v23 = vpack.c.bf16 %v27639_v40, %v27637_v46  ;;  %v27649_v4 = vand.u32 4294901760, %v27648_v39  ;;  %v27659_v5 = vand.u32 4294901760, %v27658_v17  ;;  %v27676_v45 = vld [vmem:[#allocation18_spill] sm:$0xff]  ;;  %v27680_v12 = vld [vmem:[#allocation37_spill] sm:$0xff]  ;;  %v27682_v43 = vld [vmem:[#allocation60_spill] sm:$0xff] }
 0xb5e   :  { %v19531_v56 = vpack.c.bf16 %v27643_v19, %v27641_v48  ;;  %v19149_v6 = vpack.c.bf16 %v27647_v0, %v27645_v29  ;;  %v27679_v54 = vld [vmem:[#allocation6_spill] sm:$0xff]  ;;  %v27684_v14 = vld [vmem:[#allocation65_spill] sm:$0xff]  ;;  %v27686_v16 = vld [vmem:[#allocation72_spill] sm:$0xff] }
 0xb5f   :  { %19136 = vmatpush1.bf16.msra.mxu0 %v19135_v47  ;;  %v27650_v47 = vld [vmem:[#allocation188_spill] sm:$0xff]  ;;  %v27685_v22 = vld [vmem:[#allocation69_spill] sm:$0xff]  ;;  %v27687_v7 = vld [vmem:[#allocation74_spill] sm:$0xff] }
 0xb60   :  { %19520 = vmatpush1.bf16.msra.mxu1 %v19519_v35  ;;  %19138 = vmatprep.subr.bf16.mxu0 %v19137_v21  ;;  %v27651_v11 = vand.u32 4294901760, %v27650_v47  ;;  %v27652_v35 = vld [vmem:[#allocation190_spill] sm:$0xff]  ;;  %v27655_v21 = vand.u32 4294901760, %v27654_v8  ;;  %v27689_v36 = vld [vmem:[#allocation81_spill] sm:$0xff]  ;;  %v27690_v50 = vld [vmem:[#allocation84_spill] sm:$0xff] }
 0xb61   :  { %19522 = vmatprep.subr.bf16.mxu1 %v19521_v57  ;;  %v27653_v3 = vand.u32 4294901760, %v27652_v35  ;;  %v27657_v57 = vand.u32 4294901760, %v27656_v2  ;;  %v27691_v25 = vld [vmem:[#allocation86_spill] sm:$0xff]  ;;  %v27692_v58 = vld [vmem:[#allocation89_spill] sm:$0xff]  ;;  %v27694_v20 = vld [vmem:[#allocation96_spill] sm:$0xff] }
 0xb62   :  { %v19533_v9 = vpack.c.bf16 %v27651_v11, %v27649_v4  ;;  %v27695_v46 = vld [vmem:[#allocation98_spill] sm:$0xff]  ;;  %v27697_v40 = vld [vmem:[#allocation104_spill] sm:$0xff]  ;;  %v27700_v48 = vld [vmem:[#allocation113_spill] sm:$0xff] }
 0xb63   :  { %19140 = vmatpush1.bf16.msra.mxu0 %v19139_v62  ;;  %v19151_v26 = vpack.c.bf16 %v27655_v21, %v27653_v3  ;;  %v19535_v37 = vpack.c.bf16 %v27659_v5, %v27657_v57  ;;  %v27660_v62 = vld [vmem:[#allocation48_spill] sm:$0xff]  ;;  %v27696_v27 = vld [vmem:[#allocation102_spill] sm:$0xff]  ;;  %v27706_v61 = vld [vmem:[#allocation131_spill] sm:$0xff] }
 0xb64   :  { %19524 = vmatpush1.bf16.msra.mxu1 %v19523_v38  ;;  %19142 = vmatprep.subr.bf16.mxu0 %v19141_v18  ;;  %v27663_v38 = vld [vmem:[#allocation51_spill] sm:$0xff]  ;;  %v27667_v18 = vld [vmem:[#allocation56_spill] sm:$0xff]  ;;  %v27699_v53 = vld [vmem:[#allocation110_spill] sm:$0xff] }
 0xb65   :  { %19526 = vmatprep.subr.bf16.mxu1 %v19525_v59  ;;  %v27672_v59 = vld [vmem:[#allocation26_spill] sm:$0xff]  ;;  %v27701_v51 = vld [vmem:[#allocation116_spill] sm:$0xff]  ;;  %v27711_v47 = vld [vmem:[#allocation147_spill] sm:$0xff] }
 0xb66   :  { %v27702_v19 = vld [vmem:[#allocation120_spill] sm:$0xff]  ;;  %v27704_v55 = vld [vmem:[#allocation126_spill] sm:$0xff]  ;;  %v27714_v35 = vld [vmem:[#allocation155_spill] sm:$0xff] }
 0xb67   :  { %19144 = vmatpush1.bf16.msra.mxu0 %v19143_v60  ;;  %v27677_v60 = vld [vmem:[#allocation14_spill] sm:$0xff]  ;;  %v27705_v29 = vld [vmem:[#allocation128_spill] sm:$0xff]  ;;  %v27716_v8 = vld [vmem:[#allocation161_spill] sm:$0xff] }
 0xb68   :  { %19528 = vmatpush1.bf16.msra.mxu1 %v19527_v32  ;;  %19146 = vmatprep.subr.bf16.mxu0 %v19145_v42  ;;  %v27683_v32 = vld [vmem:[#allocation62_spill] sm:$0xff]  ;;  %v27688_v42 = vld [vmem:[#allocation77_spill] sm:$0xff]  ;;  %v27709_v39 = vld [vmem:[#allocation140_spill] sm:$0xff] }
 0xb69   :  { %19530 = vmatprep.subr.bf16.mxu1 %v19529_v33  ;;  %v27693_v33 = vld [vmem:[#allocation93_spill] sm:$0xff]  ;;  %v27707_v0 = vld [vmem:[#allocation134_spill] sm:$0xff]  ;;  %v27710_v4 = vld [vmem:[#allocation144_spill] sm:$0xff] }
 0xb6a   :  { %v27712_v11 = vld [vmem:[#allocation150_spill] sm:$0xff]  ;;  %v27717_v21 = vld [vmem:[#allocation164_spill] sm:$0xff]  ;;  %v27719_v2 = vld [vmem:[#allocation171_spill] sm:$0xff] }
 0xb6b   :  { %19148 = vmatpush1.bf16.msra.mxu0 %v19147_v23  ;;  %v27698_v23 = vld [vmem:[#allocation107_spill] sm:$0xff]  ;;  %v27715_v3 = vld [vmem:[#allocation158_spill] sm:$0xff]  ;;  %v27721_v17 = vld [vmem:[#allocation176_spill] sm:$0xff] }
 0xb6c   :  { %19532 = vmatpush1.bf16.msra.mxu1 %v19531_v56  ;;  %19150 = vmatprep.subr.bf16.mxu0 %v19149_v6  ;;  %v27703_v56 = vld [vmem:[#allocation123_spill] sm:$0xff]  ;;  %v27708_v6 = vld [vmem:[#allocation137_spill] sm:$0xff]  ;;  %v27720_v57 = vld [vmem:[#allocation174_spill] sm:$0xff] }
 0xb6d   :  { %19534 = vmatprep.subr.bf16.mxu1 %v19533_v9  ;;  %v27713_v9 = vld [vmem:[#allocation152_spill] sm:$0xff] }
 0xb6e   :  { %v27722_v5 = vld [vmem:[#allocation180_spill] sm:$0xff] }
 0xb6f   :  { %19152 = vmatpush1.bf16.msra.mxu0 %v19151_v26  ;;  %v27718_v26 = vld [vmem:[#allocation168_spill] sm:$0xff] }
 0xb70   :  { %19536 = vmatpush1.bf16.msra.mxu1 %v19535_v37  ;;  %19154 = vmatprep.subr.bf16.mxu0 %v27660_v62  ;;  %v27723_v37 = vld [vmem:[#allocation183_spill] sm:$0xff]  ;;  %v27724_v62 = vld [vmem:[#allocation186_spill] sm:$0xff] }
 0xb71   :  { %19538 = vmatprep.subr.bf16.mxu1 %v27661_v30  ;;  %v27725_v30 = vld [vmem:[#allocation189_spill] sm:$0xff] }
 0xb72   :  { %10251 = vmatmul.mubr.f32.vlgmr.msra.gmra.mrb[34].mxu0 %v27662_v31 }
 0xb73   :  { %19156 = vmatpush1.bf16.msra.mxu0 %v27663_v38  ;;  %12895 = vmatmul.mubr.f32.vlgmr.msra.gmra.mrb[34].mxu1 %v27664_v28  ;;  %v27726_v38 = vld [vmem:[#allocation197_spill] sm:$0xff] }
 0xb74   :  { %19540 = vmatpush1.bf16.msra.mxu1 %v27665_v44  ;;  %19158 = vmatprep.subr.bf16.mxu0 %v27666_v10  ;;  %v27727_v44 = vmov 0.0   ;;  %v13042_v10 = vpop.permute.xlu1 %13041 }
 0xb75   :  { %19542 = vmatprep.subr.bf16.mxu1 %v27667_v18  ;;  %10386 = vmatprep.mubr.f32.mxu0 %v27483_v34  ;;  %v27678_v34 = vld [vmem:[#allocation33_spill] sm:$0xff]  ;;  %v13043_v18 = vsel %vm1160_vm3, %v13042_v10, 0 }
 0xb76   :  { %13030 = vmatprep.mubr.f32.mxu1 %v27668_v24  ;;  %v25776_v24 = vand.u32 4294901760, %v13043_v18 }
 0xb77   :  { %19160 = vmatpush1.bf16.msra.mxu0 %v27669_v52 }
 0xb78   :  { %19544 = vmatpush1.bf16.msra.mxu1 %v27670_v63  ;;  %19162 = vmatprep.subr.bf16.mxu0 %v27671_v1  ;;  %v13113_v52 = vsub.f32 %v13043_v18, %v25776_v24 }
 0xb79   :  { %19546 = vmatprep.subr.bf16.mxu1 %v27672_v59 }
 0xb7a   :  { %v25779_v63 = vand.u32 4294901760, %v13113_v52 }
 0xb7b   :  { %19164 = vmatpush1.bf16.msra.mxu0 %v27673_v41 }
 0xb7c   :  { %19548 = vmatpush1.bf16.msra.mxu1 %v27674_v49  ;;  %19166 = vmatprep.subr.bf16.mxu0 %v27675_v13  ;;  %v13115_v59 = vsub.f32 %v13113_v52, %v25779_v63 }
 0xb7d   :  { %19550 = vmatprep.subr.bf16.mxu1 %v27676_v45 }
 0xb7f   :  { %19168 = vmatpush1.bf16.msra.mxu0 %v27677_v60 }
 0xb80   :  { %19552 = vmatpush1.bf16.msra.mxu1 %v27678_v34  ;;  %19170 = vmatprep.subr.bf16.mxu0 %v27679_v54 }
 0xb81   :  { %19554 = vmatprep.subr.bf16.mxu1 %v27680_v12 }
 0xb83   :  { %19172 = vmatpush1.bf16.msra.mxu0 %v27681_v15  ;;  %v13116_v15 = vand.u32 4294901760, %v13115_v59 }
 0xb84   :  { %19556 = vmatpush1.bf16.msra.mxu1 %v27682_v43  ;;  %19174 = vmatprep.subr.bf16.mxu0 %v27683_v32 }
 0xb85   :  { %19558 = vmatprep.subr.bf16.mxu1 %v27684_v14 }
 0xb87   :  { %19176 = vmatpush1.bf16.msra.mxu0 %v27685_v22 }
 0xb88   :  { %19560 = vmatpush1.bf16.msra.mxu1 %v27686_v16  ;;  %19178 = vmatprep.subr.bf16.mxu0 %v27687_v7 }
 0xb89   :  { %19562 = vmatprep.subr.bf16.mxu1 %v27688_v42 }
 0xb8b   :  { %19180 = vmatpush1.bf16.msra.mxu0 %v27689_v36 }
 0xb8c   :  { %19564 = vmatpush1.bf16.msra.mxu1 %v27690_v50  ;;  %19182 = vmatprep.subr.bf16.mxu0 %v27691_v25 }
 0xb8d   :  { %19566 = vmatprep.subr.bf16.mxu1 %v27692_v58 }
 0xb8f   :  { %19184 = vmatpush1.bf16.msra.mxu0 %v27693_v33 }
 0xb90   :  { %19568 = vmatpush1.bf16.msra.mxu1 %v27694_v20  ;;  %19186 = vmatprep.subr.bf16.mxu0 %v27695_v46  ;;  %v27728_v46 = vld [vmem:[#allocation203_spill] sm:$0xff] }
 0xb91   :  { %19570 = vmatprep.subr.bf16.mxu1 %v27696_v27  ;;  %v25869_v27 = vand.u32 4294901760, %v27728_v46 }
 0xb93   :  { %19188 = vmatpush1.bf16.msra.mxu0 %v27697_v40  ;;  %v19825_v40 = vld [vmem:[%s26068_s17] sm:$0xff] }
 0xb94   :  { %19572 = vmatpush1.bf16.msra.mxu1 %v27698_v23  ;;  %19190 = vmatprep.subr.bf16.mxu0 %v27699_v53  ;;  %v13510_v23 = vsel %vm1160_vm3, %v19825_v40, 0  ;;  %v27729_v53 = vld [vmem:[#allocation204_spill] sm:$0xff] }
 0xb95   :  { %19574 = vmatprep.subr.bf16.mxu1 %v27700_v48  ;;  %v25877_v48 = vand.u32 4294901760, %v27729_v53 }
 0xb97   :  { %19192 = vmatpush1.bf16.msra.mxu0 %v27701_v51  ;;  %v25885_v51 = vand.u32 4294901760, %v13510_v23 }
 0xb98   :  { %19576 = vmatpush1.bf16.msra.mxu1 %v27702_v19  ;;  %19194 = vmatprep.subr.bf16.mxu0 %v27703_v56  ;;  %v13591_v19 = vsub.f32 %v27728_v46, %v25869_v27  ;;  %v14528_v56 = vsub.f32 %v27729_v53, %v25877_v48 }
 0xb99   :  { %19578 = vmatprep.subr.bf16.mxu1 %v27704_v55  ;;  %v27730_v55 = vld [vmem:[#allocation105_spill] sm:$0xff] }
 0xb9b   :  { %19196 = vmatpush1.bf16.msra.mxu0 %v27705_v29  ;;  %v25893_v29 = vand.u32 4294901760, %v27730_v55 }
 0xb9c   :  { %19580 = vmatpush1.bf16.msra.mxu1 %v27706_v61  ;;  %19198 = vmatprep.subr.bf16.mxu0 %v27707_v0  ;;  %v13580_v61 = vsub.f32 %v13510_v23, %v25885_v51  ;;  %v27731_v0 = vld [vmem:[#allocation202_spill] sm:$0xff] }
 0xb9d   :  { %19582 = vmatprep.subr.bf16.mxu1 %v27708_v6  ;;  %v25897_v6 = vand.u32 4294901760, %v27731_v0 }
 0xb9f   :  { %19200 = vmatpush1.bf16.msra.mxu0 %v27709_v39  ;;  %v13592_v39 = vand.u32 4294901760, %v13591_v19 }
 0xba0   :  { %19584 = vmatpush1.bf16.msra.mxu1 %v27710_v4  ;;  %19202 = vmatprep.subr.bf16.mxu0 %v27711_v47  ;;  %v14529_v4 = vand.u32 4294901760, %v14528_v56  ;;  %v13597_v47 = vsub.f32 %v27730_v55, %v25893_v29 }
 0xba1   :  { %19586 = vmatprep.subr.bf16.mxu1 %v27712_v11  ;;  %v13581_v11 = vand.u32 4294901760, %v13580_v61 }
 0xba3   :  { %19204 = vmatpush1.bf16.msra.mxu0 %v27713_v9  ;;  %v14534_v9 = vsub.f32 %v27731_v0, %v25897_v6 }
 0xba4   :  { %19588 = vmatpush1.bf16.msra.mxu1 %v27714_v35  ;;  %19206 = vmatprep.subr.bf16.mxu0 %v27715_v3  ;;  %v13593_v35 = vsub.f32 %v13591_v19, %v13592_v39  ;;  %v14530_v3 = vsub.f32 %v14528_v56, %v14529_v4 }
 0xba5   :  { %19590 = vmatprep.subr.bf16.mxu1 %v27716_v8  ;;  %v13598_v8 = vand.u32 4294901760, %v13597_v47 }
 0xba7   :  { %19208 = vmatpush1.bf16.msra.mxu0 %v27717_v21  ;;  %v14535_v21 = vand.u32 4294901760, %v14534_v9 }
 0xba8   :  { %19592 = vmatpush1.bf16.msra.mxu1 %v27718_v26  ;;  %19210 = vmatprep.subr.bf16.mxu0 %v27719_v2  ;;  %v13594_v26 = vand.u32 4294901760, %v13593_v35  ;;  %v13582_v2 = vsub.f32 %v13580_v61, %v13581_v11 }
 0xba9   :  { %19594 = vmatprep.subr.bf16.mxu1 %v27720_v57  ;;  %v14531_v57 = vand.u32 4294901760, %v14530_v3 }
 0xbab   :  { %19212 = vmatpush1.bf16.msra.mxu0 %v27721_v17  ;;  %v13599_v17 = vsub.f32 %v13597_v47, %v13598_v8 }
 0xbac   :  { %19596 = vmatpush1.bf16.msra.mxu1 %v27722_v5  ;;  %19214 = vmatprep.subr.bf16.mxu0 %v27723_v37  ;;  %v14536_v5 = vsub.f32 %v14534_v9, %v14535_v21  ;;  %v13583_v37 = vand.u32 4294901760, %v13582_v2  ;;  %v14944_v2 = vld [vmem:[%s26077_s20] sm:$0xff] }
 0xbad   :  { %19598 = vmatprep.subr.bf16.mxu1 %v27724_v62  ;;  %v13600_v62 = vand.u32 4294901760, %v13599_v17 }
 0xbaf   :  { %19216 = vmatpush1.bf16.msra.mxu0 %v27725_v30  ;;  %v14537_v30 = vand.u32 4294901760, %v14536_v5 }
 0xbb0   :  { %19600 = vmatpush1.bf16.msra.mxu1 %v27726_v38  ;;  %v13980_v38 = vpop.permute.xlu1 %13979 }
 0xbb2   :  { %10388 = vmatmul.mubr.f32.vlgmr.msra.gmra.mrb[34].mxu0 %v27662_v31 }
 0xbb3   :  { %13032 = vmatmul.mubr.f32.vlgmr.msra.gmra.mrb[34].mxu1 %v27664_v28  ;;  %13111 = vmatprep.mubr.f32.mxu0 %v27727_v44 }
 0xbb4   :  { %14050 = vmatprep.mubr.f32.mxu1 %v27727_v44 }
 0xc85   :  { %v10389_v1 = vpop.f32.mrb[34].mxu0 }
 0xc86   :  { %v25782_v41 = vand.u32 4294901760, %v10389_v1  ;;  %14971 = vst [vmem:[%s26073_s23] sm:$0xff] %v10389_v1  ;;  %v13033_v31 = vpop.f32.mrb[34].mxu1  ;;  %v10391_v28 = vpop.f32.mrb[35].mxu0 }
 0xc87   :  { %v25787_v49 = vand.u32 4294901760, %v13033_v31  ;;  %17593 = vst [vmem:[%s26073_s23 + $0x10] sm:$0xff] %v13033_v31  ;;  %v25792_v13 = vand.u32 4294901760, %v10391_v28  ;;  %14972 = vst [vmem:[%s26073_s23 + $0x8] sm:$0xff] %v10391_v28  ;;  %v13035_v45 = vpop.f32.mrb[35].mxu1 }
 0xc88   :  { %v25798_v60 = vsub.f32 %v10389_v1, %v25782_v41  ;;  %v25800_v34 = vand.u32 4294901760, %v13035_v45  ;;  %17594 = vst [vmem:[%s26073_s23 + $0x18] sm:$0xff] %v13035_v45 }
 0xc89   :  { %v25806_v54 = vsub.f32 %v13033_v31, %v25787_v49  ;;  %v25809_v12 = vsub.f32 %v10391_v28, %v25792_v13  ;;  %13046 = vmatprep.subr.mxu0 %v25792_v13 }
 0xc8a   :  { %v25813_v43 = vand.u32 4294901760, %v25798_v60  ;;  %v25816_v32 = vsub.f32 %v13035_v45, %v25800_v34  ;;  %13985 = vmatprep.subr.mxu1 %v25800_v34  ;;  %13048 = vmatpush1.msra.mxu0 %v25782_v41 }
 0xc8b   :  { %v25821_v14 = vand.u32 4294901760, %v25806_v54  ;;  %13987 = vmatpush1.msra.mxu1 %v25787_v49  ;;  %13117 = vmatmul.mubr.f32.vlgmr.msra.gmra.mrb[36].mxu0 %v13116_v15  ;;  %v25825_v22 = vand.u32 4294901760, %v25809_v12 }
 0xc8c   :  { %14056 = vmatmul.mubr.f32.vlgmr.msra.gmra.mrb[36].mxu1 %v13116_v15  ;;  %v25828_v16 = vand.u32 4294901760, %v25816_v32  ;;  %v13132_v7 = vsub.f32 %v25798_v60, %v25813_v43  ;;  %13197 = vmatprep.mubr.f32.mxu0 %v27727_v44 }
 0xc8d   :  { %v13126_v42 = vsub.f32 %v25809_v12, %v25825_v22  ;;  %v14071_v36 = vsub.f32 %v25806_v54, %v25821_v14  ;;  %14136 = vmatprep.mubr.f32.mxu1 %v27727_v44 }
 0xc8e   :  { %v14065_v50 = vsub.f32 %v25816_v32, %v25828_v16  ;;  %v25844_v33 = vand.u32 4294901760, %v13132_v7 }
 0xc8f   :  { %v25840_v25 = vand.u32 4294901760, %v13126_v42  ;;  %v25847_v20 = vand.u32 4294901760, %v14071_v36 }
 0xc90   :  { %v25842_v58 = vand.u32 4294901760, %v14065_v50 }
 0xc91   :  { %13128 = vmatprep.subr.mxu0 %v25840_v25 }
 0xc92   :  { %14067 = vmatprep.subr.mxu1 %v25842_v58  ;;  %13134 = vmatpush1.msra.mxu0 %v25844_v33 }
 0xc93   :  { %14073 = vmatpush1.msra.mxu1 %v25847_v20  ;;  %13199 = vmatmul.mubr.f32.vlgmr.msra.gmra.mrb[36].mxu0 %v25776_v24 }
 0xc94   :  { %13207 = vmatprep.subr.mxu0 %v25809_v12  ;;  %14138 = vmatmul.mubr.f32.vlgmr.msra.gmra.mrb[36].mxu1 %v25776_v24 }
 0xc95   :  { %14146 = vmatprep.subr.mxu1 %v25816_v32  ;;  %13210 = vmatpush1.msra.mxu0 %v25798_v60 }
 0xc96   :  { %14149 = vmatpush1.msra.mxu1 %v25806_v54  ;;  %13283 = vmatprep.subr.mxu0 %v25792_v13 }
 0xc97   :  { %14222 = vmatprep.subr.mxu1 %v25800_v34  ;;  %13273 = vmatprep.mubr.f32.mxu0 %v27727_v44 }
 0xc98   :  { %14212 = vmatprep.mubr.f32.mxu1 %v27727_v44 }
 0xc9b   :  { %13276 = vmatmul.mubr.f32.vlgmr.msra.gmra.mrb[36].mxu0 %v13113_v52 }
 0xc9c   :  { %13285 = vmatpush1.msra.mxu0 %v25782_v41  ;;  %14215 = vmatmul.mubr.f32.vlgmr.msra.gmra.mrb[36].mxu1 %v13113_v52 }
 0xc9d   :  { %14224 = vmatpush1.msra.mxu1 %v25787_v49  ;;  %13361 = vmatprep.subr.mxu0 %v25825_v22 }
 0xc9e   :  { %14300 = vmatprep.subr.mxu1 %v25828_v16  ;;  %13348 = vmatprep.mubr.f32.mxu0 %v27727_v44 }
 0xc9f   :  { %14287 = vmatprep.mubr.f32.mxu1 %v27727_v44 }
 0xca3   :  { %13352 = vmatmul.mubr.f32.vlgmr.msra.gmra.mrb[36].mxu0 %v25779_v63 }
 0xca4   :  { %13365 = vmatpush1.msra.mxu0 %v25813_v43  ;;  %14291 = vmatmul.mubr.f32.vlgmr.msra.gmra.mrb[36].mxu1 %v25779_v63 }
 0xca5   :  { %14304 = vmatpush1.msra.mxu1 %v25821_v14  ;;  %13437 = vmatprep.subr.mxu0 %v25792_v13 }
 0xca6   :  { %14376 = vmatprep.subr.mxu1 %v25800_v34  ;;  %13428 = vmatprep.mubr.f32.mxu0 %v27727_v44 }
 0xca7   :  { %14367 = vmatprep.mubr.f32.mxu1 %v27727_v44 }
 0xcab   :  { %13430 = vmatmul.mubr.f32.vlgmr.msra.gmra.mrb[36].mxu0 %v25776_v24 }
 0xcac   :  { %13439 = vmatpush1.msra.mxu0 %v25782_v41  ;;  %14369 = vmatmul.mubr.f32.vlgmr.msra.gmra.mrb[36].mxu1 %v25776_v24 }
 0xcad   :  { %14378 = vmatpush1.msra.mxu1 %v25787_v49  ;;  %13513 = vmatprep.subr.mxu0 %v25869_v27 }
 0xcae   :  { %14450 = vmatprep.subr.mxu1 %v25877_v48  ;;  %13502 = vmatprep.mubr.f32.mxu0 %v27727_v44 }
 0xcaf   :  { %14441 = vmatprep.mubr.f32.mxu1 %v27727_v44 }
 0xcb3   :  { %13504 = vmatmul.mubr.f32.vlgmr.msra.gmra.mrb[36].mxu0 %v25776_v24 }
 0xcb4   :  { %13515 = vmatpush1.msra.mxu0 %v25893_v29  ;;  %14443 = vmatmul.mubr.f32.vlgmr.msra.gmra.mrb[36].mxu1 %v25776_v24 }
 0xcb5   :  { %14452 = vmatpush1.msra.mxu1 %v25897_v6  ;;  %13595 = vmatprep.subr.mxu0 %v13594_v26 }
 0xcb6   :  { %14532 = vmatprep.subr.mxu1 %v14531_v57  ;;  %13578 = vmatprep.mubr.f32.mxu0 %v27727_v44 }
 0xcb7   :  { %14515 = vmatprep.mubr.f32.mxu1 %v27727_v44 }
 0xcbb   :  { %13584 = vmatmul.mubr.f32.vlgmr.msra.gmra.mrb[36].mxu0 %v13583_v37 }
 0xcbc   :  { %13601 = vmatpush1.msra.mxu0 %v13600_v62  ;;  %14521 = vmatmul.mubr.f32.vlgmr.msra.gmra.mrb[36].mxu1 %v13583_v37 }
 0xcbd   :  { %14538 = vmatpush1.msra.mxu1 %v14537_v30  ;;  %13674 = vmatprep.subr.mxu0 %v13591_v19  ;;  %v25968_v19 = vld [vmem:[%s26074_s21] sm:$0xff] }
 0xcbe   :  { %14611 = vmatprep.subr.mxu1 %v14528_v56  ;;  %13664 = vmatprep.mubr.f32.mxu0 %v27727_v44  ;;  %v14970_v56 = vld [vmem:[%s26075_s22] sm:$0xff] }
 0xcbf   :  { %14601 = vmatprep.mubr.f32.mxu1 %v27727_v44 }
 0xcc3   :  { %13666 = vmatmul.mubr.f32.vlgmr.msra.gmra.mrb[36].mxu0 %v25885_v51 }
 0xcc4   :  { %13677 = vmatpush1.msra.mxu0 %v13597_v47  ;;  %14603 = vmatmul.mubr.f32.vlgmr.msra.gmra.mrb[36].mxu1 %v25885_v51 }
 0xcc5   :  { %14614 = vmatpush1.msra.mxu1 %v14534_v9  ;;  %13750 = vmatprep.subr.mxu0 %v25869_v27 }
 0xcc6   :  { %14687 = vmatprep.subr.mxu1 %v25877_v48  ;;  %13740 = vmatprep.mubr.f32.mxu0 %v27727_v44 }
 0xcc7   :  { %14677 = vmatprep.mubr.f32.mxu1 %v27727_v44 }
 0xccb   :  { %13743 = vmatmul.mubr.f32.vlgmr.msra.gmra.mrb[36].mxu0 %v13580_v61 }
 0xccc   :  { %13752 = vmatpush1.msra.mxu0 %v25893_v29  ;;  %14680 = vmatmul.mubr.f32.vlgmr.msra.gmra.mrb[36].mxu1 %v13580_v61 }
 0xccd   :  { %14689 = vmatpush1.msra.mxu1 %v25897_v6  ;;  %13828 = vmatprep.subr.mxu0 %v13592_v39 }
 0xcce   :  { %14765 = vmatprep.subr.mxu1 %v14529_v4  ;;  %13815 = vmatprep.mubr.f32.mxu0 %v27727_v44 }
 0xccf   :  { %14752 = vmatprep.mubr.f32.mxu1 %v27727_v44 }
 0xcd3   :  { %13819 = vmatmul.mubr.f32.vlgmr.msra.gmra.mrb[36].mxu0 %v13581_v11 }
 0xcd4   :  { %13832 = vmatpush1.msra.mxu0 %v13598_v8  ;;  %14756 = vmatmul.mubr.f32.vlgmr.msra.gmra.mrb[36].mxu1 %v13581_v11  ;;  %v14939_v8 = vld [vmem:[%s26076_s19] sm:$0xff] }
 0xcd5   :  { %14769 = vmatpush1.msra.mxu1 %v14535_v21  ;;  %13904 = vmatprep.subr.mxu0 %v25869_v27 }
 0xcd6   :  { %14841 = vmatprep.subr.mxu1 %v25877_v48  ;;  %13895 = vmatprep.mubr.f32.mxu0 %v27727_v44 }
 0xcd7   :  { %14832 = vmatprep.mubr.f32.mxu1 %v27727_v44 }
 0xcdb   :  { %13897 = vmatmul.mubr.f32.vlgmr.msra.gmra.mrb[36].mxu0 %v25885_v51 }
 0xcdc   :  { %13906 = vmatpush1.msra.mxu0 %v25893_v29  ;;  %14834 = vmatmul.mubr.f32.vlgmr.msra.gmra.mrb[36].mxu1 %v25885_v51 }
 0xcdd   :  { %14843 = vmatpush1.msra.mxu1 %v25897_v6  ;;  %14979 = vmatprep.subr.mxu0 %v25792_v13 }
 0xcde   :  { %15923 = vmatprep.subr.mxu1 %v25800_v34  ;;  %13969 = vmatprep.mubr.f32.mxu0 %v27727_v44 }
 0xcdf   :  { %14906 = vmatprep.mubr.f32.mxu1 %v27727_v44 }
 0xce3   :  { %13971 = vmatmul.mubr.f32.vlgmr.msra.gmra.mrb[36].mxu0 %v25885_v51 }
 0xce4   :  { %14908 = vmatmul.mubr.f32.vlgmr.msra.gmra.mrb[36].mxu1 %v25885_v51  ;;  %14981 = vmatpush1.msra.mxu0 %v25782_v41 }
 0xce5   :  { %15925 = vmatpush1.msra.mxu1 %v25787_v49  ;;  %15061 = vmatprep.subr.mxu0 %v25840_v25 }
 0xce6   :  { %16005 = vmatprep.subr.mxu1 %v25842_v58  ;;  %15044 = vmatprep.mubr.f32.mxu0 %v27727_v44 }
 0xce7   :  { %15988 = vmatprep.mubr.f32.mxu1 %v27727_v44 }
 0xdb6   :  { %v13972_v10 = vpop.f32.mrb[36].mxu0 }
 0xdb7   :  { %v25949_v18 = vadd.f32 %v13980_v38, %v13972_v10  ;;  %v14909_v24 = vpop.f32.mrb[36].mxu1  ;;  %v13974_v52 = vpop.f32.mrb[37].mxu0 }
 0xdb8   :  { %v25951_v63 = vadd.f32 %v14909_v24, %v13980_v38  ;;  %v25953_v1 = vadd.f32 %v13980_v38, %v13974_v52  ;;  %v14911_v59 = vpop.f32.mrb[37].mxu1 }
 0xdb9   :  { %v25955_v31 = vadd.f32 %v14911_v59, %v13980_v38 }
 0xdba   :  { %v14916_v28 = vadd.f32 %v25953_v1, %v25949_v18 }
 0xdbb   :  { %v14919_v45 = vadd.f32 %v25955_v31, %v25951_v63 }
 0xdbc   :  { %14917 = vadd.xlane.f32.xlu1 %v14916_v28 }
 0xdbd   :  { %14920 = vadd.xlane.f32.xlu0 %v14919_v45 }
 0xe49   :  { %v14918_v15 = vpop.xlane.xlu1 %14917 }
 0xe4a   :  { %v14921_v7 = vpop.xlane.xlu0 %14920 }
 0xe4b   :  { %v14922_v42 = vadd.f32 %v14921_v7, %v14918_v15 }
 0xe4d   :  { %v14923_v36 = vmul.f32 0.001953125, %v14922_v42 }
 0xe4f   :  { %v14931_v50 = vsub.f32 %v25951_v63, %v14923_v36  ;;  %v14932_v25 = vsub.f32 %v25955_v31, %v14923_v36  ;;  %v14924_v58 = vsub.f32 %v25949_v18, %v14923_v36  ;;  %v14925_v46 = vsub.f32 %v25953_v1, %v14923_v36 }
 0xe51   :  { %v14933_v27 = vmul.f32 %v14931_v50, %v14931_v50  ;;  %v14934_v40 = vmul.f32 %v14932_v25, %v14932_v25  ;;  %v14926_v23 = vmul.f32 %v14924_v58, %v14924_v58  ;;  %v14927_v53 = vmul.f32 %v14925_v46, %v14925_v46 }
 0xe53   :  { %v14935_v48 = vadd.f32 %v14934_v40, %v14933_v27  ;;  %v14928_v51 = vadd.f32 %v14927_v53, %v14926_v23 }
 0xe55   :  { %14936 = vadd.xlane.f32.xlu1 %v14935_v48  ;;  %14929 = vadd.xlane.f32.xlu0 %v14928_v51 }
 0xe6b   :  { %14974 = vrot.lane.b32.xlu0 %v25968_v19, %s19831_s13 }
 0xe6f   :  { %15912 = vperm.xlu0 %19817, %v14970_v56  }
 0xee2   :  { %v14937_v55 = vpop.xlane.xlu1 %14936  ;;  %v14930_v29 = vpop.xlane.xlu0 %14929 }
 0xee3   :  { %v14938_v61 = vadd.f32 %v14937_v55, %v14930_v29 }
 0xee5   :  { %v14940_v0 = vmul.f32 0.001953125, %v14938_v61 }
 0xee6   :  { %v14975_v6 = vpop.permute.xlu0 %14974 }
 0xee7   :  { %v14941_v39 = vadd.f32 1e-05, %v14940_v0  ;;  %v14976_v4 = vsel %vm1160_vm3, %v14975_v6, 0 }
 0xee8   :  { %v15045_v47 = vand.u32 4294901760, %v14976_v4 }
 0xee9   :  { %19823 = vrsqrt.f32 %v14941_v39 }
 0xeea   :  { %v15046_v11 = vsub.f32 %v14976_v4, %v15045_v47 }
 0xeec   :  { %v15047_v9 = vand.u32 4294901760, %v15046_v11 }
 0xeee   :  { %v15048_v35 = vsub.f32 %v15046_v11, %v15047_v9  ;;  %v15913_v53 = vpop.permute.xlu0 %15912 }
 0xef0   :  { %v15049_v3 = vand.u32 4294901760, %v15048_v35 }
 0xef2   :  { %15050 = vmatmul.mubr.f32.vlgmr.msra.gmra.mrb[38].mxu0 %v15049_v3  ;;  %15994 = vmatmul.mubr.f32.vlgmr.msra.gmra.mrb[38].mxu1 %v15049_v3 }
 0xef3   :  { %v19824_v21 = vpop.eup %19823  ;;  %15067 = vmatpush1.msra.mxu0 %v25844_v33  ;;  %16011 = vmatpush1.msra.mxu1 %v25847_v20 }
 0xef4   :  { %15140 = vmatprep.subr.mxu0 %v25809_v12  ;;  %16084 = vmatprep.subr.mxu1 %v25816_v32  ;;  %v14943_v26 = vmul.f32 %v19824_v21, %v14939_v8 }
 0xef5   :  { %15130 = vmatprep.mubr.f32.mxu0 %v27727_v44  ;;  %16074 = vmatprep.mubr.f32.mxu1 %v27727_v44 }
 0xef6   :  { %14949 = vperm.xlu1 %19818, %v14943_v26   ;;  %v14945_v57 = vmul.f32 %v14943_v26, %v14923_v36 }
 0xef8   :  { %v14946_v17 = vsub.f32 %v14944_v2, %v14945_v57 }
 0xefa   :  { %14956 = vperm.xlu1 %19818, %v14946_v17   ;;  %15132 = vmatmul.mubr.f32.vlgmr.msra.gmra.mrb[38].mxu0 %v15045_v47 }
 0xefb   :  { %15143 = vmatpush1.msra.mxu0 %v25798_v60  ;;  %16076 = vmatmul.mubr.f32.vlgmr.msra.gmra.mrb[38].mxu1 %v15045_v47 }
 0xefc   :  { %16087 = vmatpush1.msra.mxu1 %v25806_v54  ;;  %15216 = vmatprep.subr.mxu0 %v25792_v13 }
 0xefd   :  { %16160 = vmatprep.subr.mxu1 %v25800_v34  ;;  %15206 = vmatprep.mubr.f32.mxu0 %v27727_v44 }
 0xefe   :  { %16150 = vmatprep.mubr.f32.mxu1 %v27727_v44 }
 0xf02   :  { %15209 = vmatmul.mubr.f32.vlgmr.msra.gmra.mrb[38].mxu0 %v15046_v11 }
 0xf03   :  { %15218 = vmatpush1.msra.mxu0 %v25782_v41  ;;  %16153 = vmatmul.mubr.f32.vlgmr.msra.gmra.mrb[38].mxu1 %v15046_v11 }
 0xf04   :  { %16162 = vmatpush1.msra.mxu1 %v25787_v49  ;;  %15294 = vmatprep.subr.mxu0 %v25825_v22 }
 0xf05   :  { %16238 = vmatprep.subr.mxu1 %v25828_v16  ;;  %15281 = vmatprep.mubr.f32.mxu0 %v27727_v44 }
 0xf06   :  { %16225 = vmatprep.mubr.f32.mxu1 %v27727_v44 }
 0xf0a   :  { %15285 = vmatmul.mubr.f32.vlgmr.msra.gmra.mrb[38].mxu0 %v15047_v9 }
 0xf0b   :  { %15298 = vmatpush1.msra.mxu0 %v25813_v43  ;;  %16229 = vmatmul.mubr.f32.vlgmr.msra.gmra.mrb[38].mxu1 %v15047_v9 }
 0xf0c   :  { %16242 = vmatpush1.msra.mxu1 %v25821_v14  ;;  %15370 = vmatprep.subr.mxu0 %v25792_v13  ;;  %v15443_v13 = vsel %vm1160_vm3, %v25968_v19, 0 }
 0xf0d   :  { %16314 = vmatprep.subr.mxu1 %v25800_v34  ;;  %15361 = vmatprep.mubr.f32.mxu0 %v27727_v44  ;;  %v26014_v60 = vand.u32 4294901760, %v15443_v13 }
 0xf0e   :  { %16305 = vmatprep.mubr.f32.mxu1 %v27727_v44 }
 0xf12   :  { %15363 = vmatmul.mubr.f32.vlgmr.msra.gmra.mrb[38].mxu0 %v15045_v47 }
 0xf13   :  { %15372 = vmatpush1.msra.mxu0 %v25782_v41  ;;  %16307 = vmatmul.mubr.f32.vlgmr.msra.gmra.mrb[38].mxu1 %v15045_v47  ;;  %v15513_v41 = vsub.f32 %v15443_v13, %v26014_v60 }
 0xf14   :  { %16316 = vmatpush1.msra.mxu1 %v25787_v49  ;;  %15435 = vmatprep.mubr.f32.mxu0 %v27727_v44 }
 0xf15   :  { %16379 = vmatprep.mubr.f32.mxu1 %v27727_v44  ;;  %v26017_v34 = vand.u32 4294901760, %v15513_v41 }
 0xf17   :  { %v15515_v22 = vsub.f32 %v15513_v41, %v26017_v34 }
 0xf19   :  { %v15516_v10 = vand.u32 4294901760, %v15515_v22 }
 0xf1a   :  { %15437 = vmatmul.mubr.f32.vlgmr.msra.gmra.mrb[38].mxu0 %v15045_v47 }
 0xf1b   :  { %16381 = vmatmul.mubr.f32.vlgmr.msra.gmra.mrb[38].mxu1 %v15045_v47  ;;  %15511 = vmatprep.mubr.f32.mxu0 %v27727_v44 }
 0xf1c   :  { %16453 = vmatprep.mubr.f32.mxu1 %v27727_v44 }
 0xf75   :  { %v14950_v49 = vpop.permute.xlu1 %14949 }
 0xf76   :  { %v14952_v54 = vmul.f32 %v14950_v49, %v25949_v18  ;;  %v14953_v12 = vmul.f32 %v14950_v49, %v25953_v1  ;;  %v14963_v43 = vmul.f32 %v14950_v49, %v25951_v63  ;;  %v14964_v32 = vmul.f32 %v14950_v49, %v25955_v31 }
 0xf79   :  { %v14957_v14 = vpop.permute.xlu1 %14956 }
 0xf7a   :  { %v14959_v16 = vadd.f32 %v14957_v14, %v14952_v54  ;;  %v14960_v33 = vadd.f32 %v14957_v14, %v14953_v12  ;;  %v14965_v20 = vadd.f32 %v14963_v43, %v14957_v14  ;;  %v14966_v5 = vadd.f32 %v14964_v32, %v14957_v14 }
 0xf7c   :  { %v14961_v37 = vmax.f32 %v14959_v16, 0.0  ;;  %v14962_v62 = vmax.f32 %v14960_v33, 0.0  ;;  %v14967_v30 = vmax.f32 %v14965_v20, 0.0  ;;  %v14968_v38 = vmax.f32 %v14966_v5, 0.0 }
 0xf7e   :  { %v15445_v24 = vand.u32 4294901760, %v14962_v62  ;;  %v15447_v18 = vand.u32 4294901760, %v14961_v37  ;;  %v16387_v52 = vand.u32 4294901760, %v14968_v38  ;;  %v16389_v1 = vand.u32 4294901760, %v14967_v30 }
 0xf80   :  { %v15524_v59 = vsub.f32 %v14962_v62, %v15445_v24  ;;  %v15530_v63 = vsub.f32 %v14961_v37, %v15447_v18  ;;  %v16466_v28 = vsub.f32 %v14968_v38, %v16387_v52  ;;  %v16472_v31 = vsub.f32 %v14967_v30, %v16389_v1  ;;  %15446 = vmatprep.subr.mxu0 %v15445_v24 }
 0xf81   :  { %16388 = vmatprep.subr.mxu1 %v16387_v52  ;;  %15448 = vmatpush1.msra.mxu0 %v15447_v18 }
 0xf82   :  { %16390 = vmatpush1.msra.mxu1 %v16389_v1  ;;  %15517 = vmatmul.mubr.f32.vlgmr.msra.gmra.mrb[38].mxu0 %v15516_v10  ;;  %v15525_v45 = vand.u32 4294901760, %v15524_v59  ;;  %v16467_v15 = vand.u32 4294901760, %v16466_v28  ;;  %v15531_v7 = vand.u32 4294901760, %v15530_v63  ;;  %v16473_v42 = vand.u32 4294901760, %v16472_v31 }
 0xf83   :  { %16459 = vmatmul.mubr.f32.vlgmr.msra.gmra.mrb[38].mxu1 %v15516_v10  ;;  %15597 = vmatprep.mubr.f32.mxu0 %v27727_v44 }
 0xf84   :  { %v15526_v36 = vsub.f32 %v15524_v59, %v15525_v45  ;;  %v16468_v50 = vsub.f32 %v16466_v28, %v16467_v15  ;;  %v15532_v25 = vsub.f32 %v15530_v63, %v15531_v7  ;;  %v16474_v58 = vsub.f32 %v16472_v31, %v16473_v42  ;;  %16539 = vmatprep.mubr.f32.mxu1 %v27727_v44 }
 0xf86   :  { %v15527_v46 = vand.u32 4294901760, %v15526_v36  ;;  %v16469_v27 = vand.u32 4294901760, %v16468_v50  ;;  %v15533_v40 = vand.u32 4294901760, %v15532_v25  ;;  %v16475_v23 = vand.u32 4294901760, %v16474_v58 }
 0xf88   :  { %15528 = vmatprep.subr.mxu0 %v15527_v46  ;;  %16470 = vmatprep.subr.mxu1 %v16469_v27 }
 0xf89   :  { %15534 = vmatpush1.msra.mxu0 %v15533_v40  ;;  %16476 = vmatpush1.msra.mxu1 %v16475_v23 }
 0xf8a   :  { %15599 = vmatmul.mubr.f32.vlgmr.msra.gmra.mrb[38].mxu0 %v26014_v60  ;;  %15607 = vmatprep.subr.mxu0 %v15524_v59 }
 0xf8b   :  { %16541 = vmatmul.mubr.f32.vlgmr.msra.gmra.mrb[38].mxu1 %v26014_v60  ;;  %16549 = vmatprep.subr.mxu1 %v16466_v28 }
 0xf8c   :  { %15610 = vmatpush1.msra.mxu0 %v15530_v63  ;;  %16552 = vmatpush1.msra.mxu1 %v16472_v31 }
 0xf8d   :  { %15683 = vmatprep.subr.mxu0 %v15445_v24  ;;  %16625 = vmatprep.subr.mxu1 %v16387_v52 }
 0xf8e   :  { %15673 = vmatprep.mubr.f32.mxu0 %v27727_v44  ;;  %16615 = vmatprep.mubr.f32.mxu1 %v27727_v44 }
 0xf92   :  { %15676 = vmatmul.mubr.f32.vlgmr.msra.gmra.mrb[38].mxu0 %v15513_v41 }
 0xf93   :  { %15685 = vmatpush1.msra.mxu0 %v15447_v18  ;;  %16618 = vmatmul.mubr.f32.vlgmr.msra.gmra.mrb[38].mxu1 %v15513_v41 }
 0xf94   :  { %16627 = vmatpush1.msra.mxu1 %v16389_v1  ;;  %15761 = vmatprep.subr.mxu0 %v15525_v45 }
 0xf95   :  { %16703 = vmatprep.subr.mxu1 %v16467_v15  ;;  %15748 = vmatprep.mubr.f32.mxu0 %v27727_v44 }
 0xf96   :  { %16690 = vmatprep.mubr.f32.mxu1 %v27727_v44 }
 0xf9a   :  { %15752 = vmatmul.mubr.f32.vlgmr.msra.gmra.mrb[38].mxu0 %v26017_v34 }
 0xf9b   :  { %15765 = vmatpush1.msra.mxu0 %v15531_v7  ;;  %16694 = vmatmul.mubr.f32.vlgmr.msra.gmra.mrb[38].mxu1 %v26017_v34 }
 0xf9c   :  { %16707 = vmatpush1.msra.mxu1 %v16473_v42  ;;  %15837 = vmatprep.subr.mxu0 %v15445_v24 }
 0xf9d   :  { %16779 = vmatprep.subr.mxu1 %v16387_v52  ;;  %15828 = vmatprep.mubr.f32.mxu0 %v27727_v44 }
 0xf9e   :  { %16770 = vmatprep.mubr.f32.mxu1 %v27727_v44 }
 0xfa2   :  { %15830 = vmatmul.mubr.f32.vlgmr.msra.gmra.mrb[38].mxu0 %v26014_v60 }
 0xfa3   :  { %15839 = vmatpush1.msra.mxu0 %v15447_v18  ;;  %16772 = vmatmul.mubr.f32.vlgmr.msra.gmra.mrb[38].mxu1 %v26014_v60 }
 0xfa4   :  { %16781 = vmatpush1.msra.mxu1 %v16389_v1  ;;  %15902 = vmatprep.mubr.f32.mxu0 %v27727_v44 }
 0xfa5   :  { %16844 = vmatprep.mubr.f32.mxu1 %v27727_v44 }
 0xfaa   :  { %15904 = vmatmul.mubr.f32.vlgmr.msra.gmra.mrb[38].mxu0 %v26014_v60 }
 0xfab   :  { %16846 = vmatmul.mubr.f32.vlgmr.msra.gmra.mrb[38].mxu1 %v26014_v60 }
0x107d   :  { %v15905_v48 = vpop.f32.mrb[38].mxu0 }
0x107e   :  { %v15915_v51 = vadd.f32 %v15913_v53, %v15905_v48  ;;  %v16847_v19 = vpop.f32.mrb[38].mxu1  ;;  %v15907_v56 = vpop.f32.mrb[39].mxu0 }
0x107f   :  { %v16852_v55 = vadd.f32 %v16847_v19, %v15913_v53  ;;  %v15916_v29 = vadd.f32 %v15913_v53, %v15907_v56  ;;  %v16849_v61 = vpop.f32.mrb[39].mxu1 }
0x1080   :  { %15917 = vst [vmem:[%s26078_s24] sm:$0xff] %v15915_v51  ;;  %v16853_v0 = vadd.f32 %v16849_v61, %v15913_v53 }
0x1081   :  { %17595 = vst [vmem:[%s26078_s24 + $0x10] sm:$0xff] %v16852_v55  ;;  %15918 = vst [vmem:[%s26078_s24 + $0x8] sm:$0xff] %v15916_v29 }
0x1082   :  { %17596 = vst [vmem:[%s26078_s24 + $0x18] sm:$0xff] %v16853_v0 }

</bundles_post_ra>
